<compile_context>
chip_gen: v6e
topology: v6e:2x2x1
jax: 0.10.0
libtpu: 0.0.40
codegen_flags: <defaults>
</compile_context>

<pallas_src>
import functools

import jax
import jax.numpy as jnp
from jax.experimental import pallas as pl
from jax.experimental.pallas import tpu as pltpu

BP = 8  # padded batch rows per time step (one full sublane group)


# ----------------------------------------------------------------------------
# Fused forward kernel
# ----------------------------------------------------------------------------
def tts_fused_kernel(x_ref, c1w_ref, c1b_ref, c2w_ref, c2b_ref,
                     ewih_ref, ewhh_ref, eb_ref,
                     dw_ref, db_ref, fcw_ref, fcb_ref,
                     out_ref, xproj_ref, *, Ty):
    f32 = jnp.float32
    bf16 = jnp.bfloat16

    R, _ = x_ref.shape                 # R = P * BP (P = Tx + 2 time slots)
    P = R // BP
    K1 = c1w_ref.shape[0]
    K2 = c2w_ref.shape[0]
    G = ewih_ref.shape[1]              # 4 * H   (= 256)
    HW = G // 2                        # paired-gate vreg width (= 128)
    H = G // 4                         # true hidden size (= 64)
    MW = fcw_ref.shape[1]              # padded mel width (= 128)
    L1 = P - K1 + 1                    # conv1 valid length
    L2 = L1 + 2 - K2 + 1               # conv2 valid length

    row = jax.lax.broadcasted_iota(jnp.int32, (R, 1), 0)

    # ---- Conv1d(k, padding=1) + ReLU via shift-and-accumulate ---------------
    # Slab convention: time step s occupies rows [s*BP, (s+1)*BP); s = 0 is the
    # left zero-pad row, s in [1, L] holds the valid sequence, the rest is 0.
    # (Dropout1d is identity at inference.)
    def conv_relu(x_f32, w_ref, b_ref, K, L_out):
        C_out = w_ref.shape[2]
        acc = jnp.zeros((R, C_out), f32)
        for k in range(K):
            shift = ((1 - k) * BP) % R          # out[s] += in[s - 1 + k] @ W[k]
            xs = x_f32 if shift == 0 else pltpu.roll(x_f32, shift, axis=0)
            acc = acc + jnp.dot(xs.astype(bf16), w_ref[k],
                                preferred_element_type=f32)
        y = jnp.maximum(acc + b_ref[...], 0.0)
        keep = (row >= BP) & (row < (L_out + 1) * BP)   # zero the pad/garbage rows
        return jnp.where(keep, y, 0.0)

    x1 = conv_relu(x_ref[...], c1w_ref, c1b_ref, K1, L1)    # (R, 32)
    x2 = conv_relu(x1, c2w_ref, c2b_ref, K2, L2)            # (R, 64)

    # ---- encoder: hoist x @ W_ih + b out of the recurrence (time-major) -----
    xv = x2[BP:(L2 + 1) * BP, :]                             # rows for t = 1..L2
    xproj_ref[...] = (jnp.dot(xv.astype(bf16), ewih_ref[...],
                              preferred_element_type=f32) + eb_ref[...])

    lane = jax.lax.broadcasted_iota(jnp.int32, (BP, HW), 1)
    is_g = lane < H                                          # [g | o] split mask

    # ---- LSTM cell on paired-gate vregs: [i|f] , [g|o] -----------------------
    def lstm_cell(gates, c_prev):
        g_if = gates[:, 0:HW]                                # [ i | f ]
        g_go = gates[:, HW:G]                                # [ g | o ]
        sig_if = 0.5 * (jnp.tanh(0.5 * g_if) + 1.0)          # [sig(i) | sig(f)]
        t_go = jnp.tanh(jnp.where(is_g, g_go, 0.5 * g_go))
        act_go = jnp.where(is_g, t_go, 0.5 * (t_go + 1.0))   # [tanh(g) | sig(o)]
        f_roll = pltpu.roll(sig_if, H, axis=1)               # [sig(f) | sig(i)]
        c_new = f_roll * c_prev + sig_if * act_go            # lanes < H valid
        o_roll = pltpu.roll(act_go, H, axis=1)               # [sig(o) | tanh(g)]
        h_new = o_roll * jnp.tanh(c_new)                     # lanes < H valid
        return h_new, c_new

    h = jnp.zeros((BP, HW), f32)
    c = jnp.zeros((BP, HW), f32)
    for t in range(L2):
        gates = (xproj_ref[t * BP:(t + 1) * BP, :] +
                 jnp.dot(h.astype(bf16), ewhh_ref[...],
                         preferred_element_type=f32))
        h, c = lstm_cell(gates, c)

    # ---- free-running decoder: ONE fused gate matmul per step ----------------
    db = jnp.broadcast_to(db_ref[...], (BP, G))              # hoisted once
    fcb = jnp.broadcast_to(fcb_ref[...], (BP, MW))           # hoisted once
    y_wide = jnp.zeros((BP, MW), f32)                        # torch.zeros(B,1,mel)
    outs = []
    for _ in range(Ty):
        din = jnp.concatenate([y_wide, h], axis=1).astype(bf16)   # (BP, MW+HW)
        gates = jnp.dot(din, dw_ref[...], preferred_element_type=f32) + db
        h, c = lstm_cell(gates, c)
        y_wide = (jnp.dot(h.astype(bf16), fcw_ref[...],
                          preferred_element_type=f32) + fcb)
        outs.append(y_wide)
    # single unmasked, lane-dense (BP, Ty*MW) store
    out_ref[...] = jnp.concatenate(outs, axis=1)


# ----------------------------------------------------------------------------
# Parameter construction: PyTorch-shaped weights + Pallas-friendly repacking
# ----------------------------------------------------------------------------
def init_params(key, vocab_size, embedding_dim, enc_out_size, mel_bins):
    E, H, M = embedding_dim, enc_out_size, mel_bins
    assert 2 * H == 128, "paired-gate packing assumes enc_out_size == 64"
    assert M <= 2 * H
    K1, C1, K2, C2 = 10, 32, 5, 64
    HW, G = 2 * H, 4 * H
    f32, bf16 = jnp.float32, jnp.bfloat16
    ks = jax.random.split(key, 16)

    def u(k, shape, scale):
        return jax.random.uniform(k, shape, jnp.float32, -scale, scale)

    raw = {
        "emb": jax.random.normal(ks[0], (vocab_size, E), f32),
        "conv1_w": u(ks[1], (C1, E, K1), 0.05),
        "conv1_b": u(ks[2], (C1,), 0.05),
        "conv2_w": u(ks[3], (C2, C1, K2), 0.07),
        "conv2_b": u(ks[4], (C2,), 0.07),
        "enc_wih": u(ks[5], (4 * H, C2), 0.1),
        "enc_whh": u(ks[6], (4 * H, H), 0.1),
        "enc_bih": u(ks[7], (4 * H,), 0.1),
        "enc_bhh": u(ks[8], (4 * H,), 0.1),
        "dec_wih": u(ks[9], (4 * H, M), 0.1),
        "dec_whh": u(ks[10], (4 * H, H), 0.1),
        "dec_bih": u(ks[11], (4 * H,), 0.1),
        "dec_bhh": u(ks[12], (4 * H,), 0.1),
        "fc_w": u(ks[13], (M, H), 0.1),
        "fc_b": u(ks[14], (M,), 0.1),
    }

    # torch gate order i,f,g,o is preserved; gate blocks are H=64 lanes each,
    # so the packed gate layout is [ i | f | g | o ] = two 128-lane vreg pairs.
    enc_wih = raw["enc_wih"].T                                         # (C2, G)
    enc_whh = jnp.zeros((HW, G), f32).at[:H, :].set(raw["enc_whh"].T)  # rows 64: zero
    enc_b = (raw["enc_bih"] + raw["enc_bhh"])[None, :]

    # decoder: stacked [W_ih ; W_hh] for one fused [y_wide | h] gate matmul
    dec_w = jnp.zeros((2 * HW, G), f32)
    dec_w = dec_w.at[:M, :].set(raw["dec_wih"].T)         # mel rows (0:32)
    dec_w = dec_w.at[HW:HW + H, :].set(raw["dec_whh"].T)  # hidden rows (128:192)
    dec_b = (raw["dec_bih"] + raw["dec_bhh"])[None, :]

    fc_w = jnp.zeros((HW, HW), f32).at[:H, :M].set(raw["fc_w"].T)
    fc_b = jnp.zeros((1, HW), f32).at[0, :M].set(raw["fc_b"])

    params = {
        "emb": raw["emb"],                                             # wrapper gather
        # Conv1d weight (C_out, C_in, K) -> per-tap matrices (K, C_in, C_out)
        "conv1_w": jnp.transpose(raw["conv1_w"], (2, 1, 0)).astype(bf16),
        "conv1_b": raw["conv1_b"][None, :],
        "conv2_w": jnp.transpose(raw["conv2_w"], (2, 1, 0)).astype(bf16),
        "conv2_b": raw["conv2_b"][None, :],
        "enc_wih": enc_wih.astype(bf16),
        "enc_whh": enc_whh.astype(bf16),
        "enc_b": enc_b,
        "dec_w": dec_w.astype(bf16),
        "dec_b": dec_b,
        "fc_w": fc_w.astype(bf16),
        "fc_b": fc_b,
    }
    return params, raw


# ----------------------------------------------------------------------------
# Wrapper: embedding gather + slab layout in XLA, one fused pallas_call
# ----------------------------------------------------------------------------
@jax.jit
def tts_simple_forward(params, tokens, y):
    # tokens: (B, Tx) int32 ; y: (B, mel_bins, Ty) float32 (shape only)
    B, Tx = tokens.shape
    M, Ty = y.shape[1], y.shape[2]
    assert B <= BP

    emb = jnp.take(params["emb"], tokens, axis=0)            # (B, Tx, E) gather hoisted
    E = emb.shape[-1]
    P = Tx + 2                                               # conv padding built in
    slab = jnp.zeros((P, BP, E), jnp.float32)
    slab = slab.at[1:Tx + 1, :B, :].set(jnp.transpose(emb, (1, 0, 2)))
    slab = slab.reshape(P * BP, E)                           # time-major, 8 rows/step

    K1 = params["conv1_w"].shape[0]
    K2 = params["conv2_w"].shape[0]
    L1 = P - K1 + 1
    L2 = L1 + 2 - K2 + 1
    G = params["enc_wih"].shape[1]
    MW = params["fc_w"].shape[1]

    vmem = pl.BlockSpec(memory_space=pltpu.MemorySpace.VMEM)
    out_wide = pl.pallas_call(
        functools.partial(tts_fused_kernel, Ty=Ty),
        out_shape=jax.ShapeDtypeStruct((BP, Ty * MW), jnp.float32),
        in_specs=[vmem] * 12,
        out_specs=vmem,
        scratch_shapes=[pltpu.VMEM((L2 * BP, G), jnp.float32)],
    )(slab,
      params["conv1_w"], params["conv1_b"],
      params["conv2_w"], params["conv2_b"],
      params["enc_wih"], params["enc_whh"], params["enc_b"],
      params["dec_w"], params["dec_b"],
      params["fc_w"], params["fc_b"])

    out = out_wide.reshape(BP, Ty, MW)[:B, :, :M]            # (B, Ty, mel)
    return jnp.transpose(out, (0, 2, 1))                     # (B, mel, Ty)


# ----------------------------------------------------------------------------
# Plain-JAX reference (mirrors the PyTorch module) for a correctness check
# ----------------------------------------------------------------------------
def reference_forward(raw, tokens, Ty):
    x = jnp.take(raw["emb"], tokens, axis=0)                 # (B, Tx, E)

    def conv1d_relu_ref(x_blc, w_oik, b_o):
        K = w_oik.shape[2]
        xp = jnp.pad(x_blc, ((0, 0), (1, 1), (0, 0)))
        L_out = xp.shape[1] - K + 1
        cols = jnp.stack([xp[:, k:k + L_out, :] for k in range(K)], axis=-1)
        out = jnp.einsum("blck,ock->blo", cols, w_oik) + b_o[None, None, :]
        return jnp.maximum(out, 0.0)

    x = conv1d_relu_ref(x, raw["conv1_w"], raw["conv1_b"])
    x = conv1d_relu_ref(x, raw["conv2_w"], raw["conv2_b"])

    B = tokens.shape[0]
    H = raw["enc_whh"].shape[1]
    M = raw["fc_w"].shape[0]

    def cell(h, c, xt, wih, whh, bih, bhh):
        gates = xt @ wih.T + h @ whh.T + bih + bhh
        i = jax.nn.sigmoid(gates[:, 0:H])
        f = jax.nn.sigmoid(gates[:, H:2 * H])
        g = jnp.tanh(gates[:, 2 * H:3 * H])
        o = jax.nn.sigmoid(gates[:, 3 * H:4 * H])
        c = f * c + i * g
        h = o * jnp.tanh(c)
        return h, c

    h = jnp.zeros((B, H), jnp.float32)
    c = jnp.zeros((B, H), jnp.float32)
    for t in range(x.shape[1]):
        h, c = cell(h, c, x[:, t, :], raw["enc_wih"], raw["enc_whh"],
                    raw["enc_bih"], raw["enc_bhh"])

    dec_in = jnp.zeros((B, M), jnp.float32)
    outs = []
    for _ in range(Ty):
        h, c = cell(h, c, dec_in, raw["dec_wih"], raw["dec_whh"],
                    raw["dec_bih"], raw["dec_bhh"])
        y_t = h @ raw["fc_w"].T + raw["fc_b"]
        outs.append(y_t)
        dec_in = y_t
    return jnp.transpose(jnp.stack(outs, axis=1), (0, 2, 1))  # (B, mel, Ty)


if __name__ == "__main__":
    vocab_size, embedding_dim, enc_out_size, mel_bins = 40, 32, 64, 32
    B, Tx, Ty = 2, 24, 8

    key = jax.random.PRNGKey(0)
    k_par, k_tok, k_y = jax.random.split(key, 3)
    params, raw = init_params(k_par, vocab_size, embedding_dim, enc_out_size,
                              mel_bins)
    tokens = jax.random.randint(k_tok, (B, Tx), 0, vocab_size, jnp.int32)
    y = jax.random.normal(k_y, (B, mel_bins, Ty), jnp.float32)

    out = tts_simple_forward(params, tokens, y)
    out = jax.block_until_ready(out)
    assert out.shape == (B, mel_bins, Ty), out.shape
    assert bool(jnp.all(jnp.isfinite(out)))

    ref = reference_forward(raw, tokens, Ty)
    err = float(jnp.max(jnp.abs(out - ref)))
    # bf16 MXU operands (f32 accumulation) across the 23-step recurrence:
    # observed error is O(1e-2); 5e-2 is the accept threshold.
    assert err < 5e-2, f"max |kernel - reference| = {err}"
    print("KERNEL_OK")
</pallas_src>

<mosaic_0001>
module attributes {stable_mosaic.version = 11 : i64} {
  func.func @tts_fused_kernel(%arg0: memref<208x32xf32, #tpu.memory_space<vmem>>, %arg1: memref<10x32x32xbf16, #tpu.memory_space<vmem>>, %arg2: memref<1x32xf32, #tpu.memory_space<vmem>>, %arg3: memref<5x32x64xbf16, #tpu.memory_space<vmem>>, %arg4: memref<1x64xf32, #tpu.memory_space<vmem>>, %arg5: memref<64x256xbf16, #tpu.memory_space<vmem>>, %arg6: memref<128x256xbf16, #tpu.memory_space<vmem>>, %arg7: memref<1x256xf32, #tpu.memory_space<vmem>>, %arg8: memref<256x256xbf16, #tpu.memory_space<vmem>>, %arg9: memref<1x256xf32, #tpu.memory_space<vmem>>, %arg10: memref<128x128xbf16, #tpu.memory_space<vmem>>, %arg11: memref<1x128xf32, #tpu.memory_space<vmem>>, %arg12: memref<8x1024xf32, #tpu.memory_space<vmem>>, %arg13: memref<120x256xf32, #tpu.memory_space<vmem>>) attributes {dimension_semantics = [], scalar_prefetch = 0 : i64, scratch_operands = 1 : i64, tpu.core_type = #tpu.core_type<tc>} {
    %0 = tpu.iota {dimensions = array<i32: 0>} : vector<208x1xi32>
    %c0 = arith.constant 0 : index
    %c0_0 = arith.constant 0 : index
    %1 = vector.load %arg0[%c0, %c0_0] : memref<208x32xf32, #tpu.memory_space<vmem>>, vector<208x32xf32>
    %cst = arith.constant 0.000000e+00 : f32
    %2 = vector.broadcast %cst : f32 to vector<208x32xf32>
    %c8_i32 = arith.constant 8 : i32
    %3 = tpu.dynamic_rotate %1 by %c8_i32 dim 0 : vector<208x32xf32>, i32 -> vector<208x32xf32>
    %4 = arith.truncf %3 : vector<208x32xf32> to vector<208x32xbf16>
    %c0_1 = arith.constant 0 : index
    %c0_2 = arith.constant 0 : index
    %c0_3 = arith.constant 0 : index
    %5 = vector.load %arg1[%c0_1, %c0_2, %c0_3] : memref<10x32x32xbf16, #tpu.memory_space<vmem>>, vector<1x32x32xbf16>
    %6 = vector.shape_cast %5 : vector<1x32x32xbf16> to vector<32x32xbf16>
    %cst_4 = arith.constant dense<0.000000e+00> : vector<208x32xf32>
    %7 = tpu.matmul %4, %6, %cst_4 {dimension_numbers = #tpu.dot_dimension_numbers<[1], [0], [0], [1], [0, 0, 1, 1], [], []>} : vector<208x32xbf16>, vector<32x32xbf16>, vector<208x32xf32> -> vector<208x32xf32>
    %8 = arith.addf %2, %7 : vector<208x32xf32>
    %9 = arith.truncf %1 : vector<208x32xf32> to vector<208x32xbf16>
    %c1 = arith.constant 1 : index
    %c0_5 = arith.constant 0 : index
    %c0_6 = arith.constant 0 : index
    %10 = vector.load %arg1[%c1, %c0_5, %c0_6] : memref<10x32x32xbf16, #tpu.memory_space<vmem>>, vector<1x32x32xbf16>
    %11 = vector.shape_cast %10 : vector<1x32x32xbf16> to vector<32x32xbf16>
    %cst_7 = arith.constant dense<0.000000e+00> : vector<208x32xf32>
    %12 = tpu.matmul %9, %11, %cst_7 {dimension_numbers = #tpu.dot_dimension_numbers<[1], [0], [0], [1], [0, 0, 1, 1], [], []>} : vector<208x32xbf16>, vector<32x32xbf16>, vector<208x32xf32> -> vector<208x32xf32>
    %13 = arith.addf %8, %12 : vector<208x32xf32>
    %c200_i32 = arith.constant 200 : i32
    %14 = tpu.dynamic_rotate %1 by %c200_i32 dim 0 : vector<208x32xf32>, i32 -> vector<208x32xf32>
    %15 = arith.truncf %14 : vector<208x32xf32> to vector<208x32xbf16>
    %c2 = arith.constant 2 : index
    %c0_8 = arith.constant 0 : index
    %c0_9 = arith.constant 0 : index
    %16 = vector.load %arg1[%c2, %c0_8, %c0_9] : memref<10x32x32xbf16, #tpu.memory_space<vmem>>, vector<1x32x32xbf16>
    %17 = vector.shape_cast %16 : vector<1x32x32xbf16> to vector<32x32xbf16>
    %cst_10 = arith.constant dense<0.000000e+00> : vector<208x32xf32>
    %18 = tpu.matmul %15, %17, %cst_10 {dimension_numbers = #tpu.dot_dimension_numbers<[1], [0], [0], [1], [0, 0, 1, 1], [], []>} : vector<208x32xbf16>, vector<32x32xbf16>, vector<208x32xf32> -> vector<208x32xf32>
    %19 = arith.addf %13, %18 : vector<208x32xf32>
    %c192_i32 = arith.constant 192 : i32
    %20 = tpu.dynamic_rotate %1 by %c192_i32 dim 0 : vector<208x32xf32>, i32 -> vector<208x32xf32>
    %21 = arith.truncf %20 : vector<208x32xf32> to vector<208x32xbf16>
    %c3 = arith.constant 3 : index
    %c0_11 = arith.constant 0 : index
    %c0_12 = arith.constant 0 : index
    %22 = vector.load %arg1[%c3, %c0_11, %c0_12] : memref<10x32x32xbf16, #tpu.memory_space<vmem>>, vector<1x32x32xbf16>
    %23 = vector.shape_cast %22 : vector<1x32x32xbf16> to vector<32x32xbf16>
    %cst_13 = arith.constant dense<0.000000e+00> : vector<208x32xf32>
    %24 = tpu.matmul %21, %23, %cst_13 {dimension_numbers = #tpu.dot_dimension_numbers<[1], [0], [0], [1], [0, 0, 1, 1], [], []>} : vector<208x32xbf16>, vector<32x32xbf16>, vector<208x32xf32> -> vector<208x32xf32>
    %25 = arith.addf %19, %24 : vector<208x32xf32>
    %c184_i32 = arith.constant 184 : i32
    %26 = tpu.dynamic_rotate %1 by %c184_i32 dim 0 : vector<208x32xf32>, i32 -> vector<208x32xf32>
    %27 = arith.truncf %26 : vector<208x32xf32> to vector<208x32xbf16>
    %c4 = arith.constant 4 : index
    %c0_14 = arith.constant 0 : index
    %c0_15 = arith.constant 0 : index
    %28 = vector.load %arg1[%c4, %c0_14, %c0_15] : memref<10x32x32xbf16, #tpu.memory_space<vmem>>, vector<1x32x32xbf16>
    %29 = vector.shape_cast %28 : vector<1x32x32xbf16> to vector<32x32xbf16>
    %cst_16 = arith.constant dense<0.000000e+00> : vector<208x32xf32>
    %30 = tpu.matmul %27, %29, %cst_16 {dimension_numbers = #tpu.dot_dimension_numbers<[1], [0], [0], [1], [0, 0, 1, 1], [], []>} : vector<208x32xbf16>, vector<32x32xbf16>, vector<208x32xf32> -> vector<208x32xf32>
    %31 = arith.addf %25, %30 : vector<208x32xf32>
    %c176_i32 = arith.constant 176 : i32
    %32 = tpu.dynamic_rotate %1 by %c176_i32 dim 0 : vector<208x32xf32>, i32 -> vector<208x32xf32>
    %33 = arith.truncf %32 : vector<208x32xf32> to vector<208x32xbf16>
    %c5 = arith.constant 5 : index
    %c0_17 = arith.constant 0 : index
    %c0_18 = arith.constant 0 : index
    %34 = vector.load %arg1[%c5, %c0_17, %c0_18] : memref<10x32x32xbf16, #tpu.memory_space<vmem>>, vector<1x32x32xbf16>
    %35 = vector.shape_cast %34 : vector<1x32x32xbf16> to vector<32x32xbf16>
    %cst_19 = arith.constant dense<0.000000e+00> : vector<208x32xf32>
    %36 = tpu.matmul %33, %35, %cst_19 {dimension_numbers = #tpu.dot_dimension_numbers<[1], [0], [0], [1], [0, 0, 1, 1], [], []>} : vector<208x32xbf16>, vector<32x32xbf16>, vector<208x32xf32> -> vector<208x32xf32>
    %37 = arith.addf %31, %36 : vector<208x32xf32>
    %c168_i32 = arith.constant 168 : i32
    %38 = tpu.dynamic_rotate %1 by %c168_i32 dim 0 : vector<208x32xf32>, i32 -> vector<208x32xf32>
    %39 = arith.truncf %38 : vector<208x32xf32> to vector<208x32xbf16>
    %c6 = arith.constant 6 : index
    %c0_20 = arith.constant 0 : index
    %c0_21 = arith.constant 0 : index
    %40 = vector.load %arg1[%c6, %c0_20, %c0_21] : memref<10x32x32xbf16, #tpu.memory_space<vmem>>, vector<1x32x32xbf16>
    %41 = vector.shape_cast %40 : vector<1x32x32xbf16> to vector<32x32xbf16>
    %cst_22 = arith.constant dense<0.000000e+00> : vector<208x32xf32>
    %42 = tpu.matmul %39, %41, %cst_22 {dimension_numbers = #tpu.dot_dimension_numbers<[1], [0], [0], [1], [0, 0, 1, 1], [], []>} : vector<208x32xbf16>, vector<32x32xbf16>, vector<208x32xf32> -> vector<208x32xf32>
    %43 = arith.addf %37, %42 : vector<208x32xf32>
    %c160_i32 = arith.constant 160 : i32
    %44 = tpu.dynamic_rotate %1 by %c160_i32 dim 0 : vector<208x32xf32>, i32 -> vector<208x32xf32>
    %45 = arith.truncf %44 : vector<208x32xf32> to vector<208x32xbf16>
    %c7 = arith.constant 7 : index
    %c0_23 = arith.constant 0 : index
    %c0_24 = arith.constant 0 : index
    %46 = vector.load %arg1[%c7, %c0_23, %c0_24] : memref<10x32x32xbf16, #tpu.memory_space<vmem>>, vector<1x32x32xbf16>
    %47 = vector.shape_cast %46 : vector<1x32x32xbf16> to vector<32x32xbf16>
    %cst_25 = arith.constant dense<0.000000e+00> : vector<208x32xf32>
    %48 = tpu.matmul %45, %47, %cst_25 {dimension_numbers = #tpu.dot_dimension_numbers<[1], [0], [0], [1], [0, 0, 1, 1], [], []>} : vector<208x32xbf16>, vector<32x32xbf16>, vector<208x32xf32> -> vector<208x32xf32>
    %49 = arith.addf %43, %48 : vector<208x32xf32>
    %c152_i32 = arith.constant 152 : i32
    %50 = tpu.dynamic_rotate %1 by %c152_i32 dim 0 : vector<208x32xf32>, i32 -> vector<208x32xf32>
    %51 = arith.truncf %50 : vector<208x32xf32> to vector<208x32xbf16>
    %c8 = arith.constant 8 : index
    %c0_26 = arith.constant 0 : index
    %c0_27 = arith.constant 0 : index
    %52 = vector.load %arg1[%c8, %c0_26, %c0_27] : memref<10x32x32xbf16, #tpu.memory_space<vmem>>, vector<1x32x32xbf16>
    %53 = vector.shape_cast %52 : vector<1x32x32xbf16> to vector<32x32xbf16>
    %cst_28 = arith.constant dense<0.000000e+00> : vector<208x32xf32>
    %54 = tpu.matmul %51, %53, %cst_28 {dimension_numbers = #tpu.dot_dimension_numbers<[1], [0], [0], [1], [0, 0, 1, 1], [], []>} : vector<208x32xbf16>, vector<32x32xbf16>, vector<208x32xf32> -> vector<208x32xf32>
    %55 = arith.addf %49, %54 : vector<208x32xf32>
    %c144_i32 = arith.constant 144 : i32
    %56 = tpu.dynamic_rotate %1 by %c144_i32 dim 0 : vector<208x32xf32>, i32 -> vector<208x32xf32>
    %57 = arith.truncf %56 : vector<208x32xf32> to vector<208x32xbf16>
    %c9 = arith.constant 9 : index
    %c0_29 = arith.constant 0 : index
    %c0_30 = arith.constant 0 : index
    %58 = vector.load %arg1[%c9, %c0_29, %c0_30] : memref<10x32x32xbf16, #tpu.memory_space<vmem>>, vector<1x32x32xbf16>
    %59 = vector.shape_cast %58 : vector<1x32x32xbf16> to vector<32x32xbf16>
    %cst_31 = arith.constant dense<0.000000e+00> : vector<208x32xf32>
    %60 = tpu.matmul %57, %59, %cst_31 {dimension_numbers = #tpu.dot_dimension_numbers<[1], [0], [0], [1], [0, 0, 1, 1], [], []>} : vector<208x32xbf16>, vector<32x32xbf16>, vector<208x32xf32> -> vector<208x32xf32>
    %61 = arith.addf %55, %60 : vector<208x32xf32>
    %c0_32 = arith.constant 0 : index
    %c0_33 = arith.constant 0 : index
    %62 = vector.load %arg2[%c0_32, %c0_33] : memref<1x32xf32, #tpu.memory_space<vmem>>, vector<1x32xf32>
    %63 = vector.broadcast %62 : vector<1x32xf32> to vector<208x32xf32>
    %64 = arith.addf %61, %63 : vector<208x32xf32>
    %cst_34 = arith.constant 0.000000e+00 : f32
    %65 = vector.broadcast %cst_34 : f32 to vector<208x32xf32>
    %66 = arith.maximumf %64, %65 : vector<208x32xf32>
    %c8_i32_35 = arith.constant 8 : i32
    %67 = vector.broadcast %c8_i32_35 : i32 to vector<208x1xi32>
    %68 = arith.cmpi sge, %0, %67 : vector<208x1xi32>
    %c144_i32_36 = arith.constant 144 : i32
    %69 = vector.broadcast %c144_i32_36 : i32 to vector<208x1xi32>
    %70 = arith.cmpi slt, %0, %69 : vector<208x1xi32>
    %71 = arith.andi %68, %70 : vector<208x1xi1>
    %cst_37 = arith.constant 0.000000e+00 : f32
    %72 = vector.shape_cast %71 : vector<208x1xi1> to vector<208x1xi1>
    %73 = vector.broadcast %72 : vector<208x1xi1> to vector<208x32xi1>
    %74 = vector.broadcast %cst_37 : f32 to vector<208x32xf32>
    %75 = arith.select %73, %66, %74 : vector<208x32xi1>, vector<208x32xf32>
    %cst_38 = arith.constant 0.000000e+00 : f32
    %76 = vector.broadcast %cst_38 : f32 to vector<208x64xf32>
    %c8_i32_39 = arith.constant 8 : i32
    %77 = tpu.dynamic_rotate %75 by %c8_i32_39 dim 0 : vector<208x32xf32>, i32 -> vector<208x32xf32>
    %78 = arith.truncf %77 : vector<208x32xf32> to vector<208x32xbf16>
    %c0_40 = arith.constant 0 : index
    %c0_41 = arith.constant 0 : index
    %c0_42 = arith.constant 0 : index
    %79 = vector.load %arg3[%c0_40, %c0_41, %c0_42] : memref<5x32x64xbf16, #tpu.memory_space<vmem>>, vector<1x32x64xbf16>
    %80 = vector.shape_cast %79 : vector<1x32x64xbf16> to vector<32x64xbf16>
    %cst_43 = arith.constant dense<0.000000e+00> : vector<208x64xf32>
    %81 = tpu.matmul %78, %80, %cst_43 {dimension_numbers = #tpu.dot_dimension_numbers<[1], [0], [0], [1], [0, 0, 1, 1], [], []>} : vector<208x32xbf16>, vector<32x64xbf16>, vector<208x64xf32> -> vector<208x64xf32>
    %82 = arith.addf %76, %81 : vector<208x64xf32>
    %83 = arith.truncf %75 : vector<208x32xf32> to vector<208x32xbf16>
    %c1_44 = arith.constant 1 : index
    %c0_45 = arith.constant 0 : index
    %c0_46 = arith.constant 0 : index
    %84 = vector.load %arg3[%c1_44, %c0_45, %c0_46] : memref<5x32x64xbf16, #tpu.memory_space<vmem>>, vector<1x32x64xbf16>
    %85 = vector.shape_cast %84 : vector<1x32x64xbf16> to vector<32x64xbf16>
    %cst_47 = arith.constant dense<0.000000e+00> : vector<208x64xf32>
    %86 = tpu.matmul %83, %85, %cst_47 {dimension_numbers = #tpu.dot_dimension_numbers<[1], [0], [0], [1], [0, 0, 1, 1], [], []>} : vector<208x32xbf16>, vector<32x64xbf16>, vector<208x64xf32> -> vector<208x64xf32>
    %87 = arith.addf %82, %86 : vector<208x64xf32>
    %c200_i32_48 = arith.constant 200 : i32
    %88 = tpu.dynamic_rotate %75 by %c200_i32_48 dim 0 : vector<208x32xf32>, i32 -> vector<208x32xf32>
    %89 = arith.truncf %88 : vector<208x32xf32> to vector<208x32xbf16>
    %c2_49 = arith.constant 2 : index
    %c0_50 = arith.constant 0 : index
    %c0_51 = arith.constant 0 : index
    %90 = vector.load %arg3[%c2_49, %c0_50, %c0_51] : memref<5x32x64xbf16, #tpu.memory_space<vmem>>, vector<1x32x64xbf16>
    %91 = vector.shape_cast %90 : vector<1x32x64xbf16> to vector<32x64xbf16>
    %cst_52 = arith.constant dense<0.000000e+00> : vector<208x64xf32>
    %92 = tpu.matmul %89, %91, %cst_52 {dimension_numbers = #tpu.dot_dimension_numbers<[1], [0], [0], [1], [0, 0, 1, 1], [], []>} : vector<208x32xbf16>, vector<32x64xbf16>, vector<208x64xf32> -> vector<208x64xf32>
    %93 = arith.addf %87, %92 : vector<208x64xf32>
    %c192_i32_53 = arith.constant 192 : i32
    %94 = tpu.dynamic_rotate %75 by %c192_i32_53 dim 0 : vector<208x32xf32>, i32 -> vector<208x32xf32>
    %95 = arith.truncf %94 : vector<208x32xf32> to vector<208x32xbf16>
    %c3_54 = arith.constant 3 : index
    %c0_55 = arith.constant 0 : index
    %c0_56 = arith.constant 0 : index
    %96 = vector.load %arg3[%c3_54, %c0_55, %c0_56] : memref<5x32x64xbf16, #tpu.memory_space<vmem>>, vector<1x32x64xbf16>
    %97 = vector.shape_cast %96 : vector<1x32x64xbf16> to vector<32x64xbf16>
    %cst_57 = arith.constant dense<0.000000e+00> : vector<208x64xf32>
    %98 = tpu.matmul %95, %97, %cst_57 {dimension_numbers = #tpu.dot_dimension_numbers<[1], [0], [0], [1], [0, 0, 1, 1], [], []>} : vector<208x32xbf16>, vector<32x64xbf16>, vector<208x64xf32> -> vector<208x64xf32>
    %99 = arith.addf %93, %98 : vector<208x64xf32>
    %c184_i32_58 = arith.constant 184 : i32
    %100 = tpu.dynamic_rotate %75 by %c184_i32_58 dim 0 : vector<208x32xf32>, i32 -> vector<208x32xf32>
    %101 = arith.truncf %100 : vector<208x32xf32> to vector<208x32xbf16>
    %c4_59 = arith.constant 4 : index
    %c0_60 = arith.constant 0 : index
    %c0_61 = arith.constant 0 : index
    %102 = vector.load %arg3[%c4_59, %c0_60, %c0_61] : memref<5x32x64xbf16, #tpu.memory_space<vmem>>, vector<1x32x64xbf16>
    %103 = vector.shape_cast %102 : vector<1x32x64xbf16> to vector<32x64xbf16>
    %cst_62 = arith.constant dense<0.000000e+00> : vector<208x64xf32>
    %104 = tpu.matmul %101, %103, %cst_62 {dimension_numbers = #tpu.dot_dimension_numbers<[1], [0], [0], [1], [0, 0, 1, 1], [], []>} : vector<208x32xbf16>, vector<32x64xbf16>, vector<208x64xf32> -> vector<208x64xf32>
    %105 = arith.addf %99, %104 : vector<208x64xf32>
    %c0_63 = arith.constant 0 : index
    %c0_64 = arith.constant 0 : index
    %106 = vector.load %arg4[%c0_63, %c0_64] : memref<1x64xf32, #tpu.memory_space<vmem>>, vector<1x64xf32>
    %107 = vector.broadcast %106 : vector<1x64xf32> to vector<208x64xf32>
    %108 = arith.addf %105, %107 : vector<208x64xf32>
    %cst_65 = arith.constant 0.000000e+00 : f32
    %109 = vector.broadcast %cst_65 : f32 to vector<208x64xf32>
    %110 = arith.maximumf %108, %109 : vector<208x64xf32>
    %c8_i32_66 = arith.constant 8 : i32
    %111 = vector.broadcast %c8_i32_66 : i32 to vector<208x1xi32>
    %112 = arith.cmpi sge, %0, %111 : vector<208x1xi32>
    %c128_i32 = arith.constant 128 : i32
    %113 = vector.broadcast %c128_i32 : i32 to vector<208x1xi32>
    %114 = arith.cmpi slt, %0, %113 : vector<208x1xi32>
    %115 = arith.andi %112, %114 : vector<208x1xi1>
    %cst_67 = arith.constant 0.000000e+00 : f32
    %116 = vector.shape_cast %115 : vector<208x1xi1> to vector<208x1xi1>
    %117 = vector.broadcast %116 : vector<208x1xi1> to vector<208x64xi1>
    %118 = vector.broadcast %cst_67 : f32 to vector<208x64xf32>
    %119 = arith.select %117, %110, %118 : vector<208x64xi1>, vector<208x64xf32>
    %120 = vector.extract_strided_slice %119 {offsets = [8, 0], sizes = [120, 64], strides = [1, 1]} : vector<208x64xf32> to vector<120x64xf32>
    %121 = arith.truncf %120 : vector<120x64xf32> to vector<120x64xbf16>
    %c0_68 = arith.constant 0 : index
    %c0_69 = arith.constant 0 : index
    %122 = vector.load %arg5[%c0_68, %c0_69] : memref<64x256xbf16, #tpu.memory_space<vmem>>, vector<64x256xbf16>
    %cst_70 = arith.constant dense<0.000000e+00> : vector<120x256xf32>
    %123 = tpu.matmul %121, %122, %cst_70 {dimension_numbers = #tpu.dot_dimension_numbers<[1], [0], [0], [1], [0, 0, 1, 1], [], []>} : vector<120x64xbf16>, vector<64x256xbf16>, vector<120x256xf32> -> vector<120x256xf32>
    %c0_71 = arith.constant 0 : index
    %c0_72 = arith.constant 0 : index
    %124 = vector.load %arg7[%c0_71, %c0_72] : memref<1x256xf32, #tpu.memory_space<vmem>>, vector<1x256xf32>
    %125 = vector.broadcast %124 : vector<1x256xf32> to vector<120x256xf32>
    %126 = arith.addf %123, %125 : vector<120x256xf32>
    %c0_73 = arith.constant 0 : index
    %c0_74 = arith.constant 0 : index
    %127 = vector.load %arg13[%c0_73, %c0_74] : memref<120x256xf32, #tpu.memory_space<vmem>>, vector<120x256xf32>
    tpu.vector_store %arg13[%c0_73, %c0_74], %126 {strides = array<i32>} : memref<120x256xf32, #tpu.memory_space<vmem>>, vector<120x256xf32>,
    %128 = tpu.iota {dimensions = array<i32: 1>} : vector<8x128xi32>
    %c64_i32 = arith.constant 64 : i32
    %129 = vector.broadcast %c64_i32 : i32 to vector<8x128xi32>
    %130 = arith.cmpi slt, %128, %129 : vector<8x128xi32>
    %cst_75 = arith.constant 0.000000e+00 : f32
    %131 = vector.broadcast %cst_75 : f32 to vector<8x128xf32>
    %cst_76 = arith.constant 0.000000e+00 : f32
    %132 = vector.broadcast %cst_76 : f32 to vector<8x128xf32>
    %c0_77 = arith.constant 0 : index
    %c0_78 = arith.constant 0 : index
    %133 = vector.load %arg13[%c0_77, %c0_78] : memref<120x256xf32, #tpu.memory_space<vmem>>, vector<8x256xf32>
    %134 = arith.truncf %131 : vector<8x128xf32> to vector<8x128xbf16>
    %c0_79 = arith.constant 0 : index
    %c0_80 = arith.constant 0 : index
    %135 = vector.load %arg6[%c0_79, %c0_80] : memref<128x256xbf16, #tpu.memory_space<vmem>>, vector<128x256xbf16>
    %cst_81 = arith.constant dense<0.000000e+00> : vector<8x256xf32>
    %136 = tpu.matmul %134, %135, %cst_81 {dimension_numbers = #tpu.dot_dimension_numbers<[1], [0], [0], [1], [0, 0, 1, 1], [], []>} : vector<8x128xbf16>, vector<128x256xbf16>, vector<8x256xf32> -> vector<8x256xf32>
    %137 = arith.addf %133, %136 : vector<8x256xf32>
    %138 = vector.extract_strided_slice %137 {offsets = [0, 0], sizes = [8, 128], strides = [1, 1]} : vector<8x256xf32> to vector<8x128xf32>
    %139 = vector.extract_strided_slice %137 {offsets = [0, 128], sizes = [8, 128], strides = [1, 1]} : vector<8x256xf32> to vector<8x128xf32>
    %cst_82 = arith.constant 5.000000e-01 : f32
    %140 = vector.broadcast %cst_82 : f32 to vector<8x128xf32>
    %141 = arith.mulf %140, %138 : vector<8x128xf32>
    %142 = math.tanh %141 : vector<8x128xf32>
    %cst_83 = arith.constant 1.000000e+00 : f32
    %143 = vector.broadcast %cst_83 : f32 to vector<8x128xf32>
    %144 = arith.addf %142, %143 : vector<8x128xf32>
    %cst_84 = arith.constant 5.000000e-01 : f32
    %145 = vector.broadcast %cst_84 : f32 to vector<8x128xf32>
    %146 = arith.mulf %145, %144 : vector<8x128xf32>
    %cst_85 = arith.constant 5.000000e-01 : f32
    %147 = vector.broadcast %cst_85 : f32 to vector<8x128xf32>
    %148 = arith.mulf %147, %139 : vector<8x128xf32>
    %149 = arith.select %130, %139, %148 : vector<8x128xi1>, vector<8x128xf32>
    %150 = math.tanh %149 : vector<8x128xf32>
    %cst_86 = arith.constant 1.000000e+00 : f32
    %151 = vector.broadcast %cst_86 : f32 to vector<8x128xf32>
    %152 = arith.addf %150, %151 : vector<8x128xf32>
    %cst_87 = arith.constant 5.000000e-01 : f32
    %153 = vector.broadcast %cst_87 : f32 to vector<8x128xf32>
    %154 = arith.mulf %153, %152 : vector<8x128xf32>
    %155 = arith.select %130, %150, %154 : vector<8x128xi1>, vector<8x128xf32>
    %c64_i32_88 = arith.constant 64 : i32
    %156 = tpu.dynamic_rotate %146 by %c64_i32_88 dim 1 : vector<8x128xf32>, i32 -> vector<8x128xf32>
    %157 = arith.mulf %156, %132 : vector<8x128xf32>
    %158 = arith.mulf %146, %155 : vector<8x128xf32>
    %159 = arith.addf %157, %158 : vector<8x128xf32>
    %c64_i32_89 = arith.constant 64 : i32
    %160 = tpu.dynamic_rotate %155 by %c64_i32_89 dim 1 : vector<8x128xf32>, i32 -> vector<8x128xf32>
    %161 = math.tanh %159 : vector<8x128xf32>
    %162 = arith.mulf %160, %161 : vector<8x128xf32>
    %c8_90 = arith.constant 8 : index
    %c0_91 = arith.constant 0 : index
    %163 = vector.load %arg13[%c8_90, %c0_91] : memref<120x256xf32, #tpu.memory_space<vmem>>, vector<8x256xf32>
    %164 = arith.truncf %162 : vector<8x128xf32> to vector<8x128xbf16>
    %c0_92 = arith.constant 0 : index
    %c0_93 = arith.constant 0 : index
    %165 = vector.load %arg6[%c0_92, %c0_93] : memref<128x256xbf16, #tpu.memory_space<vmem>>, vector<128x256xbf16>
    %cst_94 = arith.constant dense<0.000000e+00> : vector<8x256xf32>
    %166 = tpu.matmul %164, %165, %cst_94 {dimension_numbers = #tpu.dot_dimension_numbers<[1], [0], [0], [1], [0, 0, 1, 1], [], []>} : vector<8x128xbf16>, vector<128x256xbf16>, vector<8x256xf32> -> vector<8x256xf32>
    %167 = arith.addf %163, %166 : vector<8x256xf32>
    %168 = vector.extract_strided_slice %167 {offsets = [0, 0], sizes = [8, 128], strides = [1, 1]} : vector<8x256xf32> to vector<8x128xf32>
    %169 = vector.extract_strided_slice %167 {offsets = [0, 128], sizes = [8, 128], strides = [1, 1]} : vector<8x256xf32> to vector<8x128xf32>
    %cst_95 = arith.constant 5.000000e-01 : f32
    %170 = vector.broadcast %cst_95 : f32 to vector<8x128xf32>
    %171 = arith.mulf %170, %168 : vector<8x128xf32>
    %172 = math.tanh %171 : vector<8x128xf32>
    %cst_96 = arith.constant 1.000000e+00 : f32
    %173 = vector.broadcast %cst_96 : f32 to vector<8x128xf32>
    %174 = arith.addf %172, %173 : vector<8x128xf32>
    %cst_97 = arith.constant 5.000000e-01 : f32
    %175 = vector.broadcast %cst_97 : f32 to vector<8x128xf32>
    %176 = arith.mulf %175, %174 : vector<8x128xf32>
    %cst_98 = arith.constant 5.000000e-01 : f32
    %177 = vector.broadcast %cst_98 : f32 to vector<8x128xf32>
    %178 = arith.mulf %177, %169 : vector<8x128xf32>
    %179 = arith.select %130, %169, %178 : vector<8x128xi1>, vector<8x128xf32>
    %180 = math.tanh %179 : vector<8x128xf32>
    %cst_99 = arith.constant 1.000000e+00 : f32
    %181 = vector.broadcast %cst_99 : f32 to vector<8x128xf32>
    %182 = arith.addf %180, %181 : vector<8x128xf32>
    %cst_100 = arith.constant 5.000000e-01 : f32
    %183 = vector.broadcast %cst_100 : f32 to vector<8x128xf32>
    %184 = arith.mulf %183, %182 : vector<8x128xf32>
    %185 = arith.select %130, %180, %184 : vector<8x128xi1>, vector<8x128xf32>
    %c64_i32_101 = arith.constant 64 : i32
    %186 = tpu.dynamic_rotate %176 by %c64_i32_101 dim 1 : vector<8x128xf32>, i32 -> vector<8x128xf32>
    %187 = arith.mulf %186, %159 : vector<8x128xf32>
    %188 = arith.mulf %176, %185 : vector<8x128xf32>
    %189 = arith.addf %187, %188 : vector<8x128xf32>
    %c64_i32_102 = arith.constant 64 : i32
    %190 = tpu.dynamic_rotate %185 by %c64_i32_102 dim 1 : vector<8x128xf32>, i32 -> vector<8x128xf32>
    %191 = math.tanh %189 : vector<8x128xf32>
    %192 = arith.mulf %190, %191 : vector<8x128xf32>
    %c16 = arith.constant 16 : index
    %c0_103 = arith.constant 0 : index
    %193 = vector.load %arg13[%c16, %c0_103] : memref<120x256xf32, #tpu.memory_space<vmem>>, vector<8x256xf32>
    %194 = arith.truncf %192 : vector<8x128xf32> to vector<8x128xbf16>
    %c0_104 = arith.constant 0 : index
    %c0_105 = arith.constant 0 : index
    %195 = vector.load %arg6[%c0_104, %c0_105] : memref<128x256xbf16, #tpu.memory_space<vmem>>, vector<128x256xbf16>
    %cst_106 = arith.constant dense<0.000000e+00> : vector<8x256xf32>
    %196 = tpu.matmul %194, %195, %cst_106 {dimension_numbers = #tpu.dot_dimension_numbers<[1], [0], [0], [1], [0, 0, 1, 1], [], []>} : vector<8x128xbf16>, vector<128x256xbf16>, vector<8x256xf32> -> vector<8x256xf32>
    %197 = arith.addf %193, %196 : vector<8x256xf32>
    %198 = vector.extract_strided_slice %197 {offsets = [0, 0], sizes = [8, 128], strides = [1, 1]} : vector<8x256xf32> to vector<8x128xf32>
    %199 = vector.extract_strided_slice %197 {offsets = [0, 128], sizes = [8, 128], strides = [1, 1]} : vector<8x256xf32> to vector<8x128xf32>
    %cst_107 = arith.constant 5.000000e-01 : f32
    %200 = vector.broadcast %cst_107 : f32 to vector<8x128xf32>
    %201 = arith.mulf %200, %198 : vector<8x128xf32>
    %202 = math.tanh %201 : vector<8x128xf32>
    %cst_108 = arith.constant 1.000000e+00 : f32
    %203 = vector.broadcast %cst_108 : f32 to vector<8x128xf32>
    %204 = arith.addf %202, %203 : vector<8x128xf32>
    %cst_109 = arith.constant 5.000000e-01 : f32
    %205 = vector.broadcast %cst_109 : f32 to vector<8x128xf32>
    %206 = arith.mulf %205, %204 : vector<8x128xf32>
    %cst_110 = arith.constant 5.000000e-01 : f32
    %207 = vector.broadcast %cst_110 : f32 to vector<8x128xf32>
    %208 = arith.mulf %207, %199 : vector<8x128xf32>
    %209 = arith.select %130, %199, %208 : vector<8x128xi1>, vector<8x128xf32>
    %210 = math.tanh %209 : vector<8x128xf32>
    %cst_111 = arith.constant 1.000000e+00 : f32
    %211 = vector.broadcast %cst_111 : f32 to vector<8x128xf32>
    %212 = arith.addf %210, %211 : vector<8x128xf32>
    %cst_112 = arith.constant 5.000000e-01 : f32
    %213 = vector.broadcast %cst_112 : f32 to vector<8x128xf32>
    %214 = arith.mulf %213, %212 : vector<8x128xf32>
    %215 = arith.select %130, %210, %214 : vector<8x128xi1>, vector<8x128xf32>
    %c64_i32_113 = arith.constant 64 : i32
    %216 = tpu.dynamic_rotate %206 by %c64_i32_113 dim 1 : vector<8x128xf32>, i32 -> vector<8x128xf32>
    %217 = arith.mulf %216, %189 : vector<8x128xf32>
    %218 = arith.mulf %206, %215 : vector<8x128xf32>
    %219 = arith.addf %217, %218 : vector<8x128xf32>
    %c64_i32_114 = arith.constant 64 : i32
    %220 = tpu.dynamic_rotate %215 by %c64_i32_114 dim 1 : vector<8x128xf32>, i32 -> vector<8x128xf32>
    %221 = math.tanh %219 : vector<8x128xf32>
    %222 = arith.mulf %220, %221 : vector<8x128xf32>
    %c24 = arith.constant 24 : index
    %c0_115 = arith.constant 0 : index
    %223 = vector.load %arg13[%c24, %c0_115] : memref<120x256xf32, #tpu.memory_space<vmem>>, vector<8x256xf32>
    %224 = arith.truncf %222 : vector<8x128xf32> to vector<8x128xbf16>
    %c0_116 = arith.constant 0 : index
    %c0_117 = arith.constant 0 : index
    %225 = vector.load %arg6[%c0_116, %c0_117] : memref<128x256xbf16, #tpu.memory_space<vmem>>, vector<128x256xbf16>
    %cst_118 = arith.constant dense<0.000000e+00> : vector<8x256xf32>
    %226 = tpu.matmul %224, %225, %cst_118 {dimension_numbers = #tpu.dot_dimension_numbers<[1], [0], [0], [1], [0, 0, 1, 1], [], []>} : vector<8x128xbf16>, vector<128x256xbf16>, vector<8x256xf32> -> vector<8x256xf32>
    %227 = arith.addf %223, %226 : vector<8x256xf32>
    %228 = vector.extract_strided_slice %227 {offsets = [0, 0], sizes = [8, 128], strides = [1, 1]} : vector<8x256xf32> to vector<8x128xf32>
    %229 = vector.extract_strided_slice %227 {offsets = [0, 128], sizes = [8, 128], strides = [1, 1]} : vector<8x256xf32> to vector<8x128xf32>
    %cst_119 = arith.constant 5.000000e-01 : f32
    %230 = vector.broadcast %cst_119 : f32 to vector<8x128xf32>
    %231 = arith.mulf %230, %228 : vector<8x128xf32>
    %232 = math.tanh %231 : vector<8x128xf32>
    %cst_120 = arith.constant 1.000000e+00 : f32
    %233 = vector.broadcast %cst_120 : f32 to vector<8x128xf32>
    %234 = arith.addf %232, %233 : vector<8x128xf32>
    %cst_121 = arith.constant 5.000000e-01 : f32
    %235 = vector.broadcast %cst_121 : f32 to vector<8x128xf32>
    %236 = arith.mulf %235, %234 : vector<8x128xf32>
    %cst_122 = arith.constant 5.000000e-01 : f32
    %237 = vector.broadcast %cst_122 : f32 to vector<8x128xf32>
    %238 = arith.mulf %237, %229 : vector<8x128xf32>
    %239 = arith.select %130, %229, %238 : vector<8x128xi1>, vector<8x128xf32>
    %240 = math.tanh %239 : vector<8x128xf32>
    %cst_123 = arith.constant 1.000000e+00 : f32
    %241 = vector.broadcast %cst_123 : f32 to vector<8x128xf32>
    %242 = arith.addf %240, %241 : vector<8x128xf32>
    %cst_124 = arith.constant 5.000000e-01 : f32
    %243 = vector.broadcast %cst_124 : f32 to vector<8x128xf32>
    %244 = arith.mulf %243, %242 : vector<8x128xf32>
    %245 = arith.select %130, %240, %244 : vector<8x128xi1>, vector<8x128xf32>
    %c64_i32_125 = arith.constant 64 : i32
    %246 = tpu.dynamic_rotate %236 by %c64_i32_125 dim 1 : vector<8x128xf32>, i32 -> vector<8x128xf32>
    %247 = arith.mulf %246, %219 : vector<8x128xf32>
    %248 = arith.mulf %236, %245 : vector<8x128xf32>
    %249 = arith.addf %247, %248 : vector<8x128xf32>
    %c64_i32_126 = arith.constant 64 : i32
    %250 = tpu.dynamic_rotate %245 by %c64_i32_126 dim 1 : vector<8x128xf32>, i32 -> vector<8x128xf32>
    %251 = math.tanh %249 : vector<8x128xf32>
    %252 = arith.mulf %250, %251 : vector<8x128xf32>
    %c32 = arith.constant 32 : index
    %c0_127 = arith.constant 0 : index
    %253 = vector.load %arg13[%c32, %c0_127] : memref<120x256xf32, #tpu.memory_space<vmem>>, vector<8x256xf32>
    %254 = arith.truncf %252 : vector<8x128xf32> to vector<8x128xbf16>
    %c0_128 = arith.constant 0 : index
    %c0_129 = arith.constant 0 : index
    %255 = vector.load %arg6[%c0_128, %c0_129] : memref<128x256xbf16, #tpu.memory_space<vmem>>, vector<128x256xbf16>
    %cst_130 = arith.constant dense<0.000000e+00> : vector<8x256xf32>
    %256 = tpu.matmul %254, %255, %cst_130 {dimension_numbers = #tpu.dot_dimension_numbers<[1], [0], [0], [1], [0, 0, 1, 1], [], []>} : vector<8x128xbf16>, vector<128x256xbf16>, vector<8x256xf32> -> vector<8x256xf32>
    %257 = arith.addf %253, %256 : vector<8x256xf32>
    %258 = vector.extract_strided_slice %257 {offsets = [0, 0], sizes = [8, 128], strides = [1, 1]} : vector<8x256xf32> to vector<8x128xf32>
    %259 = vector.extract_strided_slice %257 {offsets = [0, 128], sizes = [8, 128], strides = [1, 1]} : vector<8x256xf32> to vector<8x128xf32>
    %cst_131 = arith.constant 5.000000e-01 : f32
    %260 = vector.broadcast %cst_131 : f32 to vector<8x128xf32>
    %261 = arith.mulf %260, %258 : vector<8x128xf32>
    %262 = math.tanh %261 : vector<8x128xf32>
    %cst_132 = arith.constant 1.000000e+00 : f32
    %263 = vector.broadcast %cst_132 : f32 to vector<8x128xf32>
    %264 = arith.addf %262, %263 : vector<8x128xf32>
    %cst_133 = arith.constant 5.000000e-01 : f32
    %265 = vector.broadcast %cst_133 : f32 to vector<8x128xf32>
    %266 = arith.mulf %265, %264 : vector<8x128xf32>
    %cst_134 = arith.constant 5.000000e-01 : f32
    %267 = vector.broadcast %cst_134 : f32 to vector<8x128xf32>
    %268 = arith.mulf %267, %259 : vector<8x128xf32>
    %269 = arith.select %130, %259, %268 : vector<8x128xi1>, vector<8x128xf32>
    %270 = math.tanh %269 : vector<8x128xf32>
    %cst_135 = arith.constant 1.000000e+00 : f32
    %271 = vector.broadcast %cst_135 : f32 to vector<8x128xf32>
    %272 = arith.addf %270, %271 : vector<8x128xf32>
    %cst_136 = arith.constant 5.000000e-01 : f32
    %273 = vector.broadcast %cst_136 : f32 to vector<8x128xf32>
    %274 = arith.mulf %273, %272 : vector<8x128xf32>
    %275 = arith.select %130, %270, %274 : vector<8x128xi1>, vector<8x128xf32>
    %c64_i32_137 = arith.constant 64 : i32
    %276 = tpu.dynamic_rotate %266 by %c64_i32_137 dim 1 : vector<8x128xf32>, i32 -> vector<8x128xf32>
    %277 = arith.mulf %276, %249 : vector<8x128xf32>
    %278 = arith.mulf %266, %275 : vector<8x128xf32>
    %279 = arith.addf %277, %278 : vector<8x128xf32>
    %c64_i32_138 = arith.constant 64 : i32
    %280 = tpu.dynamic_rotate %275 by %c64_i32_138 dim 1 : vector<8x128xf32>, i32 -> vector<8x128xf32>
    %281 = math.tanh %279 : vector<8x128xf32>
    %282 = arith.mulf %280, %281 : vector<8x128xf32>
    %c40 = arith.constant 40 : index
    %c0_139 = arith.constant 0 : index
    %283 = vector.load %arg13[%c40, %c0_139] : memref<120x256xf32, #tpu.memory_space<vmem>>, vector<8x256xf32>
    %284 = arith.truncf %282 : vector<8x128xf32> to vector<8x128xbf16>
    %c0_140 = arith.constant 0 : index
    %c0_141 = arith.constant 0 : index
    %285 = vector.load %arg6[%c0_140, %c0_141] : memref<128x256xbf16, #tpu.memory_space<vmem>>, vector<128x256xbf16>
    %cst_142 = arith.constant dense<0.000000e+00> : vector<8x256xf32>
    %286 = tpu.matmul %284, %285, %cst_142 {dimension_numbers = #tpu.dot_dimension_numbers<[1], [0], [0], [1], [0, 0, 1, 1], [], []>} : vector<8x128xbf16>, vector<128x256xbf16>, vector<8x256xf32> -> vector<8x256xf32>
    %287 = arith.addf %283, %286 : vector<8x256xf32>
    %288 = vector.extract_strided_slice %287 {offsets = [0, 0], sizes = [8, 128], strides = [1, 1]} : vector<8x256xf32> to vector<8x128xf32>
    %289 = vector.extract_strided_slice %287 {offsets = [0, 128], sizes = [8, 128], strides = [1, 1]} : vector<8x256xf32> to vector<8x128xf32>
    %cst_143 = arith.constant 5.000000e-01 : f32
    %290 = vector.broadcast %cst_143 : f32 to vector<8x128xf32>
    %291 = arith.mulf %290, %288 : vector<8x128xf32>
    %292 = math.tanh %291 : vector<8x128xf32>
    %cst_144 = arith.constant 1.000000e+00 : f32
    %293 = vector.broadcast %cst_144 : f32 to vector<8x128xf32>
    %294 = arith.addf %292, %293 : vector<8x128xf32>
    %cst_145 = arith.constant 5.000000e-01 : f32
    %295 = vector.broadcast %cst_145 : f32 to vector<8x128xf32>
    %296 = arith.mulf %295, %294 : vector<8x128xf32>
    %cst_146 = arith.constant 5.000000e-01 : f32
    %297 = vector.broadcast %cst_146 : f32 to vector<8x128xf32>
    %298 = arith.mulf %297, %289 : vector<8x128xf32>
    %299 = arith.select %130, %289, %298 : vector<8x128xi1>, vector<8x128xf32>
    %300 = math.tanh %299 : vector<8x128xf32>
    %cst_147 = arith.constant 1.000000e+00 : f32
    %301 = vector.broadcast %cst_147 : f32 to vector<8x128xf32>
    %302 = arith.addf %300, %301 : vector<8x128xf32>
    %cst_148 = arith.constant 5.000000e-01 : f32
    %303 = vector.broadcast %cst_148 : f32 to vector<8x128xf32>
    %304 = arith.mulf %303, %302 : vector<8x128xf32>
    %305 = arith.select %130, %300, %304 : vector<8x128xi1>, vector<8x128xf32>
    %c64_i32_149 = arith.constant 64 : i32
    %306 = tpu.dynamic_rotate %296 by %c64_i32_149 dim 1 : vector<8x128xf32>, i32 -> vector<8x128xf32>
    %307 = arith.mulf %306, %279 : vector<8x128xf32>
    %308 = arith.mulf %296, %305 : vector<8x128xf32>
    %309 = arith.addf %307, %308 : vector<8x128xf32>
    %c64_i32_150 = arith.constant 64 : i32
    %310 = tpu.dynamic_rotate %305 by %c64_i32_150 dim 1 : vector<8x128xf32>, i32 -> vector<8x128xf32>
    %311 = math.tanh %309 : vector<8x128xf32>
    %312 = arith.mulf %310, %311 : vector<8x128xf32>
    %c48 = arith.constant 48 : index
    %c0_151 = arith.constant 0 : index
    %313 = vector.load %arg13[%c48, %c0_151] : memref<120x256xf32, #tpu.memory_space<vmem>>, vector<8x256xf32>
    %314 = arith.truncf %312 : vector<8x128xf32> to vector<8x128xbf16>
    %c0_152 = arith.constant 0 : index
    %c0_153 = arith.constant 0 : index
    %315 = vector.load %arg6[%c0_152, %c0_153] : memref<128x256xbf16, #tpu.memory_space<vmem>>, vector<128x256xbf16>
    %cst_154 = arith.constant dense<0.000000e+00> : vector<8x256xf32>
    %316 = tpu.matmul %314, %315, %cst_154 {dimension_numbers = #tpu.dot_dimension_numbers<[1], [0], [0], [1], [0, 0, 1, 1], [], []>} : vector<8x128xbf16>, vector<128x256xbf16>, vector<8x256xf32> -> vector<8x256xf32>
    %317 = arith.addf %313, %316 : vector<8x256xf32>
    %318 = vector.extract_strided_slice %317 {offsets = [0, 0], sizes = [8, 128], strides = [1, 1]} : vector<8x256xf32> to vector<8x128xf32>
    %319 = vector.extract_strided_slice %317 {offsets = [0, 128], sizes = [8, 128], strides = [1, 1]} : vector<8x256xf32> to vector<8x128xf32>
    %cst_155 = arith.constant 5.000000e-01 : f32
    %320 = vector.broadcast %cst_155 : f32 to vector<8x128xf32>
    %321 = arith.mulf %320, %318 : vector<8x128xf32>
    %322 = math.tanh %321 : vector<8x128xf32>
    %cst_156 = arith.constant 1.000000e+00 : f32
    %323 = vector.broadcast %cst_156 : f32 to vector<8x128xf32>
    %324 = arith.addf %322, %323 : vector<8x128xf32>
    %cst_157 = arith.constant 5.000000e-01 : f32
    %325 = vector.broadcast %cst_157 : f32 to vector<8x128xf32>
    %326 = arith.mulf %325, %324 : vector<8x128xf32>
    %cst_158 = arith.constant 5.000000e-01 : f32
    %327 = vector.broadcast %cst_158 : f32 to vector<8x128xf32>
    %328 = arith.mulf %327, %319 : vector<8x128xf32>
    %329 = arith.select %130, %319, %328 : vector<8x128xi1>, vector<8x128xf32>
    %330 = math.tanh %329 : vector<8x128xf32>
    %cst_159 = arith.constant 1.000000e+00 : f32
    %331 = vector.broadcast %cst_159 : f32 to vector<8x128xf32>
    %332 = arith.addf %330, %331 : vector<8x128xf32>
    %cst_160 = arith.constant 5.000000e-01 : f32
    %333 = vector.broadcast %cst_160 : f32 to vector<8x128xf32>
    %334 = arith.mulf %333, %332 : vector<8x128xf32>
    %335 = arith.select %130, %330, %334 : vector<8x128xi1>, vector<8x128xf32>
    %c64_i32_161 = arith.constant 64 : i32
    %336 = tpu.dynamic_rotate %326 by %c64_i32_161 dim 1 : vector<8x128xf32>, i32 -> vector<8x128xf32>
    %337 = arith.mulf %336, %309 : vector<8x128xf32>
    %338 = arith.mulf %326, %335 : vector<8x128xf32>
    %339 = arith.addf %337, %338 : vector<8x128xf32>
    %c64_i32_162 = arith.constant 64 : i32
    %340 = tpu.dynamic_rotate %335 by %c64_i32_162 dim 1 : vector<8x128xf32>, i32 -> vector<8x128xf32>
    %341 = math.tanh %339 : vector<8x128xf32>
    %342 = arith.mulf %340, %341 : vector<8x128xf32>
    %c56 = arith.constant 56 : index
    %c0_163 = arith.constant 0 : index
    %343 = vector.load %arg13[%c56, %c0_163] : memref<120x256xf32, #tpu.memory_space<vmem>>, vector<8x256xf32>
    %344 = arith.truncf %342 : vector<8x128xf32> to vector<8x128xbf16>
    %c0_164 = arith.constant 0 : index
    %c0_165 = arith.constant 0 : index
    %345 = vector.load %arg6[%c0_164, %c0_165] : memref<128x256xbf16, #tpu.memory_space<vmem>>, vector<128x256xbf16>
    %cst_166 = arith.constant dense<0.000000e+00> : vector<8x256xf32>
    %346 = tpu.matmul %344, %345, %cst_166 {dimension_numbers = #tpu.dot_dimension_numbers<[1], [0], [0], [1], [0, 0, 1, 1], [], []>} : vector<8x128xbf16>, vector<128x256xbf16>, vector<8x256xf32> -> vector<8x256xf32>
    %347 = arith.addf %343, %346 : vector<8x256xf32>
    %348 = vector.extract_strided_slice %347 {offsets = [0, 0], sizes = [8, 128], strides = [1, 1]} : vector<8x256xf32> to vector<8x128xf32>
    %349 = vector.extract_strided_slice %347 {offsets = [0, 128], sizes = [8, 128], strides = [1, 1]} : vector<8x256xf32> to vector<8x128xf32>
    %cst_167 = arith.constant 5.000000e-01 : f32
    %350 = vector.broadcast %cst_167 : f32 to vector<8x128xf32>
    %351 = arith.mulf %350, %348 : vector<8x128xf32>
    %352 = math.tanh %351 : vector<8x128xf32>
    %cst_168 = arith.constant 1.000000e+00 : f32
    %353 = vector.broadcast %cst_168 : f32 to vector<8x128xf32>
    %354 = arith.addf %352, %353 : vector<8x128xf32>
    %cst_169 = arith.constant 5.000000e-01 : f32
    %355 = vector.broadcast %cst_169 : f32 to vector<8x128xf32>
    %356 = arith.mulf %355, %354 : vector<8x128xf32>
    %cst_170 = arith.constant 5.000000e-01 : f32
    %357 = vector.broadcast %cst_170 : f32 to vector<8x128xf32>
    %358 = arith.mulf %357, %349 : vector<8x128xf32>
    %359 = arith.select %130, %349, %358 : vector<8x128xi1>, vector<8x128xf32>
    %360 = math.tanh %359 : vector<8x128xf32>
    %cst_171 = arith.constant 1.000000e+00 : f32
    %361 = vector.broadcast %cst_171 : f32 to vector<8x128xf32>
    %362 = arith.addf %360, %361 : vector<8x128xf32>
    %cst_172 = arith.constant 5.000000e-01 : f32
    %363 = vector.broadcast %cst_172 : f32 to vector<8x128xf32>
    %364 = arith.mulf %363, %362 : vector<8x128xf32>
    %365 = arith.select %130, %360, %364 : vector<8x128xi1>, vector<8x128xf32>
    %c64_i32_173 = arith.constant 64 : i32
    %366 = tpu.dynamic_rotate %356 by %c64_i32_173 dim 1 : vector<8x128xf32>, i32 -> vector<8x128xf32>
    %367 = arith.mulf %366, %339 : vector<8x128xf32>
    %368 = arith.mulf %356, %365 : vector<8x128xf32>
    %369 = arith.addf %367, %368 : vector<8x128xf32>
    %c64_i32_174 = arith.constant 64 : i32
    %370 = tpu.dynamic_rotate %365 by %c64_i32_174 dim 1 : vector<8x128xf32>, i32 -> vector<8x128xf32>
    %371 = math.tanh %369 : vector<8x128xf32>
    %372 = arith.mulf %370, %371 : vector<8x128xf32>
    %c64 = arith.constant 64 : index
    %c0_175 = arith.constant 0 : index
    %373 = vector.load %arg13[%c64, %c0_175] : memref<120x256xf32, #tpu.memory_space<vmem>>, vector<8x256xf32>
    %374 = arith.truncf %372 : vector<8x128xf32> to vector<8x128xbf16>
    %c0_176 = arith.constant 0 : index
    %c0_177 = arith.constant 0 : index
    %375 = vector.load %arg6[%c0_176, %c0_177] : memref<128x256xbf16, #tpu.memory_space<vmem>>, vector<128x256xbf16>
    %cst_178 = arith.constant dense<0.000000e+00> : vector<8x256xf32>
    %376 = tpu.matmul %374, %375, %cst_178 {dimension_numbers = #tpu.dot_dimension_numbers<[1], [0], [0], [1], [0, 0, 1, 1], [], []>} : vector<8x128xbf16>, vector<128x256xbf16>, vector<8x256xf32> -> vector<8x256xf32>
    %377 = arith.addf %373, %376 : vector<8x256xf32>
    %378 = vector.extract_strided_slice %377 {offsets = [0, 0], sizes = [8, 128], strides = [1, 1]} : vector<8x256xf32> to vector<8x128xf32>
    %379 = vector.extract_strided_slice %377 {offsets = [0, 128], sizes = [8, 128], strides = [1, 1]} : vector<8x256xf32> to vector<8x128xf32>
    %cst_179 = arith.constant 5.000000e-01 : f32
    %380 = vector.broadcast %cst_179 : f32 to vector<8x128xf32>
    %381 = arith.mulf %380, %378 : vector<8x128xf32>
    %382 = math.tanh %381 : vector<8x128xf32>
    %cst_180 = arith.constant 1.000000e+00 : f32
    %383 = vector.broadcast %cst_180 : f32 to vector<8x128xf32>
    %384 = arith.addf %382, %383 : vector<8x128xf32>
    %cst_181 = arith.constant 5.000000e-01 : f32
    %385 = vector.broadcast %cst_181 : f32 to vector<8x128xf32>
    %386 = arith.mulf %385, %384 : vector<8x128xf32>
    %cst_182 = arith.constant 5.000000e-01 : f32
    %387 = vector.broadcast %cst_182 : f32 to vector<8x128xf32>
    %388 = arith.mulf %387, %379 : vector<8x128xf32>
    %389 = arith.select %130, %379, %388 : vector<8x128xi1>, vector<8x128xf32>
    %390 = math.tanh %389 : vector<8x128xf32>
    %cst_183 = arith.constant 1.000000e+00 : f32
    %391 = vector.broadcast %cst_183 : f32 to vector<8x128xf32>
    %392 = arith.addf %390, %391 : vector<8x128xf32>
    %cst_184 = arith.constant 5.000000e-01 : f32
    %393 = vector.broadcast %cst_184 : f32 to vector<8x128xf32>
    %394 = arith.mulf %393, %392 : vector<8x128xf32>
    %395 = arith.select %130, %390, %394 : vector<8x128xi1>, vector<8x128xf32>
    %c64_i32_185 = arith.constant 64 : i32
    %396 = tpu.dynamic_rotate %386 by %c64_i32_185 dim 1 : vector<8x128xf32>, i32 -> vector<8x128xf32>
    %397 = arith.mulf %396, %369 : vector<8x128xf32>
    %398 = arith.mulf %386, %395 : vector<8x128xf32>
    %399 = arith.addf %397, %398 : vector<8x128xf32>
    %c64_i32_186 = arith.constant 64 : i32
    %400 = tpu.dynamic_rotate %395 by %c64_i32_186 dim 1 : vector<8x128xf32>, i32 -> vector<8x128xf32>
    %401 = math.tanh %399 : vector<8x128xf32>
    %402 = arith.mulf %400, %401 : vector<8x128xf32>
    %c72 = arith.constant 72 : index
    %c0_187 = arith.constant 0 : index
    %403 = vector.load %arg13[%c72, %c0_187] : memref<120x256xf32, #tpu.memory_space<vmem>>, vector<8x256xf32>
    %404 = arith.truncf %402 : vector<8x128xf32> to vector<8x128xbf16>
    %c0_188 = arith.constant 0 : index
    %c0_189 = arith.constant 0 : index
    %405 = vector.load %arg6[%c0_188, %c0_189] : memref<128x256xbf16, #tpu.memory_space<vmem>>, vector<128x256xbf16>
    %cst_190 = arith.constant dense<0.000000e+00> : vector<8x256xf32>
    %406 = tpu.matmul %404, %405, %cst_190 {dimension_numbers = #tpu.dot_dimension_numbers<[1], [0], [0], [1], [0, 0, 1, 1], [], []>} : vector<8x128xbf16>, vector<128x256xbf16>, vector<8x256xf32> -> vector<8x256xf32>
    %407 = arith.addf %403, %406 : vector<8x256xf32>
    %408 = vector.extract_strided_slice %407 {offsets = [0, 0], sizes = [8, 128], strides = [1, 1]} : vector<8x256xf32> to vector<8x128xf32>
    %409 = vector.extract_strided_slice %407 {offsets = [0, 128], sizes = [8, 128], strides = [1, 1]} : vector<8x256xf32> to vector<8x128xf32>
    %cst_191 = arith.constant 5.000000e-01 : f32
    %410 = vector.broadcast %cst_191 : f32 to vector<8x128xf32>
    %411 = arith.mulf %410, %408 : vector<8x128xf32>
    %412 = math.tanh %411 : vector<8x128xf32>
    %cst_192 = arith.constant 1.000000e+00 : f32
    %413 = vector.broadcast %cst_192 : f32 to vector<8x128xf32>
    %414 = arith.addf %412, %413 : vector<8x128xf32>
    %cst_193 = arith.constant 5.000000e-01 : f32
    %415 = vector.broadcast %cst_193 : f32 to vector<8x128xf32>
    %416 = arith.mulf %415, %414 : vector<8x128xf32>
    %cst_194 = arith.constant 5.000000e-01 : f32
    %417 = vector.broadcast %cst_194 : f32 to vector<8x128xf32>
    %418 = arith.mulf %417, %409 : vector<8x128xf32>
    %419 = arith.select %130, %409, %418 : vector<8x128xi1>, vector<8x128xf32>
    %420 = math.tanh %419 : vector<8x128xf32>
    %cst_195 = arith.constant 1.000000e+00 : f32
    %421 = vector.broadcast %cst_195 : f32 to vector<8x128xf32>
    %422 = arith.addf %420, %421 : vector<8x128xf32>
    %cst_196 = arith.constant 5.000000e-01 : f32
    %423 = vector.broadcast %cst_196 : f32 to vector<8x128xf32>
    %424 = arith.mulf %423, %422 : vector<8x128xf32>
    %425 = arith.select %130, %420, %424 : vector<8x128xi1>, vector<8x128xf32>
    %c64_i32_197 = arith.constant 64 : i32
    %426 = tpu.dynamic_rotate %416 by %c64_i32_197 dim 1 : vector<8x128xf32>, i32 -> vector<8x128xf32>
    %427 = arith.mulf %426, %399 : vector<8x128xf32>
    %428 = arith.mulf %416, %425 : vector<8x128xf32>
    %429 = arith.addf %427, %428 : vector<8x128xf32>
    %c64_i32_198 = arith.constant 64 : i32
    %430 = tpu.dynamic_rotate %425 by %c64_i32_198 dim 1 : vector<8x128xf32>, i32 -> vector<8x128xf32>
    %431 = math.tanh %429 : vector<8x128xf32>
    %432 = arith.mulf %430, %431 : vector<8x128xf32>
    %c80 = arith.constant 80 : index
    %c0_199 = arith.constant 0 : index
    %433 = vector.load %arg13[%c80, %c0_199] : memref<120x256xf32, #tpu.memory_space<vmem>>, vector<8x256xf32>
    %434 = arith.truncf %432 : vector<8x128xf32> to vector<8x128xbf16>
    %c0_200 = arith.constant 0 : index
    %c0_201 = arith.constant 0 : index
    %435 = vector.load %arg6[%c0_200, %c0_201] : memref<128x256xbf16, #tpu.memory_space<vmem>>, vector<128x256xbf16>
    %cst_202 = arith.constant dense<0.000000e+00> : vector<8x256xf32>
    %436 = tpu.matmul %434, %435, %cst_202 {dimension_numbers = #tpu.dot_dimension_numbers<[1], [0], [0], [1], [0, 0, 1, 1], [], []>} : vector<8x128xbf16>, vector<128x256xbf16>, vector<8x256xf32> -> vector<8x256xf32>
    %437 = arith.addf %433, %436 : vector<8x256xf32>
    %438 = vector.extract_strided_slice %437 {offsets = [0, 0], sizes = [8, 128], strides = [1, 1]} : vector<8x256xf32> to vector<8x128xf32>
    %439 = vector.extract_strided_slice %437 {offsets = [0, 128], sizes = [8, 128], strides = [1, 1]} : vector<8x256xf32> to vector<8x128xf32>
    %cst_203 = arith.constant 5.000000e-01 : f32
    %440 = vector.broadcast %cst_203 : f32 to vector<8x128xf32>
    %441 = arith.mulf %440, %438 : vector<8x128xf32>
    %442 = math.tanh %441 : vector<8x128xf32>
    %cst_204 = arith.constant 1.000000e+00 : f32
    %443 = vector.broadcast %cst_204 : f32 to vector<8x128xf32>
    %444 = arith.addf %442, %443 : vector<8x128xf32>
    %cst_205 = arith.constant 5.000000e-01 : f32
    %445 = vector.broadcast %cst_205 : f32 to vector<8x128xf32>
    %446 = arith.mulf %445, %444 : vector<8x128xf32>
    %cst_206 = arith.constant 5.000000e-01 : f32
    %447 = vector.broadcast %cst_206 : f32 to vector<8x128xf32>
    %448 = arith.mulf %447, %439 : vector<8x128xf32>
    %449 = arith.select %130, %439, %448 : vector<8x128xi1>, vector<8x128xf32>
    %450 = math.tanh %449 : vector<8x128xf32>
    %cst_207 = arith.constant 1.000000e+00 : f32
    %451 = vector.broadcast %cst_207 : f32 to vector<8x128xf32>
    %452 = arith.addf %450, %451 : vector<8x128xf32>
    %cst_208 = arith.constant 5.000000e-01 : f32
    %453 = vector.broadcast %cst_208 : f32 to vector<8x128xf32>
    %454 = arith.mulf %453, %452 : vector<8x128xf32>
    %455 = arith.select %130, %450, %454 : vector<8x128xi1>, vector<8x128xf32>
    %c64_i32_209 = arith.constant 64 : i32
    %456 = tpu.dynamic_rotate %446 by %c64_i32_209 dim 1 : vector<8x128xf32>, i32 -> vector<8x128xf32>
    %457 = arith.mulf %456, %429 : vector<8x128xf32>
    %458 = arith.mulf %446, %455 : vector<8x128xf32>
    %459 = arith.addf %457, %458 : vector<8x128xf32>
    %c64_i32_210 = arith.constant 64 : i32
    %460 = tpu.dynamic_rotate %455 by %c64_i32_210 dim 1 : vector<8x128xf32>, i32 -> vector<8x128xf32>
    %461 = math.tanh %459 : vector<8x128xf32>
    %462 = arith.mulf %460, %461 : vector<8x128xf32>
    %c88 = arith.constant 88 : index
    %c0_211 = arith.constant 0 : index
    %463 = vector.load %arg13[%c88, %c0_211] : memref<120x256xf32, #tpu.memory_space<vmem>>, vector<8x256xf32>
    %464 = arith.truncf %462 : vector<8x128xf32> to vector<8x128xbf16>
    %c0_212 = arith.constant 0 : index
    %c0_213 = arith.constant 0 : index
    %465 = vector.load %arg6[%c0_212, %c0_213] : memref<128x256xbf16, #tpu.memory_space<vmem>>, vector<128x256xbf16>
    %cst_214 = arith.constant dense<0.000000e+00> : vector<8x256xf32>
    %466 = tpu.matmul %464, %465, %cst_214 {dimension_numbers = #tpu.dot_dimension_numbers<[1], [0], [0], [1], [0, 0, 1, 1], [], []>} : vector<8x128xbf16>, vector<128x256xbf16>, vector<8x256xf32> -> vector<8x256xf32>
    %467 = arith.addf %463, %466 : vector<8x256xf32>
    %468 = vector.extract_strided_slice %467 {offsets = [0, 0], sizes = [8, 128], strides = [1, 1]} : vector<8x256xf32> to vector<8x128xf32>
    %469 = vector.extract_strided_slice %467 {offsets = [0, 128], sizes = [8, 128], strides = [1, 1]} : vector<8x256xf32> to vector<8x128xf32>
    %cst_215 = arith.constant 5.000000e-01 : f32
    %470 = vector.broadcast %cst_215 : f32 to vector<8x128xf32>
    %471 = arith.mulf %470, %468 : vector<8x128xf32>
    %472 = math.tanh %471 : vector<8x128xf32>
    %cst_216 = arith.constant 1.000000e+00 : f32
    %473 = vector.broadcast %cst_216 : f32 to vector<8x128xf32>
    %474 = arith.addf %472, %473 : vector<8x128xf32>
    %cst_217 = arith.constant 5.000000e-01 : f32
    %475 = vector.broadcast %cst_217 : f32 to vector<8x128xf32>
    %476 = arith.mulf %475, %474 : vector<8x128xf32>
    %cst_218 = arith.constant 5.000000e-01 : f32
    %477 = vector.broadcast %cst_218 : f32 to vector<8x128xf32>
    %478 = arith.mulf %477, %469 : vector<8x128xf32>
    %479 = arith.select %130, %469, %478 : vector<8x128xi1>, vector<8x128xf32>
    %480 = math.tanh %479 : vector<8x128xf32>
    %cst_219 = arith.constant 1.000000e+00 : f32
    %481 = vector.broadcast %cst_219 : f32 to vector<8x128xf32>
    %482 = arith.addf %480, %481 : vector<8x128xf32>
    %cst_220 = arith.constant 5.000000e-01 : f32
    %483 = vector.broadcast %cst_220 : f32 to vector<8x128xf32>
    %484 = arith.mulf %483, %482 : vector<8x128xf32>
    %485 = arith.select %130, %480, %484 : vector<8x128xi1>, vector<8x128xf32>
    %c64_i32_221 = arith.constant 64 : i32
    %486 = tpu.dynamic_rotate %476 by %c64_i32_221 dim 1 : vector<8x128xf32>, i32 -> vector<8x128xf32>
    %487 = arith.mulf %486, %459 : vector<8x128xf32>
    %488 = arith.mulf %476, %485 : vector<8x128xf32>
    %489 = arith.addf %487, %488 : vector<8x128xf32>
    %c64_i32_222 = arith.constant 64 : i32
    %490 = tpu.dynamic_rotate %485 by %c64_i32_222 dim 1 : vector<8x128xf32>, i32 -> vector<8x128xf32>
    %491 = math.tanh %489 : vector<8x128xf32>
    %492 = arith.mulf %490, %491 : vector<8x128xf32>
    %c96 = arith.constant 96 : index
    %c0_223 = arith.constant 0 : index
    %493 = vector.load %arg13[%c96, %c0_223] : memref<120x256xf32, #tpu.memory_space<vmem>>, vector<8x256xf32>
    %494 = arith.truncf %492 : vector<8x128xf32> to vector<8x128xbf16>
    %c0_224 = arith.constant 0 : index
    %c0_225 = arith.constant 0 : index
    %495 = vector.load %arg6[%c0_224, %c0_225] : memref<128x256xbf16, #tpu.memory_space<vmem>>, vector<128x256xbf16>
    %cst_226 = arith.constant dense<0.000000e+00> : vector<8x256xf32>
    %496 = tpu.matmul %494, %495, %cst_226 {dimension_numbers = #tpu.dot_dimension_numbers<[1], [0], [0], [1], [0, 0, 1, 1], [], []>} : vector<8x128xbf16>, vector<128x256xbf16>, vector<8x256xf32> -> vector<8x256xf32>
    %497 = arith.addf %493, %496 : vector<8x256xf32>
    %498 = vector.extract_strided_slice %497 {offsets = [0, 0], sizes = [8, 128], strides = [1, 1]} : vector<8x256xf32> to vector<8x128xf32>
    %499 = vector.extract_strided_slice %497 {offsets = [0, 128], sizes = [8, 128], strides = [1, 1]} : vector<8x256xf32> to vector<8x128xf32>
    %cst_227 = arith.constant 5.000000e-01 : f32
    %500 = vector.broadcast %cst_227 : f32 to vector<8x128xf32>
    %501 = arith.mulf %500, %498 : vector<8x128xf32>
    %502 = math.tanh %501 : vector<8x128xf32>
    %cst_228 = arith.constant 1.000000e+00 : f32
    %503 = vector.broadcast %cst_228 : f32 to vector<8x128xf32>
    %504 = arith.addf %502, %503 : vector<8x128xf32>
    %cst_229 = arith.constant 5.000000e-01 : f32
    %505 = vector.broadcast %cst_229 : f32 to vector<8x128xf32>
    %506 = arith.mulf %505, %504 : vector<8x128xf32>
    %cst_230 = arith.constant 5.000000e-01 : f32
    %507 = vector.broadcast %cst_230 : f32 to vector<8x128xf32>
    %508 = arith.mulf %507, %499 : vector<8x128xf32>
    %509 = arith.select %130, %499, %508 : vector<8x128xi1>, vector<8x128xf32>
    %510 = math.tanh %509 : vector<8x128xf32>
    %cst_231 = arith.constant 1.000000e+00 : f32
    %511 = vector.broadcast %cst_231 : f32 to vector<8x128xf32>
    %512 = arith.addf %510, %511 : vector<8x128xf32>
    %cst_232 = arith.constant 5.000000e-01 : f32
    %513 = vector.broadcast %cst_232 : f32 to vector<8x128xf32>
    %514 = arith.mulf %513, %512 : vector<8x128xf32>
    %515 = arith.select %130, %510, %514 : vector<8x128xi1>, vector<8x128xf32>
    %c64_i32_233 = arith.constant 64 : i32
    %516 = tpu.dynamic_rotate %506 by %c64_i32_233 dim 1 : vector<8x128xf32>, i32 -> vector<8x128xf32>
    %517 = arith.mulf %516, %489 : vector<8x128xf32>
    %518 = arith.mulf %506, %515 : vector<8x128xf32>
    %519 = arith.addf %517, %518 : vector<8x128xf32>
    %c64_i32_234 = arith.constant 64 : i32
    %520 = tpu.dynamic_rotate %515 by %c64_i32_234 dim 1 : vector<8x128xf32>, i32 -> vector<8x128xf32>
    %521 = math.tanh %519 : vector<8x128xf32>
    %522 = arith.mulf %520, %521 : vector<8x128xf32>
    %c104 = arith.constant 104 : index
    %c0_235 = arith.constant 0 : index
    %523 = vector.load %arg13[%c104, %c0_235] : memref<120x256xf32, #tpu.memory_space<vmem>>, vector<8x256xf32>
    %524 = arith.truncf %522 : vector<8x128xf32> to vector<8x128xbf16>
    %c0_236 = arith.constant 0 : index
    %c0_237 = arith.constant 0 : index
    %525 = vector.load %arg6[%c0_236, %c0_237] : memref<128x256xbf16, #tpu.memory_space<vmem>>, vector<128x256xbf16>
    %cst_238 = arith.constant dense<0.000000e+00> : vector<8x256xf32>
    %526 = tpu.matmul %524, %525, %cst_238 {dimension_numbers = #tpu.dot_dimension_numbers<[1], [0], [0], [1], [0, 0, 1, 1], [], []>} : vector<8x128xbf16>, vector<128x256xbf16>, vector<8x256xf32> -> vector<8x256xf32>
    %527 = arith.addf %523, %526 : vector<8x256xf32>
    %528 = vector.extract_strided_slice %527 {offsets = [0, 0], sizes = [8, 128], strides = [1, 1]} : vector<8x256xf32> to vector<8x128xf32>
    %529 = vector.extract_strided_slice %527 {offsets = [0, 128], sizes = [8, 128], strides = [1, 1]} : vector<8x256xf32> to vector<8x128xf32>
    %cst_239 = arith.constant 5.000000e-01 : f32
    %530 = vector.broadcast %cst_239 : f32 to vector<8x128xf32>
    %531 = arith.mulf %530, %528 : vector<8x128xf32>
    %532 = math.tanh %531 : vector<8x128xf32>
    %cst_240 = arith.constant 1.000000e+00 : f32
    %533 = vector.broadcast %cst_240 : f32 to vector<8x128xf32>
    %534 = arith.addf %532, %533 : vector<8x128xf32>
    %cst_241 = arith.constant 5.000000e-01 : f32
    %535 = vector.broadcast %cst_241 : f32 to vector<8x128xf32>
    %536 = arith.mulf %535, %534 : vector<8x128xf32>
    %cst_242 = arith.constant 5.000000e-01 : f32
    %537 = vector.broadcast %cst_242 : f32 to vector<8x128xf32>
    %538 = arith.mulf %537, %529 : vector<8x128xf32>
    %539 = arith.select %130, %529, %538 : vector<8x128xi1>, vector<8x128xf32>
    %540 = math.tanh %539 : vector<8x128xf32>
    %cst_243 = arith.constant 1.000000e+00 : f32
    %541 = vector.broadcast %cst_243 : f32 to vector<8x128xf32>
    %542 = arith.addf %540, %541 : vector<8x128xf32>
    %cst_244 = arith.constant 5.000000e-01 : f32
    %543 = vector.broadcast %cst_244 : f32 to vector<8x128xf32>
    %544 = arith.mulf %543, %542 : vector<8x128xf32>
    %545 = arith.select %130, %540, %544 : vector<8x128xi1>, vector<8x128xf32>
    %c64_i32_245 = arith.constant 64 : i32
    %546 = tpu.dynamic_rotate %536 by %c64_i32_245 dim 1 : vector<8x128xf32>, i32 -> vector<8x128xf32>
    %547 = arith.mulf %546, %519 : vector<8x128xf32>
    %548 = arith.mulf %536, %545 : vector<8x128xf32>
    %549 = arith.addf %547, %548 : vector<8x128xf32>
    %c64_i32_246 = arith.constant 64 : i32
    %550 = tpu.dynamic_rotate %545 by %c64_i32_246 dim 1 : vector<8x128xf32>, i32 -> vector<8x128xf32>
    %551 = math.tanh %549 : vector<8x128xf32>
    %552 = arith.mulf %550, %551 : vector<8x128xf32>
    %c112 = arith.constant 112 : index
    %c0_247 = arith.constant 0 : index
    %553 = vector.load %arg13[%c112, %c0_247] : memref<120x256xf32, #tpu.memory_space<vmem>>, vector<8x256xf32>
    %554 = arith.truncf %552 : vector<8x128xf32> to vector<8x128xbf16>
    %c0_248 = arith.constant 0 : index
    %c0_249 = arith.constant 0 : index
    %555 = vector.load %arg6[%c0_248, %c0_249] : memref<128x256xbf16, #tpu.memory_space<vmem>>, vector<128x256xbf16>
    %cst_250 = arith.constant dense<0.000000e+00> : vector<8x256xf32>
    %556 = tpu.matmul %554, %555, %cst_250 {dimension_numbers = #tpu.dot_dimension_numbers<[1], [0], [0], [1], [0, 0, 1, 1], [], []>} : vector<8x128xbf16>, vector<128x256xbf16>, vector<8x256xf32> -> vector<8x256xf32>
    %557 = arith.addf %553, %556 : vector<8x256xf32>
    %558 = vector.extract_strided_slice %557 {offsets = [0, 0], sizes = [8, 128], strides = [1, 1]} : vector<8x256xf32> to vector<8x128xf32>
    %559 = vector.extract_strided_slice %557 {offsets = [0, 128], sizes = [8, 128], strides = [1, 1]} : vector<8x256xf32> to vector<8x128xf32>
    %cst_251 = arith.constant 5.000000e-01 : f32
    %560 = vector.broadcast %cst_251 : f32 to vector<8x128xf32>
    %561 = arith.mulf %560, %558 : vector<8x128xf32>
    %562 = math.tanh %561 : vector<8x128xf32>
    %cst_252 = arith.constant 1.000000e+00 : f32
    %563 = vector.broadcast %cst_252 : f32 to vector<8x128xf32>
    %564 = arith.addf %562, %563 : vector<8x128xf32>
    %cst_253 = arith.constant 5.000000e-01 : f32
    %565 = vector.broadcast %cst_253 : f32 to vector<8x128xf32>
    %566 = arith.mulf %565, %564 : vector<8x128xf32>
    %cst_254 = arith.constant 5.000000e-01 : f32
    %567 = vector.broadcast %cst_254 : f32 to vector<8x128xf32>
    %568 = arith.mulf %567, %559 : vector<8x128xf32>
    %569 = arith.select %130, %559, %568 : vector<8x128xi1>, vector<8x128xf32>
    %570 = math.tanh %569 : vector<8x128xf32>
    %cst_255 = arith.constant 1.000000e+00 : f32
    %571 = vector.broadcast %cst_255 : f32 to vector<8x128xf32>
    %572 = arith.addf %570, %571 : vector<8x128xf32>
    %cst_256 = arith.constant 5.000000e-01 : f32
    %573 = vector.broadcast %cst_256 : f32 to vector<8x128xf32>
    %574 = arith.mulf %573, %572 : vector<8x128xf32>
    %575 = arith.select %130, %570, %574 : vector<8x128xi1>, vector<8x128xf32>
    %c64_i32_257 = arith.constant 64 : i32
    %576 = tpu.dynamic_rotate %566 by %c64_i32_257 dim 1 : vector<8x128xf32>, i32 -> vector<8x128xf32>
    %577 = arith.mulf %576, %549 : vector<8x128xf32>
    %578 = arith.mulf %566, %575 : vector<8x128xf32>
    %579 = arith.addf %577, %578 : vector<8x128xf32>
    %c64_i32_258 = arith.constant 64 : i32
    %580 = tpu.dynamic_rotate %575 by %c64_i32_258 dim 1 : vector<8x128xf32>, i32 -> vector<8x128xf32>
    %581 = math.tanh %579 : vector<8x128xf32>
    %582 = arith.mulf %580, %581 : vector<8x128xf32>
    %c0_259 = arith.constant 0 : index
    %c0_260 = arith.constant 0 : index
    %583 = vector.load %arg9[%c0_259, %c0_260] : memref<1x256xf32, #tpu.memory_space<vmem>>, vector<1x256xf32>
    %584 = vector.shape_cast %583 : vector<1x256xf32> to vector<1x256xf32>
    %585 = vector.broadcast %584 : vector<1x256xf32> to vector<8x256xf32>
    %c0_261 = arith.constant 0 : index
    %c0_262 = arith.constant 0 : index
    %586 = vector.load %arg11[%c0_261, %c0_262] : memref<1x128xf32, #tpu.memory_space<vmem>>, vector<1x128xf32>
    %587 = vector.shape_cast %586 : vector<1x128xf32> to vector<1x128xf32>
    %588 = vector.broadcast %587 : vector<1x128xf32> to vector<8x128xf32>
    %cst_263 = arith.constant 0.000000e+00 : f32
    %589 = vector.broadcast %cst_263 : f32 to vector<8x128xf32>
    %590 = tpu.concatenate %589, %582 in 1 : vector<8x128xf32>, vector<8x128xf32> -> vector<8x256xf32>
    %591 = arith.truncf %590 : vector<8x256xf32> to vector<8x256xbf16>
    %c0_264 = arith.constant 0 : index
    %c0_265 = arith.constant 0 : index
    %592 = vector.load %arg8[%c0_264, %c0_265] : memref<256x256xbf16, #tpu.memory_space<vmem>>, vector<256x256xbf16>
    %cst_266 = arith.constant dense<0.000000e+00> : vector<8x256xf32>
    %593 = tpu.matmul %591, %592, %cst_266 {dimension_numbers = #tpu.dot_dimension_numbers<[1], [0], [0], [1], [0, 0, 1, 1], [], []>} : vector<8x256xbf16>, vector<256x256xbf16>, vector<8x256xf32> -> vector<8x256xf32>
    %594 = arith.addf %593, %585 : vector<8x256xf32>
    %595 = vector.extract_strided_slice %594 {offsets = [0, 0], sizes = [8, 128], strides = [1, 1]} : vector<8x256xf32> to vector<8x128xf32>
    %596 = vector.extract_strided_slice %594 {offsets = [0, 128], sizes = [8, 128], strides = [1, 1]} : vector<8x256xf32> to vector<8x128xf32>
    %cst_267 = arith.constant 5.000000e-01 : f32
    %597 = vector.broadcast %cst_267 : f32 to vector<8x128xf32>
    %598 = arith.mulf %597, %595 : vector<8x128xf32>
    %599 = math.tanh %598 : vector<8x128xf32>
    %cst_268 = arith.constant 1.000000e+00 : f32
    %600 = vector.broadcast %cst_268 : f32 to vector<8x128xf32>
    %601 = arith.addf %599, %600 : vector<8x128xf32>
    %cst_269 = arith.constant 5.000000e-01 : f32
    %602 = vector.broadcast %cst_269 : f32 to vector<8x128xf32>
    %603 = arith.mulf %602, %601 : vector<8x128xf32>
    %cst_270 = arith.constant 5.000000e-01 : f32
    %604 = vector.broadcast %cst_270 : f32 to vector<8x128xf32>
    %605 = arith.mulf %604, %596 : vector<8x128xf32>
    %606 = arith.select %130, %596, %605 : vector<8x128xi1>, vector<8x128xf32>
    %607 = math.tanh %606 : vector<8x128xf32>
    %cst_271 = arith.constant 1.000000e+00 : f32
    %608 = vector.broadcast %cst_271 : f32 to vector<8x128xf32>
    %609 = arith.addf %607, %608 : vector<8x128xf32>
    %cst_272 = arith.constant 5.000000e-01 : f32
    %610 = vector.broadcast %cst_272 : f32 to vector<8x128xf32>
    %611 = arith.mulf %610, %609 : vector<8x128xf32>
    %612 = arith.select %130, %607, %611 : vector<8x128xi1>, vector<8x128xf32>
    %c64_i32_273 = arith.constant 64 : i32
    %613 = tpu.dynamic_rotate %603 by %c64_i32_273 dim 1 : vector<8x128xf32>, i32 -> vector<8x128xf32>
    %614 = arith.mulf %613, %579 : vector<8x128xf32>
    %615 = arith.mulf %603, %612 : vector<8x128xf32>
    %616 = arith.addf %614, %615 : vector<8x128xf32>
    %c64_i32_274 = arith.constant 64 : i32
    %617 = tpu.dynamic_rotate %612 by %c64_i32_274 dim 1 : vector<8x128xf32>, i32 -> vector<8x128xf32>
    %618 = math.tanh %616 : vector<8x128xf32>
    %619 = arith.mulf %617, %618 : vector<8x128xf32>
    %620 = arith.truncf %619 : vector<8x128xf32> to vector<8x128xbf16>
    %c0_275 = arith.constant 0 : index
    %c0_276 = arith.constant 0 : index
    %621 = vector.load %arg10[%c0_275, %c0_276] : memref<128x128xbf16, #tpu.memory_space<vmem>>, vector<128x128xbf16>
    %cst_277 = arith.constant dense<0.000000e+00> : vector<8x128xf32>
    %622 = tpu.matmul %620, %621, %cst_277 {dimension_numbers = #tpu.dot_dimension_numbers<[1], [0], [0], [1], [0, 0, 1, 1], [], []>} : vector<8x128xbf16>, vector<128x128xbf16>, vector<8x128xf32> -> vector<8x128xf32>
    %623 = arith.addf %622, %588 : vector<8x128xf32>
    %624 = tpu.concatenate %623, %619 in 1 : vector<8x128xf32>, vector<8x128xf32> -> vector<8x256xf32>
    %625 = arith.truncf %624 : vector<8x256xf32> to vector<8x256xbf16>
    %c0_278 = arith.constant 0 : index
    %c0_279 = arith.constant 0 : index
    %626 = vector.load %arg8[%c0_278, %c0_279] : memref<256x256xbf16, #tpu.memory_space<vmem>>, vector<256x256xbf16>
    %cst_280 = arith.constant dense<0.000000e+00> : vector<8x256xf32>
    %627 = tpu.matmul %625, %626, %cst_280 {dimension_numbers = #tpu.dot_dimension_numbers<[1], [0], [0], [1], [0, 0, 1, 1], [], []>} : vector<8x256xbf16>, vector<256x256xbf16>, vector<8x256xf32> -> vector<8x256xf32>
    %628 = arith.addf %627, %585 : vector<8x256xf32>
    %629 = vector.extract_strided_slice %628 {offsets = [0, 0], sizes = [8, 128], strides = [1, 1]} : vector<8x256xf32> to vector<8x128xf32>
    %630 = vector.extract_strided_slice %628 {offsets = [0, 128], sizes = [8, 128], strides = [1, 1]} : vector<8x256xf32> to vector<8x128xf32>
    %cst_281 = arith.constant 5.000000e-01 : f32
    %631 = vector.broadcast %cst_281 : f32 to vector<8x128xf32>
    %632 = arith.mulf %631, %629 : vector<8x128xf32>
    %633 = math.tanh %632 : vector<8x128xf32>
    %cst_282 = arith.constant 1.000000e+00 : f32
    %634 = vector.broadcast %cst_282 : f32 to vector<8x128xf32>
    %635 = arith.addf %633, %634 : vector<8x128xf32>
    %cst_283 = arith.constant 5.000000e-01 : f32
    %636 = vector.broadcast %cst_283 : f32 to vector<8x128xf32>
    %637 = arith.mulf %636, %635 : vector<8x128xf32>
    %cst_284 = arith.constant 5.000000e-01 : f32
    %638 = vector.broadcast %cst_284 : f32 to vector<8x128xf32>
    %639 = arith.mulf %638, %630 : vector<8x128xf32>
    %640 = arith.select %130, %630, %639 : vector<8x128xi1>, vector<8x128xf32>
    %641 = math.tanh %640 : vector<8x128xf32>
    %cst_285 = arith.constant 1.000000e+00 : f32
    %642 = vector.broadcast %cst_285 : f32 to vector<8x128xf32>
    %643 = arith.addf %641, %642 : vector<8x128xf32>
    %cst_286 = arith.constant 5.000000e-01 : f32
    %644 = vector.broadcast %cst_286 : f32 to vector<8x128xf32>
    %645 = arith.mulf %644, %643 : vector<8x128xf32>
    %646 = arith.select %130, %641, %645 : vector<8x128xi1>, vector<8x128xf32>
    %c64_i32_287 = arith.constant 64 : i32
    %647 = tpu.dynamic_rotate %637 by %c64_i32_287 dim 1 : vector<8x128xf32>, i32 -> vector<8x128xf32>
    %648 = arith.mulf %647, %616 : vector<8x128xf32>
    %649 = arith.mulf %637, %646 : vector<8x128xf32>
    %650 = arith.addf %648, %649 : vector<8x128xf32>
    %c64_i32_288 = arith.constant 64 : i32
    %651 = tpu.dynamic_rotate %646 by %c64_i32_288 dim 1 : vector<8x128xf32>, i32 -> vector<8x128xf32>
    %652 = math.tanh %650 : vector<8x128xf32>
    %653 = arith.mulf %651, %652 : vector<8x128xf32>
    %654 = arith.truncf %653 : vector<8x128xf32> to vector<8x128xbf16>
    %c0_289 = arith.constant 0 : index
    %c0_290 = arith.constant 0 : index
    %655 = vector.load %arg10[%c0_289, %c0_290] : memref<128x128xbf16, #tpu.memory_space<vmem>>, vector<128x128xbf16>
    %cst_291 = arith.constant dense<0.000000e+00> : vector<8x128xf32>
    %656 = tpu.matmul %654, %655, %cst_291 {dimension_numbers = #tpu.dot_dimension_numbers<[1], [0], [0], [1], [0, 0, 1, 1], [], []>} : vector<8x128xbf16>, vector<128x128xbf16>, vector<8x128xf32> -> vector<8x128xf32>
    %657 = arith.addf %656, %588 : vector<8x128xf32>
    %658 = tpu.concatenate %657, %653 in 1 : vector<8x128xf32>, vector<8x128xf32> -> vector<8x256xf32>
    %659 = arith.truncf %658 : vector<8x256xf32> to vector<8x256xbf16>
    %c0_292 = arith.constant 0 : index
    %c0_293 = arith.constant 0 : index
    %660 = vector.load %arg8[%c0_292, %c0_293] : memref<256x256xbf16, #tpu.memory_space<vmem>>, vector<256x256xbf16>
    %cst_294 = arith.constant dense<0.000000e+00> : vector<8x256xf32>
    %661 = tpu.matmul %659, %660, %cst_294 {dimension_numbers = #tpu.dot_dimension_numbers<[1], [0], [0], [1], [0, 0, 1, 1], [], []>} : vector<8x256xbf16>, vector<256x256xbf16>, vector<8x256xf32> -> vector<8x256xf32>
    %662 = arith.addf %661, %585 : vector<8x256xf32>
    %663 = vector.extract_strided_slice %662 {offsets = [0, 0], sizes = [8, 128], strides = [1, 1]} : vector<8x256xf32> to vector<8x128xf32>
    %664 = vector.extract_strided_slice %662 {offsets = [0, 128], sizes = [8, 128], strides = [1, 1]} : vector<8x256xf32> to vector<8x128xf32>
    %cst_295 = arith.constant 5.000000e-01 : f32
    %665 = vector.broadcast %cst_295 : f32 to vector<8x128xf32>
    %666 = arith.mulf %665, %663 : vector<8x128xf32>
    %667 = math.tanh %666 : vector<8x128xf32>
    %cst_296 = arith.constant 1.000000e+00 : f32
    %668 = vector.broadcast %cst_296 : f32 to vector<8x128xf32>
    %669 = arith.addf %667, %668 : vector<8x128xf32>
    %cst_297 = arith.constant 5.000000e-01 : f32
    %670 = vector.broadcast %cst_297 : f32 to vector<8x128xf32>
    %671 = arith.mulf %670, %669 : vector<8x128xf32>
    %cst_298 = arith.constant 5.000000e-01 : f32
    %672 = vector.broadcast %cst_298 : f32 to vector<8x128xf32>
    %673 = arith.mulf %672, %664 : vector<8x128xf32>
    %674 = arith.select %130, %664, %673 : vector<8x128xi1>, vector<8x128xf32>
    %675 = math.tanh %674 : vector<8x128xf32>
    %cst_299 = arith.constant 1.000000e+00 : f32
    %676 = vector.broadcast %cst_299 : f32 to vector<8x128xf32>
    %677 = arith.addf %675, %676 : vector<8x128xf32>
    %cst_300 = arith.constant 5.000000e-01 : f32
    %678 = vector.broadcast %cst_300 : f32 to vector<8x128xf32>
    %679 = arith.mulf %678, %677 : vector<8x128xf32>
    %680 = arith.select %130, %675, %679 : vector<8x128xi1>, vector<8x128xf32>
    %c64_i32_301 = arith.constant 64 : i32
    %681 = tpu.dynamic_rotate %671 by %c64_i32_301 dim 1 : vector<8x128xf32>, i32 -> vector<8x128xf32>
    %682 = arith.mulf %681, %650 : vector<8x128xf32>
    %683 = arith.mulf %671, %680 : vector<8x128xf32>
    %684 = arith.addf %682, %683 : vector<8x128xf32>
    %c64_i32_302 = arith.constant 64 : i32
    %685 = tpu.dynamic_rotate %680 by %c64_i32_302 dim 1 : vector<8x128xf32>, i32 -> vector<8x128xf32>
    %686 = math.tanh %684 : vector<8x128xf32>
    %687 = arith.mulf %685, %686 : vector<8x128xf32>
    %688 = arith.truncf %687 : vector<8x128xf32> to vector<8x128xbf16>
    %c0_303 = arith.constant 0 : index
    %c0_304 = arith.constant 0 : index
    %689 = vector.load %arg10[%c0_303, %c0_304] : memref<128x128xbf16, #tpu.memory_space<vmem>>, vector<128x128xbf16>
    %cst_305 = arith.constant dense<0.000000e+00> : vector<8x128xf32>
    %690 = tpu.matmul %688, %689, %cst_305 {dimension_numbers = #tpu.dot_dimension_numbers<[1], [0], [0], [1], [0, 0, 1, 1], [], []>} : vector<8x128xbf16>, vector<128x128xbf16>, vector<8x128xf32> -> vector<8x128xf32>
    %691 = arith.addf %690, %588 : vector<8x128xf32>
    %692 = tpu.concatenate %691, %687 in 1 : vector<8x128xf32>, vector<8x128xf32> -> vector<8x256xf32>
    %693 = arith.truncf %692 : vector<8x256xf32> to vector<8x256xbf16>
    %c0_306 = arith.constant 0 : index
    %c0_307 = arith.constant 0 : index
    %694 = vector.load %arg8[%c0_306, %c0_307] : memref<256x256xbf16, #tpu.memory_space<vmem>>, vector<256x256xbf16>
    %cst_308 = arith.constant dense<0.000000e+00> : vector<8x256xf32>
    %695 = tpu.matmul %693, %694, %cst_308 {dimension_numbers = #tpu.dot_dimension_numbers<[1], [0], [0], [1], [0, 0, 1, 1], [], []>} : vector<8x256xbf16>, vector<256x256xbf16>, vector<8x256xf32> -> vector<8x256xf32>
    %696 = arith.addf %695, %585 : vector<8x256xf32>
    %697 = vector.extract_strided_slice %696 {offsets = [0, 0], sizes = [8, 128], strides = [1, 1]} : vector<8x256xf32> to vector<8x128xf32>
    %698 = vector.extract_strided_slice %696 {offsets = [0, 128], sizes = [8, 128], strides = [1, 1]} : vector<8x256xf32> to vector<8x128xf32>
    %cst_309 = arith.constant 5.000000e-01 : f32
    %699 = vector.broadcast %cst_309 : f32 to vector<8x128xf32>
    %700 = arith.mulf %699, %697 : vector<8x128xf32>
    %701 = math.tanh %700 : vector<8x128xf32>
    %cst_310 = arith.constant 1.000000e+00 : f32
    %702 = vector.broadcast %cst_310 : f32 to vector<8x128xf32>
    %703 = arith.addf %701, %702 : vector<8x128xf32>
    %cst_311 = arith.constant 5.000000e-01 : f32
    %704 = vector.broadcast %cst_311 : f32 to vector<8x128xf32>
    %705 = arith.mulf %704, %703 : vector<8x128xf32>
    %cst_312 = arith.constant 5.000000e-01 : f32
    %706 = vector.broadcast %cst_312 : f32 to vector<8x128xf32>
    %707 = arith.mulf %706, %698 : vector<8x128xf32>
    %708 = arith.select %130, %698, %707 : vector<8x128xi1>, vector<8x128xf32>
    %709 = math.tanh %708 : vector<8x128xf32>
    %cst_313 = arith.constant 1.000000e+00 : f32
    %710 = vector.broadcast %cst_313 : f32 to vector<8x128xf32>
    %711 = arith.addf %709, %710 : vector<8x128xf32>
    %cst_314 = arith.constant 5.000000e-01 : f32
    %712 = vector.broadcast %cst_314 : f32 to vector<8x128xf32>
    %713 = arith.mulf %712, %711 : vector<8x128xf32>
    %714 = arith.select %130, %709, %713 : vector<8x128xi1>, vector<8x128xf32>
    %c64_i32_315 = arith.constant 64 : i32
    %715 = tpu.dynamic_rotate %705 by %c64_i32_315 dim 1 : vector<8x128xf32>, i32 -> vector<8x128xf32>
    %716 = arith.mulf %715, %684 : vector<8x128xf32>
    %717 = arith.mulf %705, %714 : vector<8x128xf32>
    %718 = arith.addf %716, %717 : vector<8x128xf32>
    %c64_i32_316 = arith.constant 64 : i32
    %719 = tpu.dynamic_rotate %714 by %c64_i32_316 dim 1 : vector<8x128xf32>, i32 -> vector<8x128xf32>
    %720 = math.tanh %718 : vector<8x128xf32>
    %721 = arith.mulf %719, %720 : vector<8x128xf32>
    %722 = arith.truncf %721 : vector<8x128xf32> to vector<8x128xbf16>
    %c0_317 = arith.constant 0 : index
    %c0_318 = arith.constant 0 : index
    %723 = vector.load %arg10[%c0_317, %c0_318] : memref<128x128xbf16, #tpu.memory_space<vmem>>, vector<128x128xbf16>
    %cst_319 = arith.constant dense<0.000000e+00> : vector<8x128xf32>
    %724 = tpu.matmul %722, %723, %cst_319 {dimension_numbers = #tpu.dot_dimension_numbers<[1], [0], [0], [1], [0, 0, 1, 1], [], []>} : vector<8x128xbf16>, vector<128x128xbf16>, vector<8x128xf32> -> vector<8x128xf32>
    %725 = arith.addf %724, %588 : vector<8x128xf32>
    %726 = tpu.concatenate %725, %721 in 1 : vector<8x128xf32>, vector<8x128xf32> -> vector<8x256xf32>
    %727 = arith.truncf %726 : vector<8x256xf32> to vector<8x256xbf16>
    %c0_320 = arith.constant 0 : index
    %c0_321 = arith.constant 0 : index
    %728 = vector.load %arg8[%c0_320, %c0_321] : memref<256x256xbf16, #tpu.memory_space<vmem>>, vector<256x256xbf16>
    %cst_322 = arith.constant dense<0.000000e+00> : vector<8x256xf32>
    %729 = tpu.matmul %727, %728, %cst_322 {dimension_numbers = #tpu.dot_dimension_numbers<[1], [0], [0], [1], [0, 0, 1, 1], [], []>} : vector<8x256xbf16>, vector<256x256xbf16>, vector<8x256xf32> -> vector<8x256xf32>
    %730 = arith.addf %729, %585 : vector<8x256xf32>
    %731 = vector.extract_strided_slice %730 {offsets = [0, 0], sizes = [8, 128], strides = [1, 1]} : vector<8x256xf32> to vector<8x128xf32>
    %732 = vector.extract_strided_slice %730 {offsets = [0, 128], sizes = [8, 128], strides = [1, 1]} : vector<8x256xf32> to vector<8x128xf32>
    %cst_323 = arith.constant 5.000000e-01 : f32
    %733 = vector.broadcast %cst_323 : f32 to vector<8x128xf32>
    %734 = arith.mulf %733, %731 : vector<8x128xf32>
    %735 = math.tanh %734 : vector<8x128xf32>
    %cst_324 = arith.constant 1.000000e+00 : f32
    %736 = vector.broadcast %cst_324 : f32 to vector<8x128xf32>
    %737 = arith.addf %735, %736 : vector<8x128xf32>
    %cst_325 = arith.constant 5.000000e-01 : f32
    %738 = vector.broadcast %cst_325 : f32 to vector<8x128xf32>
    %739 = arith.mulf %738, %737 : vector<8x128xf32>
    %cst_326 = arith.constant 5.000000e-01 : f32
    %740 = vector.broadcast %cst_326 : f32 to vector<8x128xf32>
    %741 = arith.mulf %740, %732 : vector<8x128xf32>
    %742 = arith.select %130, %732, %741 : vector<8x128xi1>, vector<8x128xf32>
    %743 = math.tanh %742 : vector<8x128xf32>
    %cst_327 = arith.constant 1.000000e+00 : f32
    %744 = vector.broadcast %cst_327 : f32 to vector<8x128xf32>
    %745 = arith.addf %743, %744 : vector<8x128xf32>
    %cst_328 = arith.constant 5.000000e-01 : f32
    %746 = vector.broadcast %cst_328 : f32 to vector<8x128xf32>
    %747 = arith.mulf %746, %745 : vector<8x128xf32>
    %748 = arith.select %130, %743, %747 : vector<8x128xi1>, vector<8x128xf32>
    %c64_i32_329 = arith.constant 64 : i32
    %749 = tpu.dynamic_rotate %739 by %c64_i32_329 dim 1 : vector<8x128xf32>, i32 -> vector<8x128xf32>
    %750 = arith.mulf %749, %718 : vector<8x128xf32>
    %751 = arith.mulf %739, %748 : vector<8x128xf32>
    %752 = arith.addf %750, %751 : vector<8x128xf32>
    %c64_i32_330 = arith.constant 64 : i32
    %753 = tpu.dynamic_rotate %748 by %c64_i32_330 dim 1 : vector<8x128xf32>, i32 -> vector<8x128xf32>
    %754 = math.tanh %752 : vector<8x128xf32>
    %755 = arith.mulf %753, %754 : vector<8x128xf32>
    %756 = arith.truncf %755 : vector<8x128xf32> to vector<8x128xbf16>
    %c0_331 = arith.constant 0 : index
    %c0_332 = arith.constant 0 : index
    %757 = vector.load %arg10[%c0_331, %c0_332] : memref<128x128xbf16, #tpu.memory_space<vmem>>, vector<128x128xbf16>
    %cst_333 = arith.constant dense<0.000000e+00> : vector<8x128xf32>
    %758 = tpu.matmul %756, %757, %cst_333 {dimension_numbers = #tpu.dot_dimension_numbers<[1], [0], [0], [1], [0, 0, 1, 1], [], []>} : vector<8x128xbf16>, vector<128x128xbf16>, vector<8x128xf32> -> vector<8x128xf32>
    %759 = arith.addf %758, %588 : vector<8x128xf32>
    %760 = tpu.concatenate %759, %755 in 1 : vector<8x128xf32>, vector<8x128xf32> -> vector<8x256xf32>
    %761 = arith.truncf %760 : vector<8x256xf32> to vector<8x256xbf16>
    %c0_334 = arith.constant 0 : index
    %c0_335 = arith.constant 0 : index
    %762 = vector.load %arg8[%c0_334, %c0_335] : memref<256x256xbf16, #tpu.memory_space<vmem>>, vector<256x256xbf16>
    %cst_336 = arith.constant dense<0.000000e+00> : vector<8x256xf32>
    %763 = tpu.matmul %761, %762, %cst_336 {dimension_numbers = #tpu.dot_dimension_numbers<[1], [0], [0], [1], [0, 0, 1, 1], [], []>} : vector<8x256xbf16>, vector<256x256xbf16>, vector<8x256xf32> -> vector<8x256xf32>
    %764 = arith.addf %763, %585 : vector<8x256xf32>
    %765 = vector.extract_strided_slice %764 {offsets = [0, 0], sizes = [8, 128], strides = [1, 1]} : vector<8x256xf32> to vector<8x128xf32>
    %766 = vector.extract_strided_slice %764 {offsets = [0, 128], sizes = [8, 128], strides = [1, 1]} : vector<8x256xf32> to vector<8x128xf32>
    %cst_337 = arith.constant 5.000000e-01 : f32
    %767 = vector.broadcast %cst_337 : f32 to vector<8x128xf32>
    %768 = arith.mulf %767, %765 : vector<8x128xf32>
    %769 = math.tanh %768 : vector<8x128xf32>
    %cst_338 = arith.constant 1.000000e+00 : f32
    %770 = vector.broadcast %cst_338 : f32 to vector<8x128xf32>
    %771 = arith.addf %769, %770 : vector<8x128xf32>
    %cst_339 = arith.constant 5.000000e-01 : f32
    %772 = vector.broadcast %cst_339 : f32 to vector<8x128xf32>
    %773 = arith.mulf %772, %771 : vector<8x128xf32>
    %cst_340 = arith.constant 5.000000e-01 : f32
    %774 = vector.broadcast %cst_340 : f32 to vector<8x128xf32>
    %775 = arith.mulf %774, %766 : vector<8x128xf32>
    %776 = arith.select %130, %766, %775 : vector<8x128xi1>, vector<8x128xf32>
    %777 = math.tanh %776 : vector<8x128xf32>
    %cst_341 = arith.constant 1.000000e+00 : f32
    %778 = vector.broadcast %cst_341 : f32 to vector<8x128xf32>
    %779 = arith.addf %777, %778 : vector<8x128xf32>
    %cst_342 = arith.constant 5.000000e-01 : f32
    %780 = vector.broadcast %cst_342 : f32 to vector<8x128xf32>
    %781 = arith.mulf %780, %779 : vector<8x128xf32>
    %782 = arith.select %130, %777, %781 : vector<8x128xi1>, vector<8x128xf32>
    %c64_i32_343 = arith.constant 64 : i32
    %783 = tpu.dynamic_rotate %773 by %c64_i32_343 dim 1 : vector<8x128xf32>, i32 -> vector<8x128xf32>
    %784 = arith.mulf %783, %752 : vector<8x128xf32>
    %785 = arith.mulf %773, %782 : vector<8x128xf32>
    %786 = arith.addf %784, %785 : vector<8x128xf32>
    %c64_i32_344 = arith.constant 64 : i32
    %787 = tpu.dynamic_rotate %782 by %c64_i32_344 dim 1 : vector<8x128xf32>, i32 -> vector<8x128xf32>
    %788 = math.tanh %786 : vector<8x128xf32>
    %789 = arith.mulf %787, %788 : vector<8x128xf32>
    %790 = arith.truncf %789 : vector<8x128xf32> to vector<8x128xbf16>
    %c0_345 = arith.constant 0 : index
    %c0_346 = arith.constant 0 : index
    %791 = vector.load %arg10[%c0_345, %c0_346] : memref<128x128xbf16, #tpu.memory_space<vmem>>, vector<128x128xbf16>
    %cst_347 = arith.constant dense<0.000000e+00> : vector<8x128xf32>
    %792 = tpu.matmul %790, %791, %cst_347 {dimension_numbers = #tpu.dot_dimension_numbers<[1], [0], [0], [1], [0, 0, 1, 1], [], []>} : vector<8x128xbf16>, vector<128x128xbf16>, vector<8x128xf32> -> vector<8x128xf32>
    %793 = arith.addf %792, %588 : vector<8x128xf32>
    %794 = tpu.concatenate %793, %789 in 1 : vector<8x128xf32>, vector<8x128xf32> -> vector<8x256xf32>
    %795 = arith.truncf %794 : vector<8x256xf32> to vector<8x256xbf16>
    %c0_348 = arith.constant 0 : index
    %c0_349 = arith.constant 0 : index
    %796 = vector.load %arg8[%c0_348, %c0_349] : memref<256x256xbf16, #tpu.memory_space<vmem>>, vector<256x256xbf16>
    %cst_350 = arith.constant dense<0.000000e+00> : vector<8x256xf32>
    %797 = tpu.matmul %795, %796, %cst_350 {dimension_numbers = #tpu.dot_dimension_numbers<[1], [0], [0], [1], [0, 0, 1, 1], [], []>} : vector<8x256xbf16>, vector<256x256xbf16>, vector<8x256xf32> -> vector<8x256xf32>
    %798 = arith.addf %797, %585 : vector<8x256xf32>
    %799 = vector.extract_strided_slice %798 {offsets = [0, 0], sizes = [8, 128], strides = [1, 1]} : vector<8x256xf32> to vector<8x128xf32>
    %800 = vector.extract_strided_slice %798 {offsets = [0, 128], sizes = [8, 128], strides = [1, 1]} : vector<8x256xf32> to vector<8x128xf32>
    %cst_351 = arith.constant 5.000000e-01 : f32
    %801 = vector.broadcast %cst_351 : f32 to vector<8x128xf32>
    %802 = arith.mulf %801, %799 : vector<8x128xf32>
    %803 = math.tanh %802 : vector<8x128xf32>
    %cst_352 = arith.constant 1.000000e+00 : f32
    %804 = vector.broadcast %cst_352 : f32 to vector<8x128xf32>
    %805 = arith.addf %803, %804 : vector<8x128xf32>
    %cst_353 = arith.constant 5.000000e-01 : f32
    %806 = vector.broadcast %cst_353 : f32 to vector<8x128xf32>
    %807 = arith.mulf %806, %805 : vector<8x128xf32>
    %cst_354 = arith.constant 5.000000e-01 : f32
    %808 = vector.broadcast %cst_354 : f32 to vector<8x128xf32>
    %809 = arith.mulf %808, %800 : vector<8x128xf32>
    %810 = arith.select %130, %800, %809 : vector<8x128xi1>, vector<8x128xf32>
    %811 = math.tanh %810 : vector<8x128xf32>
    %cst_355 = arith.constant 1.000000e+00 : f32
    %812 = vector.broadcast %cst_355 : f32 to vector<8x128xf32>
    %813 = arith.addf %811, %812 : vector<8x128xf32>
    %cst_356 = arith.constant 5.000000e-01 : f32
    %814 = vector.broadcast %cst_356 : f32 to vector<8x128xf32>
    %815 = arith.mulf %814, %813 : vector<8x128xf32>
    %816 = arith.select %130, %811, %815 : vector<8x128xi1>, vector<8x128xf32>
    %c64_i32_357 = arith.constant 64 : i32
    %817 = tpu.dynamic_rotate %807 by %c64_i32_357 dim 1 : vector<8x128xf32>, i32 -> vector<8x128xf32>
    %818 = arith.mulf %817, %786 : vector<8x128xf32>
    %819 = arith.mulf %807, %816 : vector<8x128xf32>
    %820 = arith.addf %818, %819 : vector<8x128xf32>
    %c64_i32_358 = arith.constant 64 : i32
    %821 = tpu.dynamic_rotate %816 by %c64_i32_358 dim 1 : vector<8x128xf32>, i32 -> vector<8x128xf32>
    %822 = math.tanh %820 : vector<8x128xf32>
    %823 = arith.mulf %821, %822 : vector<8x128xf32>
    %824 = arith.truncf %823 : vector<8x128xf32> to vector<8x128xbf16>
    %c0_359 = arith.constant 0 : index
    %c0_360 = arith.constant 0 : index
    %825 = vector.load %arg10[%c0_359, %c0_360] : memref<128x128xbf16, #tpu.memory_space<vmem>>, vector<128x128xbf16>
    %cst_361 = arith.constant dense<0.000000e+00> : vector<8x128xf32>
    %826 = tpu.matmul %824, %825, %cst_361 {dimension_numbers = #tpu.dot_dimension_numbers<[1], [0], [0], [1], [0, 0, 1, 1], [], []>} : vector<8x128xbf16>, vector<128x128xbf16>, vector<8x128xf32> -> vector<8x128xf32>
    %827 = arith.addf %826, %588 : vector<8x128xf32>
    %828 = tpu.concatenate %827, %823 in 1 : vector<8x128xf32>, vector<8x128xf32> -> vector<8x256xf32>
    %829 = arith.truncf %828 : vector<8x256xf32> to vector<8x256xbf16>
    %c0_362 = arith.constant 0 : index
    %c0_363 = arith.constant 0 : index
    %830 = vector.load %arg8[%c0_362, %c0_363] : memref<256x256xbf16, #tpu.memory_space<vmem>>, vector<256x256xbf16>
    %cst_364 = arith.constant dense<0.000000e+00> : vector<8x256xf32>
    %831 = tpu.matmul %829, %830, %cst_364 {dimension_numbers = #tpu.dot_dimension_numbers<[1], [0], [0], [1], [0, 0, 1, 1], [], []>} : vector<8x256xbf16>, vector<256x256xbf16>, vector<8x256xf32> -> vector<8x256xf32>
    %832 = arith.addf %831, %585 : vector<8x256xf32>
    %833 = vector.extract_strided_slice %832 {offsets = [0, 0], sizes = [8, 128], strides = [1, 1]} : vector<8x256xf32> to vector<8x128xf32>
    %834 = vector.extract_strided_slice %832 {offsets = [0, 128], sizes = [8, 128], strides = [1, 1]} : vector<8x256xf32> to vector<8x128xf32>
    %cst_365 = arith.constant 5.000000e-01 : f32
    %835 = vector.broadcast %cst_365 : f32 to vector<8x128xf32>
    %836 = arith.mulf %835, %833 : vector<8x128xf32>
    %837 = math.tanh %836 : vector<8x128xf32>
    %cst_366 = arith.constant 1.000000e+00 : f32
    %838 = vector.broadcast %cst_366 : f32 to vector<8x128xf32>
    %839 = arith.addf %837, %838 : vector<8x128xf32>
    %cst_367 = arith.constant 5.000000e-01 : f32
    %840 = vector.broadcast %cst_367 : f32 to vector<8x128xf32>
    %841 = arith.mulf %840, %839 : vector<8x128xf32>
    %cst_368 = arith.constant 5.000000e-01 : f32
    %842 = vector.broadcast %cst_368 : f32 to vector<8x128xf32>
    %843 = arith.mulf %842, %834 : vector<8x128xf32>
    %844 = arith.select %130, %834, %843 : vector<8x128xi1>, vector<8x128xf32>
    %845 = math.tanh %844 : vector<8x128xf32>
    %cst_369 = arith.constant 1.000000e+00 : f32
    %846 = vector.broadcast %cst_369 : f32 to vector<8x128xf32>
    %847 = arith.addf %845, %846 : vector<8x128xf32>
    %cst_370 = arith.constant 5.000000e-01 : f32
    %848 = vector.broadcast %cst_370 : f32 to vector<8x128xf32>
    %849 = arith.mulf %848, %847 : vector<8x128xf32>
    %850 = arith.select %130, %845, %849 : vector<8x128xi1>, vector<8x128xf32>
    %c64_i32_371 = arith.constant 64 : i32
    %851 = tpu.dynamic_rotate %841 by %c64_i32_371 dim 1 : vector<8x128xf32>, i32 -> vector<8x128xf32>
    %852 = arith.mulf %851, %820 : vector<8x128xf32>
    %853 = arith.mulf %841, %850 : vector<8x128xf32>
    %854 = arith.addf %852, %853 : vector<8x128xf32>
    %c64_i32_372 = arith.constant 64 : i32
    %855 = tpu.dynamic_rotate %850 by %c64_i32_372 dim 1 : vector<8x128xf32>, i32 -> vector<8x128xf32>
    %856 = math.tanh %854 : vector<8x128xf32>
    %857 = arith.mulf %855, %856 : vector<8x128xf32>
    %858 = arith.truncf %857 : vector<8x128xf32> to vector<8x128xbf16>
    %c0_373 = arith.constant 0 : index
    %c0_374 = arith.constant 0 : index
    %859 = vector.load %arg10[%c0_373, %c0_374] : memref<128x128xbf16, #tpu.memory_space<vmem>>, vector<128x128xbf16>
    %cst_375 = arith.constant dense<0.000000e+00> : vector<8x128xf32>
    %860 = tpu.matmul %858, %859, %cst_375 {dimension_numbers = #tpu.dot_dimension_numbers<[1], [0], [0], [1], [0, 0, 1, 1], [], []>} : vector<8x128xbf16>, vector<128x128xbf16>, vector<8x128xf32> -> vector<8x128xf32>
    %861 = arith.addf %860, %588 : vector<8x128xf32>
    %862 = tpu.concatenate %623, %657, %691, %725, %759, %793, %827, %861 in 1 : vector<8x128xf32>, vector<8x128xf32>, vector<8x128xf32>, vector<8x128xf32>, vector<8x128xf32>, vector<8x128xf32>, vector<8x128xf32>, vector<8x128xf32> -> vector<8x1024xf32>
    %c0_376 = arith.constant 0 : index
    %c0_377 = arith.constant 0 : index
    %863 = vector.load %arg12[%c0_376, %c0_377] : memref<8x1024xf32, #tpu.memory_space<vmem>>, vector<8x1024xf32>
    tpu.vector_store %arg12[%c0_376, %c0_377], %862 {strides = array<i32>} : memref<8x1024xf32, #tpu.memory_space<vmem>>, vector<8x1024xf32>,
    return
  }
}

</mosaic_0001>

<bundles_post_ra>
// kernel: tts_simple_forward.1
= control target key start
LH: loop header
LB: loop body
LE: loop exit
PB: predicated region body
PF: predicated region fallthrough
CT: control target
= control target key end

     0   :  { %v10554_v0 = vmov 0.0   ;;  %vm7500_vm0 = vmmov 0   ;;  %vm142_vm1 = vcmask 261120   ;;  %vm3205_vm2 = vcmask 523264   ;;  %s10538_s1 = inlined_call_operand.vmem [shape: bf16[10,32,32], index: 1, kind: input, shape index: {}]   ;;  %s10539_s0 = inlined_call_operand.vmem [shape: f32[208,32], index: 0, kind: input, shape index: {}]   ;;  %s10540_s3 = inlined_call_operand.vmem [shape: bf16[5,32,64], index: 3, kind: input, shape index: {}]   ;;  %s10541_s2 = inlined_call_operand.vmem [shape: f32[1,32], index: 2, kind: input, shape index: {}]   ;;  %s10542_s5 = inlined_call_operand.vmem [shape: bf16[64,256], index: 5, kind: input, shape index: {}]   ;;  %s10543_s6 = inlined_call_operand.vmem [shape: bf16[128,256], index: 6, kind: input, shape index: {}]   ;;  %s10544_s4 = inlined_call_operand.vmem [shape: f32[1,64], index: 4, kind: input, shape index: {}]   ;;  %s10545_s7 = inlined_call_operand.vmem [shape: f32[1,256], index: 7, kind: input, shape index: {}]   ;;  %s10546_s8 = inlined_call_operand.vmem [shape: bf16[256,256], index: 8, kind: input, shape index: {}]   ;;  %s10547_s10 = inlined_call_operand.vmem [shape: bf16[128,128], index: 10, kind: input, shape index: {}]   ;;  %s10548_s9 = inlined_call_operand.vmem [shape: f32[1,256], index: 9, kind: input, shape index: {}]   ;;  %s10549_s11 = inlined_call_operand.vmem [shape: f32[1,128], index: 11, kind: input, shape index: {}]   ;;  %s10550_s12 = inlined_call_operand.vmem [shape: f32[8,1024], index: 12, kind: output, shape index: {}]  }
   0x1   :  { %6177 = vmatprep.subr.bf16.mxu0 %v10554_v0  ;;  %6233 = vmatprep.subr.bf16.mxu1 %v10554_v0  ;;  %v7182_v1 = vld [vmem:[%s10538_s1 + $0x18] sm:$0xff]   ;;  %v7183_v2 = vld [vmem:[%s10538_s1 + $0x8] sm:$0xff]   ;;  %v7184_v3 = vld [vmem:[%s10538_s1 + $0x10] sm:$0xff]  }
   0x2   :  { %6181 = vmatprep.mubr.msk.bf16.mxu0 %vm7500_vm0, %v10554_v0  ;;  %6237 = vmatprep.mubr.msk.bf16.mxu1 %vm7500_vm0, %v10554_v0  ;;  %v7185_v4 = vld [vmem:[%s10538_s1] sm:$0xff]   ;;  %v70_v6 = vld [vmem:[%s10539_s0 + $0x8] sm:$0xff]  ;;  %v7187_v11 = vld [vmem:[%s10538_s1 + $0x38] sm:$0xff]  }
   0x3   :  { %6178 = vmatpush3.bf16.msra.mxu0 %v7182_v1  ;;  %6234 = vmatpush3.bf16.msra.mxu1 %v7183_v2  ;;  %v69_v5 = vld [vmem:[%s10539_s0] sm:$0xff]  ;;  %v94_v7 = vld [vmem:[%s10539_s0 + $0xc8] sm:$0xff]  ;;  %v71_v12 = vld [vmem:[%s10539_s0 + $0x10] sm:$0xff] }
   0x4   :  { %6179 = vmatprep.subr.bf16.mxu0 %v10554_v0  ;;  %6235 = vmatprep.subr.bf16.mxu1 %v10554_v0  ;;  %v7598_v8 = vpack.c.bf16 %v70_v6, %v69_v5  ;;  %v7600_v9 = vpack.c.bf16 %v69_v5, %v94_v7  ;;  %v7186_v10 = vld [vmem:[%s10538_s1 + $0x28] sm:$0xff]   ;;  %v72_v13 = vld [vmem:[%s10539_s0 + $0x18] sm:$0xff]  ;;  %v7188_v14 = vld [vmem:[%s10538_s1 + $0x20] sm:$0xff]   ;;  %v7634_v17 = vpack.c.bf16 %v71_v12, %v70_v6 }
   0x5   :  { %v7189_v15 = vld [vmem:[%s10538_s1 + $0x30] sm:$0xff]   ;;  %v7631_v16 = vpack.c.bf16 %v72_v13, %v71_v12  ;;  %v7640_v18 = vld [vmem:[%s10539_s0 + $0xc0] sm:$0xff]  ;;  %v74_v21 = vld [vmem:[%s10539_s0 + $0x28] sm:$0xff] }
   0x6   :  { %v73_v19 = vld [vmem:[%s10539_s0 + $0x20] sm:$0xff]  ;;  %v7649_v20 = vpack.c.bf16 %v94_v7, %v7640_v18  ;;  %v75_v24 = vld [vmem:[%s10539_s0 + $0x30] sm:$0xff]  ;;  %v76_v25 = vld [vmem:[%s10539_s0 + $0x38] sm:$0xff] }
   0x7   :  { %6180 = vmatpush3.bf16.msra.mxu0 %v7184_v3  ;;  %6236 = vmatpush3.bf16.msra.mxu1 %v7185_v4  ;;  %v7660_v22 = vpack.c.bf16 %v74_v21, %v73_v19  ;;  %v7662_v23 = vpack.c.bf16 %v73_v19, %v72_v13  ;;  %v7678_v26 = vpack.c.bf16 %v76_v25, %v75_v24  ;;  %v77_v28 = vld [vmem:[%s10539_s0 + $0x40] sm:$0xff]  ;;  %v78_v29 = vld [vmem:[%s10539_s0 + $0x48] sm:$0xff]  ;;  %v79_v32 = vld [vmem:[%s10539_s0 + $0x50] sm:$0xff] }
   0x8   :  { %6289 = vmatprep.subr.bf16.mxu0 %v10554_v0  ;;  %6345 = vmatprep.subr.bf16.mxu1 %v10554_v0  ;;  %v7680_v27 = vpack.c.bf16 %v75_v24, %v74_v21  ;;  %v7696_v30 = vpack.c.bf16 %v78_v29, %v77_v28  ;;  %v7698_v31 = vpack.c.bf16 %v77_v28, %v76_v25  ;;  %v80_v33 = vld [vmem:[%s10539_s0 + $0x58] sm:$0xff]  ;;  %v81_v36 = vld [vmem:[%s10539_s0 + $0x60] sm:$0xff]  ;;  %v82_v37 = vld [vmem:[%s10539_s0 + $0x68] sm:$0xff] }
   0x9   :  { %v7714_v34 = vpack.c.bf16 %v80_v33, %v79_v32  ;;  %v7716_v35 = vpack.c.bf16 %v79_v32, %v78_v29  ;;  %v7732_v38 = vpack.c.bf16 %v82_v37, %v81_v36  ;;  %v7734_v39 = vpack.c.bf16 %v81_v36, %v80_v33  ;;  %v83_v40 = vld [vmem:[%s10539_s0 + $0x70] sm:$0xff]  ;;  %v84_v41 = vld [vmem:[%s10539_s0 + $0x78] sm:$0xff]  ;;  %v85_v44 = vld [vmem:[%s10539_s0 + $0x80] sm:$0xff] }
   0xa   :  { %6182 = vmatmul.mubr.msk.bf16.vlgmr.msra.gmra.mxu0 %vm142_vm1, %v7598_v8  ;;  %6238 = vmatmul.mubr.msk.bf16.vlgmr.msra.gmra.mxu1 %vm142_vm1, %v7600_v9  ;;  %v7750_v42 = vpack.c.bf16 %v84_v41, %v83_v40  ;;  %v7752_v43 = vpack.c.bf16 %v83_v40, %v82_v37  ;;  %v86_v45 = vld [vmem:[%s10539_s0 + $0x88] sm:$0xff]  ;;  %v7770_v47 = vpack.c.bf16 %v85_v44, %v84_v41  ;;  %v87_v48 = vld [vmem:[%s10539_s0 + $0x90] sm:$0xff]  ;;  %v88_v49 = vld [vmem:[%s10539_s0 + $0x98] sm:$0xff] }
   0xb   :  { %6290 = vmatpush3.bf16.msra.mxu0 %v7186_v10  ;;  %6346 = vmatpush3.bf16.msra.mxu1 %v7187_v11  ;;  %v7768_v46 = vpack.c.bf16 %v86_v45, %v85_v44  ;;  %v7786_v50 = vpack.c.bf16 %v88_v49, %v87_v48  ;;  %v7788_v51 = vpack.c.bf16 %v87_v48, %v86_v45  ;;  %v89_v52 = vld [vmem:[%s10539_s0 + $0xa0] sm:$0xff]  ;;  %v90_v53 = vld [vmem:[%s10539_s0 + $0xa8] sm:$0xff]  ;;  %v91_v56 = vld [vmem:[%s10539_s0 + $0xb0] sm:$0xff] }
   0xc   :  { %6185 = vmatprep.mubr.msk.bf16.mxu0 %vm7500_vm0, %v10554_v0  ;;  %6241 = vmatprep.mubr.msk.bf16.mxu1 %vm7500_vm0, %v10554_v0  ;;  %v7804_v54 = vpack.c.bf16 %v90_v53, %v89_v52  ;;  %v7806_v55 = vpack.c.bf16 %v89_v52, %v88_v49  ;;  %v92_v57 = vld [vmem:[%s10539_s0 + $0xb8] sm:$0xff]  ;;  %v7824_v59 = vpack.c.bf16 %v91_v56, %v90_v53  ;;  %v7190_v61 = vld [vmem:[%s10538_s1 + $0x48] sm:$0xff]   ;;  %v7192_v63 = vld [vmem:[%s10538_s1 + $0x40] sm:$0xff]  }
   0xd   :  { %6291 = vmatprep.subr.bf16.mxu0 %v10554_v0  ;;  %6347 = vmatprep.subr.bf16.mxu1 %v10554_v0  ;;  %v7822_v58 = vpack.c.bf16 %v92_v57, %v91_v56  ;;  %v7835_v60 = vpack.c.bf16 %v7640_v18, %v92_v57  ;;  %v7191_v62 = vld [vmem:[%s10538_s1 + $0x58] sm:$0xff]   ;;  %v7193_v1 = vld [vmem:[%s10538_s1 + $0x50] sm:$0xff]   ;;  %v7194_v25 = vld [vmem:[%s10538_s1 + $0x68] sm:$0xff]  }
   0xe   :  { %v7195_v32 = vld [vmem:[%s10538_s1 + $0x78] sm:$0xff]   ;;  %v7196_v40 = vld [vmem:[%s10538_s1 + $0x60] sm:$0xff]   ;;  %v7197_v45 = vld [vmem:[%s10538_s1 + $0x70] sm:$0xff]  }
   0xf   :  { %6292 = vmatpush3.bf16.msra.mxu0 %v7188_v14  ;;  %6348 = vmatpush3.bf16.msra.mxu1 %v7189_v15 }
  0x10   :  { %6401 = vmatprep.subr.bf16.mxu0 %v10554_v0  ;;  %6457 = vmatprep.subr.bf16.mxu1 %v10554_v0 }
  0x12   :  { %6186 = vmatmul.mubr.msk.bf16.gmra.mxu0 %vm142_vm1, %v7631_v16  ;;  %6242 = vmatmul.mubr.msk.bf16.gmra.mxu1 %vm142_vm1, %v7634_v17 }
  0x13   :  { %6189 = vmatprep.mubr.msk.bf16.mxu0 %vm7500_vm0, %v10554_v0  ;;  %6245 = vmatprep.mubr.msk.bf16.mxu1 %vm7500_vm0, %v10554_v0 }
  0x1a   :  { %6190 = vmatmul.mubr.msk.bf16.gmra.mxu0 %vm142_vm1, %v7660_v22  ;;  %6246 = vmatmul.mubr.msk.bf16.gmra.mxu1 %vm142_vm1, %v7662_v23 }
  0x1b   :  { %6193 = vmatprep.mubr.msk.bf16.mxu0 %vm7500_vm0, %v10554_v0  ;;  %6249 = vmatprep.mubr.msk.bf16.mxu1 %vm7500_vm0, %v10554_v0 }
  0x22   :  { %6194 = vmatmul.mubr.msk.bf16.gmra.mxu0 %vm142_vm1, %v7678_v26  ;;  %6250 = vmatmul.mubr.msk.bf16.gmra.mxu1 %vm142_vm1, %v7680_v27 }
  0x23   :  { %6197 = vmatprep.mubr.msk.bf16.mxu0 %vm7500_vm0, %v10554_v0  ;;  %6253 = vmatprep.mubr.msk.bf16.mxu1 %vm7500_vm0, %v10554_v0 }
  0x2a   :  { %6198 = vmatmul.mubr.msk.bf16.gmra.mxu0 %vm142_vm1, %v7696_v30  ;;  %6254 = vmatmul.mubr.msk.bf16.gmra.mxu1 %vm142_vm1, %v7698_v31 }
  0x2b   :  { %6201 = vmatprep.mubr.msk.bf16.mxu0 %vm7500_vm0, %v10554_v0  ;;  %6257 = vmatprep.mubr.msk.bf16.mxu1 %vm7500_vm0, %v10554_v0 }
  0x32   :  { %6202 = vmatmul.mubr.msk.bf16.gmra.mxu0 %vm142_vm1, %v7714_v34  ;;  %6258 = vmatmul.mubr.msk.bf16.gmra.mxu1 %vm142_vm1, %v7716_v35 }
  0x33   :  { %6205 = vmatprep.mubr.msk.bf16.mxu0 %vm7500_vm0, %v10554_v0  ;;  %6261 = vmatprep.mubr.msk.bf16.mxu1 %vm7500_vm0, %v10554_v0 }
  0x3a   :  { %6206 = vmatmul.mubr.msk.bf16.gmra.mxu0 %vm142_vm1, %v7732_v38  ;;  %6262 = vmatmul.mubr.msk.bf16.gmra.mxu1 %vm142_vm1, %v7734_v39 }
  0x3b   :  { %6209 = vmatprep.mubr.msk.bf16.mxu0 %vm7500_vm0, %v10554_v0  ;;  %6265 = vmatprep.mubr.msk.bf16.mxu1 %vm7500_vm0, %v10554_v0 }
  0x42   :  { %6210 = vmatmul.mubr.msk.bf16.gmra.mxu0 %vm142_vm1, %v7750_v42  ;;  %6266 = vmatmul.mubr.msk.bf16.gmra.mxu1 %vm142_vm1, %v7752_v43 }
  0x43   :  { %6213 = vmatprep.mubr.msk.bf16.mxu0 %vm7500_vm0, %v10554_v0  ;;  %6269 = vmatprep.mubr.msk.bf16.mxu1 %vm7500_vm0, %v10554_v0 }
  0x4a   :  { %6214 = vmatmul.mubr.msk.bf16.gmra.mxu0 %vm142_vm1, %v7768_v46  ;;  %6270 = vmatmul.mubr.msk.bf16.gmra.mxu1 %vm142_vm1, %v7770_v47 }
  0x4b   :  { %6217 = vmatprep.mubr.msk.bf16.mxu0 %vm7500_vm0, %v10554_v0  ;;  %6273 = vmatprep.mubr.msk.bf16.mxu1 %vm7500_vm0, %v10554_v0 }
  0x52   :  { %6218 = vmatmul.mubr.msk.bf16.gmra.mxu0 %vm142_vm1, %v7786_v50  ;;  %6274 = vmatmul.mubr.msk.bf16.gmra.mxu1 %vm142_vm1, %v7788_v51 }
  0x53   :  { %6221 = vmatprep.mubr.msk.bf16.mxu0 %vm7500_vm0, %v10554_v0  ;;  %6277 = vmatprep.mubr.msk.bf16.mxu1 %vm7500_vm0, %v10554_v0 }
  0x5a   :  { %6222 = vmatmul.mubr.msk.bf16.gmra.mxu0 %vm142_vm1, %v7804_v54  ;;  %6278 = vmatmul.mubr.msk.bf16.gmra.mxu1 %vm142_vm1, %v7806_v55 }
  0x5b   :  { %6225 = vmatprep.mubr.msk.bf16.mxu0 %vm7500_vm0, %v10554_v0  ;;  %6281 = vmatprep.mubr.msk.bf16.mxu1 %vm7500_vm0, %v10554_v0 }
  0x62   :  { %6226 = vmatmul.mubr.msk.bf16.gmra.mxu0 %vm142_vm1, %v7822_v58  ;;  %6282 = vmatmul.mubr.msk.bf16.gmra.mxu1 %vm142_vm1, %v7824_v59 }
  0x63   :  { %6229 = vmatprep.mubr.msk.bf16.mxu0 %vm7500_vm0, %v10554_v0  ;;  %6285 = vmatprep.mubr.msk.bf16.mxu1 %vm7500_vm0, %v10554_v0 }
  0x6a   :  { %6230 = vmatmul.mubr.msk.bf16.gmra.mxu0 %vm142_vm1, %v7649_v20  ;;  %6286 = vmatmul.mubr.msk.bf16.gmra.mxu1 %vm142_vm1, %v7835_v60 }
  0x6b   :  { %6293 = vmatprep.mubr.msk.bf16.mxu0 %vm7500_vm0, %v10554_v0  ;;  %6349 = vmatprep.mubr.msk.bf16.mxu1 %vm7500_vm0, %v10554_v0 }
  0x72   :  { %6294 = vmatmul.mubr.msk.bf16.vlgmr.msra.gmra.mxu0 %vm142_vm1, %v7634_v17  ;;  %6350 = vmatmul.mubr.msk.bf16.vlgmr.msra.gmra.mxu1 %vm142_vm1, %v7631_v16 }
  0x73   :  { %6402 = vmatpush3.bf16.msra.mxu0 %v7190_v61  ;;  %6458 = vmatpush3.bf16.msra.mxu1 %v7191_v62 }
  0x74   :  { %6297 = vmatprep.mubr.msk.bf16.mxu0 %vm7500_vm0, %v10554_v0  ;;  %6353 = vmatprep.mubr.msk.bf16.mxu1 %vm7500_vm0, %v10554_v0 }
  0x75   :  { %6403 = vmatprep.subr.bf16.mxu0 %v10554_v0  ;;  %6459 = vmatprep.subr.bf16.mxu1 %v10554_v0 }
  0x77   :  { %6404 = vmatpush3.bf16.msra.mxu0 %v7192_v63  ;;  %6460 = vmatpush3.bf16.msra.mxu1 %v7193_v1 }
  0x78   :  { %6513 = vmatprep.subr.bf16.mxu0 %v10554_v0  ;;  %6569 = vmatprep.subr.bf16.mxu1 %v10554_v0 }
  0x7a   :  { %6298 = vmatmul.mubr.msk.bf16.gmra.mxu0 %vm142_vm1, %v7662_v23  ;;  %6354 = vmatmul.mubr.msk.bf16.gmra.mxu1 %vm142_vm1, %v7660_v22 }
  0x7b   :  { %6301 = vmatprep.mubr.msk.bf16.mxu0 %vm7500_vm0, %v10554_v0  ;;  %6357 = vmatprep.mubr.msk.bf16.mxu1 %vm7500_vm0, %v10554_v0 }
  0x82   :  { %6302 = vmatmul.mubr.msk.bf16.gmra.mxu0 %vm142_vm1, %v7680_v27  ;;  %6358 = vmatmul.mubr.msk.bf16.gmra.mxu1 %vm142_vm1, %v7678_v26 }
  0x83   :  { %6305 = vmatprep.mubr.msk.bf16.mxu0 %vm7500_vm0, %v10554_v0  ;;  %6361 = vmatprep.mubr.msk.bf16.mxu1 %vm7500_vm0, %v10554_v0 }
  0x8a   :  { %6306 = vmatmul.mubr.msk.bf16.gmra.mxu0 %vm142_vm1, %v7698_v31  ;;  %6362 = vmatmul.mubr.msk.bf16.gmra.mxu1 %vm142_vm1, %v7696_v30 }
  0x8b   :  { %6309 = vmatprep.mubr.msk.bf16.mxu0 %vm7500_vm0, %v10554_v0  ;;  %6365 = vmatprep.mubr.msk.bf16.mxu1 %vm7500_vm0, %v10554_v0 }
  0x92   :  { %6310 = vmatmul.mubr.msk.bf16.gmra.mxu0 %vm142_vm1, %v7716_v35  ;;  %6366 = vmatmul.mubr.msk.bf16.gmra.mxu1 %vm142_vm1, %v7714_v34 }
  0x93   :  { %6313 = vmatprep.mubr.msk.bf16.mxu0 %vm7500_vm0, %v10554_v0  ;;  %6369 = vmatprep.mubr.msk.bf16.mxu1 %vm7500_vm0, %v10554_v0 }
  0x9a   :  { %6314 = vmatmul.mubr.msk.bf16.gmra.mxu0 %vm142_vm1, %v7734_v39  ;;  %6370 = vmatmul.mubr.msk.bf16.gmra.mxu1 %vm142_vm1, %v7732_v38 }
  0x9b   :  { %6317 = vmatprep.mubr.msk.bf16.mxu0 %vm7500_vm0, %v10554_v0  ;;  %6373 = vmatprep.mubr.msk.bf16.mxu1 %vm7500_vm0, %v10554_v0 }
  0xa2   :  { %6318 = vmatmul.mubr.msk.bf16.gmra.mxu0 %vm142_vm1, %v7752_v43  ;;  %6374 = vmatmul.mubr.msk.bf16.gmra.mxu1 %vm142_vm1, %v7750_v42 }
  0xa3   :  { %6321 = vmatprep.mubr.msk.bf16.mxu0 %vm7500_vm0, %v10554_v0  ;;  %6377 = vmatprep.mubr.msk.bf16.mxu1 %vm7500_vm0, %v10554_v0 }
  0xaa   :  { %6322 = vmatmul.mubr.msk.bf16.gmra.mxu0 %vm142_vm1, %v7770_v47  ;;  %6378 = vmatmul.mubr.msk.bf16.gmra.mxu1 %vm142_vm1, %v7768_v46 }
  0xab   :  { %6325 = vmatprep.mubr.msk.bf16.mxu0 %vm7500_vm0, %v10554_v0  ;;  %6381 = vmatprep.mubr.msk.bf16.mxu1 %vm7500_vm0, %v10554_v0 }
  0xb2   :  { %6326 = vmatmul.mubr.msk.bf16.gmra.mxu0 %vm142_vm1, %v7788_v51  ;;  %6382 = vmatmul.mubr.msk.bf16.gmra.mxu1 %vm142_vm1, %v7786_v50 }
  0xb3   :  { %6329 = vmatprep.mubr.msk.bf16.mxu0 %vm7500_vm0, %v10554_v0  ;;  %6385 = vmatprep.mubr.msk.bf16.mxu1 %vm7500_vm0, %v10554_v0 }
  0xba   :  { %6330 = vmatmul.mubr.msk.bf16.gmra.mxu0 %vm142_vm1, %v7806_v55  ;;  %6386 = vmatmul.mubr.msk.bf16.gmra.mxu1 %vm142_vm1, %v7804_v54 }
  0xbb   :  { %6333 = vmatprep.mubr.msk.bf16.mxu0 %vm7500_vm0, %v10554_v0  ;;  %6389 = vmatprep.mubr.msk.bf16.mxu1 %vm7500_vm0, %v10554_v0 }
  0xc2   :  { %6334 = vmatmul.mubr.msk.bf16.gmra.mxu0 %vm142_vm1, %v7824_v59  ;;  %6390 = vmatmul.mubr.msk.bf16.gmra.mxu1 %vm142_vm1, %v7822_v58 }
  0xc3   :  { %6337 = vmatprep.mubr.msk.bf16.mxu0 %vm7500_vm0, %v10554_v0  ;;  %6393 = vmatprep.mubr.msk.bf16.mxu1 %vm7500_vm0, %v10554_v0 }
  0xca   :  { %v216_v2 = vpop.f32.mrf.mxu0  ;;  %6338 = vmatmul.mubr.msk.bf16.gmra.mxu0 %vm142_vm1, %v7835_v60  ;;  %v404_v3 = vpop.f32.mrf.mxu1  ;;  %6394 = vmatmul.mubr.msk.bf16.gmra.mxu1 %vm142_vm1, %v7649_v20 }
  0xcb   :  { %6341 = vmatprep.mubr.msk.bf16.mxu0 %vm7500_vm0, %v10554_v0  ;;  %6397 = vmatprep.mubr.msk.bf16.mxu1 %vm7500_vm0, %v10554_v0 }
  0xcc   :  { %v6183_v4 = vpop.f32.mrf.mxu0  ;;  %v6239_v5 = vpop.f32.mrf.mxu1 }
  0xce   :  { %v219_v6 = vpop.f32.mrf.mxu0  ;;  %v407_v7 = vpop.f32.mrf.mxu1 }
  0xcf   :  { %v7957_v10 = vadd.f32 %v407_v7, %v219_v6 }
  0xd0   :  { %v6184_v11 = vpop.f32.mrf.mxu0  ;;  %v6240_v12 = vpop.f32.mrf.mxu1 }
  0xd2   :  { %v224_v13 = vpop.f32.mrf.mxu0  ;;  %6342 = vmatmul.mubr.msk.bf16.gmra.mxu0 %vm142_vm1, %v7600_v9  ;;  %v412_v14 = vpop.f32.mrf.mxu1  ;;  %6398 = vmatmul.mubr.msk.bf16.gmra.mxu1 %vm142_vm1, %v7598_v8 }
  0xd3   :  { %6405 = vmatprep.mubr.msk.bf16.mxu0 %vm7500_vm0, %v10554_v0  ;;  %v7965_v15 = vadd.f32 %v412_v14, %v224_v13  ;;  %6461 = vmatprep.mubr.msk.bf16.mxu1 %vm7500_vm0, %v10554_v0 }
  0xd4   :  { %v6187_v18 = vpop.f32.mrf.mxu0  ;;  %v6243_v19 = vpop.f32.mrf.mxu1 }
  0xd6   :  { %v227_v21 = vpop.f32.mrf.mxu0  ;;  %v415_v24 = vpop.f32.mrf.mxu1 }
  0xd7   :  { %v7972_v28 = vadd.f32 %v415_v24, %v227_v21 }
  0xd8   :  { %v6188_v29 = vpop.f32.mrf.mxu0  ;;  %v6244_v33 = vpop.f32.mrf.mxu1 }
  0xda   :  { %v232_v36 = vpop.f32.mrf.mxu0  ;;  %6406 = vmatmul.mubr.msk.bf16.vlgmr.msra.gmra.mxu0 %vm142_vm1, %v7662_v23  ;;  %v420_v37 = vpop.f32.mrf.mxu1  ;;  %6462 = vmatmul.mubr.msk.bf16.vlgmr.msra.gmra.mxu1 %vm142_vm1, %v7660_v22 }
  0xdb   :  { %6514 = vmatpush3.bf16.msra.mxu0 %v7194_v25  ;;  %v7984_v41 = vadd.f32 %v420_v37, %v232_v36  ;;  %6570 = vmatpush3.bf16.msra.mxu1 %v7195_v32 }
  0xdc   :  { %v6191_v44 = vpop.f32.mrf.mxu0  ;;  %6409 = vmatprep.mubr.msk.bf16.mxu0 %vm7500_vm0, %v10554_v0  ;;  %v6247_v48 = vpop.f32.mrf.mxu1  ;;  %6465 = vmatprep.mubr.msk.bf16.mxu1 %vm7500_vm0, %v10554_v0 }
  0xdd   :  { %6515 = vmatprep.subr.bf16.mxu0 %v10554_v0  ;;  %6571 = vmatprep.subr.bf16.mxu1 %v10554_v0 }
  0xde   :  { %v235_v49 = vpop.f32.mrf.mxu0  ;;  %v423_v52 = vpop.f32.mrf.mxu1 }
  0xdf   :  { %6516 = vmatpush3.bf16.msra.mxu0 %v7196_v40  ;;  %v7995_v53 = vadd.f32 %v423_v52, %v235_v49  ;;  %6572 = vmatpush3.bf16.msra.mxu1 %v7197_v45 }
  0xe0   :  { %v6192_v56 = vpop.f32.mrf.mxu0  ;;  %6625 = vmatprep.subr.bf16.mxu0 %v10554_v0  ;;  %v6248_v57 = vpop.f32.mrf.mxu1  ;;  %6681 = vmatprep.subr.bf16.mxu1 %v10554_v0 }
  0xe2   :  { %v240_v61 = vpop.f32.mrf.mxu0  ;;  %6410 = vmatmul.mubr.msk.bf16.gmra.mxu0 %vm142_vm1, %v7680_v27  ;;  %v428_v62 = vpop.f32.mrf.mxu1  ;;  %6466 = vmatmul.mubr.msk.bf16.gmra.mxu1 %vm142_vm1, %v7678_v26 }
  0xe3   :  { %6413 = vmatprep.mubr.msk.bf16.mxu0 %vm7500_vm0, %v10554_v0  ;;  %v8005_v63 = vadd.f32 %v428_v62, %v240_v61  ;;  %6469 = vmatprep.mubr.msk.bf16.mxu1 %vm7500_vm0, %v10554_v0 }
  0xe4   :  { %v6195_v1 = vpop.f32.mrf.mxu0  ;;  %v6251_v2 = vpop.f32.mrf.mxu1 }
  0xe6   :  { %v243_v3 = vpop.f32.mrf.mxu0  ;;  %v431_v4 = vpop.f32.mrf.mxu1 }
  0xe7   :  { %v8009_v5 = vadd.f32 %v431_v4, %v243_v3 }
  0xe8   :  { %v6196_v6 = vpop.f32.mrf.mxu0  ;;  %v6252_v7 = vpop.f32.mrf.mxu1 }
  0xea   :  { %v248_v11 = vpop.f32.mrf.mxu0  ;;  %6414 = vmatmul.mubr.msk.bf16.gmra.mxu0 %vm142_vm1, %v7698_v31  ;;  %v436_v12 = vpop.f32.mrf.mxu1  ;;  %6470 = vmatmul.mubr.msk.bf16.gmra.mxu1 %vm142_vm1, %v7696_v30 }
  0xeb   :  { %6417 = vmatprep.mubr.msk.bf16.mxu0 %vm7500_vm0, %v10554_v0  ;;  %v8017_v13 = vadd.f32 %v436_v12, %v248_v11  ;;  %6473 = vmatprep.mubr.msk.bf16.mxu1 %vm7500_vm0, %v10554_v0 }
  0xec   :  { %v6199_v14 = vpop.f32.mrf.mxu0  ;;  %v6255_v18 = vpop.f32.mrf.mxu1 }
  0xee   :  { %v251_v19 = vpop.f32.mrf.mxu0  ;;  %v439_v21 = vpop.f32.mrf.mxu1 }
  0xef   :  { %v8021_v24 = vadd.f32 %v439_v21, %v251_v19 }
  0xf0   :  { %v6200_v25 = vpop.f32.mrf.mxu0  ;;  %v6256_v29 = vpop.f32.mrf.mxu1 }
  0xf2   :  { %v256_v32 = vpop.f32.mrf.mxu0  ;;  %6418 = vmatmul.mubr.msk.bf16.gmra.mxu0 %vm142_vm1, %v7716_v35  ;;  %v444_v33 = vpop.f32.mrf.mxu1  ;;  %6474 = vmatmul.mubr.msk.bf16.gmra.mxu1 %vm142_vm1, %v7714_v34 }
  0xf3   :  { %6421 = vmatprep.mubr.msk.bf16.mxu0 %vm7500_vm0, %v10554_v0  ;;  %v8029_v36 = vadd.f32 %v444_v33, %v256_v32  ;;  %6477 = vmatprep.mubr.msk.bf16.mxu1 %vm7500_vm0, %v10554_v0 }
  0xf4   :  { %v6203_v37 = vpop.f32.mrf.mxu0  ;;  %v6259_v40 = vpop.f32.mrf.mxu1 }
  0xf6   :  { %v259_v44 = vpop.f32.mrf.mxu0  ;;  %v447_v45 = vpop.f32.mrf.mxu1 }
  0xf7   :  { %v8033_v48 = vadd.f32 %v447_v45, %v259_v44 }
  0xf8   :  { %v6204_v49 = vpop.f32.mrf.mxu0  ;;  %v6260_v52 = vpop.f32.mrf.mxu1 }
  0xfa   :  { %v264_v56 = vpop.f32.mrf.mxu0  ;;  %6422 = vmatmul.mubr.msk.bf16.gmra.mxu0 %vm142_vm1, %v7734_v39  ;;  %v452_v57 = vpop.f32.mrf.mxu1  ;;  %6478 = vmatmul.mubr.msk.bf16.gmra.mxu1 %vm142_vm1, %v7732_v38 }
  0xfb   :  { %6425 = vmatprep.mubr.msk.bf16.mxu0 %vm7500_vm0, %v10554_v0  ;;  %v8041_v61 = vadd.f32 %v452_v57, %v264_v56  ;;  %6481 = vmatprep.mubr.msk.bf16.mxu1 %vm7500_vm0, %v10554_v0 }
  0xfc   :  { %v6207_v62 = vpop.f32.mrf.mxu0  ;;  %v6263_v1 = vpop.f32.mrf.mxu1 }
  0xfe   :  { %v267_v2 = vpop.f32.mrf.mxu0  ;;  %v455_v3 = vpop.f32.mrf.mxu1 }
  0xff   :  { %v8045_v4 = vadd.f32 %v455_v3, %v267_v2 }
 0x100   :  { %v6208_v6 = vpop.f32.mrf.mxu0  ;;  %v6264_v7 = vpop.f32.mrf.mxu1 }
 0x102   :  { %v272_v11 = vpop.f32.mrf.mxu0  ;;  %6426 = vmatmul.mubr.msk.bf16.gmra.mxu0 %vm142_vm1, %v7752_v43  ;;  %v460_v12 = vpop.f32.mrf.mxu1  ;;  %6482 = vmatmul.mubr.msk.bf16.gmra.mxu1 %vm142_vm1, %v7750_v42 }
 0x103   :  { %6429 = vmatprep.mubr.msk.bf16.mxu0 %vm7500_vm0, %v10554_v0  ;;  %v8053_v14 = vadd.f32 %v460_v12, %v272_v11  ;;  %6485 = vmatprep.mubr.msk.bf16.mxu1 %vm7500_vm0, %v10554_v0 }
 0x104   :  { %v6211_v18 = vpop.f32.mrf.mxu0  ;;  %v6267_v19 = vpop.f32.mrf.mxu1 }
 0x106   :  { %v275_v21 = vpop.f32.mrf.mxu0  ;;  %v463_v25 = vpop.f32.mrf.mxu1 }
 0x107   :  { %v8057_v29 = vadd.f32 %v463_v25, %v275_v21 }
 0x108   :  { %v6212_v32 = vpop.f32.mrf.mxu0  ;;  %v6268_v33 = vpop.f32.mrf.mxu1 }
 0x10a   :  { %v280_v37 = vpop.f32.mrf.mxu0  ;;  %6430 = vmatmul.mubr.msk.bf16.gmra.mxu0 %vm142_vm1, %v7770_v47  ;;  %v468_v40 = vpop.f32.mrf.mxu1  ;;  %6486 = vmatmul.mubr.msk.bf16.gmra.mxu1 %vm142_vm1, %v7768_v46 }
 0x10b   :  { %6433 = vmatprep.mubr.msk.bf16.mxu0 %vm7500_vm0, %v10554_v0  ;;  %v8065_v44 = vadd.f32 %v468_v40, %v280_v37  ;;  %6489 = vmatprep.mubr.msk.bf16.mxu1 %vm7500_vm0, %v10554_v0 }
 0x10c   :  { %v6215_v45 = vpop.f32.mrf.mxu0  ;;  %v6271_v49 = vpop.f32.mrf.mxu1 }
 0x10e   :  { %v283_v52 = vpop.f32.mrf.mxu0  ;;  %v471_v56 = vpop.f32.mrf.mxu1 }
 0x10f   :  { %v8069_v57 = vadd.f32 %v471_v56, %v283_v52 }
 0x110   :  { %v6216_v62 = vpop.f32.mrf.mxu0  ;;  %v6272_v1 = vpop.f32.mrf.mxu1 }
 0x112   :  { %v288_v2 = vpop.f32.mrf.mxu0  ;;  %6434 = vmatmul.mubr.msk.bf16.gmra.mxu0 %vm142_vm1, %v7788_v51  ;;  %v476_v3 = vpop.f32.mrf.mxu1  ;;  %6490 = vmatmul.mubr.msk.bf16.gmra.mxu1 %vm142_vm1, %v7786_v50 }
 0x113   :  { %6437 = vmatprep.mubr.msk.bf16.mxu0 %vm7500_vm0, %v10554_v0  ;;  %6493 = vmatprep.mubr.msk.bf16.mxu1 %vm7500_vm0, %v10554_v0 }
 0x114   :  { %v6219_v6 = vpop.f32.mrf.mxu0  ;;  %v6275_v7 = vpop.f32.mrf.mxu1 }
 0x116   :  { %v291_v11 = vpop.f32.mrf.mxu0  ;;  %v479_v12 = vpop.f32.mrf.mxu1 }
 0x118   :  { %v6220_v18 = vpop.f32.mrf.mxu0  ;;  %v6276_v19 = vpop.f32.mrf.mxu1 }
 0x11a   :  { %v296_v21 = vpop.f32.mrf.mxu0  ;;  %6438 = vmatmul.mubr.msk.bf16.gmra.mxu0 %vm142_vm1, %v7806_v55  ;;  %v484_v25 = vpop.f32.mrf.mxu1  ;;  %6494 = vmatmul.mubr.msk.bf16.gmra.mxu1 %vm142_vm1, %v7804_v54 }
 0x11b   :  { %6441 = vmatprep.mubr.msk.bf16.mxu0 %vm7500_vm0, %v10554_v0  ;;  %6497 = vmatprep.mubr.msk.bf16.mxu1 %vm7500_vm0, %v10554_v0 }
 0x11c   :  { %v6223_v32 = vpop.f32.mrf.mxu0  ;;  %v6279_v33 = vpop.f32.mrf.mxu1 }
 0x11e   :  { %v299_v37 = vpop.f32.mrf.mxu0  ;;  %v487_v40 = vpop.f32.mrf.mxu1 }
 0x120   :  { %v6224_v45 = vpop.f32.mrf.mxu0  ;;  %v6280_v49 = vpop.f32.mrf.mxu1 }
 0x122   :  { %v304_v52 = vpop.f32.mrf.mxu0  ;;  %6442 = vmatmul.mubr.msk.bf16.gmra.mxu0 %vm142_vm1, %v7824_v59  ;;  %v492_v56 = vpop.f32.mrf.mxu1  ;;  %6498 = vmatmul.mubr.msk.bf16.gmra.mxu1 %vm142_vm1, %v7822_v58 }
 0x123   :  { %6445 = vmatprep.mubr.msk.bf16.mxu0 %vm7500_vm0, %v10554_v0  ;;  %6501 = vmatprep.mubr.msk.bf16.mxu1 %vm7500_vm0, %v10554_v0 }
 0x124   :  { %v6227_v62 = vpop.f32.mrf.mxu0  ;;  %v6283_v1 = vpop.f32.mrf.mxu1 }
 0x126   :  { %v307_v2 = vpop.f32.mrf.mxu0  ;;  %v495_v3 = vpop.f32.mrf.mxu1 }
 0x128   :  { %v6228_v6 = vpop.f32.mrf.mxu0  ;;  %v6284_v7 = vpop.f32.mrf.mxu1 }
 0x12a   :  { %v312_v11 = vpop.f32.mrf.mxu0  ;;  %6446 = vmatmul.mubr.msk.bf16.gmra.mxu0 %vm142_vm1, %v7835_v60  ;;  %v500_v12 = vpop.f32.mrf.mxu1  ;;  %6502 = vmatmul.mubr.msk.bf16.gmra.mxu1 %vm142_vm1, %v7649_v20 }
 0x12b   :  { %6449 = vmatprep.mubr.msk.bf16.mxu0 %vm7500_vm0, %v10554_v0  ;;  %6505 = vmatprep.mubr.msk.bf16.mxu1 %vm7500_vm0, %v10554_v0 }
 0x12c   :  { %v6231_v18 = vpop.f32.mrf.mxu0  ;;  %v6287_v19 = vpop.f32.mrf.mxu1 }
 0x12e   :  { %v315_v21 = vpop.f32.mrf.mxu0  ;;  %v503_v25 = vpop.f32.mrf.mxu1 }
 0x130   :  { %v6232_v32 = vpop.f32.mrf.mxu0  ;;  %v6288_v33 = vpop.f32.mrf.mxu1 }
 0x131   :  { %v7199_v33 = vld [vmem:[%s10538_s1 + $0x98] sm:$0xff]  }
 0x132   :  { %v558_v37 = vpop.f32.mrf.mxu0  ;;  %6450 = vmatmul.mubr.msk.bf16.gmra.mxu0 %vm142_vm1, %v7600_v9  ;;  %v738_v40 = vpop.f32.mrf.mxu1  ;;  %6506 = vmatmul.mubr.msk.bf16.gmra.mxu1 %vm142_vm1, %v7598_v8 }
 0x133   :  { %6453 = vmatprep.mubr.msk.bf16.mxu0 %vm7500_vm0, %v10554_v0  ;;  %6509 = vmatprep.mubr.msk.bf16.mxu1 %vm7500_vm0, %v10554_v0 }
 0x134   :  { %v6295_v45 = vpop.f32.mrf.mxu0  ;;  %v6351_v49 = vpop.f32.mrf.mxu1 }
 0x136   :  { %v561_v52 = vpop.f32.mrf.mxu0  ;;  %v741_v62 = vpop.f32.mrf.mxu1 }
 0x137   :  { %v662_v56 = vadd.f32 %v561_v52, %v7957_v10  ;;  %v7200_v52 = vld [vmem:[%s10538_s1 + $0x80] sm:$0xff]  }
 0x138   :  { %v6296_v1 = vpop.f32.mrf.mxu0  ;;  %v6352_v3 = vpop.f32.mrf.mxu1 }
 0x139   :  { %v8112_v2 = vadd.f32 %v741_v62, %v662_v56  ;;  %v7201_v62 = vld [vmem:[%s10538_s1 + $0x90] sm:$0xff]  }
 0x13a   :  { %v566_v6 = vpop.f32.mrf.mxu0  ;;  %6454 = vmatmul.mubr.msk.bf16.gmra.mxu0 %vm142_vm1, %v7634_v17  ;;  %v746_v11 = vpop.f32.mrf.mxu1  ;;  %6510 = vmatmul.mubr.msk.bf16.gmra.mxu1 %vm142_vm1, %v7631_v16 }
 0x13b   :  { %v663_v7 = vadd.f32 %v566_v6, %v7965_v15  ;;  %6517 = vmatprep.mubr.msk.bf16.mxu0 %vm7500_vm0, %v10554_v0  ;;  %6573 = vmatprep.mubr.msk.bf16.mxu1 %vm7500_vm0, %v10554_v0  ;;  %v7198_v15 = vld [vmem:[%s10538_s1 + $0x88] sm:$0xff]  }
 0x13c   :  { %v6299_v12 = vpop.f32.mrf.mxu0  ;;  %v6355_v18 = vpop.f32.mrf.mxu1 }
 0x13d   :  { %v8123_v10 = vadd.f32 %v746_v11, %v663_v7 }
 0x13e   :  { %v569_v19 = vpop.f32.mrf.mxu0  ;;  %v749_v25 = vpop.f32.mrf.mxu1 }
 0x13f   :  { %v664_v21 = vadd.f32 %v569_v19, %v7972_v28 }
 0x140   :  { %v6300_v32 = vpop.f32.mrf.mxu0  ;;  %v6356_v40 = vpop.f32.mrf.mxu1 }
 0x141   :  { %v8132_v37 = vadd.f32 %v749_v25, %v664_v21 }
 0x142   :  { %v574_v45 = vpop.f32.mrf.mxu0  ;;  %6518 = vmatmul.mubr.msk.bf16.vlgmr.msra.gmra.mxu0 %vm142_vm1, %v7680_v27  ;;  %v754_v28 = vpop.f32.mrf.mxu1  ;;  %6574 = vmatmul.mubr.msk.bf16.vlgmr.msra.gmra.mxu1 %vm142_vm1, %v7678_v26 }
 0x143   :  { %v665_v49 = vadd.f32 %v574_v45, %v7984_v41  ;;  %6626 = vmatpush3.bf16.msra.mxu0 %v7198_v15  ;;  %6682 = vmatpush3.bf16.msra.mxu1 %v7199_v33 }
 0x144   :  { %v6303_v56 = vpop.f32.mrf.mxu0  ;;  %6521 = vmatprep.mubr.msk.bf16.mxu0 %vm7500_vm0, %v10554_v0  ;;  %v6359_v41 = vpop.f32.mrf.mxu1  ;;  %6577 = vmatprep.mubr.msk.bf16.mxu1 %vm7500_vm0, %v10554_v0 }
 0x145   :  { %v8147_v1 = vadd.f32 %v754_v28, %v665_v49  ;;  %6627 = vmatprep.subr.bf16.mxu0 %v10554_v0  ;;  %6683 = vmatprep.subr.bf16.mxu1 %v10554_v0 }
 0x146   :  { %v577_v3 = vpop.f32.mrf.mxu0  ;;  %v757_v7 = vpop.f32.mrf.mxu1 }
 0x147   :  { %v666_v6 = vadd.f32 %v577_v3, %v7995_v53  ;;  %6628 = vmatpush3.bf16.msra.mxu0 %v7200_v52  ;;  %6684 = vmatpush3.bf16.msra.mxu1 %v7201_v62 }
 0x148   :  { %v6304_v11 = vpop.f32.mrf.mxu0  ;;  %6737 = vmatprep.subr.bf16.mxu0 %v10554_v0  ;;  %v6360_v18 = vpop.f32.mrf.mxu1  ;;  %6793 = vmatprep.subr.bf16.mxu1 %v10554_v0 }
 0x149   :  { %v8155_v12 = vadd.f32 %v757_v7, %v666_v6 }
 0x14a   :  { %v582_v19 = vpop.f32.mrf.mxu0  ;;  %6522 = vmatmul.mubr.msk.bf16.gmra.mxu0 %vm142_vm1, %v7698_v31  ;;  %v762_v25 = vpop.f32.mrf.mxu1  ;;  %6578 = vmatmul.mubr.msk.bf16.gmra.mxu1 %vm142_vm1, %v7696_v30 }
 0x14b   :  { %v667_v21 = vadd.f32 %v582_v19, %v8005_v63  ;;  %6525 = vmatprep.mubr.msk.bf16.mxu0 %vm7500_vm0, %v10554_v0  ;;  %6581 = vmatprep.mubr.msk.bf16.mxu1 %vm7500_vm0, %v10554_v0 }
 0x14c   :  { %v6307_v53 = vpop.f32.mrf.mxu0  ;;  %v6363_v32 = vpop.f32.mrf.mxu1 }
 0x14d   :  { %v8167_v15 = vadd.f32 %v762_v25, %v667_v21 }
 0x14e   :  { %v585_v33 = vpop.f32.mrf.mxu0  ;;  %v765_v45 = vpop.f32.mrf.mxu1 }
 0x14f   :  { %v668_v40 = vadd.f32 %v585_v33, %v8009_v5 }
 0x150   :  { %v6308_v49 = vpop.f32.mrf.mxu0  ;;  %v6364_v28 = vpop.f32.mrf.mxu1 }
 0x151   :  { %v8170_v63 = vadd.f32 %v765_v45, %v668_v40 }
 0x152   :  { %v590_v52 = vpop.f32.mrf.mxu0  ;;  %6526 = vmatmul.mubr.msk.bf16.gmra.mxu0 %vm142_vm1, %v7716_v35  ;;  %v770_v62 = vpop.f32.mrf.mxu1  ;;  %6582 = vmatmul.mubr.msk.bf16.gmra.mxu1 %vm142_vm1, %v7714_v34 }
 0x153   :  { %v669_v56 = vadd.f32 %v590_v52, %v8017_v13  ;;  %6529 = vmatprep.mubr.msk.bf16.mxu0 %vm7500_vm0, %v10554_v0  ;;  %6585 = vmatprep.mubr.msk.bf16.mxu1 %vm7500_vm0, %v10554_v0 }
 0x154   :  { %v6311_v41 = vpop.f32.mrf.mxu0  ;;  %v6367_v3 = vpop.f32.mrf.mxu1 }
 0x155   :  { %v8181_v5 = vadd.f32 %v770_v62, %v669_v56 }
 0x156   :  { %v593_v6 = vpop.f32.mrf.mxu0  ;;  %v773_v11 = vpop.f32.mrf.mxu1 }
 0x157   :  { %v670_v7 = vadd.f32 %v593_v6, %v8021_v24 }
 0x158   :  { %v6312_v18 = vpop.f32.mrf.mxu0  ;;  %v6368_v19 = vpop.f32.mrf.mxu1 }
 0x159   :  { %v8184_v13 = vadd.f32 %v773_v11, %v670_v7 }
 0x15a   :  { %v598_v21 = vpop.f32.mrf.mxu0  ;;  %6530 = vmatmul.mubr.msk.bf16.gmra.mxu0 %vm142_vm1, %v7734_v39  ;;  %v778_v53 = vpop.f32.mrf.mxu1  ;;  %6586 = vmatmul.mubr.msk.bf16.gmra.mxu1 %vm142_vm1, %v7732_v38 }
 0x15b   :  { %v671_v25 = vadd.f32 %v598_v21, %v8029_v36  ;;  %6533 = vmatprep.mubr.msk.bf16.mxu0 %vm7500_vm0, %v10554_v0  ;;  %6589 = vmatprep.mubr.msk.bf16.mxu1 %vm7500_vm0, %v10554_v0 }
 0x15c   :  { %v6315_v32 = vpop.f32.mrf.mxu0  ;;  %v6371_v33 = vpop.f32.mrf.mxu1 }
 0x15d   :  { %v8195_v24 = vadd.f32 %v778_v53, %v671_v25 }
 0x15e   :  { %v601_v40 = vpop.f32.mrf.mxu0  ;;  %v781_v49 = vpop.f32.mrf.mxu1 }
 0x15f   :  { %v672_v45 = vadd.f32 %v601_v40, %v8033_v48 }
 0x160   :  { %v6316_v28 = vpop.f32.mrf.mxu0  ;;  %v6372_v52 = vpop.f32.mrf.mxu1 }
 0x161   :  { %v8198_v36 = vadd.f32 %v781_v49, %v672_v45 }
 0x162   :  { %v606_v56 = vpop.f32.mrf.mxu0  ;;  %6534 = vmatmul.mubr.msk.bf16.gmra.mxu0 %vm142_vm1, %v7752_v43  ;;  %v786_v41 = vpop.f32.mrf.mxu1  ;;  %6590 = vmatmul.mubr.msk.bf16.gmra.mxu1 %vm142_vm1, %v7750_v42 }
 0x163   :  { %v673_v62 = vadd.f32 %v606_v56, %v8041_v61  ;;  %6537 = vmatprep.mubr.msk.bf16.mxu0 %vm7500_vm0, %v10554_v0  ;;  %6593 = vmatprep.mubr.msk.bf16.mxu1 %vm7500_vm0, %v10554_v0 }
 0x164   :  { %v6319_v3 = vpop.f32.mrf.mxu0  ;;  %v6375_v6 = vpop.f32.mrf.mxu1 }
 0x165   :  { %v8209_v48 = vadd.f32 %v786_v41, %v673_v62 }
 0x166   :  { %v609_v7 = vpop.f32.mrf.mxu0  ;;  %v789_v18 = vpop.f32.mrf.mxu1 }
 0x167   :  { %v674_v11 = vadd.f32 %v609_v7, %v8045_v4 }
 0x168   :  { %v6320_v19 = vpop.f32.mrf.mxu0  ;;  %v6376_v21 = vpop.f32.mrf.mxu1 }
 0x169   :  { %v8212_v61 = vadd.f32 %v789_v18, %v674_v11 }
 0x16a   :  { %v614_v25 = vpop.f32.mrf.mxu0  ;;  %6538 = vmatmul.mubr.msk.bf16.gmra.mxu0 %vm142_vm1, %v7770_v47  ;;  %v794_v32 = vpop.f32.mrf.mxu1  ;;  %6594 = vmatmul.mubr.msk.bf16.gmra.mxu1 %vm142_vm1, %v7768_v46 }
 0x16b   :  { %v675_v53 = vadd.f32 %v614_v25, %v8053_v14  ;;  %6541 = vmatprep.mubr.msk.bf16.mxu0 %vm7500_vm0, %v10554_v0  ;;  %6597 = vmatprep.mubr.msk.bf16.mxu1 %vm7500_vm0, %v10554_v0 }
 0x16c   :  { %v6323_v33 = vpop.f32.mrf.mxu0  ;;  %v6379_v40 = vpop.f32.mrf.mxu1 }
 0x16d   :  { %v8223_v4 = vadd.f32 %v794_v32, %v675_v53 }
 0x16e   :  { %v617_v45 = vpop.f32.mrf.mxu0  ;;  %v797_v28 = vpop.f32.mrf.mxu1 }
 0x16f   :  { %v676_v49 = vadd.f32 %v617_v45, %v8057_v29 }
 0x170   :  { %v6324_v52 = vpop.f32.mrf.mxu0  ;;  %v6380_v56 = vpop.f32.mrf.mxu1 }
 0x171   :  { %v8226_v14 = vadd.f32 %v797_v28, %v676_v49 }
 0x172   :  { %v622_v62 = vpop.f32.mrf.mxu0  ;;  %6542 = vmatmul.mubr.msk.bf16.gmra.mxu0 %vm142_vm1, %v7788_v51  ;;  %v802_v3 = vpop.f32.mrf.mxu1  ;;  %6598 = vmatmul.mubr.msk.bf16.gmra.mxu1 %vm142_vm1, %v7786_v50 }
 0x173   :  { %v677_v41 = vadd.f32 %v622_v62, %v8065_v44  ;;  %6545 = vmatprep.mubr.msk.bf16.mxu0 %vm7500_vm0, %v10554_v0  ;;  %6601 = vmatprep.mubr.msk.bf16.mxu1 %vm7500_vm0, %v10554_v0 }
 0x174   :  { %v6327_v6 = vpop.f32.mrf.mxu0  ;;  %v6383_v7 = vpop.f32.mrf.mxu1 }
 0x175   :  { %v8237_v29 = vadd.f32 %v802_v3, %v677_v41 }
 0x176   :  { %v625_v11 = vpop.f32.mrf.mxu0  ;;  %v805_v19 = vpop.f32.mrf.mxu1 }
 0x177   :  { %v678_v18 = vadd.f32 %v625_v11, %v8069_v57 }
 0x178   :  { %v6328_v21 = vpop.f32.mrf.mxu0  ;;  %v6384_v25 = vpop.f32.mrf.mxu1 }
 0x179   :  { %v8240_v44 = vadd.f32 %v805_v19, %v678_v18 }
 0x17a   :  { %v630_v53 = vpop.f32.mrf.mxu0  ;;  %6546 = vmatmul.mubr.msk.bf16.gmra.mxu0 %vm142_vm1, %v7806_v55  ;;  %v810_v32 = vpop.f32.mrf.mxu1  ;;  %6602 = vmatmul.mubr.msk.bf16.gmra.mxu1 %vm142_vm1, %v7804_v54 }
 0x17b   :  { %6549 = vmatprep.mubr.msk.bf16.mxu0 %vm7500_vm0, %v10554_v0  ;;  %6605 = vmatprep.mubr.msk.bf16.mxu1 %vm7500_vm0, %v10554_v0 }
 0x17c   :  { %v6331_v33 = vpop.f32.mrf.mxu0  ;;  %v6387_v57 = vpop.f32.mrf.mxu1 }
 0x17e   :  { %v633_v40 = vpop.f32.mrf.mxu0  ;;  %v813_v45 = vpop.f32.mrf.mxu1 }
 0x180   :  { %v6332_v49 = vpop.f32.mrf.mxu0  ;;  %v6388_v28 = vpop.f32.mrf.mxu1 }
 0x182   :  { %v638_v52 = vpop.f32.mrf.mxu0  ;;  %6550 = vmatmul.mubr.msk.bf16.gmra.mxu0 %vm142_vm1, %v7824_v59  ;;  %v818_v56 = vpop.f32.mrf.mxu1  ;;  %6606 = vmatmul.mubr.msk.bf16.gmra.mxu1 %vm142_vm1, %v7822_v58 }
 0x183   :  { %6553 = vmatprep.mubr.msk.bf16.mxu0 %vm7500_vm0, %v10554_v0  ;;  %6609 = vmatprep.mubr.msk.bf16.mxu1 %vm7500_vm0, %v10554_v0 }
 0x184   :  { %v6335_v62 = vpop.f32.mrf.mxu0  ;;  %v6391_v41 = vpop.f32.mrf.mxu1 }
 0x186   :  { %v641_v3 = vpop.f32.mrf.mxu0  ;;  %v821_v6 = vpop.f32.mrf.mxu1 }
 0x188   :  { %v6336_v7 = vpop.f32.mrf.mxu0  ;;  %v6392_v11 = vpop.f32.mrf.mxu1 }
 0x18a   :  { %v646_v18 = vpop.f32.mrf.mxu0  ;;  %6554 = vmatmul.mubr.msk.bf16.gmra.mxu0 %vm142_vm1, %v7835_v60  ;;  %v826_v19 = vpop.f32.mrf.mxu1  ;;  %6610 = vmatmul.mubr.msk.bf16.gmra.mxu1 %vm142_vm1, %v7649_v20 }
 0x18b   :  { %6557 = vmatprep.mubr.msk.bf16.mxu0 %vm7500_vm0, %v10554_v0  ;;  %6613 = vmatprep.mubr.msk.bf16.mxu1 %vm7500_vm0, %v10554_v0 }
 0x18c   :  { %v6339_v21 = vpop.f32.mrf.mxu0  ;;  %v6395_v25 = vpop.f32.mrf.mxu1 }
 0x18e   :  { %v649_v53 = vpop.f32.mrf.mxu0  ;;  %v829_v32 = vpop.f32.mrf.mxu1 }
 0x190   :  { %v6340_v33 = vpop.f32.mrf.mxu0  ;;  %v6396_v57 = vpop.f32.mrf.mxu1 }
 0x192   :  { %v654_v40 = vpop.f32.mrf.mxu0  ;;  %6558 = vmatmul.mubr.msk.bf16.gmra.mxu0 %vm142_vm1, %v7600_v9  ;;  %v834_v45 = vpop.f32.mrf.mxu1  ;;  %6614 = vmatmul.mubr.msk.bf16.gmra.mxu1 %vm142_vm1, %v7598_v8 }
 0x193   :  { %6561 = vmatprep.mubr.msk.bf16.mxu0 %vm7500_vm0, %v10554_v0  ;;  %6617 = vmatprep.mubr.msk.bf16.mxu1 %vm7500_vm0, %v10554_v0 }
 0x194   :  { %v6343_v49 = vpop.f32.mrf.mxu0  ;;  %v6399_v28 = vpop.f32.mrf.mxu1 }
 0x196   :  { %v657_v52 = vpop.f32.mrf.mxu0  ;;  %v837_v56 = vpop.f32.mrf.mxu1 }
 0x198   :  { %v6344_v62 = vpop.f32.mrf.mxu0  ;;  %v6400_v41 = vpop.f32.mrf.mxu1 }
 0x19a   :  { %v918_v3 = vpop.f32.mrf.mxu0  ;;  %6562 = vmatmul.mubr.msk.bf16.gmra.mxu0 %vm142_vm1, %v7634_v17  ;;  %v1098_v6 = vpop.f32.mrf.mxu1  ;;  %6618 = vmatmul.mubr.msk.bf16.gmra.mxu1 %vm142_vm1, %v7631_v16 }
 0x19b   :  { %6565 = vmatprep.mubr.msk.bf16.mxu0 %vm7500_vm0, %v10554_v0  ;;  %6621 = vmatprep.mubr.msk.bf16.mxu1 %vm7500_vm0, %v10554_v0 }
 0x19c   :  { %v6407_v7 = vpop.f32.mrf.mxu0  ;;  %v6463_v11 = vpop.f32.mrf.mxu1 }
 0x19e   :  { %v921_v18 = vpop.f32.mrf.mxu0  ;;  %v1101_v21 = vpop.f32.mrf.mxu1 }
 0x19f   :  { %v1022_v19 = vadd.f32 %v921_v18, %v8112_v2 }
 0x1a0   :  { %v6408_v25 = vpop.f32.mrf.mxu0  ;;  %v6464_v32 = vpop.f32.mrf.mxu1 }
 0x1a1   :  { %v8283_v53 = vadd.f32 %v1101_v21, %v1022_v19 }
 0x1a2   :  { %v926_v33 = vpop.f32.mrf.mxu0  ;;  %6566 = vmatmul.mubr.msk.bf16.gmra.mxu0 %vm142_vm1, %v7662_v23  ;;  %v1106_v40 = vpop.f32.mrf.mxu1  ;;  %6622 = vmatmul.mubr.msk.bf16.gmra.mxu1 %vm142_vm1, %v7660_v22 }
 0x1a3   :  { %v1023_v57 = vadd.f32 %v926_v33, %v8123_v10  ;;  %6629 = vmatprep.mubr.msk.bf16.mxu0 %vm7500_vm0, %v10554_v0  ;;  %6685 = vmatprep.mubr.msk.bf16.mxu1 %vm7500_vm0, %v10554_v0  ;;  %v7202_v10 = vld [vmem:[%s10540_s3 + $0x18] sm:$0xff]  }
 0x1a4   :  { %v6411_v45 = vpop.f32.mrf.mxu0  ;;  %v6467_v49 = vpop.f32.mrf.mxu1 }
 0x1a5   :  { %v8294_v2 = vadd.f32 %v1106_v40, %v1023_v57 }
 0x1a6   :  { %v929_v28 = vpop.f32.mrf.mxu0  ;;  %v1109_v56 = vpop.f32.mrf.mxu1 }
 0x1a7   :  { %v1024_v52 = vadd.f32 %v929_v28, %v8132_v37 }
 0x1a8   :  { %v6412_v62 = vpop.f32.mrf.mxu0  ;;  %v6468_v3 = vpop.f32.mrf.mxu1 }
 0x1a9   :  { %v8300_v41 = vadd.f32 %v1109_v56, %v1024_v52 }
 0x1aa   :  { %v934_v6 = vpop.f32.mrf.mxu0  ;;  %6630 = vmatmul.mubr.msk.bf16.vlgmr.msra.gmra.mxu0 %vm142_vm1, %v7698_v31  ;;  %v1114_v11 = vpop.f32.mrf.mxu1  ;;  %6686 = vmatmul.mubr.msk.bf16.vlgmr.msra.gmra.mxu1 %vm142_vm1, %v7696_v30 }
 0x1ab   :  { %v1025_v7 = vadd.f32 %v934_v6, %v8147_v1  ;;  %6633 = vmatprep.mubr.msk.bf16.mxu0 %vm7500_vm0, %v10554_v0  ;;  %6689 = vmatprep.mubr.msk.bf16.mxu1 %vm7500_vm0, %v10554_v0 }
 0x1ac   :  { %v6415_v37 = vpop.f32.mrf.mxu0  ;;  %6738 = vmatpush3.bf16.msra.mxu0 %v7202_v10  ;;  %v6471_v19 = vpop.f32.mrf.mxu1 }
 0x1ad   :  { %v8311_v18 = vadd.f32 %v1114_v11, %v1025_v7  ;;  %6739 = vmatprep.subr.bf16.mxu0 %v10554_v0 }
 0x1ae   :  { %v937_v31 = vpop.f32.mrf.mxu0  ;;  %v1117_v21 = vpop.f32.mrf.mxu1 }
 0x1af   :  { %v1026_v1 = vadd.f32 %v937_v31, %v8155_v12 }
 0x1b0   :  { %v6416_v25 = vpop.f32.mrf.mxu0  ;;  %v6472_v30 = vpop.f32.mrf.mxu1 }
 0x1b1   :  { %v8315_v32 = vadd.f32 %v1117_v21, %v1026_v1 }
 0x1b2   :  { %v942_v33 = vpop.f32.mrf.mxu0  ;;  %6634 = vmatmul.mubr.msk.bf16.gmra.mxu0 %vm142_vm1, %v7716_v35  ;;  %v1122_v40 = vpop.f32.mrf.mxu1  ;;  %6690 = vmatmul.mubr.msk.bf16.gmra.mxu1 %vm142_vm1, %v7714_v34 }
 0x1b3   :  { %v1027_v57 = vadd.f32 %v942_v33, %v8167_v15  ;;  %6637 = vmatprep.mubr.msk.bf16.mxu0 %vm7500_vm0, %v10554_v0  ;;  %6693 = vmatprep.mubr.msk.bf16.mxu1 %vm7500_vm0, %v10554_v0 }
 0x1b4   :  { %v6419_v45 = vpop.f32.mrf.mxu0  ;;  %v6475_v49 = vpop.f32.mrf.mxu1 }
 0x1b5   :  { %v8326_v12 = vadd.f32 %v1122_v40, %v1027_v57 }
 0x1b6   :  { %v945_v28 = vpop.f32.mrf.mxu0  ;;  %v1125_v35 = vpop.f32.mrf.mxu1 }
 0x1b7   :  { %v1028_v52 = vadd.f32 %v945_v28, %v8170_v63 }
 0x1b8   :  { %v6420_v56 = vpop.f32.mrf.mxu0  ;;  %v6476_v62 = vpop.f32.mrf.mxu1 }
 0x1b9   :  { %v8329_v15 = vadd.f32 %v1125_v35, %v1028_v52 }
 0x1ba   :  { %v950_v10 = vpop.f32.mrf.mxu0  ;;  %6638 = vmatmul.mubr.msk.bf16.gmra.mxu0 %vm142_vm1, %v7734_v39  ;;  %v1130_v3 = vpop.f32.mrf.mxu1  ;;  %6694 = vmatmul.mubr.msk.bf16.gmra.mxu1 %vm142_vm1, %v7732_v38 }
 0x1bb   :  { %v1029_v34 = vadd.f32 %v950_v10, %v8181_v5  ;;  %6641 = vmatprep.mubr.msk.bf16.mxu0 %vm7500_vm0, %v10554_v0  ;;  %6697 = vmatprep.mubr.msk.bf16.mxu1 %vm7500_vm0, %v10554_v0 }
 0x1bc   :  { %v6423_v6 = vpop.f32.mrf.mxu0  ;;  %v6479_v7 = vpop.f32.mrf.mxu1 }
 0x1bd   :  { %v8340_v63 = vadd.f32 %v1130_v3, %v1029_v34 }
 0x1be   :  { %v953_v11 = vpop.f32.mrf.mxu0  ;;  %v1133_v39 = vpop.f32.mrf.mxu1 }
 0x1bf   :  { %v1030_v37 = vadd.f32 %v953_v11, %v8184_v13 }
 0x1c0   :  { %v6424_v19 = vpop.f32.mrf.mxu0  ;;  %v6480_v31 = vpop.f32.mrf.mxu1 }
 0x1c1   :  { %v8343_v5 = vadd.f32 %v1133_v39, %v1030_v37 }
 0x1c2   :  { %v958_v1 = vpop.f32.mrf.mxu0  ;;  %6642 = vmatmul.mubr.msk.bf16.gmra.mxu0 %vm142_vm1, %v7752_v43  ;;  %v1138_v21 = vpop.f32.mrf.mxu1  ;;  %6698 = vmatmul.mubr.msk.bf16.gmra.mxu1 %vm142_vm1, %v7750_v42  ;;  %v7203_v42 = vld [vmem:[%s10540_s3 + $0x10] sm:$0xff]  }
 0x1c3   :  { %v1031_v38 = vadd.f32 %v958_v1, %v8195_v24  ;;  %6645 = vmatprep.mubr.msk.bf16.mxu0 %vm7500_vm0, %v10554_v0  ;;  %6701 = vmatprep.mubr.msk.bf16.mxu1 %vm7500_vm0, %v10554_v0 }
 0x1c4   :  { %v6427_v25 = vpop.f32.mrf.mxu0  ;;  %v6483_v30 = vpop.f32.mrf.mxu1  ;;  %6740 = vmatpush3.bf16.msra.mxu0 %v7203_v42 }
 0x1c5   :  { %v8354_v13 = vadd.f32 %v1138_v21, %v1031_v38  ;;  %6849 = vmatprep.subr.bf16.mxu0 %v10554_v0 }
 0x1c6   :  { %v961_v33 = vpop.f32.mrf.mxu0  ;;  %v1141_v43 = vpop.f32.mrf.mxu1 }
 0x1c7   :  { %v1032_v57 = vadd.f32 %v961_v33, %v8198_v36 }
 0x1c8   :  { %v6428_v40 = vpop.f32.mrf.mxu0  ;;  %v6484_v45 = vpop.f32.mrf.mxu1 }
 0x1c9   :  { %v8357_v24 = vadd.f32 %v1141_v43, %v1032_v57 }
 0x1ca   :  { %v966_v49 = vpop.f32.mrf.mxu0  ;;  %6646 = vmatmul.mubr.msk.bf16.gmra.mxu0 %vm142_vm1, %v7770_v47  ;;  %v1146_v52 = vpop.f32.mrf.mxu1  ;;  %6702 = vmatmul.mubr.msk.bf16.gmra.mxu1 %vm142_vm1, %v7768_v46 }
 0x1cb   :  { %v1033_v28 = vadd.f32 %v966_v49, %v8209_v48  ;;  %6649 = vmatprep.mubr.msk.bf16.mxu0 %vm7500_vm0, %v10554_v0  ;;  %6705 = vmatprep.mubr.msk.bf16.mxu1 %vm7500_vm0, %v10554_v0 }
 0x1cc   :  { %v6431_v36 = vpop.f32.mrf.mxu0  ;;  %v6487_v56 = vpop.f32.mrf.mxu1 }
 0x1cd   :  { %v8371_v35 = vadd.f32 %v1146_v52, %v1033_v28 }
 0x1ce   :  { %v969_v47 = vpop.f32.mrf.mxu0  ;;  %v1149_v62 = vpop.f32.mrf.mxu1 }
 0x1cf   :  { %v1034_v48 = vadd.f32 %v969_v47, %v8212_v61 }
 0x1d0   :  { %v6432_v10 = vpop.f32.mrf.mxu0  ;;  %v6488_v46 = vpop.f32.mrf.mxu1 }
 0x1d1   :  { %v8375_v34 = vadd.f32 %v1149_v62, %v1034_v48  ;;  %v7204_v48 = vld [vmem:[%s10540_s3 + $0x8] sm:$0xff]  }
 0x1d2   :  { %v974_v3 = vpop.f32.mrf.mxu0  ;;  %6650 = vmatmul.mubr.msk.bf16.gmra.mxu0 %vm142_vm1, %v7788_v51  ;;  %v1154_v7 = vpop.f32.mrf.mxu1  ;;  %6706 = vmatmul.mubr.msk.bf16.gmra.mxu1 %vm142_vm1, %v7786_v50 }
 0x1d3   :  { %v1035_v6 = vadd.f32 %v974_v3, %v8223_v4  ;;  %6653 = vmatprep.mubr.msk.bf16.mxu0 %vm7500_vm0, %v10554_v0  ;;  %6709 = vmatprep.mubr.msk.bf16.mxu1 %vm7500_vm0, %v10554_v0 }
 0x1d4   :  { %v6435_v11 = vpop.f32.mrf.mxu0  ;;  %v6491_v37 = vpop.f32.mrf.mxu1  ;;  %6794 = vmatpush3.bf16.msra.mxu1 %v7204_v48 }
 0x1d5   :  { %v8386_v61 = vadd.f32 %v1154_v7, %v1035_v6  ;;  %6795 = vmatprep.subr.bf16.mxu1 %v10554_v0 }
 0x1d6   :  { %v977_v39 = vpop.f32.mrf.mxu0  ;;  %v1157_v51 = vpop.f32.mrf.mxu1 }
 0x1d7   :  { %v1036_v19 = vadd.f32 %v977_v39, %v8226_v14 }
 0x1d8   :  { %v6436_v31 = vpop.f32.mrf.mxu0  ;;  %v6492_v1 = vpop.f32.mrf.mxu1 }
 0x1d9   :  { %v8389_v4 = vadd.f32 %v1157_v51, %v1036_v19 }
 0x1da   :  { %v982_v38 = vpop.f32.mrf.mxu0  ;;  %6654 = vmatmul.mubr.msk.bf16.gmra.mxu0 %vm142_vm1, %v7806_v55  ;;  %v1162_v21 = vpop.f32.mrf.mxu1  ;;  %6710 = vmatmul.mubr.msk.bf16.gmra.mxu1 %vm142_vm1, %v7804_v54 }
 0x1db   :  { %v1037_v50 = vadd.f32 %v982_v38, %v8237_v29  ;;  %6657 = vmatprep.mubr.msk.bf16.mxu0 %vm7500_vm0, %v10554_v0  ;;  %6713 = vmatprep.mubr.msk.bf16.mxu1 %vm7500_vm0, %v10554_v0 }
 0x1dc   :  { %v6439_v25 = vpop.f32.mrf.mxu0  ;;  %v6495_v30 = vpop.f32.mrf.mxu1 }
 0x1dd   :  { %v8400_v14 = vadd.f32 %v1162_v21, %v1037_v50 }
 0x1de   :  { %v985_v33 = vpop.f32.mrf.mxu0  ;;  %v1165_v55 = vpop.f32.mrf.mxu1 }
 0x1df   :  { %v1038_v57 = vadd.f32 %v985_v33, %v8240_v44 }
 0x1e0   :  { %v6440_v43 = vpop.f32.mrf.mxu0  ;;  %v6496_v40 = vpop.f32.mrf.mxu1 }
 0x1e1   :  { %v8403_v29 = vadd.f32 %v1165_v55, %v1038_v57 }
 0x1e2   :  { %v990_v45 = vpop.f32.mrf.mxu0  ;;  %6658 = vmatmul.mubr.msk.bf16.gmra.mxu0 %vm142_vm1, %v7824_v59  ;;  %v1170_v54 = vpop.f32.mrf.mxu1  ;;  %6714 = vmatmul.mubr.msk.bf16.gmra.mxu1 %vm142_vm1, %v7822_v58 }
 0x1e3   :  { %6661 = vmatprep.mubr.msk.bf16.mxu0 %vm7500_vm0, %v10554_v0  ;;  %6717 = vmatprep.mubr.msk.bf16.mxu1 %vm7500_vm0, %v10554_v0 }
 0x1e4   :  { %v6443_v42 = vpop.f32.mrf.mxu0  ;;  %v6499_v44 = vpop.f32.mrf.mxu1 }
 0x1e6   :  { %v993_v49 = vpop.f32.mrf.mxu0  ;;  %v1173_v28 = vpop.f32.mrf.mxu1 }
 0x1e8   :  { %v6444_v52 = vpop.f32.mrf.mxu0  ;;  %v6500_v36 = vpop.f32.mrf.mxu1 }
 0x1ea   :  { %v998_v56 = vpop.f32.mrf.mxu0  ;;  %6662 = vmatmul.mubr.msk.bf16.gmra.mxu0 %vm142_vm1, %v7835_v60  ;;  %v1178_v59 = vpop.f32.mrf.mxu1  ;;  %6718 = vmatmul.mubr.msk.bf16.gmra.mxu1 %vm142_vm1, %v7649_v20  ;;  %v7205_v20 = vld [vmem:[%s10540_s3] sm:$0xff]  }
 0x1eb   :  { %6665 = vmatprep.mubr.msk.bf16.mxu0 %vm7500_vm0, %v10554_v0  ;;  %6721 = vmatprep.mubr.msk.bf16.mxu1 %vm7500_vm0, %v10554_v0 }
 0x1ec   :  { %v6447_v58 = vpop.f32.mrf.mxu0  ;;  %v6503_v47 = vpop.f32.mrf.mxu1  ;;  %6796 = vmatpush3.bf16.msra.mxu1 %v7205_v20 }
 0x1ed   :  { %6905 = vmatprep.subr.bf16.mxu1 %v10554_v0  ;;  %v10553_v47 = vmov 0.0|0.0  }
 0x1ee   :  { %v1001_v62 = vpop.f32.mrf.mxu0  ;;  %v1181_v10 = vpop.f32.mrf.mxu1 }
 0x1f0   :  { %v6448_v60 = vpop.f32.mrf.mxu0  ;;  %v6504_v46 = vpop.f32.mrf.mxu1 }
 0x1f2   :  { %v1006_v3 = vpop.f32.mrf.mxu0  ;;  %6666 = vmatmul.mubr.msk.bf16.gmra.mxu0 %vm142_vm1, %v7600_v9  ;;  %v1186_v6 = vpop.f32.mrf.mxu1  ;;  %6722 = vmatmul.mubr.msk.bf16.gmra.mxu1 %vm142_vm1, %v7598_v8 }
 0x1f3   :  { %6669 = vmatprep.mubr.msk.bf16.mxu0 %vm7500_vm0, %v10554_v0  ;;  %6725 = vmatprep.mubr.msk.bf16.mxu1 %vm7500_vm0, %v10554_v0 }
 0x1f4   :  { %v6451_v7 = vpop.f32.mrf.mxu0  ;;  %v6507_v11 = vpop.f32.mrf.mxu1 }
 0x1f6   :  { %v1009_v37 = vpop.f32.mrf.mxu0  ;;  %v1189_v39 = vpop.f32.mrf.mxu1 }
 0x1f8   :  { %v6452_v19 = vpop.f32.mrf.mxu0  ;;  %v6508_v51 = vpop.f32.mrf.mxu1 }
 0x1fa   :  { %v1014_v9 = vpop.f32.mrf.mxu0  ;;  %6670 = vmatmul.mubr.msk.bf16.gmra.mxu0 %vm142_vm1, %v7634_v17  ;;  %v1194_v8 = vpop.f32.mrf.mxu1  ;;  %6726 = vmatmul.mubr.msk.bf16.gmra.mxu1 %vm142_vm1, %v7631_v16 }
 0x1fb   :  { %6673 = vmatprep.mubr.msk.bf16.mxu0 %vm7500_vm0, %v10554_v0  ;;  %6729 = vmatprep.mubr.msk.bf16.mxu1 %vm7500_vm0, %v10554_v0 }
 0x1fc   :  { %v6455_v31 = vpop.f32.mrf.mxu0  ;;  %v6511_v1 = vpop.f32.mrf.mxu1 }
 0x1fe   :  { %v1017_v38 = vpop.f32.mrf.mxu0  ;;  %v1197_v50 = vpop.f32.mrf.mxu1 }
 0x200   :  { %v6456_v21 = vpop.f32.mrf.mxu0  ;;  %v6512_v25 = vpop.f32.mrf.mxu1 }
 0x202   :  { %v1278_v30 = vpop.f32.mrf.mxu0  ;;  %6674 = vmatmul.mubr.msk.bf16.gmra.mxu0 %vm142_vm1, %v7662_v23  ;;  %v1458_v17 = vpop.f32.mrf.mxu1  ;;  %6730 = vmatmul.mubr.msk.bf16.gmra.mxu1 %vm142_vm1, %v7660_v22 }
 0x203   :  { %6677 = vmatprep.mubr.msk.bf16.mxu0 %vm7500_vm0, %v10554_v0  ;;  %6733 = vmatprep.mubr.msk.bf16.mxu1 %vm7500_vm0, %v10554_v0 }
 0x204   :  { %v6519_v16 = vpop.f32.mrf.mxu0  ;;  %v6575_v33 = vpop.f32.mrf.mxu1 }
 0x206   :  { %v1281_v57 = vpop.f32.mrf.mxu0  ;;  %v1461_v43 = vpop.f32.mrf.mxu1 }
 0x207   :  { %v1382_v55 = vadd.f32 %v1281_v57, %v8283_v53 }
 0x208   :  { %v6520_v40 = vpop.f32.mrf.mxu0  ;;  %v6576_v23 = vpop.f32.mrf.mxu1 }
 0x209   :  { %v8454_v45 = vadd.f32 %v1461_v43, %v1382_v55 }
 0x20a   :  { %v1286_v54 = vpop.f32.mrf.mxu0  ;;  %6678 = vmatmul.mubr.msk.bf16.gmra.mxu0 %vm142_vm1, %v7680_v27  ;;  %v1466_v42 = vpop.f32.mrf.mxu1  ;;  %6734 = vmatmul.mubr.msk.bf16.gmra.mxu1 %vm142_vm1, %v7678_v26 }
 0x20b   :  { %v1383_v22 = vadd.f32 %v1286_v54, %v8294_v2  ;;  %6741 = vmatprep.mubr.msk.bf16.mxu0 %vm7500_vm0, %v10554_v0  ;;  %6797 = vmatprep.mubr.msk.bf16.mxu1 %vm7500_vm0, %v10554_v0 }
 0x20c   :  { %v6523_v44 = vpop.f32.mrf.mxu0  ;;  %v6579_v49 = vpop.f32.mrf.mxu1 }
 0x20d   :  { %v8465_v53 = vadd.f32 %v1466_v42, %v1383_v22 }
 0x20e   :  { %v1289_v28 = vpop.f32.mrf.mxu0  ;;  %v1469_v27 = vpop.f32.mrf.mxu1 }
 0x20f   :  { %v1384_v52 = vadd.f32 %v1289_v28, %v8300_v41 }
 0x210   :  { %v6524_v36 = vpop.f32.mrf.mxu0  ;;  %v6580_v56 = vpop.f32.mrf.mxu1 }
 0x211   :  { %v8468_v2 = vadd.f32 %v1469_v27, %v1384_v52 }
 0x212   :  { %v1294_v59 = vpop.f32.mrf.mxu0  ;;  %v1474_v58 = vpop.f32.mrf.mxu1  ;;  %6798 = vmatmul.mubr.bf16.vlgmr.msra.gmra.mxu1 %v10553_v47 }
 0x213   :  { %v1385_v26 = vadd.f32 %v1294_v59, %v8311_v18  ;;  %6801 = vmatprep.mubr.msk.bf16.mxu1 %vm7500_vm0, %v10554_v0 }
 0x214   :  { %v6527_v48 = vpop.f32.mrf.mxu0  ;;  %v6583_v10 = vpop.f32.mrf.mxu1 }
 0x215   :  { %v8474_v62 = vadd.f32 %v1474_v58, %v1385_v26 }
 0x216   :  { %v1297_v41 = vpop.f32.mrf.mxu0  ;;  %v1477_v46 = vpop.f32.mrf.mxu1 }
 0x217   :  { %v1386_v60 = vadd.f32 %v1297_v41, %v8315_v32 }
 0x218   :  { %v6528_v20 = vpop.f32.mrf.mxu0  ;;  %v6584_v6 = vpop.f32.mrf.mxu1 }
 0x219   :  { %v8477_v3 = vadd.f32 %v1477_v46, %v1386_v60 }
 0x21a   :  { %v1302_v18 = vpop.f32.mrf.mxu0  ;;  %v1482_v11 = vpop.f32.mrf.mxu1 }
 0x21b   :  { %v1387_v7 = vadd.f32 %v1302_v18, %v8326_v12 }
 0x21c   :  { %v6531_v37 = vpop.f32.mrf.mxu0  ;;  %v6587_v19 = vpop.f32.mrf.mxu1 }
 0x21d   :  { %v8480_v39 = vadd.f32 %v1482_v11, %v1387_v7 }
 0x21e   :  { %v1305_v51 = vpop.f32.mrf.mxu0  ;;  %v1485_v8 = vpop.f32.mrf.mxu1 }
 0x21f   :  { %v1388_v9 = vadd.f32 %v1305_v51, %v8329_v15 }
 0x220   :  { %v6532_v31 = vpop.f32.mrf.mxu0  ;;  %v6588_v32 = vpop.f32.mrf.mxu1 }
 0x221   :  { %v8483_v1 = vadd.f32 %v1485_v8, %v1388_v9 }
 0x222   :  { %v1310_v38 = vpop.f32.mrf.mxu0  ;;  %v1490_v21 = vpop.f32.mrf.mxu1 }
 0x223   :  { %v1389_v50 = vadd.f32 %v1310_v38, %v8340_v63 }
 0x224   :  { %v6535_v25 = vpop.f32.mrf.mxu0  ;;  %v6591_v12 = vpop.f32.mrf.mxu1 }
 0x225   :  { %v8486_v30 = vadd.f32 %v1490_v21, %v1389_v50 }
 0x226   :  { %v1313_v17 = vpop.f32.mrf.mxu0  ;;  %v1493_v33 = vpop.f32.mrf.mxu1 }
 0x227   :  { %v1390_v16 = vadd.f32 %v1313_v17, %v8343_v5 }
 0x228   :  { %v6536_v57 = vpop.f32.mrf.mxu0  ;;  %v6592_v15 = vpop.f32.mrf.mxu1 }
 0x229   :  { %v8489_v55 = vadd.f32 %v1493_v33, %v1390_v16 }
 0x22a   :  { %v1318_v43 = vpop.f32.mrf.mxu0  ;;  %v1498_v23 = vpop.f32.mrf.mxu1 }
 0x22b   :  { %v1391_v40 = vadd.f32 %v1318_v43, %v8354_v13 }
 0x22c   :  { %v6539_v54 = vpop.f32.mrf.mxu0  ;;  %v6595_v63 = vpop.f32.mrf.mxu1 }
 0x22d   :  { %v8492_v22 = vadd.f32 %v1498_v23, %v1391_v40 }
 0x22e   :  { %v1321_v42 = vpop.f32.mrf.mxu0  ;;  %v1501_v49 = vpop.f32.mrf.mxu1 }
 0x22f   :  { %v1392_v44 = vadd.f32 %v1321_v42, %v8357_v24 }
 0x230   :  { %v6540_v28 = vpop.f32.mrf.mxu0  ;;  %v6596_v5 = vpop.f32.mrf.mxu1 }
 0x231   :  { %v8495_v52 = vadd.f32 %v1501_v49, %v1392_v44 }
 0x232   :  { %v1326_v27 = vpop.f32.mrf.mxu0  ;;  %v1506_v56 = vpop.f32.mrf.mxu1 }
 0x233   :  { %v1393_v36 = vadd.f32 %v1326_v27, %v8371_v35 }
 0x234   :  { %v6543_v59 = vpop.f32.mrf.mxu0  ;;  %v6599_v13 = vpop.f32.mrf.mxu1 }
 0x235   :  { %v8498_v26 = vadd.f32 %v1506_v56, %v1393_v36  ;;  %v7209_v56 = vld [vmem:[%s10540_s3 + $0x30] sm:$0xff]  }
 0x236   :  { %v1329_v58 = vpop.f32.mrf.mxu0  ;;  %v1509_v10 = vpop.f32.mrf.mxu1 }
 0x237   :  { %v1394_v48 = vadd.f32 %v1329_v58, %v8375_v34 }
 0x238   :  { %v6544_v41 = vpop.f32.mrf.mxu0  ;;  %v6600_v24 = vpop.f32.mrf.mxu1 }
 0x239   :  { %v8501_v60 = vadd.f32 %v1509_v10, %v1394_v48 }
 0x23a   :  { %v1334_v46 = vpop.f32.mrf.mxu0  ;;  %v1514_v6 = vpop.f32.mrf.mxu1 }
 0x23b   :  { %v1395_v20 = vadd.f32 %v1334_v46, %v8386_v61 }
 0x23c   :  { %v6547_v18 = vpop.f32.mrf.mxu0  ;;  %v6603_v35 = vpop.f32.mrf.mxu1 }
 0x23d   :  { %v8504_v7 = vadd.f32 %v1514_v6, %v1395_v20 }
 0x23e   :  { %v1337_v11 = vpop.f32.mrf.mxu0  ;;  %v1517_v19 = vpop.f32.mrf.mxu1 }
 0x23f   :  { %v1396_v37 = vadd.f32 %v1337_v11, %v8389_v4 }
 0x240   :  { %v6548_v51 = vpop.f32.mrf.mxu0  ;;  %v6604_v34 = vpop.f32.mrf.mxu1 }
 0x241   :  { %v8507_v9 = vadd.f32 %v1517_v19, %v1396_v37 }
 0x242   :  { %v1342_v8 = vpop.f32.mrf.mxu0  ;;  %v1522_v32 = vpop.f32.mrf.mxu1 }
 0x243   :  { %v1397_v31 = vadd.f32 %v1342_v8, %v8400_v14 }
 0x244   :  { %v6551_v38 = vpop.f32.mrf.mxu0  ;;  %v6607_v61 = vpop.f32.mrf.mxu1 }
 0x245   :  { %v8510_v50 = vadd.f32 %v1522_v32, %v1397_v31 }
 0x246   :  { %v1345_v21 = vpop.f32.mrf.mxu0  ;;  %v1525_v12 = vpop.f32.mrf.mxu1 }
 0x247   :  { %v1398_v25 = vadd.f32 %v1345_v21, %v8403_v29  ;;  %v7208_v29 = vld [vmem:[%s10540_s3 + $0x38] sm:$0xff]  }
 0x248   :  { %v6552_v17 = vpop.f32.mrf.mxu0  ;;  %v6608_v4 = vpop.f32.mrf.mxu1  ;;  %6906 = vmatpush3.bf16.msra.mxu1 %v7208_v29 }
 0x249   :  { %v8513_v16 = vadd.f32 %v1525_v12, %v1398_v25  ;;  %6907 = vmatprep.subr.bf16.mxu1 %v10554_v0  ;;  %v8526_v25 = vld [vmem:[%s10541_s2] ss:$0 sm:$0xff] }
 0x24a   :  { %v1350_v33 = vpop.f32.mrf.mxu0  ;;  %v1530_v57 = vpop.f32.mrf.mxu1 }
 0x24c   :  { %v6555_v15 = vpop.f32.mrf.mxu0  ;;  %v6611_v43 = vpop.f32.mrf.mxu1  ;;  %6908 = vmatpush3.bf16.msra.mxu1 %v7209_v56  ;;  %v7207_v56 = vld [vmem:[%s10540_s3 + $0x20] sm:$0xff]  }
 0x24e   :  { %v1353_v40 = vpop.f32.mrf.mxu0  ;;  %v1533_v23 = vpop.f32.mrf.mxu1 }
 0x250   :  { %v6556_v14 = vpop.f32.mrf.mxu0  ;;  %v6612_v54 = vpop.f32.mrf.mxu1 }
 0x252   :  { %v1358_v63 = vpop.f32.mrf.mxu0  ;;  %v1538_v42 = vpop.f32.mrf.mxu1 }
 0x253   :  { %v7206_v63 = vld [vmem:[%s10540_s3 + $0x28] sm:$0xff]  }
 0x254   :  { %v6559_v44 = vpop.f32.mrf.mxu0  ;;  %v6615_v49 = vpop.f32.mrf.mxu1 }
 0x256   :  { %v1361_v28 = vpop.f32.mrf.mxu0  ;;  %v1541_v5 = vpop.f32.mrf.mxu1 }
 0x258   :  { %v6560_v27 = vpop.f32.mrf.mxu0  ;;  %v6616_v36 = vpop.f32.mrf.mxu1 }
 0x25a   :  { %v1366_v59 = vpop.f32.mrf.mxu0  ;;  %v1546_v13 = vpop.f32.mrf.mxu1 }
 0x25c   :  { %v6563_v58 = vpop.f32.mrf.mxu0  ;;  %v6619_v48 = vpop.f32.mrf.mxu1 }
 0x25e   :  { %v1369_v10 = vpop.f32.mrf.mxu0  ;;  %v1549_v41 = vpop.f32.mrf.mxu1 }
 0x260   :  { %v6564_v24 = vpop.f32.mrf.mxu0  ;;  %v6620_v46 = vpop.f32.mrf.mxu1 }
 0x262   :  { %v1374_v20 = vpop.f32.mrf.mxu0  ;;  %v1554_v6 = vpop.f32.mrf.mxu1 }
 0x264   :  { %v6567_v18 = vpop.f32.mrf.mxu0  ;;  %v6623_v35 = vpop.f32.mrf.mxu1 }
 0x266   :  { %v1377_v11 = vpop.f32.mrf.mxu0  ;;  %v1557_v37 = vpop.f32.mrf.mxu1 }
 0x268   :  { %v6568_v19 = vpop.f32.mrf.mxu0  ;;  %v6624_v51 = vpop.f32.mrf.mxu1 }
 0x26a   :  { %v1638_v34 = vpop.f32.mrf.mxu0  ;;  %v1818_v8 = vpop.f32.mrf.mxu1 }
 0x26c   :  { %v6631_v31 = vpop.f32.mrf.mxu0  ;;  %v6687_v32 = vpop.f32.mrf.mxu1 }
 0x26e   :  { %v1641_v38 = vpop.f32.mrf.mxu0  ;;  %v1821_v21 = vpop.f32.mrf.mxu1 }
 0x26f   :  { %v1742_v61 = vadd.f32 %v1641_v38, %v8454_v45 }
 0x270   :  { %v6632_v12 = vpop.f32.mrf.mxu0  ;;  %v6688_v4 = vpop.f32.mrf.mxu1 }
 0x271   :  { %v1922_v17 = vadd.f32 %v1821_v21, %v1742_v61 }
 0x272   :  { %v1646_v33 = vpop.f32.mrf.mxu0  ;;  %v1826_v43 = vpop.f32.mrf.mxu1 }
 0x273   :  { %v1955_v57 = vadd.f32 %v8526_v25, %v1922_v17  ;;  %v1743_v15 = vadd.f32 %v1646_v33, %v8465_v53 }
 0x274   :  { %v6635_v40 = vpop.f32.mrf.mxu0  ;;  %v6691_v54 = vpop.f32.mrf.mxu1 }
 0x275   :  { %v1981_v23 = vmax.f32 %v1955_v57, 0.0  ;;  %v1923_v14 = vadd.f32 %v1826_v43, %v1743_v15 }
 0x276   :  { %v1649_v45 = vpop.f32.mrf.mxu0  ;;  %v1829_v29 = vpop.f32.mrf.mxu1 }
 0x277   :  { %v8534_v42 = vpack.c.bf16 %v1981_v23, %v10554_v0  ;;  %v1956_v44 = vadd.f32 %v8526_v25, %v1923_v14  ;;  %v1744_v49 = vadd.f32 %v1649_v45, %v8468_v2 }
 0x278   :  { %v6636_v28 = vpop.f32.mrf.mxu0  ;;  %v6692_v27 = vpop.f32.mrf.mxu1 }
 0x279   :  { %v1982_v53 = vmax.f32 %v1956_v44, 0.0  ;;  %v1924_v5 = vadd.f32 %v1829_v29, %v1744_v49  ;;  %6742 = vmatmul.mubr.msk.bf16.vlgmr.msra.gmra.mxu0 %vm142_vm1, %v8534_v42 }
 0x27a   :  { %v1654_v36 = vpop.f32.mrf.mxu0  ;;  %6850 = vmatpush3.bf16.msra.mxu0 %v7206_v63  ;;  %6745 = vmatprep.mubr.msk.bf16.mxu0 %vm7500_vm0, %v10554_v0  ;;  %v1834_v58 = vpop.f32.mrf.mxu1 }
 0x27b   :  { %v8545_v59 = vpack.c.bf16 %v1982_v53, %v1981_v23  ;;  %v1957_v2 = vadd.f32 %v8526_v25, %v1924_v5  ;;  %v1745_v13 = vadd.f32 %v1654_v36, %v8474_v62  ;;  %6851 = vmatprep.subr.bf16.mxu0 %v10554_v0 }
 0x27c   :  { %v6639_v48 = vpop.f32.mrf.mxu0  ;;  %v6695_v24 = vpop.f32.mrf.mxu1 }
 0x27d   :  { %v1983_v10 = vmax.f32 %v1957_v2, 0.0  ;;  %v1925_v41 = vadd.f32 %v1834_v58, %v1745_v13  ;;  %6802 = vmatmul.mubr.msk.bf16.gmra.mxu1 %vm142_vm1, %v8545_v59 }
 0x27e   :  { %v1657_v46 = vpop.f32.mrf.mxu0  ;;  %6805 = vmatprep.mubr.msk.bf16.mxu1 %vm7500_vm0, %v10554_v0  ;;  %6852 = vmatpush3.bf16.msra.mxu0 %v7207_v56  ;;  %v1837_v18 = vpop.f32.mrf.mxu1 }
 0x27f   :  { %v8554_v20 = vpack.c.bf16 %v1983_v10, %v1982_v53  ;;  %v1958_v6 = vadd.f32 %v8526_v25, %v1925_v41  ;;  %v1746_v62 = vadd.f32 %v1657_v46, %v8477_v3  ;;  %6961 = vmatprep.subr.bf16.mxu0 %v10554_v0 }
 0x280   :  { %v6640_v35 = vpop.f32.mrf.mxu0  ;;  %v6696_v19 = vpop.f32.mrf.mxu1 }
 0x281   :  { %v1984_v11 = vmax.f32 %v1958_v6, 0.0  ;;  %v1926_v37 = vadd.f32 %v1837_v18, %v1746_v62  ;;  %6746 = vmatmul.mubr.msk.bf16.gmra.mxu0 %vm142_vm1, %v8554_v20 }
 0x282   :  { %v1662_v51 = vpop.f32.mrf.mxu0  ;;  %6749 = vmatprep.mubr.msk.bf16.mxu0 %vm7500_vm0, %v10554_v0  ;;  %v1842_v31 = vpop.f32.mrf.mxu1 }
 0x283   :  { %v8563_v34 = vpack.c.bf16 %v1984_v11, %v1983_v10  ;;  %v1959_v8 = vadd.f32 %v8526_v25, %v1926_v37  ;;  %v1747_v3 = vadd.f32 %v1662_v51, %v8480_v39 }
 0x284   :  { %v6643_v32 = vpop.f32.mrf.mxu0  ;;  %v6699_v21 = vpop.f32.mrf.mxu1 }
 0x285   :  { %v1985_v38 = vmax.f32 %v1959_v8, 0.0  ;;  %v1927_v61 = vadd.f32 %v1842_v31, %v1747_v3  ;;  %6806 = vmatmul.mubr.msk.bf16.gmra.mxu1 %vm142_vm1, %v8563_v34 }
 0x286   :  { %v1665_v12 = vpop.f32.mrf.mxu0  ;;  %6809 = vmatprep.mubr.msk.bf16.mxu1 %vm7500_vm0, %v10554_v0  ;;  %v1845_v57 = vpop.f32.mrf.mxu1 }
 0x287   :  { %v8571_v17 = vpack.c.bf16 %v1985_v38, %v1984_v11  ;;  %v1960_v4 = vadd.f32 %v8526_v25, %v1927_v61  ;;  %v1748_v33 = vadd.f32 %v1665_v12, %v8483_v1 }
 0x288   :  { %v6644_v39 = vpop.f32.mrf.mxu0  ;;  %v6700_v40 = vpop.f32.mrf.mxu1 }
 0x289   :  { %v1986_v15 = vmax.f32 %v1960_v4, 0.0  ;;  %v1928_v43 = vadd.f32 %v1845_v57, %v1748_v33  ;;  %6750 = vmatmul.mubr.msk.bf16.gmra.mxu0 %vm142_vm1, %v8571_v17 }
 0x28a   :  { %v1670_v23 = vpop.f32.mrf.mxu0  ;;  %6753 = vmatprep.mubr.msk.bf16.mxu0 %vm7500_vm0, %v10554_v0  ;;  %v1850_v63 = vpop.f32.mrf.mxu1 }
 0x28b   :  { %v8579_v14 = vpack.c.bf16 %v1986_v15, %v1985_v38  ;;  %v1961_v54 = vadd.f32 %v8526_v25, %v1928_v43  ;;  %v1749_v45 = vadd.f32 %v1670_v23, %v8486_v30 }
 0x28c   :  { %v6647_v1 = vpop.f32.mrf.mxu0  ;;  %v6703_v29 = vpop.f32.mrf.mxu1 }
 0x28d   :  { %v1987_v44 = vmax.f32 %v1961_v54, 0.0  ;;  %v1929_v49 = vadd.f32 %v1850_v63, %v1749_v45  ;;  %6810 = vmatmul.mubr.msk.bf16.gmra.mxu1 %vm142_vm1, %v8579_v14 }
 0x28e   :  { %v1673_v28 = vpop.f32.mrf.mxu0  ;;  %6813 = vmatprep.mubr.msk.bf16.mxu1 %vm7500_vm0, %v10554_v0  ;;  %v1853_v36 = vpop.f32.mrf.mxu1 }
 0x28f   :  { %v8587_v53 = vpack.c.bf16 %v1987_v44, %v1986_v15  ;;  %v1962_v5 = vadd.f32 %v8526_v25, %v1929_v49  ;;  %v1750_v27 = vadd.f32 %v1673_v28, %v8489_v55 }
 0x290   :  { %v6648_v30 = vpop.f32.mrf.mxu0  ;;  %v6704_v13 = vpop.f32.mrf.mxu1 }
 0x291   :  { %v1988_v56 = vmax.f32 %v1962_v5, 0.0  ;;  %v1930_v2 = vadd.f32 %v1853_v36, %v1750_v27  ;;  %6754 = vmatmul.mubr.msk.bf16.gmra.mxu0 %vm142_vm1, %v8587_v53 }
 0x292   :  { %v1678_v58 = vpop.f32.mrf.mxu0  ;;  %6757 = vmatprep.mubr.msk.bf16.mxu0 %vm7500_vm0, %v10554_v0  ;;  %v1858_v24 = vpop.f32.mrf.mxu1 }
 0x293   :  { %v8595_v48 = vpack.c.bf16 %v1988_v56, %v1987_v44  ;;  %v1963_v10 = vadd.f32 %v8526_v25, %v1930_v2  ;;  %v1751_v41 = vadd.f32 %v1678_v58, %v8492_v22 }
 0x294   :  { %v6651_v55 = vpop.f32.mrf.mxu0  ;;  %v6707_v62 = vpop.f32.mrf.mxu1 }
 0x295   :  { %v1989_v46 = vmax.f32 %v1963_v10, 0.0  ;;  %v1931_v6 = vadd.f32 %v1858_v24, %v1751_v41  ;;  %6814 = vmatmul.mubr.msk.bf16.gmra.mxu1 %vm142_vm1, %v8595_v48 }
 0x296   :  { %v1681_v18 = vpop.f32.mrf.mxu0  ;;  %6817 = vmatprep.mubr.msk.bf16.mxu1 %vm7500_vm0, %v10554_v0  ;;  %v1861_v19 = vpop.f32.mrf.mxu1 }
 0x297   :  { %v8603_v35 = vpack.c.bf16 %v1989_v46, %v1988_v56  ;;  %v1964_v11 = vadd.f32 %v8526_v25, %v1931_v6  ;;  %v1752_v37 = vadd.f32 %v1681_v18, %v8495_v52 }
 0x298   :  { %v6652_v22 = vpop.f32.mrf.mxu0  ;;  %v6708_v3 = vpop.f32.mrf.mxu1 }
 0x299   :  { %v1990_v51 = vmax.f32 %v1964_v11, 0.0  ;;  %v1932_v8 = vadd.f32 %v1861_v19, %v1752_v37  ;;  %6758 = vmatmul.mubr.msk.bf16.gmra.mxu0 %vm142_vm1, %v8603_v35 }
 0x29a   :  { %v1686_v31 = vpop.f32.mrf.mxu0  ;;  %6761 = vmatprep.mubr.msk.bf16.mxu0 %vm7500_vm0, %v10554_v0  ;;  %v1866_v21 = vpop.f32.mrf.mxu1 }
 0x29b   :  { %v8611_v32 = vpack.c.bf16 %v1990_v51, %v1989_v46  ;;  %v1965_v38 = vadd.f32 %v8526_v25, %v1932_v8  ;;  %v1753_v61 = vadd.f32 %v1686_v31, %v8498_v26 }
 0x29c   :  { %v6655_v52 = vpop.f32.mrf.mxu0  ;;  %v6711_v33 = vpop.f32.mrf.mxu1 }
 0x29d   :  { %v1991_v12 = vmax.f32 %v1965_v38, 0.0  ;;  %v1933_v4 = vadd.f32 %v1866_v21, %v1753_v61  ;;  %6818 = vmatmul.mubr.msk.bf16.gmra.mxu1 %vm142_vm1, %v8611_v32 }
 0x29e   :  { %v1689_v57 = vpop.f32.mrf.mxu0  ;;  %6821 = vmatprep.mubr.msk.bf16.mxu1 %vm7500_vm0, %v10554_v0  ;;  %v1869_v40 = vpop.f32.mrf.mxu1 }
 0x29f   :  { %v8619_v39 = vpack.c.bf16 %v1991_v12, %v1990_v51  ;;  %v1966_v15 = vadd.f32 %v8526_v25, %v1933_v4  ;;  %v1754_v43 = vadd.f32 %v1689_v57, %v8501_v60 }
 0x2a0   :  { %v6656_v26 = vpop.f32.mrf.mxu0  ;;  %v6712_v45 = vpop.f32.mrf.mxu1 }
 0x2a1   :  { %v1992_v23 = vmax.f32 %v1966_v15, 0.0  ;;  %v1934_v54 = vadd.f32 %v1869_v40, %v1754_v43  ;;  %6762 = vmatmul.mubr.msk.bf16.gmra.mxu0 %vm142_vm1, %v8619_v39 }
 0x2a2   :  { %v1694_v63 = vpop.f32.mrf.mxu0  ;;  %6765 = vmatprep.mubr.msk.bf16.mxu0 %vm7500_vm0, %v10554_v0  ;;  %v1874_v29 = vpop.f32.mrf.mxu1 }
 0x2a3   :  { %v8627_v1 = vpack.c.bf16 %v1992_v23, %v1991_v12  ;;  %v1967_v44 = vadd.f32 %v8526_v25, %v1934_v54  ;;  %v1755_v49 = vadd.f32 %v1694_v63, %v8504_v7 }
 0x2a4   :  { %v6659_v60 = vpop.f32.mrf.mxu0  ;;  %v6715_v27 = vpop.f32.mrf.mxu1 }
 0x2a5   :  { %v1993_v28 = vmax.f32 %v1967_v44, 0.0  ;;  %v1935_v5 = vadd.f32 %v1874_v29, %v1755_v49  ;;  %6822 = vmatmul.mubr.msk.bf16.gmra.mxu1 %vm142_vm1, %v8627_v1 }
 0x2a6   :  { %v1697_v36 = vpop.f32.mrf.mxu0  ;;  %6825 = vmatprep.mubr.msk.bf16.mxu1 %vm7500_vm0, %v10554_v0  ;;  %v1877_v13 = vpop.f32.mrf.mxu1 }
 0x2a7   :  { %v8635_v30 = vpack.c.bf16 %v1993_v28, %v1992_v23  ;;  %v1968_v56 = vadd.f32 %v8526_v25, %v1935_v5  ;;  %v1756_v2 = vadd.f32 %v1697_v36, %v8507_v9 }
 0x2a8   :  { %v6660_v7 = vpop.f32.mrf.mxu0  ;;  %v6716_v41 = vpop.f32.mrf.mxu1 }
 0x2a9   :  { %v1994_v58 = vmax.f32 %v1968_v56, 0.0  ;;  %v1936_v10 = vadd.f32 %v1877_v13, %v1756_v2  ;;  %6766 = vmatmul.mubr.msk.bf16.gmra.mxu0 %vm142_vm1, %v8635_v30 }
 0x2aa   :  { %v1702_v24 = vpop.f32.mrf.mxu0  ;;  %6769 = vmatprep.mubr.msk.bf16.mxu0 %vm7500_vm0, %v10554_v0  ;;  %v1882_v62 = vpop.f32.mrf.mxu1 }
 0x2ab   :  { %v8643_v55 = vpack.c.bf16 %v1994_v58, %v1993_v28  ;;  %v1969_v46 = vadd.f32 %v8526_v25, %v1936_v10  ;;  %v1757_v6 = vadd.f32 %v1702_v24, %v8510_v50 }
 0x2ac   :  { %v6663_v9 = vpop.f32.mrf.mxu0  ;;  %v6719_v37 = vpop.f32.mrf.mxu1 }
 0x2ad   :  { %v1995_v18 = vmax.f32 %v1969_v46, 0.0  ;;  %v1937_v11 = vadd.f32 %v1882_v62, %v1757_v6  ;;  %6826 = vmatmul.mubr.msk.bf16.gmra.mxu1 %vm142_vm1, %v8643_v55 }
 0x2ae   :  { %v1705_v19 = vpop.f32.mrf.mxu0  ;;  %6829 = vmatprep.mubr.msk.bf16.mxu1 %vm7500_vm0, %v10554_v0  ;;  %v1885_v3 = vpop.f32.mrf.mxu1 }
 0x2af   :  { %v8651_v22 = vpack.c.bf16 %v1995_v18, %v1994_v58  ;;  %v1970_v51 = vadd.f32 %v8526_v25, %v1937_v11  ;;  %v1758_v8 = vadd.f32 %v1705_v19, %v8513_v16 }
 0x2b0   :  { %v6664_v50 = vpop.f32.mrf.mxu0  ;;  %v6720_v61 = vpop.f32.mrf.mxu1 }
 0x2b1   :  { %v1996_v31 = vmax.f32 %v1970_v51, 0.0  ;;  %v1938_v38 = vadd.f32 %v1885_v3, %v1758_v8  ;;  %6770 = vmatmul.mubr.msk.bf16.gmra.mxu0 %vm142_vm1, %v8651_v22  ;;  %v7210_v8 = vld [vmem:[%s10540_s3 + $0x48] sm:$0xff]   ;;  %v7211_v3 = vld [vmem:[%s10540_s3 + $0x40] sm:$0xff]  }
 0x2b2   :  { %6773 = vmatprep.mubr.msk.bf16.mxu0 %vm7500_vm0, %v10554_v0  ;;  %v1710_v21 = vpop.f32.mrf.mxu0  ;;  %v1890_v4 = vpop.f32.mrf.mxu1 }
 0x2b3   :  { %v8659_v52 = vpack.c.bf16 %v1996_v31, %v1995_v18  ;;  %v1971_v12 = vadd.f32 %v8526_v25, %v1938_v38 }
 0x2b4   :  { %v6667_v33 = vpop.f32.mrf.mxu0  ;;  %v6723_v16 = vpop.f32.mrf.mxu1 }
 0x2b5   :  { %v1997_v57 = vmax.f32 %v1971_v12, 0.0  ;;  %6830 = vmatmul.mubr.msk.bf16.gmra.mxu1 %vm142_vm1, %v8659_v52 }
 0x2b6   :  { %6833 = vmatprep.mubr.msk.bf16.mxu1 %vm7500_vm0, %v10554_v0  ;;  %v1713_v15 = vpop.f32.mrf.mxu0  ;;  %v1893_v40 = vpop.f32.mrf.mxu1 }
 0x2b7   :  { %v8666_v43 = vpack.c.bf16 %v1997_v57, %v1996_v31  ;;  %v8673_v54 = vpack.c.bf16 %v10554_v0, %v1997_v57 }
 0x2b8   :  { %v6668_v26 = vpop.f32.mrf.mxu0  ;;  %v6724_v23 = vpop.f32.mrf.mxu1 }
 0x2b9   :  { %6774 = vmatmul.mubr.msk.bf16.gmra.mxu0 %vm142_vm1, %v8666_v43 }
 0x2ba   :  { %6777 = vmatprep.mubr.msk.bf16.mxu0 %vm7500_vm0, %v10554_v0  ;;  %v1718_v25 = vpop.f32.mrf.mxu0  ;;  %v1898_v45 = vpop.f32.mrf.mxu1 }
 0x2bb   :  { %v7215_v25 = vld [vmem:[%s10542_s5 + $0x20] ss:$8 sps:$4 sm:$0xff]   ;;  %v7217_v45 = vld [vmem:[%s10542_s5 + $0x24] ss:$8 sps:$4 sm:$0xff]  }
 0x2bc   :  { %v6671_v63 = vpop.f32.mrf.mxu0  ;;  %v6727_v44 = vpop.f32.mrf.mxu1 }
 0x2bd   :  { %6834 = vmatmul.mubr.msk.bf16.gmra.mxu1 %vm142_vm1, %v8673_v54 }
 0x2be   :  { %6837 = vmatprep.mubr.msk.bf16.mxu1 %vm7500_vm0, %v10554_v0  ;;  %v1721_v49 = vpop.f32.mrf.mxu0  ;;  %v1901_v29 = vpop.f32.mrf.mxu1 }
 0x2c0   :  { %v6672_v60 = vpop.f32.mrf.mxu0  ;;  %v6728_v28 = vpop.f32.mrf.mxu1 }
 0x2c1   :  { %6778 = vmatmul.mubr.bf16.gmra.mxu0 %v10553_v47 }
 0x2c2   :  { %6781 = vmatprep.mubr.msk.bf16.mxu0 %vm7500_vm0, %v10554_v0  ;;  %v1726_v5 = vpop.f32.mrf.mxu0  ;;  %v1906_v27 = vpop.f32.mrf.mxu1 }
 0x2c4   :  { %v6675_v36 = vpop.f32.mrf.mxu0  ;;  %v6731_v56 = vpop.f32.mrf.mxu1 }
 0x2c5   :  { %6838 = vmatmul.mubr.bf16.gmra.mxu1 %v10553_v47 }
 0x2c6   :  { %6841 = vmatprep.mubr.msk.bf16.mxu1 %vm7500_vm0, %v10554_v0  ;;  %v1729_v2 = vpop.f32.mrf.mxu0  ;;  %v1909_v13 = vpop.f32.mrf.mxu1 }
 0x2c8   :  { %v6676_v7 = vpop.f32.mrf.mxu0  ;;  %v6732_v58 = vpop.f32.mrf.mxu1 }
 0x2c9   :  { %6782 = vmatmul.mubr.bf16.gmra.mxu0 %v10553_v47 }
 0x2ca   :  { %6785 = vmatprep.mubr.msk.bf16.mxu0 %vm7500_vm0, %v10554_v0  ;;  %v1734_v10 = vpop.f32.mrf.mxu0  ;;  %v1914_v41 = vpop.f32.mrf.mxu1 }
 0x2cc   :  { %v6679_v24 = vpop.f32.mrf.mxu0  ;;  %v6735_v46 = vpop.f32.mrf.mxu1 }
 0x2cd   :  { %6842 = vmatmul.mubr.bf16.gmra.mxu1 %v10553_v47 }
 0x2ce   :  { %6845 = vmatprep.mubr.msk.bf16.mxu1 %vm7500_vm0, %v10554_v0  ;;  %v1737_v6 = vpop.f32.mrf.mxu0  ;;  %v1917_v62 = vpop.f32.mrf.mxu1 }
 0x2d0   :  { %v6680_v9 = vpop.f32.mrf.mxu0  ;;  %v6736_v18 = vpop.f32.mrf.mxu1 }
 0x2d1   :  { %6786 = vmatmul.mubr.bf16.gmra.mxu0 %v10553_v47 }
 0x2d2   :  { %6789 = vmatprep.mubr.msk.bf16.mxu0 %vm7500_vm0, %v10554_v0  ;;  %v2459_v11 = vpop.f32.mrf.mxu1 }
 0x2d4   :  { %v6799_v37 = vpop.f32.mrf.mxu1 }
 0x2d5   :  { %6846 = vmatmul.mubr.bf16.gmra.mxu1 %v10553_v47 }
 0x2d6   :  { %6909 = vmatprep.mubr.msk.bf16.mxu1 %vm7500_vm0, %v10554_v0  ;;  %v8697_v19 = vpop.f32.mrf.mxu1 }
 0x2d8   :  { %v6800_v51 = vpop.f32.mrf.mxu1 }
 0x2d9   :  { %6790 = vmatmul.mubr.bf16.gmra.mxu0 %v10553_v47 }
 0x2da   :  { %6853 = vmatprep.mubr.msk.bf16.mxu0 %vm7500_vm0, %v10554_v0 }
 0x2dd   :  { %6910 = vmatmul.mubr.msk.bf16.vlgmr.msra.gmra.mxu1 %vm142_vm1, %v8554_v20  ;;  %v7212_v20 = vld [vmem:[%s10542_s5 + $0x30] ss:$8 sps:$4 sm:$0xff]  }
 0x2de   :  { %6913 = vmatprep.mubr.msk.bf16.mxu1 %vm7500_vm0, %v10554_v0 }
 0x2e1   :  { %6854 = vmatmul.mubr.msk.bf16.vlgmr.msra.gmra.mxu0 %vm142_vm1, %v8545_v59 }
 0x2e2   :  { %6962 = vmatpush3.bf16.msra.mxu0 %v7210_v8  ;;  %6857 = vmatprep.mubr.msk.bf16.mxu0 %vm7500_vm0, %v10554_v0 }
 0x2e3   :  { %6963 = vmatprep.subr.bf16.mxu0 %v10554_v0 }
 0x2e5   :  { %6914 = vmatmul.mubr.msk.bf16.gmra.mxu1 %vm142_vm1, %v8571_v17  ;;  %v7214_v17 = vld [vmem:[%s10542_s5 + $0x34] ss:$8 sps:$4 sm:$0xff]  }
 0x2e6   :  { %6917 = vmatprep.mubr.msk.bf16.mxu1 %vm7500_vm0, %v10554_v0  ;;  %6964 = vmatpush3.bf16.msra.mxu0 %v7211_v3 }
 0x2e7   :  { %3238 = vmatprep.subr.bf16.mxu1 %v7214_v17 }
 0x2e8   :  { %3239 = vmatpush1.bf16.msra.mxu1 %v7212_v20 }
 0x2e9   :  { %6858 = vmatmul.mubr.msk.bf16.gmra.mxu0 %vm142_vm1, %v8563_v34  ;;  %3240 = vmatprep.subr.bf16.mxu1 %v7217_v45 }
 0x2ea   :  { %6861 = vmatprep.mubr.msk.bf16.mxu0 %vm7500_vm0, %v10554_v0 }
 0x2ec   :  { %3241 = vmatpush1.bf16.msra.mxu1 %v7215_v25 }
 0x2ed   :  { %6918 = vmatmul.mubr.msk.bf16.gmra.mxu1 %vm142_vm1, %v8587_v53 }
 0x2ee   :  { %6921 = vmatprep.mubr.msk.bf16.mxu1 %vm7500_vm0, %v10554_v0 }
 0x2f1   :  { %6862 = vmatmul.mubr.msk.bf16.gmra.mxu0 %vm142_vm1, %v8579_v14 }
 0x2f2   :  { %6865 = vmatprep.mubr.msk.bf16.mxu0 %vm7500_vm0, %v10554_v0 }
 0x2f5   :  { %6922 = vmatmul.mubr.msk.bf16.gmra.mxu1 %vm142_vm1, %v8603_v35 }
 0x2f6   :  { %6925 = vmatprep.mubr.msk.bf16.mxu1 %vm7500_vm0, %v10554_v0 }
 0x2f9   :  { %6866 = vmatmul.mubr.msk.bf16.gmra.mxu0 %vm142_vm1, %v8595_v48 }
 0x2fa   :  { %6869 = vmatprep.mubr.msk.bf16.mxu0 %vm7500_vm0, %v10554_v0 }
 0x2fd   :  { %6926 = vmatmul.mubr.msk.bf16.gmra.mxu1 %vm142_vm1, %v8619_v39 }
 0x2fe   :  { %6929 = vmatprep.mubr.msk.bf16.mxu1 %vm7500_vm0, %v10554_v0 }
 0x301   :  { %6870 = vmatmul.mubr.msk.bf16.gmra.mxu0 %vm142_vm1, %v8611_v32 }
 0x302   :  { %6873 = vmatprep.mubr.msk.bf16.mxu0 %vm7500_vm0, %v10554_v0 }
 0x305   :  { %6930 = vmatmul.mubr.msk.bf16.gmra.mxu1 %vm142_vm1, %v8635_v30 }
 0x306   :  { %6933 = vmatprep.mubr.msk.bf16.mxu1 %vm7500_vm0, %v10554_v0 }
 0x309   :  { %6874 = vmatmul.mubr.msk.bf16.gmra.mxu0 %vm142_vm1, %v8627_v1 }
 0x30a   :  { %6877 = vmatprep.mubr.msk.bf16.mxu0 %vm7500_vm0, %v10554_v0 }
 0x30d   :  { %6934 = vmatmul.mubr.msk.bf16.gmra.mxu1 %vm142_vm1, %v8651_v22 }
 0x30e   :  { %6937 = vmatprep.mubr.msk.bf16.mxu1 %vm7500_vm0, %v10554_v0 }
 0x311   :  { %6878 = vmatmul.mubr.msk.bf16.gmra.mxu0 %vm142_vm1, %v8643_v55 }
 0x312   :  { %6881 = vmatprep.mubr.msk.bf16.mxu0 %vm7500_vm0, %v10554_v0 }
 0x315   :  { %6938 = vmatmul.mubr.msk.bf16.gmra.mxu1 %vm142_vm1, %v8666_v43 }
 0x316   :  { %6941 = vmatprep.mubr.msk.bf16.mxu1 %vm7500_vm0, %v10554_v0 }
 0x319   :  { %6882 = vmatmul.mubr.msk.bf16.gmra.mxu0 %vm142_vm1, %v8659_v52 }
 0x31a   :  { %6885 = vmatprep.mubr.msk.bf16.mxu0 %vm7500_vm0, %v10554_v0 }
 0x31d   :  { %6942 = vmatmul.mubr.bf16.gmra.mxu1 %v10553_v47 }
 0x31e   :  { %6945 = vmatprep.mubr.msk.bf16.mxu1 %vm7500_vm0, %v10554_v0 }
 0x321   :  { %6886 = vmatmul.mubr.msk.bf16.gmra.mxu0 %vm142_vm1, %v8673_v54 }
 0x322   :  { %6889 = vmatprep.mubr.msk.bf16.mxu0 %vm7500_vm0, %v10554_v0 }
 0x325   :  { %6946 = vmatmul.mubr.bf16.gmra.mxu1 %v10553_v47 }
 0x326   :  { %6949 = vmatprep.mubr.msk.bf16.mxu1 %vm7500_vm0, %v10554_v0 }
 0x329   :  { %6890 = vmatmul.mubr.bf16.gmra.mxu0 %v10553_v47 }
 0x32a   :  { %6893 = vmatprep.mubr.msk.bf16.mxu0 %vm7500_vm0, %v10554_v0 }
 0x32d   :  { %6950 = vmatmul.mubr.bf16.gmra.mxu1 %v10553_v47 }
 0x32e   :  { %6953 = vmatprep.mubr.msk.bf16.mxu1 %vm7500_vm0, %v10554_v0 }
 0x331   :  { %6894 = vmatmul.mubr.bf16.gmra.mxu0 %v10553_v47 }
 0x332   :  { %6897 = vmatprep.mubr.msk.bf16.mxu0 %vm7500_vm0, %v10554_v0 }
 0x335   :  { %6954 = vmatmul.mubr.bf16.gmra.mxu1 %v10553_v47 }
 0x336   :  { %6957 = vmatprep.mubr.msk.bf16.mxu1 %vm7500_vm0, %v10554_v0 }
 0x339   :  { %v2282_v53 = vpop.f32.mrf.mxu0  ;;  %6898 = vmatmul.mubr.bf16.gmra.mxu0 %v10553_v47 }
 0x33a   :  { %6901 = vmatprep.mubr.msk.bf16.mxu0 %vm7500_vm0, %v10554_v0  ;;  %v7218_v53 = vld [vmem:[%s10542_s5 + $0x10] ss:$8 sps:$4 sm:$0xff]  }
 0x33b   :  { %v6743_v35 = vpop.f32.mrf.mxu0 }
 0x33c   :  { %v7220_v35 = vld [vmem:[%s10542_s5 + $0x14] ss:$8 sps:$4 sm:$0xff]  }
 0x33d   :  { %v8804_v39 = vpop.f32.mrf.mxu0  ;;  %v2466_v30 = vpop.f32.mrf.mxu1  ;;  %6958 = vmatmul.mubr.msk.bf16.gmra.mxu1 %vm142_vm1, %v8534_v42  ;;  %3242 = vmatprep.subr.bf16.mxu1 %v7220_v35 }
 0x33e   :  { %3243 = vmatpush1.bf16.msra.mxu1 %v7218_v53 }
 0x33f   :  { %v6744_v22 = vpop.f32.mrf.mxu0  ;;  %v6803_v50 = vpop.f32.mrf.mxu1 }
 0x341   :  { %v2289_v31 = vpop.f32.mrf.mxu0  ;;  %v2469_v38 = vpop.f32.mrf.mxu1  ;;  %6902 = vmatmul.mubr.bf16.gmra.mxu0 %v10553_v47 }
 0x342   :  { %v8809_v61 = vadd.f32 %v2466_v30, %v2289_v31  ;;  %6965 = vmatprep.mubr.msk.bf16.mxu0 %vm7500_vm0, %v10554_v0 }
 0x343   :  { %v6747_v21 = vpop.f32.mrf.mxu0  ;;  %v6804_v12 = vpop.f32.mrf.mxu1 }
 0x345   :  { %v2292_v4 = vpop.f32.mrf.mxu0  ;;  %v2474_v33 = vpop.f32.mrf.mxu1 }
 0x346   :  { %v8813_v57 = vadd.f32 %v2469_v38, %v2292_v4 }
 0x347   :  { %v6748_v16 = vpop.f32.mrf.mxu0  ;;  %v6807_v15 = vpop.f32.mrf.mxu1 }
 0x349   :  { %v2297_v42 = vpop.f32.mrf.mxu0  ;;  %v2477_v43 = vpop.f32.mrf.mxu1  ;;  %6966 = vmatmul.mubr.msk.bf16.vlgmr.msra.gmra.mxu0 %vm142_vm1, %v8563_v34 }
 0x34a   :  { %v8817_v40 = vadd.f32 %v2474_v33, %v2297_v42  ;;  %6969 = vmatprep.mubr.msk.bf16.mxu0 %vm7500_vm0, %v10554_v0 }
 0x34b   :  { %v6751_v26 = vpop.f32.mrf.mxu0  ;;  %v6808_v23 = vpop.f32.mrf.mxu1 }
 0x34d   :  { %v2300_v63 = vpop.f32.mrf.mxu0  ;;  %v2482_v44 = vpop.f32.mrf.mxu1 }
 0x34e   :  { %v8827_v49 = vadd.f32 %v2477_v43, %v2300_v63 }
 0x34f   :  { %v6752_v34 = vpop.f32.mrf.mxu0  ;;  %v6811_v29 = vpop.f32.mrf.mxu1 }
 0x351   :  { %v2305_v60 = vpop.f32.mrf.mxu0  ;;  %v2485_v28 = vpop.f32.mrf.mxu1  ;;  %6970 = vmatmul.mubr.msk.bf16.gmra.mxu0 %vm142_vm1, %v8579_v14 }
 0x352   :  { %v8831_v5 = vadd.f32 %v2482_v44, %v2305_v60  ;;  %6973 = vmatprep.mubr.msk.bf16.mxu0 %vm7500_vm0, %v10554_v0 }
 0x353   :  { %v6755_v27 = vpop.f32.mrf.mxu0  ;;  %v6812_v36 = vpop.f32.mrf.mxu1 }
 0x355   :  { %v2308_v56 = vpop.f32.mrf.mxu0  ;;  %v2490_v2 = vpop.f32.mrf.mxu1 }
 0x356   :  { %v8835_v13 = vadd.f32 %v2485_v28, %v2308_v56 }
 0x357   :  { %v6756_v7 = vpop.f32.mrf.mxu0  ;;  %v6815_v58 = vpop.f32.mrf.mxu1 }
 0x358   :  { %v7221_v58 = vld [vmem:[%s10542_s5] ss:$8 sps:$4 sm:$0xff]  }
 0x359   :  { %v2313_v10 = vpop.f32.mrf.mxu0  ;;  %v2493_v41 = vpop.f32.mrf.mxu1  ;;  %6974 = vmatmul.mubr.msk.bf16.gmra.mxu0 %vm142_vm1, %v8595_v48 }
 0x35a   :  { %v8839_v24 = vadd.f32 %v2490_v2, %v2313_v10  ;;  %6977 = vmatprep.mubr.msk.bf16.mxu0 %vm7500_vm0, %v10554_v0  ;;  %v7223_v10 = vld [vmem:[%s10542_s5 + $0x4] ss:$8 sps:$4 sm:$0xff]  }
 0x35b   :  { %v6759_v14 = vpop.f32.mrf.mxu0  ;;  %v6816_v46 = vpop.f32.mrf.mxu1  ;;  %3244 = vmatprep.subr.bf16.mxu1 %v7223_v10 }
 0x35c   :  { %3245 = vmatpush1.bf16.msra.mxu1 %v7221_v58 }
 0x35d   :  { %v2316_v6 = vpop.f32.mrf.mxu0  ;;  %v2498_v62 = vpop.f32.mrf.mxu1 }
 0x35e   :  { %v8843_v9 = vadd.f32 %v2493_v41, %v2316_v6 }
 0x35f   :  { %v6760_v18 = vpop.f32.mrf.mxu0  ;;  %v6819_v11 = vpop.f32.mrf.mxu1 }
 0x361   :  { %v2321_v37 = vpop.f32.mrf.mxu0  ;;  %v2501_v51 = vpop.f32.mrf.mxu1  ;;  %6978 = vmatmul.mubr.msk.bf16.gmra.mxu0 %vm142_vm1, %v8611_v32 }
 0x362   :  { %v8847_v8 = vadd.f32 %v2498_v62, %v2321_v37  ;;  %6981 = vmatprep.mubr.msk.bf16.mxu0 %vm7500_vm0, %v10554_v0 }
 0x363   :  { %v6763_v48 = vpop.f32.mrf.mxu0  ;;  %v6820_v3 = vpop.f32.mrf.mxu1 }
 0x365   :  { %v2324_v20 = vpop.f32.mrf.mxu0  ;;  %v2506_v17 = vpop.f32.mrf.mxu1 }
 0x366   :  { %v8857_v30 = vadd.f32 %v2501_v51, %v2324_v20 }
 0x367   :  { %v6764_v32 = vpop.f32.mrf.mxu0  ;;  %v6823_v22 = vpop.f32.mrf.mxu1 }
 0x369   :  { %v2329_v50 = vpop.f32.mrf.mxu0  ;;  %v2509_v31 = vpop.f32.mrf.mxu1  ;;  %6982 = vmatmul.mubr.msk.bf16.gmra.mxu0 %vm142_vm1, %v8627_v1 }
 0x36a   :  { %v8861_v38 = vadd.f32 %v2506_v17, %v2329_v50  ;;  %6985 = vmatprep.mubr.msk.bf16.mxu0 %vm7500_vm0, %v10554_v0 }
 0x36b   :  { %v6767_v21 = vpop.f32.mrf.mxu0  ;;  %v6824_v12 = vpop.f32.mrf.mxu1 }
 0x36d   :  { %v2332_v4 = vpop.f32.mrf.mxu0  ;;  %v2514_v33 = vpop.f32.mrf.mxu1 }
 0x36e   :  { %v8865_v16 = vadd.f32 %v2509_v31, %v2332_v4 }
 0x36f   :  { %v6768_v15 = vpop.f32.mrf.mxu0  ;;  %v6827_v42 = vpop.f32.mrf.mxu1 }
 0x370   :  { %v10556_v42 = vmov 0  }
 0x371   :  { %v2337_v43 = vpop.f32.mrf.mxu0  ;;  %v2517_v26 = vpop.f32.mrf.mxu1  ;;  %6986 = vmatmul.mubr.msk.bf16.gmra.mxu0 %vm142_vm1, %v8643_v55  ;;  %3262 = vmatprep.mubr.bf16.mxu1 %v10556_v42 }
 0x372   :  { %v8869_v23 = vadd.f32 %v2514_v33, %v2337_v43  ;;  %6989 = vmatprep.mubr.msk.bf16.mxu0 %vm7500_vm0, %v10554_v0 }
 0x373   :  { %v6771_v1 = vpop.f32.mrf.mxu0  ;;  %v6828_v25 = vpop.f32.mrf.mxu1 }
 0x375   :  { %v2340_v45 = vpop.f32.mrf.mxu0  ;;  %v2522_v63 = vpop.f32.mrf.mxu1 }
 0x376   :  { %v8873_v44 = vadd.f32 %v2517_v26, %v2340_v45 }
 0x377   :  { %v6772_v34 = vpop.f32.mrf.mxu0  ;;  %v6831_v29 = vpop.f32.mrf.mxu1 }
 0x379   :  { %v2345_v60 = vpop.f32.mrf.mxu0  ;;  %v2524_v28 = vpop.f32.mrf.mxu1  ;;  %6990 = vmatmul.mubr.msk.bf16.gmra.mxu0 %vm142_vm1, %v8659_v52 }
 0x37a   :  { %6993 = vmatprep.mubr.msk.bf16.mxu0 %vm7500_vm0, %v10554_v0  ;;  %v8903_v60 = vld [vmem:[%s10543_s6 + $0x74] ss:$8 sps:$4 sm:$0xff]   ;;  %v8910_v28 = vld [vmem:[%s10543_s6 + $0x70] ss:$8 sps:$4 sm:$0xff]  }
 0x37b   :  { %v6775_v55 = vpop.f32.mrf.mxu0  ;;  %v6832_v27 = vpop.f32.mrf.mxu1  ;;  %3472 = vmatprep.subr.bf16.mxu1 %v8903_v60  ;;  %3602 = vmatprep.subr.bf16.mxu0 %v8903_v60 }
 0x37c   :  { %3603 = vmatpush1.bf16.msra.mxu0 %v8910_v28 }
 0x37d   :  { %v2347_v36 = vpop.f32.mrf.mxu0  ;;  %v2528_v56 = vpop.f32.mrf.mxu1 }
 0x37e   :  { %v2462_v36 = vadd.f32 %v8697_v19, %v8804_v39  ;;  %v8929_v19 = vld [vmem:[%s10543_s6 + $0x60] ss:$8 sps:$4 sm:$0xff]  }
 0x37f   :  { %v6776_v2 = vpop.f32.mrf.mxu0  ;;  %v6835_v7 = vpop.f32.mrf.mxu1 }
 0x381   :  { %v2351_v41 = vpop.f32.mrf.mxu0  ;;  %v2530_v14 = vpop.f32.mrf.mxu1  ;;  %6994 = vmatmul.mubr.msk.bf16.gmra.mxu0 %vm142_vm1, %v8673_v54 }
 0x382   :  { %6997 = vmatprep.mubr.msk.bf16.mxu0 %vm7500_vm0, %v10554_v0  ;;  %v8922_v14 = vld [vmem:[%s10543_s6 + $0x64] ss:$8 sps:$4 sm:$0xff]  }
 0x383   :  { %v6779_v52 = vpop.f32.mrf.mxu0  ;;  %v6836_v46 = vpop.f32.mrf.mxu1  ;;  %3604 = vmatprep.subr.bf16.mxu0 %v8922_v14 }
 0x384   :  { %3605 = vmatpush1.bf16.msra.mxu0 %v8929_v19 }
 0x385   :  { %v2353_v6 = vpop.f32.mrf.mxu0  ;;  %v2534_v62 = vpop.f32.mrf.mxu1 }
 0x387   :  { %v6780_v18 = vpop.f32.mrf.mxu0  ;;  %v6839_v11 = vpop.f32.mrf.mxu1 }
 0x389   :  { %v2357_v37 = vpop.f32.mrf.mxu0  ;;  %v2536_v51 = vpop.f32.mrf.mxu1  ;;  %6998 = vmatmul.mubr.bf16.gmra.mxu0 %v10553_v47 }
 0x38a   :  { %7001 = vmatprep.mubr.msk.bf16.mxu0 %vm7500_vm0, %v10554_v0 }
 0x38b   :  { %v6783_v48 = vpop.f32.mrf.mxu0  ;;  %v6840_v54 = vpop.f32.mrf.mxu1 }
 0x38d   :  { %v2359_v3 = vpop.f32.mrf.mxu0  ;;  %v2540_v20 = vpop.f32.mrf.mxu1 }
 0x38f   :  { %v6784_v17 = vpop.f32.mrf.mxu0  ;;  %v6843_v53 = vpop.f32.mrf.mxu1 }
 0x390   :  { %v8948_v17 = vld [vmem:[%s10543_s6 + $0x50] ss:$8 sps:$4 sm:$0xff]  }
 0x391   :  { %v2363_v35 = vpop.f32.mrf.mxu0  ;;  %v2542_v32 = vpop.f32.mrf.mxu1  ;;  %7002 = vmatmul.mubr.bf16.gmra.mxu0 %v10553_v47 }
 0x392   :  { %7005 = vmatprep.mubr.msk.bf16.mxu0 %vm7500_vm0, %v10554_v0 }
 0x393   :  { %v6787_v22 = vpop.f32.mrf.mxu0  ;;  %v6844_v50 = vpop.f32.mrf.mxu1 }
 0x395   :  { %v2365_v31 = vpop.f32.mrf.mxu0  ;;  %v2546_v21 = vpop.f32.mrf.mxu1 }
 0x397   :  { %v6788_v12 = vpop.f32.mrf.mxu0  ;;  %v6847_v4 = vpop.f32.mrf.mxu1 }
 0x399   :  { %v2369_v33 = vpop.f32.mrf.mxu0  ;;  %v2548_v15 = vpop.f32.mrf.mxu1  ;;  %7006 = vmatmul.mubr.bf16.gmra.mxu0 %v10553_v47 }
 0x39a   :  { %7009 = vmatprep.mubr.msk.bf16.mxu0 %vm7500_vm0, %v10554_v0 }
 0x39b   :  { %v6791_v43 = vpop.f32.mrf.mxu0  ;;  %v6848_v26 = vpop.f32.mrf.mxu1 }
 0x39c   :  { %v8966_v43 = vld [vmem:[%s10543_s6 + $0x40] ss:$8 sps:$4 sm:$0xff]  }
 0x39d   :  { %v2371_v1 = vpop.f32.mrf.mxu0  ;;  %v2760_v25 = vpop.f32.mrf.mxu1 }
 0x39f   :  { %v6792_v45 = vpop.f32.mrf.mxu0  ;;  %v6911_v63 = vpop.f32.mrf.mxu1 }
 0x3a1   :  { %v2602_v34 = vpop.f32.mrf.mxu0  ;;  %v2762_v29 = vpop.f32.mrf.mxu1  ;;  %7010 = vmatmul.mubr.bf16.gmra.mxu0 %v10553_v47 }
 0x3a2   :  { %7013 = vmatprep.mubr.msk.bf16.mxu0 %vm7500_vm0, %v10554_v0 }
 0x3a3   :  { %v6855_v55 = vpop.f32.mrf.mxu0  ;;  %v6912_v27 = vpop.f32.mrf.mxu1 }
 0x3a5   :  { %v2604_v56 = vpop.f32.mrf.mxu0  ;;  %v2767_v2 = vpop.f32.mrf.mxu1 }
 0x3a6   :  { %v2694_v7 = vadd.f32 %v2604_v56, %v2462_v36 }
 0x3a7   :  { %v6856_v58 = vpop.f32.mrf.mxu0  ;;  %v6915_v10 = vpop.f32.mrf.mxu1 }
 0x3a8   :  { %v8917_v41 = vadd.f32 %v2762_v29, %v2694_v7 }
 0x3a9   :  { %v2609_v52 = vpop.f32.mrf.mxu0  ;;  %v2770_v46 = vpop.f32.mrf.mxu1  ;;  %7014 = vmatmul.mubr.msk.bf16.gmra.mxu0 %vm142_vm1, %v8545_v59 }
 0x3aa   :  { %v2695_v39 = vadd.f32 %v2609_v52, %v8809_v61  ;;  %3634 = vmatprep.mubr.bf16.mxu0 %v10556_v42  ;;  %v8943_v61 = vld [vmem:[%s10543_s6 + $0x54] ss:$8 sps:$4 sm:$0xff]  }
 0x3ab   :  { %v6859_v6 = vpop.f32.mrf.mxu0  ;;  %v6916_v62 = vpop.f32.mrf.mxu1  ;;  %3606 = vmatprep.subr.bf16.mxu0 %v8943_v61 }
 0x3ac   :  { %v8935_v18 = vadd.f32 %v2767_v2, %v2695_v39  ;;  %3607 = vmatpush1.bf16.msra.mxu0 %v8948_v17  ;;  %v8984_v2 = vld [vmem:[%s10543_s6 + $0x30] ss:$8 sps:$4 sm:$0xff]  }
 0x3ad   :  { %v2612_v11 = vpop.f32.mrf.mxu0  ;;  %v2775_v37 = vpop.f32.mrf.mxu1 }
 0x3ae   :  { %v2696_v59 = vadd.f32 %v2612_v11, %v8813_v57 }
 0x3af   :  { %v6860_v51 = vpop.f32.mrf.mxu0  ;;  %v6919_v48 = vpop.f32.mrf.mxu1 }
 0x3b0   :  { %v8938_v54 = vadd.f32 %v2770_v46, %v2696_v59  ;;  %v9002_v51 = vld [vmem:[%s10543_s6 + $0x20] ss:$8 sps:$4 sm:$0xff]  }
 0x3b1   :  { %v2617_v3 = vpop.f32.mrf.mxu0  ;;  %v2778_v20 = vpop.f32.mrf.mxu1 }
 0x3b2   :  { %v2697_v53 = vadd.f32 %v2617_v3, %v8817_v40  ;;  %v8961_v40 = vld [vmem:[%s10543_s6 + $0x44] ss:$8 sps:$4 sm:$0xff]  }
 0x3b3   :  { %v6863_v57 = vpop.f32.mrf.mxu0  ;;  %v6920_v35 = vpop.f32.mrf.mxu1  ;;  %3608 = vmatprep.subr.bf16.mxu0 %v8961_v40 }
 0x3b4   :  { %v8953_v32 = vadd.f32 %v2775_v37, %v2697_v53  ;;  %3609 = vmatpush1.bf16.msra.mxu0 %v8966_v43  ;;  %v9012_v53 = vld [vmem:[%s10543_s6 + $0x14] ss:$8 sps:$4 sm:$0xff]  }
 0x3b5   :  { %v2620_v22 = vpop.f32.mrf.mxu0  ;;  %v2783_v50 = vpop.f32.mrf.mxu1 }
 0x3b6   :  { %v2698_v31 = vadd.f32 %v2620_v22, %v8827_v49  ;;  %v9017_v22 = vld [vmem:[%s10543_s6 + $0x10] ss:$8 sps:$4 sm:$0xff]  }
 0x3b7   :  { %v6864_v21 = vpop.f32.mrf.mxu0  ;;  %v6923_v12 = vpop.f32.mrf.mxu1 }
 0x3b8   :  { %v8956_v4 = vadd.f32 %v2778_v20, %v2698_v31 }
 0x3b9   :  { %v2625_v33 = vpop.f32.mrf.mxu0  ;;  %v2786_v15 = vpop.f32.mrf.mxu1 }
 0x3ba   :  { %v2699_v26 = vadd.f32 %v2625_v33, %v8831_v5  ;;  %v8979_v5 = vld [vmem:[%s10543_s6 + $0x34] ss:$8 sps:$4 sm:$0xff]  }
 0x3bb   :  { %v6867_v49 = vpop.f32.mrf.mxu0  ;;  %v6924_v1 = vpop.f32.mrf.mxu1  ;;  %3610 = vmatprep.subr.bf16.mxu0 %v8979_v5 }
 0x3bc   :  { %v8971_v25 = vadd.f32 %v2783_v50, %v2699_v26  ;;  %3611 = vmatpush1.bf16.msra.mxu0 %v8984_v2  ;;  %v9028_v26 = vld [vmem:[%s10543_s6 + $0x4] ss:$8 sps:$4 sm:$0xff]  }
 0x3bd   :  { %v2628_v45 = vpop.f32.mrf.mxu0  ;;  %v2791_v63 = vpop.f32.mrf.mxu1 }
 0x3be   :  { %v2700_v34 = vadd.f32 %v2628_v45, %v8835_v13 }
 0x3bf   :  { %v6868_v29 = vpop.f32.mrf.mxu0  ;;  %v6927_v55 = vpop.f32.mrf.mxu1 }
 0x3c0   :  { %v8974_v27 = vadd.f32 %v2786_v15, %v2700_v34 }
 0x3c1   :  { %v2633_v36 = vpop.f32.mrf.mxu0  ;;  %v2794_v56 = vpop.f32.mrf.mxu1 }
 0x3c2   :  { %v2701_v7 = vadd.f32 %v2633_v36, %v8839_v24  ;;  %v8997_v24 = vld [vmem:[%s10543_s6 + $0x24] ss:$8 sps:$4 sm:$0xff]  }
 0x3c3   :  { %v6871_v13 = vpop.f32.mrf.mxu0  ;;  %v6928_v58 = vpop.f32.mrf.mxu1  ;;  %3612 = vmatprep.subr.bf16.mxu0 %v8997_v24 }
 0x3c4   :  { %v8989_v10 = vadd.f32 %v2791_v63, %v2701_v7  ;;  %3613 = vmatpush1.bf16.msra.mxu0 %v9002_v51 }
 0x3c5   :  { %v2636_v52 = vpop.f32.mrf.mxu0  ;;  %v2799_v46 = vpop.f32.mrf.mxu1  ;;  %3614 = vmatprep.subr.bf16.mxu0 %v9012_v53 }
 0x3c6   :  { %v2702_v39 = vadd.f32 %v2636_v52, %v8843_v9 }
 0x3c7   :  { %v6872_v6 = vpop.f32.mrf.mxu0  ;;  %v6931_v62 = vpop.f32.mrf.mxu1 }
 0x3c8   :  { %v8992_v11 = vadd.f32 %v2794_v56, %v2702_v39  ;;  %3615 = vmatpush1.bf16.msra.mxu0 %v9017_v22 }
 0x3c9   :  { %v2641_v37 = vpop.f32.mrf.mxu0  ;;  %v2802_v59 = vpop.f32.mrf.mxu1  ;;  %3616 = vmatprep.subr.bf16.mxu0 %v9028_v26 }
 0x3ca   :  { %v2703_v48 = vadd.f32 %v2641_v37, %v8847_v8 }
 0x3cb   :  { %v6875_v9 = vpop.f32.mrf.mxu0  ;;  %v6932_v3 = vpop.f32.mrf.mxu1 }
 0x3cc   :  { %v9007_v20 = vadd.f32 %v2799_v46, %v2703_v48 }
 0x3cd   :  { %v2644_v57 = vpop.f32.mrf.mxu0  ;;  %v2807_v35 = vpop.f32.mrf.mxu1 }
 0x3ce   :  { %v2704_v8 = vadd.f32 %v2644_v57, %v8857_v30  ;;  %v9033_v30 = vld [vmem:[%s10543_s6] ss:$8 sps:$4 sm:$0xff]  }
 0x3cf   :  { %v6876_v50 = vpop.f32.mrf.mxu0  ;;  %v6935_v31 = vpop.f32.mrf.mxu1  ;;  %3617 = vmatpush1.bf16.msra.mxu0 %v9033_v30 }
 0x3d0   :  { %v9022_v21 = vadd.f32 %v2802_v59, %v2704_v8  ;;  %3732 = vmatprep.subr.bf16.mxu0 %v8903_v60 }
 0x3d1   :  { %v2649_v12 = vpop.f32.mrf.mxu0  ;;  %v2810_v33 = vpop.f32.mrf.mxu1 }
 0x3d2   :  { %v2705_v15 = vadd.f32 %v2649_v12, %v8861_v38 }
 0x3d3   :  { %v6879_v49 = vpop.f32.mrf.mxu0  ;;  %v6936_v1 = vpop.f32.mrf.mxu1 }
 0x3d4   :  { %v9035_v45 = vadd.f32 %v2807_v35, %v2705_v15 }
 0x3d5   :  { %v2652_v63 = vpop.f32.mrf.mxu0  ;;  %v2815_v34 = vpop.f32.mrf.mxu1 }
 0x3d6   :  { %v2706_v38 = vadd.f32 %v2652_v63, %v8865_v16 }
 0x3d7   :  { %v6880_v29 = vpop.f32.mrf.mxu0  ;;  %v6939_v55 = vpop.f32.mrf.mxu1 }
 0x3d8   :  { %v9041_v36 = vadd.f32 %v2810_v33, %v2706_v38 }
 0x3d9   :  { %v2657_v56 = vpop.f32.mrf.mxu0  ;;  %v2818_v7 = vpop.f32.mrf.mxu1 }
 0x3da   :  { %v2707_v13 = vadd.f32 %v2657_v56, %v8869_v23 }
 0x3db   :  { %v6883_v58 = vpop.f32.mrf.mxu0  ;;  %v6940_v52 = vpop.f32.mrf.mxu1 }
 0x3dc   :  { %v9044_v46 = vadd.f32 %v2815_v34, %v2707_v13 }
 0x3dd   :  { %v2660_v39 = vpop.f32.mrf.mxu0  ;;  %v2823_v6 = vpop.f32.mrf.mxu1 }
 0x3de   :  { %v2708_v62 = vadd.f32 %v2660_v39, %v8873_v44 }
 0x3df   :  { %v6884_v37 = vpop.f32.mrf.mxu0  ;;  %v6943_v16 = vpop.f32.mrf.mxu1 }
 0x3e0   :  { %v9047_v59 = vadd.f32 %v2818_v7, %v2708_v62 }
 0x3e1   :  { %v2665_v48 = vpop.f32.mrf.mxu0  ;;  %v2825_v9 = vpop.f32.mrf.mxu1 }
 0x3e3   :  { %v6887_v3 = vpop.f32.mrf.mxu0  ;;  %v6944_v57 = vpop.f32.mrf.mxu1 }
 0x3e5   :  { %v2667_v35 = vpop.f32.mrf.mxu0  ;;  %v2829_v8 = vpop.f32.mrf.mxu1 }
 0x3e7   :  { %v6888_v50 = vpop.f32.mrf.mxu0  ;;  %v6947_v23 = vpop.f32.mrf.mxu1 }
 0x3e9   :  { %v2671_v31 = vpop.f32.mrf.mxu0  ;;  %v2831_v12 = vpop.f32.mrf.mxu1 }
 0x3eb   :  { %v6891_v33 = vpop.f32.mrf.mxu0  ;;  %v6948_v15 = vpop.f32.mrf.mxu1 }
 0x3ed   :  { %v2673_v49 = vpop.f32.mrf.mxu0  ;;  %v2835_v1 = vpop.f32.mrf.mxu1 }
 0x3ee   :  { %v9053_v49 = vld [vmem:[%s10544_s4] ss:$0 sm:$0xff] }
 0x3ef   :  { %v6892_v63 = vpop.f32.mrf.mxu0  ;;  %v6951_v44 = vpop.f32.mrf.mxu1 }
 0x3f1   :  { %v2677_v34 = vpop.f32.mrf.mxu0  ;;  %v2837_v38 = vpop.f32.mrf.mxu1 }
 0x3f3   :  { %v6895_v29 = vpop.f32.mrf.mxu0  ;;  %v6952_v55 = vpop.f32.mrf.mxu1 }
 0x3f5   :  { %v2679_v56 = vpop.f32.mrf.mxu0  ;;  %v2841_v7 = vpop.f32.mrf.mxu1 }
 0x3f7   :  { %v6896_v13 = vpop.f32.mrf.mxu0  ;;  %v6955_v58 = vpop.f32.mrf.mxu1 }
 0x3f9   :  { %v2683_v52 = vpop.f32.mrf.mxu0  ;;  %v2843_v39 = vpop.f32.mrf.mxu1 }
 0x3fb   :  { %v6899_v6 = vpop.f32.mrf.mxu0  ;;  %v6956_v62 = vpop.f32.mrf.mxu1 }
 0x3fd   :  { %v2685_v37 = vpop.f32.mrf.mxu0  ;;  %v2847_v16 = vpop.f32.mrf.mxu1 }
 0x3ff   :  { %v6900_v48 = vpop.f32.mrf.mxu0  ;;  %v6959_v9 = vpop.f32.mrf.mxu1 }
 0x401   :  { %v2689_v3 = vpop.f32.mrf.mxu0  ;;  %v2849_v57 = vpop.f32.mrf.mxu1 }
 0x403   :  { %v6903_v35 = vpop.f32.mrf.mxu0  ;;  %v6960_v8 = vpop.f32.mrf.mxu1 }
 0x405   :  { %v2691_v50 = vpop.f32.mrf.mxu0 }
 0x407   :  { %v6904_v23 = vpop.f32.mrf.mxu0 }
 0x409   :  { %v2918_v31 = vpop.f32.mrf.mxu0 }
 0x40b   :  { %v6967_v12 = vpop.f32.mrf.mxu0 }
 0x40d   :  { %v2920_v33 = vpop.f32.mrf.mxu0 }
 0x40e   :  { %v3010_v15 = vadd.f32 %v2920_v33, %v8917_v41 }
 0x40f   :  { %v6968_v1 = vpop.f32.mrf.mxu0 }
 0x410   :  { %v3032_v44 = vadd.f32 %v9053_v49, %v3010_v15 }
 0x411   :  { %v2925_v63 = vpop.f32.mrf.mxu0 }
 0x412   :  { %v3011_v34 = vadd.f32 %v2925_v63, %v8935_v18  ;;  %v3047_v56 = vmax.f32 %v3032_v44, 0.0 }
 0x413   :  { %v6971_v38 = vpop.f32.mrf.mxu0 }
 0x414   :  { %v3033_v29 = vadd.f32 %v9053_v49, %v3011_v34 }
 0x415   :  { %v2928_v55 = vpop.f32.mrf.mxu0 }
 0x416   :  { %v3048_v7 = vmax.f32 %v3033_v29, 0.0  ;;  %v3012_v13 = vadd.f32 %v2928_v55, %v8938_v54 }
 0x417   :  { %v6972_v41 = vpop.f32.mrf.mxu0 }
 0x418   :  { %v3137_v58 = vpack.c.bf16 %v3048_v7, %v3047_v56  ;;  %v3034_v39 = vadd.f32 %v9053_v49, %v3012_v13 }
 0x419   :  { %v2933_v52 = vpop.f32.mrf.mxu0 }
 0x41a   :  { %v3013_v6 = vadd.f32 %v2933_v52, %v8953_v32  ;;  %5815 = vmatmul.mubr.msk.bf16.vlgmr.msra.gmra.mxu1 %vm3205_vm2, %v3137_v58  ;;  %v3049_v37 = vmax.f32 %v3034_v39, 0.0 }
 0x41b   :  { %v6975_v62 = vpop.f32.mrf.mxu0  ;;  %3473 = vmatpush1.bf16.msra.mxu1 %v8910_v28  ;;  %3272 = vmatprep.mubr.bf16.mxu1 %v10556_v42 }
 0x41c   :  { %v3035_v18 = vadd.f32 %v9053_v49, %v3013_v6  ;;  %3474 = vmatprep.subr.bf16.mxu1 %v8922_v14 }
 0x41d   :  { %v2936_v54 = vpop.f32.mrf.mxu0 }
 0x41e   :  { %v3050_v16 = vmax.f32 %v3035_v18, 0.0  ;;  %v3014_v48 = vadd.f32 %v2936_v54, %v8956_v4 }
 0x41f   :  { %v6976_v9 = vpop.f32.mrf.mxu0  ;;  %3475 = vmatpush1.bf16.msra.mxu1 %v8929_v19 }
 0x420   :  { %v3138_v32 = vpack.c.bf16 %v3050_v16, %v3049_v37  ;;  %3476 = vmatprep.subr.bf16.mxu1 %v8943_v61  ;;  %v3036_v57 = vadd.f32 %v9053_v49, %v3014_v48 }
 0x421   :  { %v2941_v3 = vpop.f32.mrf.mxu0 }
 0x422   :  { %v3015_v35 = vadd.f32 %v2941_v3, %v8971_v25  ;;  %5816 = vmatmul.mubr.msk.bf16.gmra.mxu1 %vm3205_vm2, %v3138_v32  ;;  %v3051_v23 = vmax.f32 %v3036_v57, 0.0 }
 0x423   :  { %v6979_v8 = vpop.f32.mrf.mxu0  ;;  %3282 = vmatprep.mubr.bf16.mxu1 %v10556_v42  ;;  %3477 = vmatpush1.bf16.msra.mxu1 %v8948_v17 }
 0x424   :  { %v3037_v4 = vadd.f32 %v9053_v49, %v3015_v35  ;;  %3478 = vmatprep.subr.bf16.mxu1 %v8961_v40 }
 0x425   :  { %v2944_v50 = vpop.f32.mrf.mxu0 }
 0x426   :  { %v3052_v31 = vmax.f32 %v3037_v4, 0.0  ;;  %v3016_v12 = vadd.f32 %v2944_v50, %v8974_v27 }
 0x427   :  { %v6980_v33 = vpop.f32.mrf.mxu0  ;;  %3479 = vmatpush1.bf16.msra.mxu1 %v8966_v43 }
 0x428   :  { %v3139_v25 = vpack.c.bf16 %v3052_v31, %v3051_v23  ;;  %3480 = vmatprep.subr.bf16.mxu1 %v8979_v5  ;;  %v3038_v1 = vadd.f32 %v9053_v49, %v3016_v12 }
 0x429   :  { %v2949_v15 = vpop.f32.mrf.mxu0 }
 0x42a   :  { %v3017_v63 = vadd.f32 %v2949_v15, %v8989_v10  ;;  %5817 = vmatmul.mubr.msk.bf16.gmra.mxu1 %vm3205_vm2, %v3139_v25  ;;  %v3053_v38 = vmax.f32 %v3038_v1, 0.0 }
 0x42b   :  { %v6983_v44 = vpop.f32.mrf.mxu0  ;;  %3292 = vmatprep.mubr.bf16.mxu1 %v10556_v42  ;;  %3481 = vmatpush1.bf16.msra.mxu1 %v8984_v2 }
 0x42c   :  { %v3039_v27 = vadd.f32 %v9053_v49, %v3017_v63  ;;  %3482 = vmatprep.subr.bf16.mxu1 %v8997_v24 }
 0x42d   :  { %v2952_v34 = vpop.f32.mrf.mxu0 }
 0x42e   :  { %v3054_v29 = vmax.f32 %v3039_v27, 0.0  ;;  %v3018_v55 = vadd.f32 %v2952_v34, %v8992_v11 }
 0x42f   :  { %v6984_v56 = vpop.f32.mrf.mxu0  ;;  %3483 = vmatpush1.bf16.msra.mxu1 %v9002_v51 }
 0x430   :  { %v3140_v10 = vpack.c.bf16 %v3054_v29, %v3053_v38  ;;  %3484 = vmatprep.subr.bf16.mxu1 %v9012_v53  ;;  %v3040_v13 = vadd.f32 %v9053_v49, %v3018_v55 }
 0x431   :  { %v2957_v7 = vpop.f32.mrf.mxu0 }
 0x432   :  { %v3019_v41 = vadd.f32 %v2957_v7, %v9007_v20  ;;  %5818 = vmatmul.mubr.msk.bf16.gmra.mxu1 %vm3205_vm2, %v3140_v10  ;;  %v3055_v39 = vmax.f32 %v3040_v13, 0.0 }
 0x433   :  { %v6987_v58 = vpop.f32.mrf.mxu0  ;;  %3302 = vmatprep.mubr.bf16.mxu1 %v10556_v42  ;;  %3485 = vmatpush1.bf16.msra.mxu1 %v9017_v22 }
 0x434   :  { %v3041_v11 = vadd.f32 %v9053_v49, %v3019_v41  ;;  %3486 = vmatprep.subr.bf16.mxu1 %v9028_v26 }
 0x435   :  { %v2960_v52 = vpop.f32.mrf.mxu0 }
 0x436   :  { %v3056_v6 = vmax.f32 %v3041_v11, 0.0  ;;  %v3020_v62 = vadd.f32 %v2960_v52, %v9022_v21 }
 0x437   :  { %v6988_v18 = vpop.f32.mrf.mxu0  ;;  %3487 = vmatpush1.bf16.msra.mxu1 %v9033_v30 }
 0x438   :  { %v3141_v20 = vpack.c.bf16 %v3056_v6, %v3055_v39  ;;  %3537 = vmatprep.subr.bf16.mxu1 %v8903_v60  ;;  %v3042_v37 = vadd.f32 %v9053_v49, %v3020_v62 }
 0x439   :  { %v2965_v54 = vpop.f32.mrf.mxu0 }
 0x43a   :  { %v3021_v16 = vadd.f32 %v2965_v54, %v9035_v45  ;;  %5819 = vmatmul.mubr.msk.bf16.gmra.mxu1 %vm3205_vm2, %v3141_v20  ;;  %v3057_v21 = vmax.f32 %v3042_v37, 0.0  ;;  %v3155_v54 = vlaneseq }
 0x43b   :  { %v6991_v48 = vpop.f32.mrf.mxu0  ;;  %3312 = vmatprep.mubr.bf16.mxu1 %v10556_v42 }
 0x43c   :  { %v3043_v9 = vadd.f32 %v9053_v49, %v3021_v16  ;;  %v9135_v37 = vshrl.u32 %v3155_v54, 7  ;;  %v3153_v48 = vld [vmem:[%s10545_s7] sm:$0x3]  ;;  %s7503_s7 = smov 64  }
 0x43d   :  { %v2968_v32 = vpop.f32.mrf.mxu0 }
 0x43e   :  { %v3058_v3 = vmax.f32 %v3043_v9, 0.0  ;;  %v3022_v57 = vadd.f32 %v2968_v32, %v9041_v36  ;;  %v10552_v16 = vsub.s32 0, %v9135_v37  ;;  %v10551_v32 = vsub.s32 1, %v9135_v37 }
 0x43f   :  { %v6992_v35 = vpop.f32.mrf.mxu0 }
 0x440   :  { %v3142_v8 = vpack.c.bf16 %v3058_v3, %v3057_v21  ;;  %v3044_v50 = vadd.f32 %v9053_v49, %v3022_v57  ;;  %v3158_v3 = vrot.slane %v3153_v48, %v10552_v16  ;;  %v3162_v35 = vrot.slane %v3153_v48, %v10551_v32 }
 0x441   :  { %v2973_v4 = vpop.f32.mrf.mxu0 }
 0x442   :  { %v3023_v23 = vadd.f32 %v2973_v4, %v9044_v46  ;;  %5820 = vmatmul.mubr.msk.bf16.gmra.mxu1 %vm3205_vm2, %v3142_v8  ;;  %v3059_v33 = vmax.f32 %v3044_v50, 0.0 }
 0x443   :  { %v6995_v45 = vpop.f32.mrf.mxu0  ;;  %3322 = vmatprep.mubr.bf16.mxu1 %v10556_v42 }
 0x444   :  { %v3045_v31 = vadd.f32 %v9053_v49, %v3023_v23 }
 0x445   :  { %v2976_v12 = vpop.f32.mrf.mxu0 }
 0x446   :  { %v3060_v25 = vmax.f32 %v3045_v31, 0.0  ;;  %v3024_v15 = vadd.f32 %v2976_v12, %v9047_v59 }
 0x447   :  { %v6996_v36 = vpop.f32.mrf.mxu0 }
 0x448   :  { %v3143_v1 = vpack.c.bf16 %v3060_v25, %v3059_v33  ;;  %v3046_v63 = vadd.f32 %v9053_v49, %v3024_v15 }
 0x449   :  { %v2981_v44 = vpop.f32.mrf.mxu0 }
 0x44a   :  { %5821 = vmatmul.mubr.msk.bf16.gmra.mxu1 %vm3205_vm2, %v3143_v1  ;;  %v3061_v27 = vmax.f32 %v3046_v63, 0.0 }
 0x44b   :  { %v6999_v46 = vpop.f32.mrf.mxu0  ;;  %3332 = vmatprep.mubr.bf16.mxu1 %v10556_v42 }
 0x44c   :  { %v3144_v29 = vpack.c.bf16 %v3061_v27, %v3061_v27 }
 0x44d   :  { %v2983_v34 = vpop.f32.mrf.mxu0 }
 0x44f   :  { %v7000_v38 = vpop.f32.mrf.mxu0 }
 0x451   :  { %v2987_v55 = vpop.f32.mrf.mxu0 }
 0x452   :  { %5822 = vmatmul.mubr.msk.bf16.gmra.mxu1 %vm3205_vm2, %v3144_v29 }
 0x453   :  { %v7003_v56 = vpop.f32.mrf.mxu0  ;;  %3504 = vmatprep.mubr.bf16.mxu1 %v10556_v42 }
 0x455   :  { %v2989_v59 = vpop.f32.mrf.mxu0 }
 0x457   :  { %v7004_v10 = vpop.f32.mrf.mxu0 }
 0x459   :  { %v2993_v7 = vpop.f32.mrf.mxu0 }
 0x45a   :  { %3505 = vmatmul.mubr.bf16.vlgmr.msra.gmra.mxu1 %v10556_v42 }
 0x45b   :  { %v7007_v49 = vpop.f32.mrf.mxu0  ;;  %3538 = vmatpush1.bf16.msra.mxu1 %v8910_v28  ;;  %3569 = vmatprep.mubr.bf16.mxu1 %v10556_v42 }
 0x45c   :  { %3539 = vmatprep.subr.bf16.mxu1 %v8922_v14 }
 0x45d   :  { %v2995_v13 = vpop.f32.mrf.mxu0 }
 0x45f   :  { %v7008_v41 = vpop.f32.mrf.mxu0  ;;  %3540 = vmatpush1.bf16.msra.mxu1 %v8929_v19 }
 0x460   :  { %3541 = vmatprep.subr.bf16.mxu1 %v8943_v61 }
 0x461   :  { %v2999_v58 = vpop.f32.mrf.mxu0 }
 0x463   :  { %v7011_v11 = vpop.f32.mrf.mxu0  ;;  %3542 = vmatpush1.bf16.msra.mxu1 %v8948_v17 }
 0x464   :  { %3543 = vmatprep.subr.bf16.mxu1 %v8961_v40 }
 0x465   :  { %v3001_v52 = vpop.f32.mrf.mxu0 }
 0x467   :  { %v7012_v39 = vpop.f32.mrf.mxu0  ;;  %3544 = vmatpush1.bf16.msra.mxu1 %v8966_v43 }
 0x468   :  { %3545 = vmatprep.subr.bf16.mxu1 %v8979_v5 }
 0x469   :  { %v3005_v6 = vpop.f32.mrf.mxu0 }
 0x46b   :  { %v7015_v62 = vpop.f32.mrf.mxu0  ;;  %3546 = vmatpush1.bf16.msra.mxu1 %v8984_v2 }
 0x46c   :  { %3547 = vmatprep.subr.bf16.mxu1 %v8997_v24 }
 0x46d   :  { %v3007_v18 = vpop.f32.mrf.mxu0 }
 0x46f   :  { %v7016_v20 = vpop.f32.mrf.mxu0  ;;  %3548 = vmatpush1.bf16.msra.mxu1 %v9002_v51 }
 0x470   :  { %3549 = vmatprep.subr.bf16.mxu1 %v9012_v53 }
 0x473   :  { %3550 = vmatpush1.bf16.msra.mxu1 %v9017_v22 }
 0x474   :  { %3551 = vmatprep.subr.bf16.mxu1 %v9028_v26 }
 0x477   :  { %3552 = vmatpush1.bf16.msra.mxu1 %v9033_v30 }
 0x478   :  { %3667 = vmatprep.subr.bf16.mxu1 %v8903_v60 }
 0x4da   :  { %v9141_v9 = vpop.f32.mrf.mxu1 }
 0x4dc   :  { %v9144_v21 = vpop.f32.mrf.mxu1 }
 0x4de   :  { %v3268_v57 = vpop.f32.mrf.mxu1 }
 0x4df   :  { %v9150_v8 = vadd.f32 %v3268_v57, %v3158_v3 }
 0x4e0   :  { %v3270_v4 = vpop.f32.mrf.mxu1 }
 0x4e1   :  { %v9152_v50 = vadd.f32 %v3270_v4, %v3162_v35 }
 0x4e2   :  { %v3274_v23 = vpop.f32.mrf.mxu1 }
 0x4e3   :  { %v9154_v45 = vadd.f32 %v3274_v23, %v3158_v3 }
 0x4e4   :  { %v3276_v31 = vpop.f32.mrf.mxu1 }
 0x4e5   :  { %v9156_v12 = vadd.f32 %v3276_v31, %v3162_v35 }
 0x4e6   :  { %v3278_v33 = vpop.f32.mrf.mxu1 }
 0x4e7   :  { %v9158_v25 = vadd.f32 %v3278_v33, %v3158_v3 }
 0x4e8   :  { %v3280_v15 = vpop.f32.mrf.mxu1 }
 0x4e9   :  { %v9160_v36 = vadd.f32 %v3280_v15, %v3162_v35 }
 0x4ea   :  { %v3284_v1 = vpop.f32.mrf.mxu1 }
 0x4eb   :  { %v9162_v63 = vadd.f32 %v3284_v1, %v3158_v3 }
 0x4ec   :  { %v3286_v44 = vpop.f32.mrf.mxu1 }
 0x4ed   :  { %v9164_v46 = vadd.f32 %v3286_v44, %v3162_v35 }
 0x4ee   :  { %v3288_v27 = vpop.f32.mrf.mxu1 }
 0x4ef   :  { %v9166_v34 = vadd.f32 %v3288_v27, %v3158_v3 }
 0x4f0   :  { %v3290_v38 = vpop.f32.mrf.mxu1 }
 0x4f1   :  { %v9168_v29 = vadd.f32 %v3290_v38, %v3162_v35 }
 0x4f2   :  { %v3294_v55 = vpop.f32.mrf.mxu1 }
 0x4f3   :  { %v9170_v56 = vadd.f32 %v3294_v55, %v3158_v3 }
 0x4f4   :  { %v3296_v59 = vpop.f32.mrf.mxu1 }
 0x4f5   :  { %v9172_v10 = vadd.f32 %v3296_v59, %v3162_v35 }
 0x4f6   :  { %v3298_v7 = vpop.f32.mrf.mxu1 }
 0x4f7   :  { %v9174_v49 = vadd.f32 %v3298_v7, %v3158_v3 }
 0x4f8   :  { %v3300_v13 = vpop.f32.mrf.mxu1 }
 0x4f9   :  { %v9176_v41 = vadd.f32 %v3300_v13, %v3162_v35 }
 0x4fa   :  { %v3304_v58 = vpop.f32.mrf.mxu1 }
 0x4fb   :  { %v9178_v11 = vadd.f32 %v3304_v58, %v3158_v3 }
 0x4fc   :  { %v3306_v52 = vpop.f32.mrf.mxu1 }
 0x4fd   :  { %v9180_v39 = vadd.f32 %v3306_v52, %v3162_v35 }
 0x4fe   :  { %v3308_v6 = vpop.f32.mrf.mxu1 }
 0x4ff   :  { %v9182_v62 = vadd.f32 %v3308_v6, %v3158_v3 }
 0x500   :  { %v3310_v18 = vpop.f32.mrf.mxu1 }
 0x501   :  { %v9184_v20 = vadd.f32 %v3310_v18, %v3162_v35 }
 0x502   :  { %v3314_v48 = vpop.f32.mrf.mxu1 }
 0x503   :  { %v9186_v57 = vadd.f32 %v3314_v48, %v3158_v3 }
 0x504   :  { %v3316_v4 = vpop.f32.mrf.mxu1 }
 0x505   :  { %v9188_v23 = vadd.f32 %v3316_v4, %v3162_v35 }
 0x506   :  { %v3318_v31 = vpop.f32.mrf.mxu1 }
 0x507   :  { %v9190_v33 = vadd.f32 %v3318_v31, %v3158_v3 }
 0x508   :  { %v3320_v15 = vpop.f32.mrf.mxu1 }
 0x509   :  { %v9192_v1 = vadd.f32 %v3320_v15, %v3162_v35  ;;  %v3265_v15 = vadd.f32 %v9141_v9, %v3158_v3 }
 0x50a   :  { %v3324_v44 = vpop.f32.mrf.mxu1 }
 0x50b   :  { %v9194_v27 = vadd.f32 %v3324_v44, %v3158_v3  ;;  %v9208_v44 = vand.u32 127, %v3155_v54 }
 0x50c   :  { %v3326_v38 = vpop.f32.mrf.mxu1 }
 0x50d   :  { %v9196_v55 = vadd.f32 %v3326_v38, %v3162_v35  ;;  %vm3373_vm3 = vcmp.lt.s32.totalorder %v9208_v44, 64 }
 0x50e   :  { %v3328_v59 = vpop.f32.mrf.mxu1 }
 0x50f   :  { %v9198_v7 = vadd.f32 %v3328_v59, %v3158_v3  ;;  %v3267_v59 = vadd.f32 %v9144_v21, %v3162_v35 }
 0x510   :  { %v3330_v13 = vpop.f32.mrf.mxu1 }
 0x511   :  { %v9200_v58 = vadd.f32 %v3330_v13, %v3162_v35 }
 0x512   :  { %v3334_v52 = vpop.f32.mrf.mxu1 }
 0x513   :  { %v9202_v6 = vadd.f32 %v3334_v52, %v3158_v3 }
 0x514   :  { %v3336_v18 = vpop.f32.mrf.mxu1 }
 0x515   :  { %v9204_v48 = vadd.f32 %v3336_v18, %v3162_v35 }
 0x516   :  { %v3338_v4 = vpop.f32.mrf.mxu1 }
 0x518   :  { %v3339_v31 = vpop.f32.mrf.mxu1 }
 0x51a   :  { %v3506_v38 = vpop.f32.mrf.mxu1 }
 0x51b   :  { %v3513_v32 = vadd.f32 %v3506_v38, %v3265_v15 }
 0x51c   :  { %v3508_v16 = vpop.f32.mrf.mxu1 }
 0x51d   :  { %v3515_v13 = vmul.f32 0.5, %v3513_v32  ;;  %v3514_v47 = vadd.f32 %v3508_v16, %v3267_v59 }
 0x51e   :  { %v3510_v52 = vpop.f32.mrf.mxu1 }
 0x51f   :  { %7304 = vtanh.f32 %v3515_v13  ;;  %v3519_v18 = vmul.f32 0.5, %v3514_v47  ;;  %v10558_v52 = vmov 0  }
 0x520   :  { %v3511_v0 = vpop.f32.mrf.mxu1 }
 0x521   :  { %v3520_v4 = vsel %vm3373_vm3, %v3514_v47, %v3519_v18 }
 0x522   :  { %7306 = vtanh.f32 %v3520_v4 }
 0x52c   :  { %v7305_v9 = vpop.eup %7304 }
 0x52d   :  { %v3517_v54 = vadd.f32 1.0, %v7305_v9 }
 0x52f   :  { %v7307_v3 = vpop.eup %7306  ;;  %v3518_v31 = vmul.f32 0.5, %v3517_v54 }
 0x530   :  { %v3522_v42 = vadd.f32 1.0, %v7307_v3 }
 0x531   :  { %3525 = vrot.lane.b32.xlu0 %v3518_v31, %s7503_s7 }
 0x532   :  { %v3523_v32 = vmul.f32 0.5, %v3522_v42 }
 0x534   :  { %v3524_v16 = vsel %vm3373_vm3, %v7307_v3, %v3523_v32 }
 0x535   :  { %3530 = vrot.lane.b32.xlu0 %v3524_v16, %s7503_s7  ;;  %v3528_v21 = vmul.f32 %v3524_v16, %v3518_v31 }
 0x5a3   :  { %v3526_v0 = vpop.permute.xlu0 %3525 }
 0x5a4   :  { %v3527_v35 = vmul.f32 0.0, %v3526_v0 }
 0x5a6   :  { %v3529_v15 = vadd.f32 %v3528_v21, %v3527_v35 }
 0x5a7   :  { %v3531_v38 = vpop.permute.xlu0 %3530 }
 0x5a8   :  { %7308 = vtanh.f32 %v3529_v15 }
 0x5b5   :  { %v7309_v47 = vpop.eup %7308 }
 0x5b6   :  { %v3533_v59 = vmul.f32 %v7309_v47, %v3531_v38 }
 0x5b8   :  { %v3536_v13 = vpack.c.bf16 %v3533_v59, %v3533_v59 }
 0x5ba   :  { %3570 = vmatmul.mubr.bf16.vlgmr.msra.gmra.mxu1 %v3536_v13 }
 0x5bb   :  { %3668 = vmatpush1.bf16.msra.mxu1 %v8910_v28  ;;  %3699 = vmatprep.mubr.bf16.mxu1 %v10558_v52 }
 0x5bc   :  { %3669 = vmatprep.subr.bf16.mxu1 %v8922_v14 }
 0x5bf   :  { %3670 = vmatpush1.bf16.msra.mxu1 %v8929_v19 }
 0x5c0   :  { %3671 = vmatprep.subr.bf16.mxu1 %v8943_v61 }
 0x5c3   :  { %3672 = vmatpush1.bf16.msra.mxu1 %v8948_v17 }
 0x5c4   :  { %3673 = vmatprep.subr.bf16.mxu1 %v8961_v40 }
 0x5c7   :  { %3674 = vmatpush1.bf16.msra.mxu1 %v8966_v43 }
 0x5c8   :  { %3675 = vmatprep.subr.bf16.mxu1 %v8979_v5 }
 0x5cb   :  { %3676 = vmatpush1.bf16.msra.mxu1 %v8984_v2 }
 0x5cc   :  { %3677 = vmatprep.subr.bf16.mxu1 %v8997_v24 }
 0x5cf   :  { %3678 = vmatpush1.bf16.msra.mxu1 %v9002_v51 }
 0x5d0   :  { %3679 = vmatprep.subr.bf16.mxu1 %v9012_v53 }
 0x5d3   :  { %3680 = vmatpush1.bf16.msra.mxu1 %v9017_v22 }
 0x5d4   :  { %3681 = vmatprep.subr.bf16.mxu1 %v9028_v26 }
 0x5d7   :  { %3682 = vmatpush1.bf16.msra.mxu1 %v9033_v30 }
 0x5d8   :  { %3797 = vmatprep.subr.bf16.mxu1 %v8903_v60 }
 0x67a   :  { %v3571_v42 = vpop.f32.mrf.mxu1 }
 0x67b   :  { %v3578_v18 = vadd.f32 %v3571_v42, %v9150_v8 }
 0x67c   :  { %v3573_v4 = vpop.f32.mrf.mxu1 }
 0x67d   :  { %v3580_v9 = vmul.f32 0.5, %v3578_v18  ;;  %v3579_v54 = vadd.f32 %v3573_v4, %v9152_v50 }
 0x67e   :  { %v3575_v3 = vpop.f32.mrf.mxu1 }
 0x67f   :  { %7310 = vtanh.f32 %v3580_v9  ;;  %v3584_v31 = vmul.f32 0.5, %v3579_v54 }
 0x680   :  { %v3576_v32 = vpop.f32.mrf.mxu1 }
 0x681   :  { %v3585_v16 = vsel %vm3373_vm3, %v3579_v54, %v3584_v31 }
 0x682   :  { %7312 = vtanh.f32 %v3585_v16 }
 0x68c   :  { %v7311_v21 = vpop.eup %7310 }
 0x68d   :  { %v3582_v0 = vadd.f32 1.0, %v7311_v21 }
 0x68f   :  { %v7313_v35 = vpop.eup %7312  ;;  %v3583_v47 = vmul.f32 0.5, %v3582_v0 }
 0x690   :  { %v3587_v38 = vadd.f32 1.0, %v7313_v35 }
 0x691   :  { %3590 = vrot.lane.b32.xlu1 %v3583_v47, %s7503_s7 }
 0x692   :  { %v3588_v8 = vmul.f32 0.5, %v3587_v38 }
 0x694   :  { %v3589_v59 = vsel %vm3373_vm3, %v7313_v35, %v3588_v8 }
 0x695   :  { %3595 = vrot.lane.b32.xlu1 %v3589_v59, %s7503_s7  ;;  %v3593_v50 = vmul.f32 %v3589_v59, %v3583_v47 }
 0x703   :  { %v3591_v13 = vpop.permute.xlu1 %3590 }
 0x704   :  { %v3592_v42 = vmul.f32 %v3591_v13, %v3529_v15 }
 0x706   :  { %v3594_v18 = vadd.f32 %v3593_v50, %v3592_v42 }
 0x707   :  { %v3596_v9 = vpop.permute.xlu1 %3595 }
 0x708   :  { %7314 = vtanh.f32 %v3594_v18 }
 0x715   :  { %v7315_v4 = vpop.eup %7314 }
 0x716   :  { %v3598_v54 = vmul.f32 %v7315_v4, %v3596_v9 }
 0x718   :  { %v3601_v3 = vpack.c.bf16 %v3598_v54, %v3598_v54 }
 0x71a   :  { %3635 = vmatmul.mubr.bf16.vlgmr.msra.gmra.mxu0 %v3601_v3 }
 0x71b   :  { %3733 = vmatpush1.bf16.msra.mxu0 %v8910_v28  ;;  %3764 = vmatprep.mubr.bf16.mxu0 %v10558_v52 }
 0x71c   :  { %3734 = vmatprep.subr.bf16.mxu0 %v8922_v14 }
 0x71f   :  { %3735 = vmatpush1.bf16.msra.mxu0 %v8929_v19 }
 0x720   :  { %3736 = vmatprep.subr.bf16.mxu0 %v8943_v61 }
 0x723   :  { %3737 = vmatpush1.bf16.msra.mxu0 %v8948_v17 }
 0x724   :  { %3738 = vmatprep.subr.bf16.mxu0 %v8961_v40 }
 0x727   :  { %3739 = vmatpush1.bf16.msra.mxu0 %v8966_v43 }
 0x728   :  { %3740 = vmatprep.subr.bf16.mxu0 %v8979_v5 }
 0x72b   :  { %3741 = vmatpush1.bf16.msra.mxu0 %v8984_v2 }
 0x72c   :  { %3742 = vmatprep.subr.bf16.mxu0 %v8997_v24 }
 0x72f   :  { %3743 = vmatpush1.bf16.msra.mxu0 %v9002_v51 }
 0x730   :  { %3744 = vmatprep.subr.bf16.mxu0 %v9012_v53 }
 0x733   :  { %3745 = vmatpush1.bf16.msra.mxu0 %v9017_v22 }
 0x734   :  { %3746 = vmatprep.subr.bf16.mxu0 %v9028_v26 }
 0x737   :  { %3747 = vmatpush1.bf16.msra.mxu0 %v9033_v30 }
 0x738   :  { %3862 = vmatprep.subr.bf16.mxu0 %v8903_v60 }
 0x7da   :  { %v3636_v28 = vpop.f32.mrf.mxu0 }
 0x7db   :  { %v3643_v15 = vadd.f32 %v3636_v28, %v9154_v45 }
 0x7dc   :  { %v3638_v31 = vpop.f32.mrf.mxu0 }
 0x7dd   :  { %v3645_v32 = vmul.f32 0.5, %v3643_v15  ;;  %v3644_v16 = vadd.f32 %v3638_v31, %v9156_v12  ;;  %v9271_v31 = vld [vmem:[%s10543_s6 + $0x70] ss:$8 sps:$4 sm:$0xff]  }
 0x7de   :  { %v3640_v21 = vpop.f32.mrf.mxu0 }
 0x7df   :  { %7316 = vtanh.f32 %v3645_v32  ;;  %v3649_v0 = vmul.f32 0.5, %v3644_v16 }
 0x7e0   :  { %v3641_v35 = vpop.f32.mrf.mxu0 }
 0x7e1   :  { %v3650_v47 = vsel %vm3373_vm3, %v3644_v16, %v3649_v0 }
 0x7e2   :  { %7318 = vtanh.f32 %v3650_v47 }
 0x7ec   :  { %v7317_v38 = vpop.eup %7316 }
 0x7ed   :  { %v3647_v8 = vadd.f32 1.0, %v7317_v38 }
 0x7ef   :  { %v7319_v59 = vpop.eup %7318  ;;  %v3648_v50 = vmul.f32 0.5, %v3647_v8 }
 0x7f0   :  { %v3652_v60 = vadd.f32 1.0, %v7319_v59 }
 0x7f1   :  { %3655 = vrot.lane.b32.xlu0 %v3648_v50, %s7503_s7 }
 0x7f2   :  { %v3653_v45 = vmul.f32 0.5, %v3652_v60 }
 0x7f4   :  { %v3654_v13 = vsel %vm3373_vm3, %v7319_v59, %v3653_v45 }
 0x7f5   :  { %3660 = vrot.lane.b32.xlu1 %v3654_v13, %s7503_s7  ;;  %v3658_v12 = vmul.f32 %v3654_v13, %v3648_v50 }
 0x863   :  { %v3656_v42 = vpop.permute.xlu0 %3655 }
 0x864   :  { %v3657_v4 = vmul.f32 %v3656_v42, %v3594_v18 }
 0x866   :  { %v3659_v9 = vadd.f32 %v3658_v12, %v3657_v4  ;;  %v9308_v4 = vld [vmem:[%s10543_s6 + $0x64] ss:$8 sps:$4 sm:$0xff]  }
 0x867   :  { %v3661_v3 = vpop.permute.xlu1 %3660 }
 0x868   :  { %7320 = vtanh.f32 %v3659_v9 }
 0x875   :  { %v7321_v54 = vpop.eup %7320 }
 0x876   :  { %v3663_v28 = vmul.f32 %v7321_v54, %v3661_v3  ;;  %v9320_v54 = vld [vmem:[%s10543_s6 + $0x54] ss:$8 sps:$4 sm:$0xff]   ;;  %v9326_v3 = vld [vmem:[%s10543_s6 + $0x50] ss:$8 sps:$4 sm:$0xff]  }
 0x878   :  { %v3666_v15 = vpack.c.bf16 %v3663_v28, %v3663_v28  ;;  %v9332_v28 = vld [vmem:[%s10543_s6 + $0x44] ss:$8 sps:$4 sm:$0xff]  }
 0x87a   :  { %3700 = vmatmul.mubr.bf16.vlgmr.msra.gmra.mxu1 %v3666_v15  ;;  %v9338_v15 = vld [vmem:[%s10543_s6 + $0x40] ss:$8 sps:$4 sm:$0xff]  }
 0x87b   :  { %3798 = vmatpush1.bf16.msra.mxu1 %v9271_v31  ;;  %3829 = vmatprep.mubr.bf16.mxu1 %v10558_v52 }
 0x87c   :  { %3799 = vmatprep.subr.bf16.mxu1 %v8922_v14  ;;  %v9292_v14 = vld [vmem:[%s10543_s6 + $0x74] ss:$8 sps:$4 sm:$0xff]  }
 0x87f   :  { %3800 = vmatpush1.bf16.msra.mxu1 %v8929_v19 }
 0x880   :  { %3801 = vmatprep.subr.bf16.mxu1 %v8943_v61 }
 0x883   :  { %3802 = vmatpush1.bf16.msra.mxu1 %v8948_v17 }
 0x884   :  { %3803 = vmatprep.subr.bf16.mxu1 %v8961_v40 }
 0x887   :  { %3804 = vmatpush1.bf16.msra.mxu1 %v8966_v43 }
 0x888   :  { %3805 = vmatprep.subr.bf16.mxu1 %v8979_v5 }
 0x88b   :  { %3806 = vmatpush1.bf16.msra.mxu1 %v8984_v2 }
 0x88c   :  { %3807 = vmatprep.subr.bf16.mxu1 %v8997_v24 }
 0x88f   :  { %3808 = vmatpush1.bf16.msra.mxu1 %v9002_v51 }
 0x890   :  { %3809 = vmatprep.subr.bf16.mxu1 %v9012_v53 }
 0x893   :  { %3810 = vmatpush1.bf16.msra.mxu1 %v9017_v22 }
 0x894   :  { %3811 = vmatprep.subr.bf16.mxu1 %v9028_v26 }
 0x897   :  { %3812 = vmatpush1.bf16.msra.mxu1 %v9033_v30 }
 0x898   :  { %3927 = vmatprep.subr.bf16.mxu1 %v9292_v14 }
 0x93a   :  { %v3701_v19 = vpop.f32.mrf.mxu1 }
 0x93b   :  { %v3708_v61 = vadd.f32 %v3701_v19, %v9158_v25  ;;  %v9344_v19 = vld [vmem:[%s10543_s6 + $0x34] ss:$8 sps:$4 sm:$0xff]  }
 0x93c   :  { %v3703_v17 = vpop.f32.mrf.mxu1 }
 0x93d   :  { %v3710_v40 = vmul.f32 0.5, %v3708_v61  ;;  %v3709_v43 = vadd.f32 %v3703_v17, %v9160_v36 }
 0x93e   :  { %v3705_v5 = vpop.f32.mrf.mxu1 }
 0x93f   :  { %7322 = vtanh.f32 %v3710_v40  ;;  %v3714_v18 = vmul.f32 0.5, %v3709_v43 }
 0x940   :  { %v3706_v32 = vpop.f32.mrf.mxu1 }
 0x941   :  { %v3715_v16 = vsel %vm3373_vm3, %v3709_v43, %v3714_v18 }
 0x942   :  { %7324 = vtanh.f32 %v3715_v16 }
 0x94c   :  { %v7323_v21 = vpop.eup %7322 }
 0x94d   :  { %v3712_v0 = vadd.f32 1.0, %v7323_v21 }
 0x94f   :  { %v7325_v35 = vpop.eup %7324  ;;  %v3713_v47 = vmul.f32 0.5, %v3712_v0 }
 0x950   :  { %v3717_v38 = vadd.f32 1.0, %v7325_v35 }
 0x951   :  { %3720 = vrot.lane.b32.xlu0 %v3713_v47, %s7503_s7 }
 0x952   :  { %v3718_v25 = vmul.f32 0.5, %v3717_v38 }
 0x954   :  { %v3719_v8 = vsel %vm3373_vm3, %v7325_v35, %v3718_v25 }
 0x955   :  { %3725 = vrot.lane.b32.xlu1 %v3719_v8, %s7503_s7  ;;  %v3723_v36 = vmul.f32 %v3719_v8, %v3713_v47 }
 0x9c3   :  { %v3721_v59 = vpop.permute.xlu0 %3720 }
 0x9c4   :  { %v3722_v50 = vmul.f32 %v3721_v59, %v3659_v9  ;;  %v9314_v9 = vld [vmem:[%s10543_s6 + $0x60] ss:$8 sps:$4 sm:$0xff]   ;;  %v9381_v59 = vld [vmem:[%s10543_s6 + $0x24] ss:$8 sps:$4 sm:$0xff]  }
 0x9c6   :  { %v3724_v60 = vadd.f32 %v3723_v36, %v3722_v50  ;;  %v9375_v36 = vld [vmem:[%s10543_s6 + $0x30] ss:$8 sps:$4 sm:$0xff]   ;;  %v9387_v50 = vld [vmem:[%s10543_s6 + $0x20] ss:$8 sps:$4 sm:$0xff]  }
 0x9c7   :  { %v3726_v13 = vpop.permute.xlu1 %3725 }
 0x9c8   :  { %7326 = vtanh.f32 %v3724_v60 }
 0x9d5   :  { %v7327_v45 = vpop.eup %7326 }
 0x9d6   :  { %v3728_v12 = vmul.f32 %v7327_v45, %v3726_v13  ;;  %v9399_v45 = vld [vmem:[%s10543_s6 + $0x10] ss:$8 sps:$4 sm:$0xff]   ;;  %v9405_v13 = vld [vmem:[%s10543_s6 + $0x4] ss:$8 sps:$4 sm:$0xff]  }
 0x9d8   :  { %v3731_v42 = vpack.c.bf16 %v3728_v12, %v3728_v12  ;;  %v9411_v12 = vld [vmem:[%s10543_s6] ss:$8 sps:$4 sm:$0xff]  }
 0x9da   :  { %3765 = vmatmul.mubr.bf16.vlgmr.msra.gmra.mxu0 %v3731_v42 }
 0x9db   :  { %3863 = vmatpush1.bf16.msra.mxu0 %v9271_v31  ;;  %3894 = vmatprep.mubr.bf16.mxu0 %v10558_v52 }
 0x9dc   :  { %3864 = vmatprep.subr.bf16.mxu0 %v9308_v4 }
 0x9df   :  { %3865 = vmatpush1.bf16.msra.mxu0 %v9314_v9 }
 0x9e0   :  { %3866 = vmatprep.subr.bf16.mxu0 %v9320_v54 }
 0x9e3   :  { %3867 = vmatpush1.bf16.msra.mxu0 %v9326_v3 }
 0x9e4   :  { %3868 = vmatprep.subr.bf16.mxu0 %v9332_v28 }
 0x9e7   :  { %3869 = vmatpush1.bf16.msra.mxu0 %v9338_v15 }
 0x9e8   :  { %3870 = vmatprep.subr.bf16.mxu0 %v9344_v19 }
 0x9eb   :  { %3871 = vmatpush1.bf16.msra.mxu0 %v8984_v2 }
 0x9ec   :  { %3872 = vmatprep.subr.bf16.mxu0 %v8997_v24 }
 0x9ef   :  { %3873 = vmatpush1.bf16.msra.mxu0 %v9002_v51 }
 0x9f0   :  { %3874 = vmatprep.subr.bf16.mxu0 %v9012_v53 }
 0x9f3   :  { %3875 = vmatpush1.bf16.msra.mxu0 %v9017_v22 }
 0x9f4   :  { %3876 = vmatprep.subr.bf16.mxu0 %v9028_v26 }
 0x9f7   :  { %3877 = vmatpush1.bf16.msra.mxu0 %v9033_v30 }
 0x9f8   :  { %3992 = vmatprep.subr.bf16.mxu0 %v9292_v14 }
 0xa9a   :  { %v3766_v61 = vpop.f32.mrf.mxu0 }
 0xa9b   :  { %v3773_v17 = vadd.f32 %v3766_v61, %v9162_v63 }
 0xa9c   :  { %v3768_v40 = vpop.f32.mrf.mxu0 }
 0xa9d   :  { %v3775_v43 = vmul.f32 0.5, %v3773_v17  ;;  %v3774_v2 = vadd.f32 %v3768_v40, %v9164_v46 }
 0xa9e   :  { %v3770_v24 = vpop.f32.mrf.mxu0 }
 0xa9f   :  { %7328 = vtanh.f32 %v3775_v43  ;;  %v3779_v51 = vmul.f32 0.5, %v3774_v2 }
 0xaa0   :  { %v3771_v5 = vpop.f32.mrf.mxu0 }
 0xaa1   :  { %v3780_v53 = vsel %vm3373_vm3, %v3774_v2, %v3779_v51 }
 0xaa2   :  { %7330 = vtanh.f32 %v3780_v53 }
 0xaac   :  { %v7329_v22 = vpop.eup %7328 }
 0xaad   :  { %v3777_v26 = vadd.f32 1.0, %v7329_v22 }
 0xaaf   :  { %v7331_v30 = vpop.eup %7330  ;;  %v3778_v18 = vmul.f32 0.5, %v3777_v26 }
 0xab0   :  { %v3782_v32 = vadd.f32 1.0, %v7331_v30 }
 0xab1   :  { %3785 = vrot.lane.b32.xlu0 %v3778_v18, %s7503_s7 }
 0xab2   :  { %v3783_v63 = vmul.f32 0.5, %v3782_v32 }
 0xab4   :  { %v3784_v16 = vsel %vm3373_vm3, %v7331_v30, %v3783_v63 }
 0xab5   :  { %3790 = vrot.lane.b32.xlu1 %v3784_v16, %s7503_s7  ;;  %v3788_v46 = vmul.f32 %v3784_v16, %v3778_v18 }
 0xb23   :  { %v3786_v21 = vpop.permute.xlu0 %3785 }
 0xb24   :  { %v3787_v0 = vmul.f32 %v3786_v21, %v3724_v60  ;;  %v9393_v60 = vld [vmem:[%s10543_s6 + $0x14] ss:$8 sps:$4 sm:$0xff]  }
 0xb26   :  { %v3789_v35 = vadd.f32 %v3788_v46, %v3787_v0 }
 0xb27   :  { %v3791_v38 = vpop.permute.xlu1 %3790 }
 0xb28   :  { %7332 = vtanh.f32 %v3789_v35 }
 0xb35   :  { %v7333_v47 = vpop.eup %7332 }
 0xb36   :  { %v3793_v25 = vmul.f32 %v7333_v47, %v3791_v38 }
 0xb38   :  { %v3796_v8 = vpack.c.bf16 %v3793_v25, %v3793_v25 }
 0xb3a   :  { %3830 = vmatmul.mubr.bf16.vlgmr.msra.gmra.mxu1 %v3796_v8 }
 0xb3b   :  { %3928 = vmatpush1.bf16.msra.mxu1 %v9271_v31  ;;  %3959 = vmatprep.mubr.bf16.mxu1 %v10558_v52 }
 0xb3c   :  { %3929 = vmatprep.subr.bf16.mxu1 %v9308_v4 }
 0xb3f   :  { %3930 = vmatpush1.bf16.msra.mxu1 %v9314_v9 }
 0xb40   :  { %3931 = vmatprep.subr.bf16.mxu1 %v9320_v54 }
 0xb43   :  { %3932 = vmatpush1.bf16.msra.mxu1 %v9326_v3 }
 0xb44   :  { %3933 = vmatprep.subr.bf16.mxu1 %v9332_v28 }
 0xb47   :  { %3934 = vmatpush1.bf16.msra.mxu1 %v9338_v15 }
 0xb48   :  { %3935 = vmatprep.subr.bf16.mxu1 %v9344_v19 }
 0xb4b   :  { %3936 = vmatpush1.bf16.msra.mxu1 %v9375_v36 }
 0xb4c   :  { %3937 = vmatprep.subr.bf16.mxu1 %v9381_v59 }
 0xb4f   :  { %3938 = vmatpush1.bf16.msra.mxu1 %v9387_v50 }
 0xb50   :  { %3939 = vmatprep.subr.bf16.mxu1 %v9393_v60 }
 0xb53   :  { %3940 = vmatpush1.bf16.msra.mxu1 %v9399_v45 }
 0xb54   :  { %3941 = vmatprep.subr.bf16.mxu1 %v9405_v13 }
 0xb57   :  { %3942 = vmatpush1.bf16.msra.mxu1 %v9411_v12 }
 0xb58   :  { %4057 = vmatprep.subr.bf16.mxu1 %v9292_v14 }
 0xbfa   :  { %v3831_v42 = vpop.f32.mrf.mxu1 }
 0xbfb   :  { %v3838_v61 = vadd.f32 %v3831_v42, %v9166_v34 }
 0xbfc   :  { %v3833_v17 = vpop.f32.mrf.mxu1 }
 0xbfd   :  { %v3840_v40 = vmul.f32 0.5, %v3838_v61  ;;  %v3839_v43 = vadd.f32 %v3833_v17, %v9168_v29 }
 0xbfe   :  { %v3835_v2 = vpop.f32.mrf.mxu1 }
 0xbff   :  { %7334 = vtanh.f32 %v3840_v40  ;;  %v3844_v24 = vmul.f32 0.5, %v3839_v43 }
 0xc00   :  { %v3836_v51 = vpop.f32.mrf.mxu1 }
 0xc01   :  { %v3845_v5 = vsel %vm3373_vm3, %v3839_v43, %v3844_v24 }
 0xc02   :  { %7336 = vtanh.f32 %v3845_v5 }
 0xc0c   :  { %v7335_v53 = vpop.eup %7334 }
 0xc0d   :  { %v3842_v22 = vadd.f32 1.0, %v7335_v53 }
 0xc0f   :  { %v7337_v26 = vpop.eup %7336  ;;  %v3843_v30 = vmul.f32 0.5, %v3842_v22 }
 0xc10   :  { %v3847_v18 = vadd.f32 1.0, %v7337_v26 }
 0xc11   :  { %3850 = vrot.lane.b32.xlu0 %v3843_v30, %s7503_s7 }
 0xc12   :  { %v3848_v34 = vmul.f32 0.5, %v3847_v18 }
 0xc14   :  { %v3849_v32 = vsel %vm3373_vm3, %v7337_v26, %v3848_v34 }
 0xc15   :  { %3855 = vrot.lane.b32.xlu1 %v3849_v32, %s7503_s7  ;;  %v3853_v29 = vmul.f32 %v3849_v32, %v3843_v30 }
 0xc83   :  { %v3851_v63 = vpop.permute.xlu0 %3850 }
 0xc84   :  { %v3852_v16 = vmul.f32 %v3851_v63, %v3789_v35 }
 0xc86   :  { %v3854_v46 = vadd.f32 %v3853_v29, %v3852_v16 }
 0xc87   :  { %v3856_v0 = vpop.permute.xlu1 %3855 }
 0xc88   :  { %7338 = vtanh.f32 %v3854_v46 }
 0xc95   :  { %v7339_v21 = vpop.eup %7338 }
 0xc96   :  { %v3858_v47 = vmul.f32 %v7339_v21, %v3856_v0 }
 0xc98   :  { %v3861_v38 = vpack.c.bf16 %v3858_v47, %v3858_v47 }
 0xc9a   :  { %3895 = vmatmul.mubr.bf16.vlgmr.msra.gmra.mxu0 %v3861_v38 }
 0xc9b   :  { %3993 = vmatpush1.bf16.msra.mxu0 %v9271_v31  ;;  %4024 = vmatprep.mubr.bf16.mxu0 %v10558_v52 }
 0xc9c   :  { %3994 = vmatprep.subr.bf16.mxu0 %v9308_v4 }
 0xc9f   :  { %3995 = vmatpush1.bf16.msra.mxu0 %v9314_v9 }
 0xca0   :  { %3996 = vmatprep.subr.bf16.mxu0 %v9320_v54 }
 0xca3   :  { %3997 = vmatpush1.bf16.msra.mxu0 %v9326_v3 }
 0xca4   :  { %3998 = vmatprep.subr.bf16.mxu0 %v9332_v28 }
 0xca7   :  { %3999 = vmatpush1.bf16.msra.mxu0 %v9338_v15 }
 0xca8   :  { %4000 = vmatprep.subr.bf16.mxu0 %v9344_v19 }
 0xcab   :  { %4001 = vmatpush1.bf16.msra.mxu0 %v9375_v36 }
 0xcac   :  { %4002 = vmatprep.subr.bf16.mxu0 %v9381_v59 }
 0xcaf   :  { %4003 = vmatpush1.bf16.msra.mxu0 %v9387_v50 }
 0xcb0   :  { %4004 = vmatprep.subr.bf16.mxu0 %v9393_v60 }
 0xcb3   :  { %4005 = vmatpush1.bf16.msra.mxu0 %v9399_v45 }
 0xcb4   :  { %4006 = vmatprep.subr.bf16.mxu0 %v9405_v13 }
 0xcb7   :  { %4007 = vmatpush1.bf16.msra.mxu0 %v9411_v12 }
 0xcb8   :  { %4122 = vmatprep.subr.bf16.mxu0 %v9292_v14 }
 0xd5a   :  { %v3896_v35 = vpop.f32.mrf.mxu0 }
 0xd5b   :  { %v3903_v25 = vadd.f32 %v3896_v35, %v9170_v56 }
 0xd5c   :  { %v3898_v8 = vpop.f32.mrf.mxu0 }
 0xd5d   :  { %v3905_v42 = vmul.f32 0.5, %v3903_v25  ;;  %v3904_v61 = vadd.f32 %v3898_v8, %v9172_v10 }
 0xd5e   :  { %v3900_v17 = vpop.f32.mrf.mxu0 }
 0xd5f   :  { %7340 = vtanh.f32 %v3905_v42  ;;  %v3909_v40 = vmul.f32 0.5, %v3904_v61 }
 0xd60   :  { %v3901_v43 = vpop.f32.mrf.mxu0 }
 0xd61   :  { %v3910_v2 = vsel %vm3373_vm3, %v3904_v61, %v3909_v40 }
 0xd62   :  { %7342 = vtanh.f32 %v3910_v2 }
 0xd6c   :  { %v7341_v24 = vpop.eup %7340 }
 0xd6d   :  { %v3907_v51 = vadd.f32 1.0, %v7341_v24 }
 0xd6f   :  { %v7343_v5 = vpop.eup %7342  ;;  %v3908_v53 = vmul.f32 0.5, %v3907_v51 }
 0xd70   :  { %v3912_v22 = vadd.f32 1.0, %v7343_v5 }
 0xd71   :  { %3915 = vrot.lane.b32.xlu0 %v3908_v53, %s7503_s7 }
 0xd72   :  { %v3913_v56 = vmul.f32 0.5, %v3912_v22 }
 0xd74   :  { %v3914_v26 = vsel %vm3373_vm3, %v7343_v5, %v3913_v56 }
 0xd75   :  { %3920 = vrot.lane.b32.xlu1 %v3914_v26, %s7503_s7  ;;  %v3918_v10 = vmul.f32 %v3914_v26, %v3908_v53 }
 0xde3   :  { %v3916_v30 = vpop.permute.xlu0 %3915 }
 0xde4   :  { %v3917_v18 = vmul.f32 %v3916_v30, %v3854_v46 }
 0xde6   :  { %v3919_v34 = vadd.f32 %v3918_v10, %v3917_v18 }
 0xde7   :  { %v3921_v29 = vpop.permute.xlu1 %3920 }
 0xde8   :  { %7344 = vtanh.f32 %v3919_v34 }
 0xdf5   :  { %v7345_v32 = vpop.eup %7344 }
 0xdf6   :  { %v3923_v63 = vmul.f32 %v7345_v32, %v3921_v29 }
 0xdf8   :  { %v3926_v16 = vpack.c.bf16 %v3923_v63, %v3923_v63 }
 0xdfa   :  { %3960 = vmatmul.mubr.bf16.vlgmr.msra.gmra.mxu1 %v3926_v16 }
 0xdfb   :  { %4058 = vmatpush1.bf16.msra.mxu1 %v9271_v31  ;;  %4089 = vmatprep.mubr.bf16.mxu1 %v10558_v52 }
 0xdfc   :  { %4059 = vmatprep.subr.bf16.mxu1 %v9308_v4 }
 0xdff   :  { %4060 = vmatpush1.bf16.msra.mxu1 %v9314_v9 }
 0xe00   :  { %4061 = vmatprep.subr.bf16.mxu1 %v9320_v54 }
 0xe03   :  { %4062 = vmatpush1.bf16.msra.mxu1 %v9326_v3 }
 0xe04   :  { %4063 = vmatprep.subr.bf16.mxu1 %v9332_v28 }
 0xe07   :  { %4064 = vmatpush1.bf16.msra.mxu1 %v9338_v15 }
 0xe08   :  { %4065 = vmatprep.subr.bf16.mxu1 %v9344_v19 }
 0xe0b   :  { %4066 = vmatpush1.bf16.msra.mxu1 %v9375_v36 }
 0xe0c   :  { %4067 = vmatprep.subr.bf16.mxu1 %v9381_v59 }
 0xe0f   :  { %4068 = vmatpush1.bf16.msra.mxu1 %v9387_v50 }
 0xe10   :  { %4069 = vmatprep.subr.bf16.mxu1 %v9393_v60 }
 0xe13   :  { %4070 = vmatpush1.bf16.msra.mxu1 %v9399_v45 }
 0xe14   :  { %4071 = vmatprep.subr.bf16.mxu1 %v9405_v13 }
 0xe17   :  { %4072 = vmatpush1.bf16.msra.mxu1 %v9411_v12 }
 0xe18   :  { %4187 = vmatprep.subr.bf16.mxu1 %v9292_v14 }
 0xeba   :  { %v3961_v46 = vpop.f32.mrf.mxu1 }
 0xebb   :  { %v3968_v21 = vadd.f32 %v3961_v46, %v9174_v49 }
 0xebc   :  { %v3963_v0 = vpop.f32.mrf.mxu1 }
 0xebd   :  { %v3970_v47 = vmul.f32 0.5, %v3968_v21  ;;  %v3969_v38 = vadd.f32 %v3963_v0, %v9176_v41 }
 0xebe   :  { %v3965_v35 = vpop.f32.mrf.mxu1 }
 0xebf   :  { %7346 = vtanh.f32 %v3970_v47  ;;  %v3974_v25 = vmul.f32 0.5, %v3969_v38 }
 0xec0   :  { %v3966_v8 = vpop.f32.mrf.mxu1 }
 0xec1   :  { %v3975_v42 = vsel %vm3373_vm3, %v3969_v38, %v3974_v25 }
 0xec2   :  { %7348 = vtanh.f32 %v3975_v42 }
 0xecc   :  { %v7347_v61 = vpop.eup %7346 }
 0xecd   :  { %v3972_v17 = vadd.f32 1.0, %v7347_v61 }
 0xecf   :  { %v7349_v40 = vpop.eup %7348  ;;  %v3973_v43 = vmul.f32 0.5, %v3972_v17 }
 0xed0   :  { %v3977_v2 = vadd.f32 1.0, %v7349_v40 }
 0xed1   :  { %3980 = vrot.lane.b32.xlu0 %v3973_v43, %s7503_s7 }
 0xed2   :  { %v3978_v49 = vmul.f32 0.5, %v3977_v2 }
 0xed4   :  { %v3979_v24 = vsel %vm3373_vm3, %v7349_v40, %v3978_v49 }
 0xed5   :  { %3985 = vrot.lane.b32.xlu1 %v3979_v24, %s7503_s7  ;;  %v3983_v41 = vmul.f32 %v3979_v24, %v3973_v43 }
 0xf43   :  { %v3981_v51 = vpop.permute.xlu0 %3980 }
 0xf44   :  { %v3982_v5 = vmul.f32 %v3981_v51, %v3919_v34 }
 0xf46   :  { %v3984_v53 = vadd.f32 %v3983_v41, %v3982_v5 }
 0xf47   :  { %v3986_v56 = vpop.permute.xlu1 %3985 }
 0xf48   :  { %7350 = vtanh.f32 %v3984_v53 }
 0xf55   :  { %v7351_v22 = vpop.eup %7350 }
 0xf56   :  { %v3988_v26 = vmul.f32 %v7351_v22, %v3986_v56 }
 0xf58   :  { %v3991_v10 = vpack.c.bf16 %v3988_v26, %v3988_v26 }
 0xf5a   :  { %4025 = vmatmul.mubr.bf16.vlgmr.msra.gmra.mxu0 %v3991_v10 }
 0xf5b   :  { %4123 = vmatpush1.bf16.msra.mxu0 %v9271_v31  ;;  %4154 = vmatprep.mubr.bf16.mxu0 %v10558_v52 }
 0xf5c   :  { %4124 = vmatprep.subr.bf16.mxu0 %v9308_v4 }
 0xf5f   :  { %4125 = vmatpush1.bf16.msra.mxu0 %v9314_v9 }
 0xf60   :  { %4126 = vmatprep.subr.bf16.mxu0 %v9320_v54 }
 0xf63   :  { %4127 = vmatpush1.bf16.msra.mxu0 %v9326_v3 }
 0xf64   :  { %4128 = vmatprep.subr.bf16.mxu0 %v9332_v28 }
 0xf67   :  { %4129 = vmatpush1.bf16.msra.mxu0 %v9338_v15 }
 0xf68   :  { %4130 = vmatprep.subr.bf16.mxu0 %v9344_v19 }
 0xf6b   :  { %4131 = vmatpush1.bf16.msra.mxu0 %v9375_v36 }
 0xf6c   :  { %4132 = vmatprep.subr.bf16.mxu0 %v9381_v59 }
 0xf6f   :  { %4133 = vmatpush1.bf16.msra.mxu0 %v9387_v50 }
 0xf70   :  { %4134 = vmatprep.subr.bf16.mxu0 %v9393_v60 }
 0xf73   :  { %4135 = vmatpush1.bf16.msra.mxu0 %v9399_v45 }
 0xf74   :  { %4136 = vmatprep.subr.bf16.mxu0 %v9405_v13 }
 0xf77   :  { %4137 = vmatpush1.bf16.msra.mxu0 %v9411_v12 }
 0xf78   :  { %4252 = vmatprep.subr.bf16.mxu0 %v9292_v14 }
0x101a   :  { %v4026_v30 = vpop.f32.mrf.mxu0 }
0x101b   :  { %v4033_v18 = vadd.f32 %v4026_v30, %v9178_v11 }
0x101c   :  { %v4028_v34 = vpop.f32.mrf.mxu0 }
0x101d   :  { %v4035_v32 = vmul.f32 0.5, %v4033_v18  ;;  %v4034_v29 = vadd.f32 %v4028_v34, %v9180_v39 }
0x101e   :  { %v4030_v63 = vpop.f32.mrf.mxu0 }
0x101f   :  { %7352 = vtanh.f32 %v4035_v32  ;;  %v4039_v16 = vmul.f32 0.5, %v4034_v29 }
0x1020   :  { %v4031_v46 = vpop.f32.mrf.mxu0 }
0x1021   :  { %v4040_v21 = vsel %vm3373_vm3, %v4034_v29, %v4039_v16 }
0x1022   :  { %7354 = vtanh.f32 %v4040_v21 }
0x102c   :  { %v7353_v0 = vpop.eup %7352 }
0x102d   :  { %v4037_v47 = vadd.f32 1.0, %v7353_v0 }
0x102f   :  { %v7355_v38 = vpop.eup %7354  ;;  %v4038_v35 = vmul.f32 0.5, %v4037_v47 }
0x1030   :  { %v4042_v25 = vadd.f32 1.0, %v7355_v38 }
0x1031   :  { %4045 = vrot.lane.b32.xlu0 %v4038_v35, %s7503_s7 }
0x1032   :  { %v4043_v11 = vmul.f32 0.5, %v4042_v25 }
0x1034   :  { %v4044_v8 = vsel %vm3373_vm3, %v7355_v38, %v4043_v11 }
0x1035   :  { %4050 = vrot.lane.b32.xlu1 %v4044_v8, %s7503_s7  ;;  %v4048_v39 = vmul.f32 %v4044_v8, %v4038_v35 }
0x10a3   :  { %v4046_v42 = vpop.permute.xlu0 %4045 }
0x10a4   :  { %v4047_v61 = vmul.f32 %v4046_v42, %v3984_v53 }
0x10a6   :  { %v4049_v17 = vadd.f32 %v4048_v39, %v4047_v61 }
0x10a7   :  { %v4051_v43 = vpop.permute.xlu1 %4050 }
0x10a8   :  { %7356 = vtanh.f32 %v4049_v17 }
0x10b5   :  { %v7357_v40 = vpop.eup %7356 }
0x10b6   :  { %v4053_v2 = vmul.f32 %v7357_v40, %v4051_v43 }
0x10b8   :  { %v4056_v49 = vpack.c.bf16 %v4053_v2, %v4053_v2 }
0x10ba   :  { %4090 = vmatmul.mubr.bf16.vlgmr.msra.gmra.mxu1 %v4056_v49 }
0x10bb   :  { %4188 = vmatpush1.bf16.msra.mxu1 %v9271_v31  ;;  %4219 = vmatprep.mubr.bf16.mxu1 %v10558_v52 }
0x10bc   :  { %4189 = vmatprep.subr.bf16.mxu1 %v9308_v4 }
0x10bf   :  { %4190 = vmatpush1.bf16.msra.mxu1 %v9314_v9 }
0x10c0   :  { %4191 = vmatprep.subr.bf16.mxu1 %v9320_v54 }
0x10c3   :  { %4192 = vmatpush1.bf16.msra.mxu1 %v9326_v3 }
0x10c4   :  { %4193 = vmatprep.subr.bf16.mxu1 %v9332_v28 }
0x10c7   :  { %4194 = vmatpush1.bf16.msra.mxu1 %v9338_v15 }
0x10c8   :  { %4195 = vmatprep.subr.bf16.mxu1 %v9344_v19 }
0x10cb   :  { %4196 = vmatpush1.bf16.msra.mxu1 %v9375_v36 }
0x10cc   :  { %4197 = vmatprep.subr.bf16.mxu1 %v9381_v59 }
0x10cf   :  { %4198 = vmatpush1.bf16.msra.mxu1 %v9387_v50 }
0x10d0   :  { %4199 = vmatprep.subr.bf16.mxu1 %v9393_v60 }
0x10d3   :  { %4200 = vmatpush1.bf16.msra.mxu1 %v9399_v45 }
0x10d4   :  { %4201 = vmatprep.subr.bf16.mxu1 %v9405_v13 }
0x10d7   :  { %4202 = vmatpush1.bf16.msra.mxu1 %v9411_v12 }
0x10d8   :  { %4317 = vmatprep.subr.bf16.mxu1 %v9292_v14 }
0x117a   :  { %v4091_v24 = vpop.f32.mrf.mxu1 }
0x117b   :  { %v4098_v41 = vadd.f32 %v4091_v24, %v9182_v62 }
0x117c   :  { %v4093_v51 = vpop.f32.mrf.mxu1 }
0x117d   :  { %v4100_v5 = vmul.f32 0.5, %v4098_v41  ;;  %v4099_v53 = vadd.f32 %v4093_v51, %v9184_v20 }
0x117e   :  { %v4095_v22 = vpop.f32.mrf.mxu1 }
0x117f   :  { %7358 = vtanh.f32 %v4100_v5  ;;  %v4104_v56 = vmul.f32 0.5, %v4099_v53 }
0x1180   :  { %v4096_v26 = vpop.f32.mrf.mxu1 }
0x1181   :  { %v4105_v10 = vsel %vm3373_vm3, %v4099_v53, %v4104_v56 }
0x1182   :  { %7360 = vtanh.f32 %v4105_v10 }
0x118c   :  { %v7359_v30 = vpop.eup %7358 }
0x118d   :  { %v4102_v18 = vadd.f32 1.0, %v7359_v30 }
0x118f   :  { %v7361_v34 = vpop.eup %7360  ;;  %v4103_v32 = vmul.f32 0.5, %v4102_v18 }
0x1190   :  { %v4107_v29 = vadd.f32 1.0, %v7361_v34 }
0x1191   :  { %4110 = vrot.lane.b32.xlu0 %v4103_v32, %s7503_s7 }
0x1192   :  { %v4108_v62 = vmul.f32 0.5, %v4107_v29 }
0x1194   :  { %v4109_v63 = vsel %vm3373_vm3, %v7361_v34, %v4108_v62 }
0x1195   :  { %4115 = vrot.lane.b32.xlu1 %v4109_v63, %s7503_s7  ;;  %v4113_v20 = vmul.f32 %v4109_v63, %v4103_v32 }
0x1203   :  { %v4111_v16 = vpop.permute.xlu0 %4110 }
0x1204   :  { %v4112_v46 = vmul.f32 %v4111_v16, %v4049_v17 }
0x1206   :  { %v4114_v21 = vadd.f32 %v4113_v20, %v4112_v46 }
0x1207   :  { %v4116_v47 = vpop.permute.xlu1 %4115 }
0x1208   :  { %7362 = vtanh.f32 %v4114_v21 }
0x1215   :  { %v7363_v0 = vpop.eup %7362 }
0x1216   :  { %v4118_v38 = vmul.f32 %v7363_v0, %v4116_v47 }
0x1218   :  { %v4121_v35 = vpack.c.bf16 %v4118_v38, %v4118_v38 }
0x121a   :  { %4155 = vmatmul.mubr.bf16.vlgmr.msra.gmra.mxu0 %v4121_v35 }
0x121b   :  { %4253 = vmatpush1.bf16.msra.mxu0 %v9271_v31  ;;  %4284 = vmatprep.mubr.bf16.mxu0 %v10558_v52 }
0x121c   :  { %4254 = vmatprep.subr.bf16.mxu0 %v9308_v4 }
0x121f   :  { %4255 = vmatpush1.bf16.msra.mxu0 %v9314_v9 }
0x1220   :  { %4256 = vmatprep.subr.bf16.mxu0 %v9320_v54 }
0x1223   :  { %4257 = vmatpush1.bf16.msra.mxu0 %v9326_v3 }
0x1224   :  { %4258 = vmatprep.subr.bf16.mxu0 %v9332_v28 }
0x1227   :  { %4259 = vmatpush1.bf16.msra.mxu0 %v9338_v15 }
0x1228   :  { %4260 = vmatprep.subr.bf16.mxu0 %v9344_v19 }
0x122b   :  { %4261 = vmatpush1.bf16.msra.mxu0 %v9375_v36 }
0x122c   :  { %4262 = vmatprep.subr.bf16.mxu0 %v9381_v59 }
0x122f   :  { %4263 = vmatpush1.bf16.msra.mxu0 %v9387_v50 }
0x1230   :  { %4264 = vmatprep.subr.bf16.mxu0 %v9393_v60 }
0x1233   :  { %4265 = vmatpush1.bf16.msra.mxu0 %v9399_v45 }
0x1234   :  { %4266 = vmatprep.subr.bf16.mxu0 %v9405_v13 }
0x1237   :  { %4267 = vmatpush1.bf16.msra.mxu0 %v9411_v12 }
0x1238   :  { %4382 = vmatprep.subr.bf16.mxu0 %v9292_v14 }
0x12da   :  { %v4156_v25 = vpop.f32.mrf.mxu0 }
0x12db   :  { %v4163_v11 = vadd.f32 %v4156_v25, %v9186_v57 }
0x12dc   :  { %v4158_v8 = vpop.f32.mrf.mxu0 }
0x12dd   :  { %v4165_v39 = vmul.f32 0.5, %v4163_v11  ;;  %v4164_v42 = vadd.f32 %v4158_v8, %v9188_v23 }
0x12de   :  { %v4160_v61 = vpop.f32.mrf.mxu0 }
0x12df   :  { %7364 = vtanh.f32 %v4165_v39  ;;  %v4169_v17 = vmul.f32 0.5, %v4164_v42 }
0x12e0   :  { %v4161_v40 = vpop.f32.mrf.mxu0 }
0x12e1   :  { %v4170_v43 = vsel %vm3373_vm3, %v4164_v42, %v4169_v17 }
0x12e2   :  { %7366 = vtanh.f32 %v4170_v43 }
0x12ec   :  { %v7365_v2 = vpop.eup %7364 }
0x12ed   :  { %v4167_v49 = vadd.f32 1.0, %v7365_v2 }
0x12ef   :  { %v7367_v24 = vpop.eup %7366  ;;  %v4168_v41 = vmul.f32 0.5, %v4167_v49 }
0x12f0   :  { %v4172_v14 = vadd.f32 1.0, %v7367_v24 }
0x12f1   :  { %4175 = vrot.lane.b32.xlu0 %v4168_v41, %s7503_s7 }
0x12f2   :  { %v4173_v57 = vmul.f32 0.5, %v4172_v14 }
0x12f4   :  { %v4174_v51 = vsel %vm3373_vm3, %v7367_v24, %v4173_v57 }
0x12f5   :  { %4180 = vrot.lane.b32.xlu1 %v4174_v51, %s7503_s7  ;;  %v4178_v23 = vmul.f32 %v4174_v51, %v4168_v41 }
0x1363   :  { %v4176_v5 = vpop.permute.xlu0 %4175 }
0x1364   :  { %v4177_v53 = vmul.f32 %v4176_v5, %v4114_v21 }
0x1366   :  { %v4179_v22 = vadd.f32 %v4178_v23, %v4177_v53 }
0x1367   :  { %v4181_v26 = vpop.permute.xlu1 %4180 }
0x1368   :  { %7368 = vtanh.f32 %v4179_v22 }
0x1375   :  { %v7369_v56 = vpop.eup %7368 }
0x1376   :  { %v4183_v10 = vmul.f32 %v7369_v56, %v4181_v26 }
0x1378   :  { %v4186_v30 = vpack.c.bf16 %v4183_v10, %v4183_v10 }
0x137a   :  { %4220 = vmatmul.mubr.bf16.vlgmr.msra.gmra.mxu1 %v4186_v30 }
0x137b   :  { %4318 = vmatpush1.bf16.msra.mxu1 %v9271_v31  ;;  %4349 = vmatprep.mubr.bf16.mxu1 %v10558_v52 }
0x137c   :  { %4319 = vmatprep.subr.bf16.mxu1 %v9308_v4 }
0x137f   :  { %4320 = vmatpush1.bf16.msra.mxu1 %v9314_v9 }
0x1380   :  { %4321 = vmatprep.subr.bf16.mxu1 %v9320_v54 }
0x1383   :  { %4322 = vmatpush1.bf16.msra.mxu1 %v9326_v3 }
0x1384   :  { %4323 = vmatprep.subr.bf16.mxu1 %v9332_v28 }
0x1387   :  { %4324 = vmatpush1.bf16.msra.mxu1 %v9338_v15 }
0x1388   :  { %4325 = vmatprep.subr.bf16.mxu1 %v9344_v19 }
0x138b   :  { %4326 = vmatpush1.bf16.msra.mxu1 %v9375_v36 }
0x138c   :  { %4327 = vmatprep.subr.bf16.mxu1 %v9381_v59 }
0x138f   :  { %4328 = vmatpush1.bf16.msra.mxu1 %v9387_v50 }
0x1390   :  { %4329 = vmatprep.subr.bf16.mxu1 %v9393_v60 }
0x1393   :  { %4330 = vmatpush1.bf16.msra.mxu1 %v9399_v45 }
0x1394   :  { %4331 = vmatprep.subr.bf16.mxu1 %v9405_v13 }
0x1397   :  { %4332 = vmatpush1.bf16.msra.mxu1 %v9411_v12 }
0x143a   :  { %v4221_v18 = vpop.f32.mrf.mxu1 }
0x143b   :  { %v4228_v34 = vadd.f32 %v4221_v18, %v9190_v33 }
0x143c   :  { %v4223_v32 = vpop.f32.mrf.mxu1 }
0x143d   :  { %v4230_v29 = vmul.f32 0.5, %v4228_v34  ;;  %v4229_v62 = vadd.f32 %v4223_v32, %v9192_v1 }
0x143e   :  { %v4225_v63 = vpop.f32.mrf.mxu1 }
0x143f   :  { %7370 = vtanh.f32 %v4230_v29  ;;  %v4234_v20 = vmul.f32 0.5, %v4229_v62 }
0x1440   :  { %v4226_v16 = vpop.f32.mrf.mxu1 }
0x1441   :  { %v4235_v46 = vsel %vm3373_vm3, %v4229_v62, %v4234_v20 }
0x1442   :  { %7372 = vtanh.f32 %v4235_v46 }
0x144c   :  { %v7371_v21 = vpop.eup %7370 }
0x144d   :  { %v4232_v0 = vadd.f32 1.0, %v7371_v21 }
0x144f   :  { %v7373_v47 = vpop.eup %7372  ;;  %v4233_v38 = vmul.f32 0.5, %v4232_v0 }
0x1450   :  { %v4237_v35 = vadd.f32 1.0, %v7373_v47 }
0x1451   :  { %4240 = vrot.lane.b32.xlu0 %v4233_v38, %s7503_s7 }
0x1452   :  { %v4238_v33 = vmul.f32 0.5, %v4237_v35  ;;  %v9613_v35 = vld [vmem:[%s10546_s8 + $0x74] ss:$8 sps:$4 sm:$0xff]  }
0x1453   :  { %4657 = vmatprep.subr.bf16.mxu1 %v9613_v35 }
0x1454   :  { %v4239_v25 = vsel %vm3373_vm3, %v7373_v47, %v4238_v33  ;;  %v9618_v33 = vld [vmem:[%s10546_s8 + $0x70] ss:$8 sps:$4 sm:$0xff]  }
0x1455   :  { %4245 = vrot.lane.b32.xlu1 %v4239_v25, %s7503_s7  ;;  %v4243_v1 = vmul.f32 %v4239_v25, %v4233_v38  ;;  %v9624_v25 = vld [vmem:[%s10546_s8 + $0x64] ss:$8 sps:$4 sm:$0xff]  }
0x14c3   :  { %v4241_v11 = vpop.permute.xlu0 %4240 }
0x14c4   :  { %v4242_v8 = vmul.f32 %v4241_v11, %v4179_v22  ;;  %v9636_v11 = vld [vmem:[%s10546_s8 + $0x54] ss:$8 sps:$4 sm:$0xff]  }
0x14c6   :  { %v4244_v39 = vadd.f32 %v4243_v1, %v4242_v8  ;;  %v9630_v1 = vld [vmem:[%s10546_s8 + $0x60] ss:$8 sps:$4 sm:$0xff]   ;;  %v9642_v8 = vld [vmem:[%s10546_s8 + $0x50] ss:$8 sps:$4 sm:$0xff]  }
0x14c7   :  { %v4246_v61 = vpop.permute.xlu1 %4245 }
0x14c8   :  { %7374 = vtanh.f32 %v4244_v39 }
0x14d5   :  { %v7375_v42 = vpop.eup %7374 }
0x14d6   :  { %v4248_v17 = vmul.f32 %v7375_v42, %v4246_v61  ;;  %v9654_v42 = vld [vmem:[%s10546_s8 + $0x40] ss:$8 sps:$4 sm:$0xff]   ;;  %v9660_v61 = vld [vmem:[%s10546_s8 + $0x34] ss:$8 sps:$4 sm:$0xff]  }
0x14d8   :  { %v4251_v40 = vpack.c.bf16 %v4248_v17, %v4248_v17  ;;  %v9665_v17 = vld [vmem:[%s10546_s8 + $0x30] ss:$8 sps:$4 sm:$0xff]  }
0x14da   :  { %4285 = vmatmul.mubr.bf16.vlgmr.msra.gmra.mxu0 %v4251_v40  ;;  %v9670_v40 = vld [vmem:[%s10546_s8 + $0x24] ss:$8 sps:$4 sm:$0xff]  }
0x14db   :  { %4383 = vmatpush1.bf16.msra.mxu0 %v9271_v31  ;;  %4414 = vmatprep.mubr.bf16.mxu0 %v10558_v52  ;;  %v10559_v52 = vmov 0.0  }
0x14dc   :  { %4384 = vmatprep.subr.bf16.mxu0 %v9308_v4 }
0x14df   :  { %4385 = vmatpush1.bf16.msra.mxu0 %v9314_v9 }
0x14e0   :  { %4386 = vmatprep.subr.bf16.mxu0 %v9320_v54 }
0x14e3   :  { %4387 = vmatpush1.bf16.msra.mxu0 %v9326_v3 }
0x14e4   :  { %4388 = vmatprep.subr.bf16.mxu0 %v9332_v28 }
0x14e7   :  { %4389 = vmatpush1.bf16.msra.mxu0 %v9338_v15 }
0x14e8   :  { %4390 = vmatprep.subr.bf16.mxu0 %v9344_v19 }
0x14eb   :  { %4391 = vmatpush1.bf16.msra.mxu0 %v9375_v36 }
0x14ec   :  { %4392 = vmatprep.subr.bf16.mxu0 %v9381_v59 }
0x14ef   :  { %4393 = vmatpush1.bf16.msra.mxu0 %v9387_v50 }
0x14f0   :  { %4394 = vmatprep.subr.bf16.mxu0 %v9393_v60 }
0x14f3   :  { %4395 = vmatpush1.bf16.msra.mxu0 %v9399_v45 }
0x14f4   :  { %4396 = vmatprep.subr.bf16.mxu0 %v9405_v13 }
0x14f7   :  { %4397 = vmatpush1.bf16.msra.mxu0 %v9411_v12 }
0x14f8   :  { %7017 = vmatprep.subr.bf16.mxu0 %v10559_v52 }
0x159a   :  { %v4286_v31 = vpop.f32.mrf.mxu0 }
0x159b   :  { %v4293_v4 = vadd.f32 %v4286_v31, %v9194_v27  ;;  %v9678_v31 = vld [vmem:[%s10546_s8 + $0x20] ss:$8 sps:$4 sm:$0xff]  }
0x159c   :  { %v4288_v9 = vpop.f32.mrf.mxu0 }
0x159d   :  { %v4295_v54 = vmul.f32 0.5, %v4293_v4  ;;  %v4294_v3 = vadd.f32 %v4288_v9, %v9196_v55  ;;  %v9684_v4 = vld [vmem:[%s10546_s8 + $0x14] ss:$8 sps:$4 sm:$0xff]   ;;  %v9690_v9 = vld [vmem:[%s10546_s8 + $0x10] ss:$8 sps:$4 sm:$0xff]  }
0x159e   :  { %v4290_v28 = vpop.f32.mrf.mxu0 }
0x159f   :  { %7376 = vtanh.f32 %v4295_v54  ;;  %v4299_v15 = vmul.f32 0.5, %v4294_v3  ;;  %v9696_v54 = vld [vmem:[%s10546_s8 + $0x4] ss:$8 sps:$4 sm:$0xff]   ;;  %v9708_v28 = vld [vmem:[%s10546_s8 + $0xf4] ss:$8 sps:$4 sm:$0xff]  }
0x15a0   :  { %v4291_v19 = vpop.f32.mrf.mxu0 }
0x15a1   :  { %v4300_v36 = vsel %vm3373_vm3, %v4294_v3, %v4299_v15  ;;  %v9702_v3 = vld [vmem:[%s10546_s8] ss:$8 sps:$4 sm:$0xff]   ;;  %v9714_v15 = vld [vmem:[%s10546_s8 + $0xf0] ss:$8 sps:$4 sm:$0xff]   ;;  %v9720_v19 = vld [vmem:[%s10546_s8 + $0xe4] ss:$8 sps:$4 sm:$0xff]  }
0x15a2   :  { %7378 = vtanh.f32 %v4300_v36  ;;  %v9726_v36 = vld [vmem:[%s10546_s8 + $0xe0] ss:$8 sps:$4 sm:$0xff]  }
0x15ac   :  { %v7377_v59 = vpop.eup %7376 }
0x15ad   :  { %v4297_v50 = vadd.f32 1.0, %v7377_v59  ;;  %v9732_v59 = vld [vmem:[%s10546_s8 + $0xd4] ss:$8 sps:$4 sm:$0xff]  }
0x15af   :  { %v7379_v60 = vpop.eup %7378  ;;  %v4298_v45 = vmul.f32 0.5, %v4297_v50 }
0x15b0   :  { %v4302_v13 = vadd.f32 1.0, %v7379_v60 }
0x15b1   :  { %4305 = vrot.lane.b32.xlu0 %v4298_v45, %s7503_s7 }
0x15b2   :  { %v4303_v27 = vmul.f32 0.5, %v4302_v13 }
0x15b4   :  { %v4304_v12 = vsel %vm3373_vm3, %v7379_v60, %v4303_v27 }
0x15b5   :  { %4310 = vrot.lane.b32.xlu1 %v4304_v12, %s7503_s7  ;;  %v4308_v55 = vmul.f32 %v4304_v12, %v4298_v45 }
0x1623   :  { %v4306_v43 = vpop.permute.xlu0 %4305 }
0x1624   :  { %v4307_v2 = vmul.f32 %v4306_v43, %v4244_v39  ;;  %v9648_v39 = vld [vmem:[%s10546_s8 + $0x44] ss:$8 sps:$4 sm:$0xff]  }
0x1626   :  { %v4309_v49 = vadd.f32 %v4308_v55, %v4307_v2 }
0x1627   :  { %v4311_v41 = vpop.permute.xlu1 %4310 }
0x1628   :  { %7380 = vtanh.f32 %v4309_v49 }
0x1635   :  { %v7381_v24 = vpop.eup %7380 }
0x1636   :  { %v4313_v14 = vmul.f32 %v7381_v24, %v4311_v41  ;;  %v9761_v24 = vld [vmem:[%s10546_s8 + $0xb4] ss:$8 sps:$4 sm:$0xff]   ;;  %v9766_v41 = vld [vmem:[%s10546_s8 + $0xb0] ss:$8 sps:$4 sm:$0xff]  }
0x1638   :  { %v4316_v57 = vpack.c.bf16 %v4313_v14, %v4313_v14 }
0x163a   :  { %4350 = vmatmul.mubr.bf16.vlgmr.msra.gmra.mxu1 %v4316_v57 }
0x163b   :  { %4658 = vmatpush1.bf16.msra.mxu1 %v9618_v33 }
0x163c   :  { %4659 = vmatprep.subr.bf16.mxu1 %v9624_v25 }
0x163f   :  { %4660 = vmatpush1.bf16.msra.mxu1 %v9630_v1 }
0x1640   :  { %4661 = vmatprep.subr.bf16.mxu1 %v9636_v11 }
0x1643   :  { %4662 = vmatpush1.bf16.msra.mxu1 %v9642_v8 }
0x1644   :  { %4663 = vmatprep.subr.bf16.mxu1 %v9648_v39 }
0x1647   :  { %4664 = vmatpush1.bf16.msra.mxu1 %v9654_v42 }
0x1648   :  { %4665 = vmatprep.subr.bf16.mxu1 %v9660_v61 }
0x164b   :  { %4666 = vmatpush1.bf16.msra.mxu1 %v9665_v17 }
0x164c   :  { %4667 = vmatprep.subr.bf16.mxu1 %v9670_v40 }
0x164f   :  { %4668 = vmatpush1.bf16.msra.mxu1 %v9678_v31 }
0x1650   :  { %4669 = vmatprep.subr.bf16.mxu1 %v9684_v4 }
0x1653   :  { %4670 = vmatpush1.bf16.msra.mxu1 %v9690_v9 }
0x1654   :  { %4671 = vmatprep.subr.bf16.mxu1 %v9696_v54 }
0x1657   :  { %4672 = vmatpush1.bf16.msra.mxu1 %v9702_v3 }
0x1658   :  { %4673 = vmatprep.subr.bf16.mxu1 %v9708_v28 }
0x165b   :  { %4674 = vmatpush2.bf16.msra.mxu1 %v9714_v15 }
0x165c   :  { %4675 = vmatprep.subr.bf16.mxu1 %v9720_v19 }
0x165f   :  { %4676 = vmatpush2.bf16.msra.mxu1 %v9726_v36 }
0x1660   :  { %4677 = vmatprep.subr.bf16.mxu1 %v9732_v59 }
0x16fa   :  { %v4351_v51 = vpop.f32.mrf.mxu1 }
0x16fb   :  { %v4358_v23 = vadd.f32 %v4351_v51, %v9198_v7  ;;  %v9773_v51 = vld [vmem:[%s10546_s8 + $0xa4] ss:$8 sps:$4 sm:$0xff]  }
0x16fc   :  { %v4353_v5 = vpop.f32.mrf.mxu1 }
0x16fd   :  { %v4360_v53 = vmul.f32 0.5, %v4358_v23  ;;  %v4359_v22 = vadd.f32 %v4353_v5, %v9200_v58 }
0x16fe   :  { %v4355_v56 = vpop.f32.mrf.mxu1 }
0x16ff   :  { %7382 = vtanh.f32 %v4360_v53  ;;  %v4364_v26 = vmul.f32 0.5, %v4359_v22  ;;  %v9778_v53 = vld [vmem:[%s10546_s8 + $0xa0] ss:$8 sps:$4 sm:$0xff]  }
0x1700   :  { %v4356_v10 = vpop.f32.mrf.mxu1 }
0x1701   :  { %v4365_v30 = vsel %vm3373_vm3, %v4359_v22, %v4364_v26  ;;  %v9786_v26 = vld [vmem:[%s10546_s8 + $0x94] ss:$8 sps:$4 sm:$0xff]   ;;  %v9791_v10 = vld [vmem:[%s10546_s8 + $0x90] ss:$8 sps:$4 sm:$0xff]  }
0x1702   :  { %7384 = vtanh.f32 %v4365_v30 }
0x170c   :  { %v7383_v18 = vpop.eup %7382 }
0x170d   :  { %v4362_v34 = vadd.f32 1.0, %v7383_v18 }
0x170f   :  { %v7385_v32 = vpop.eup %7384  ;;  %v4363_v29 = vmul.f32 0.5, %v4362_v34  ;;  %v9801_v34 = vld [vmem:[%s10546_s8 + $0x84] ss:$8 sps:$4 sm:$0xff]  }
0x1710   :  { %v4367_v62 = vadd.f32 1.0, %v7385_v32 }
0x1711   :  { %4370 = vrot.lane.b32.xlu0 %v4363_v29, %s7503_s7 }
0x1712   :  { %v4368_v7 = vmul.f32 0.5, %v4367_v62 }
0x1714   :  { %v4369_v63 = vsel %vm3373_vm3, %v7385_v32, %v4368_v7  ;;  %v9806_v32 = vld [vmem:[%s10546_s8 + $0x80] ss:$8 sps:$4 sm:$0xff]  }
0x1715   :  { %4375 = vrot.lane.b32.xlu1 %v4369_v63, %s7503_s7  ;;  %v4373_v58 = vmul.f32 %v4369_v63, %v4363_v29 }
0x1783   :  { %v4371_v20 = vpop.permute.xlu0 %4370 }
0x1784   :  { %v4372_v16 = vmul.f32 %v4371_v20, %v4309_v49  ;;  %v9743_v49 = vld [vmem:[%s10546_s8 + $0xd0] ss:$8 sps:$4 sm:$0xff]  }
0x1785   :  { %4678 = vmatpush2.bf16.msra.mxu1 %v9743_v49 }
0x1786   :  { %v9605_v46 = vadd.f32 %v4373_v58, %v4372_v16 }
0x1787   :  { %v4376_v0 = vpop.permute.xlu1 %4375 }
0x1788   :  { %7386 = vtanh.f32 %v9605_v46 }
0x1795   :  { %v7387_v21 = vpop.eup %7386 }
0x1796   :  { %v4378_v47 = vmul.f32 %v7387_v21, %v4376_v0  ;;  %v10560_v21 = vmov 0.0|0.0   ;;  %v9821_v0 = vld [vmem:[%s10547_s10 + $0x38] sm:$0xff]  }
0x1798   :  { %v4381_v38 = vpack.c.bf16 %v4378_v47, %v4378_v47  ;;  %v9836_v47 = vld [vmem:[%s10547_s10 + $0x28] sm:$0xff]  }
0x179a   :  { %4415 = vmatmul.mubr.bf16.vlgmr.msra.gmra.mxu0 %v4381_v38  ;;  %v4444_v38 = vld [vmem:[%s10548_s9] sm:$0x3] }
0x179b   :  { %7033 = vmatprep.mubr.msk.bf16.mxu0 %vm7500_vm0, %v10559_v52  ;;  %7018 = vmatpush3.bf16.msra.mxu0 %v9821_v0 }
0x179c   :  { %7019 = vmatprep.subr.bf16.mxu0 %v10559_v52 }
0x185a   :  { %v4416_v50 = vpop.f32.mrf.mxu0 }
0x185b   :  { %v4423_v60 = vadd.f32 %v4416_v50, %v9202_v6  ;;  %v9749_v6 = vld [vmem:[%s10546_s8 + $0xc4] ss:$8 sps:$4 sm:$0xff]   ;;  %v10561_v50 = vsub.s32 0, %v9135_v37 }
0x185c   :  { %v4418_v45 = vpop.f32.mrf.mxu0  ;;  %4679 = vmatprep.subr.bf16.mxu1 %v9749_v6 }
0x185d   :  { %v4425_v13 = vmul.f32 0.5, %v4423_v60  ;;  %v4424_v27 = vadd.f32 %v4418_v45, %v9204_v48  ;;  %v9754_v48 = vld [vmem:[%s10546_s8 + $0xc0] ss:$8 sps:$4 sm:$0xff]   ;;  %v9850_v60 = vrot.slane %v4444_v38, %v10561_v50  ;;  %v10562_v45 = vsub.s32 1, %v9135_v37 }
0x185e   :  { %v4420_v12 = vpop.f32.mrf.mxu0  ;;  %4680 = vmatpush2.bf16.msra.mxu1 %v9754_v48  ;;  %v9863_v37 = vld [vmem:[%s10547_s10 + $0x20] sm:$0xff]  }
0x185f   :  { %7388 = vtanh.f32 %v4425_v13  ;;  %v4429_v55 = vmul.f32 0.5, %v4424_v27  ;;  %4681 = vmatprep.subr.bf16.mxu1 %v9761_v24  ;;  %v9854_v13 = vrot.slane %v4444_v38, %v10562_v45  ;;  %v9902_v38 = vld [vmem:[%s10547_s10] sm:$0xff]  }
0x1860   :  { %v4421_v43 = vpop.f32.mrf.mxu0 }
0x1861   :  { %v4430_v2 = vsel %vm3373_vm3, %v4424_v27, %v4429_v55 }
0x1862   :  { %7390 = vtanh.f32 %v4430_v2  ;;  %4682 = vmatpush2.bf16.msra.mxu1 %v9766_v41 }
0x1863   :  { %4683 = vmatprep.subr.bf16.mxu1 %v9773_v51 }
0x1866   :  { %4684 = vmatpush2.bf16.msra.mxu1 %v9778_v53 }
0x1867   :  { %4685 = vmatprep.subr.bf16.mxu1 %v9786_v26 }
0x186a   :  { %4686 = vmatpush2.bf16.msra.mxu1 %v9791_v10 }
0x186b   :  { %4687 = vmatprep.subr.bf16.mxu1 %v9801_v34 }
0x186c   :  { %v7389_v14 = vpop.eup %7388 }
0x186d   :  { %v4427_v57 = vadd.f32 1.0, %v7389_v14 }
0x186e   :  { %4688 = vmatpush2.bf16.msra.mxu1 %v9806_v32 }
0x186f   :  { %v7391_v23 = vpop.eup %7390  ;;  %v4428_v5 = vmul.f32 0.5, %v4427_v57  ;;  %7037 = vmatprep.subr.bf16.mxu1 %v10559_v52 }
0x1870   :  { %v4432_v22 = vadd.f32 1.0, %v7391_v23 }
0x1871   :  { %4435 = vrot.lane.b32.xlu0 %v4428_v5, %s7503_s7 }
0x1872   :  { %v4433_v56 = vmul.f32 0.5, %v4432_v22  ;;  %v9872_v22 = vld [vmem:[%s10547_s10 + $0x18] sm:$0xff]  }
0x1874   :  { %v4434_v30 = vsel %vm3373_vm3, %v7391_v23, %v4433_v56 }
0x1875   :  { %4440 = vrot.lane.b32.xlu1 %v4434_v30, %s7503_s7  ;;  %v4438_v18 = vmul.f32 %v4434_v30, %v4428_v5 }
0x18e3   :  { %v4436_v29 = vpop.permute.xlu0 %4435 }
0x18e4   :  { %v4437_v62 = vmul.f32 %v4436_v29, %v9605_v46  ;;  %v9827_v46 = vld [vmem:[%s10547_s10 + $0x30] sm:$0xff]  }
0x18e5   :  { %7020 = vmatpush3.bf16.msra.mxu0 %v9827_v46 }
0x18e6   :  { %v9812_v7 = vadd.f32 %v4438_v18, %v4437_v62  ;;  %7021 = vmatprep.subr.bf16.mxu0 %v10559_v52  ;;  %v9881_v18 = vld [vmem:[%s10547_s10 + $0x10] sm:$0xff]  }
0x18e7   :  { %v4441_v58 = vpop.permute.xlu1 %4440 }
0x18e8   :  { %7392 = vtanh.f32 %v9812_v7 }
0x18e9   :  { %7022 = vmatpush3.bf16.msra.mxu0 %v9836_v47 }
0x18ea   :  { %7023 = vmatprep.subr.bf16.mxu0 %v10559_v52 }
0x18ed   :  { %7024 = vmatpush3.bf16.msra.mxu0 %v9863_v37 }
0x18ee   :  { %7025 = vmatprep.subr.bf16.mxu0 %v10559_v52 }
0x18f1   :  { %7026 = vmatpush3.bf16.msra.mxu0 %v9872_v22 }
0x18f2   :  { %7027 = vmatprep.subr.bf16.mxu0 %v10559_v52 }
0x18f5   :  { %v7393_v63 = vpop.eup %7392  ;;  %7028 = vmatpush3.bf16.msra.mxu0 %v9881_v18 }
0x18f6   :  { %v4443_v20 = vmul.f32 %v7393_v63, %v4441_v58  ;;  %7029 = vmatprep.subr.bf16.mxu0 %v10559_v52 }
0x18f8   :  { %v4464_v16 = vpack.c.bf16 %v4443_v20, %v4443_v20  ;;  %v9890_v20 = vld [vmem:[%s10547_s10 + $0x8] sm:$0xff]  }
0x18f9   :  { %7030 = vmatpush3.bf16.msra.mxu0 %v9890_v20 }
0x18fa   :  { %4689 = vmatprep.mubr.bf16.mxu1 %v4464_v16  ;;  %7031 = vmatprep.subr.bf16.mxu0 %v10559_v52 }
0x18fb   :  { %4690 = vmatmul.mubr.bf16.vlgmr.msra.gmra.mxu1 %v10560_v21 }
0x18fc   :  { %7053 = vmatprep.mubr.msk.bf16.mxu1 %vm7500_vm0, %v10559_v52  ;;  %7038 = vmatpush3.bf16.msra.mxu1 %v9821_v0 }
0x18fd   :  { %7039 = vmatprep.subr.bf16.mxu1 %v10559_v52  ;;  %7032 = vmatpush3.bf16.msra.mxu0 %v9902_v38 }
0x18fe   :  { %4823 = vmatprep.subr.bf16.mxu0 %v9613_v35 }
0x1900   :  { %7040 = vmatpush3.bf16.msra.mxu1 %v9827_v46 }
0x1901   :  { %7041 = vmatprep.subr.bf16.mxu1 %v10559_v52 }
0x1904   :  { %7042 = vmatpush3.bf16.msra.mxu1 %v9836_v47 }
0x1905   :  { %7043 = vmatprep.subr.bf16.mxu1 %v10559_v52 }
0x1908   :  { %7044 = vmatpush3.bf16.msra.mxu1 %v9863_v37 }
0x1909   :  { %7045 = vmatprep.subr.bf16.mxu1 %v10559_v52 }
0x190c   :  { %7046 = vmatpush3.bf16.msra.mxu1 %v9872_v22 }
0x190d   :  { %7047 = vmatprep.subr.bf16.mxu1 %v10559_v52 }
0x1910   :  { %7048 = vmatpush3.bf16.msra.mxu1 %v9881_v18 }
0x1911   :  { %7049 = vmatprep.subr.bf16.mxu1 %v10559_v52 }
0x1914   :  { %7050 = vmatpush3.bf16.msra.mxu1 %v9890_v20 }
0x1915   :  { %7051 = vmatprep.subr.bf16.mxu1 %v10559_v52 }
0x1918   :  { %7052 = vmatpush3.bf16.msra.mxu1 %v9902_v38 }
0x1919   :  { %4925 = vmatprep.subr.bf16.mxu1 %v9613_v35 }
0x19bb   :  { %v4691_v27 = vpop.f32.mrf.mxu1 }
0x19bc   :  { %v4692_v12 = vadd.f32 %v4691_v27, %v9850_v60 }
0x19bd   :  { %v4693_v55 = vpop.f32.mrf.mxu1 }
0x19be   :  { %v4698_v43 = vmul.f32 0.5, %v4692_v12  ;;  %v4694_v2 = vadd.f32 %v4693_v55, %v9854_v13 }
0x19bf   :  { %v4695_v14 = vpop.f32.mrf.mxu1 }
0x19c0   :  { %7394 = vtanh.f32 %v4698_v43  ;;  %v4702_v57 = vmul.f32 0.5, %v4694_v2 }
0x19c1   :  { %v4696_v23 = vpop.f32.mrf.mxu1 }
0x19c2   :  { %v4703_v5 = vsel %vm3373_vm3, %v4694_v2, %v4702_v57 }
0x19c3   :  { %7396 = vtanh.f32 %v4703_v5 }
0x19cd   :  { %v7395_v56 = vpop.eup %7394 }
0x19ce   :  { %v4700_v30 = vadd.f32 1.0, %v7395_v56 }
0x19d0   :  { %v7397_v29 = vpop.eup %7396  ;;  %v4701_v62 = vmul.f32 0.5, %v4700_v30 }
0x19d1   :  { %v4705_v63 = vadd.f32 1.0, %v7397_v29 }
0x19d2   :  { %4708 = vrot.lane.b32.xlu0 %v4701_v62, %s7503_s7 }
0x19d3   :  { %v4706_v58 = vmul.f32 0.5, %v4705_v63 }
0x19d5   :  { %v4707_v16 = vsel %vm3373_vm3, %v7397_v29, %v4706_v58 }
0x19d6   :  { %4713 = vrot.lane.b32.xlu1 %v4707_v16, %s7503_s7  ;;  %v4711_v21 = vmul.f32 %v4707_v16, %v4701_v62 }
0x1a44   :  { %v4709_v50 = vpop.permute.xlu0 %4708 }
0x1a45   :  { %v4710_v45 = vmul.f32 %v4709_v50, %v9812_v7  ;;  %v9948_v7 = vld [vmem:[%s10549_s11] ss:$0 sm:$0xff] }
0x1a47   :  { %v9910_v27 = vadd.f32 %v4711_v21, %v4710_v45 }
0x1a48   :  { %v4714_v55 = vpop.permute.xlu1 %4713 }
0x1a49   :  { %7398 = vtanh.f32 %v9910_v27 }
0x1a56   :  { %v7399_v12 = vpop.eup %7398 }
0x1a57   :  { %v4716_v43 = vmul.f32 %v7399_v12, %v4714_v55 }
0x1a59   :  { %v4717_v2 = vpack.c.bf16 %v4716_v43, %v4716_v43 }
0x1a5b   :  { %7034 = vmatmul.mubr.bf16.vlgmr.msra.gmra.mxu0 %v4717_v2 }
0x1a5c   :  { %4855 = vmatprep.mubr.bf16.mxu0 %v4717_v2  ;;  %4824 = vmatpush1.bf16.msra.mxu0 %v9618_v33 }
0x1a5d   :  { %4825 = vmatprep.subr.bf16.mxu0 %v9624_v25 }
0x1a60   :  { %4826 = vmatpush1.bf16.msra.mxu0 %v9630_v1 }
0x1a61   :  { %4827 = vmatprep.subr.bf16.mxu0 %v9636_v11 }
0x1a64   :  { %4828 = vmatpush1.bf16.msra.mxu0 %v9642_v8 }
0x1a65   :  { %4829 = vmatprep.subr.bf16.mxu0 %v9648_v39 }
0x1a68   :  { %4830 = vmatpush1.bf16.msra.mxu0 %v9654_v42 }
0x1a69   :  { %4831 = vmatprep.subr.bf16.mxu0 %v9660_v61 }
0x1a6c   :  { %4832 = vmatpush1.bf16.msra.mxu0 %v9665_v17 }
0x1a6d   :  { %4833 = vmatprep.subr.bf16.mxu0 %v9670_v40 }
0x1a70   :  { %4834 = vmatpush1.bf16.msra.mxu0 %v9678_v31 }
0x1a71   :  { %4835 = vmatprep.subr.bf16.mxu0 %v9684_v4 }
0x1a74   :  { %4836 = vmatpush1.bf16.msra.mxu0 %v9690_v9 }
0x1a75   :  { %4837 = vmatprep.subr.bf16.mxu0 %v9696_v54 }
0x1a78   :  { %4838 = vmatpush1.bf16.msra.mxu0 %v9702_v3 }
0x1a79   :  { %4839 = vmatprep.subr.bf16.mxu0 %v9708_v28 }
0x1a7c   :  { %4840 = vmatpush2.bf16.msra.mxu0 %v9714_v15 }
0x1a7d   :  { %4841 = vmatprep.subr.bf16.mxu0 %v9720_v19 }
0x1a80   :  { %4842 = vmatpush2.bf16.msra.mxu0 %v9726_v36 }
0x1a81   :  { %4843 = vmatprep.subr.bf16.mxu0 %v9732_v59 }
0x1a84   :  { %4844 = vmatpush2.bf16.msra.mxu0 %v9743_v49 }
0x1a85   :  { %4845 = vmatprep.subr.bf16.mxu0 %v9749_v6 }
0x1a88   :  { %4846 = vmatpush2.bf16.msra.mxu0 %v9754_v48 }
0x1a89   :  { %4847 = vmatprep.subr.bf16.mxu0 %v9761_v24 }
0x1a8c   :  { %4848 = vmatpush2.bf16.msra.mxu0 %v9766_v41 }
0x1a8d   :  { %4849 = vmatprep.subr.bf16.mxu0 %v9773_v51 }
0x1a90   :  { %4850 = vmatpush2.bf16.msra.mxu0 %v9778_v53 }
0x1a91   :  { %4851 = vmatprep.subr.bf16.mxu0 %v9786_v26 }
0x1a94   :  { %4852 = vmatpush2.bf16.msra.mxu0 %v9791_v10 }
0x1a95   :  { %4853 = vmatprep.subr.bf16.mxu0 %v9801_v34 }
0x1a98   :  { %4854 = vmatpush2.bf16.msra.mxu0 %v9806_v32 }
0x1a99   :  { %7057 = vmatprep.subr.bf16.mxu0 %v10559_v52 }
0x1b1b   :  { %v4816_v14 = vpop.f32.mrf.mxu0 }
0x1b1c   :  { %v4817_v57 = vadd.f32 %v9948_v7, %v4816_v14 }
0x1b1d   :  { %v7035_v23 = vpop.f32.mrf.mxu0 }
0x1b1e   :  { %v4822_v5 = vpack.c.bf16 %v4817_v57, %v4817_v57  ;;  %5536 = vst [vmem:[%s10550_s12] sm:$0xff] %v4817_v57 }
0x1b1f   :  { %v4819_v56 = vpop.f32.mrf.mxu0 }
0x1b20   :  { %4856 = vmatmul.mubr.bf16.vlgmr.msra.gmra.mxu0 %v4822_v5 }
0x1b21   :  { %v7036_v30 = vpop.f32.mrf.mxu0  ;;  %7058 = vmatpush3.bf16.msra.mxu0 %v9821_v0  ;;  %7073 = vmatprep.mubr.msk.bf16.mxu0 %vm7500_vm0, %v10559_v52 }
0x1b22   :  { %7059 = vmatprep.subr.bf16.mxu0 %v10559_v52 }
0x1b25   :  { %7060 = vmatpush3.bf16.msra.mxu0 %v9827_v46 }
0x1b26   :  { %7061 = vmatprep.subr.bf16.mxu0 %v10559_v52 }
0x1b29   :  { %7062 = vmatpush3.bf16.msra.mxu0 %v9836_v47 }
0x1b2a   :  { %7063 = vmatprep.subr.bf16.mxu0 %v10559_v52 }
0x1b2d   :  { %7064 = vmatpush3.bf16.msra.mxu0 %v9863_v37 }
0x1b2e   :  { %7065 = vmatprep.subr.bf16.mxu0 %v10559_v52 }
0x1b31   :  { %7066 = vmatpush3.bf16.msra.mxu0 %v9872_v22 }
0x1b32   :  { %7067 = vmatprep.subr.bf16.mxu0 %v10559_v52 }
0x1b35   :  { %7068 = vmatpush3.bf16.msra.mxu0 %v9881_v18 }
0x1b36   :  { %7069 = vmatprep.subr.bf16.mxu0 %v10559_v52 }
0x1b39   :  { %7070 = vmatpush3.bf16.msra.mxu0 %v9890_v20 }
0x1b3a   :  { %7071 = vmatprep.subr.bf16.mxu0 %v10559_v52 }
0x1b3d   :  { %7072 = vmatpush3.bf16.msra.mxu0 %v9902_v38 }
0x1b3e   :  { %5027 = vmatprep.subr.bf16.mxu0 %v9613_v35 }
0x1be0   :  { %v4857_v29 = vpop.f32.mrf.mxu0 }
0x1be1   :  { %v4858_v62 = vadd.f32 %v4857_v29, %v9850_v60 }
0x1be2   :  { %v4859_v63 = vpop.f32.mrf.mxu0 }
0x1be3   :  { %v4864_v58 = vmul.f32 0.5, %v4858_v62  ;;  %v4860_v16 = vadd.f32 %v4859_v63, %v9854_v13 }
0x1be4   :  { %v4861_v21 = vpop.f32.mrf.mxu0 }
0x1be5   :  { %7400 = vtanh.f32 %v4864_v58  ;;  %v4868_v50 = vmul.f32 0.5, %v4860_v16 }
0x1be6   :  { %v4862_v45 = vpop.f32.mrf.mxu0 }
0x1be7   :  { %v4869_v12 = vsel %vm3373_vm3, %v4860_v16, %v4868_v50 }
0x1be8   :  { %7402 = vtanh.f32 %v4869_v12 }
0x1bf2   :  { %v7401_v55 = vpop.eup %7400 }
0x1bf3   :  { %v4866_v43 = vadd.f32 1.0, %v7401_v55 }
0x1bf5   :  { %v7403_v2 = vpop.eup %7402  ;;  %v4867_v14 = vmul.f32 0.5, %v4866_v43 }
0x1bf6   :  { %v4871_v57 = vadd.f32 1.0, %v7403_v2 }
0x1bf7   :  { %4874 = vrot.lane.b32.xlu0 %v4867_v14, %s7503_s7 }
0x1bf8   :  { %v4872_v23 = vmul.f32 0.5, %v4871_v57 }
0x1bfa   :  { %v4873_v5 = vsel %vm3373_vm3, %v7403_v2, %v4872_v23 }
0x1bfb   :  { %4879 = vrot.lane.b32.xlu1 %v4873_v5, %s7503_s7  ;;  %v4877_v56 = vmul.f32 %v4873_v5, %v4867_v14 }
0x1c69   :  { %v4875_v30 = vpop.permute.xlu0 %4874 }
0x1c6a   :  { %v4876_v29 = vmul.f32 %v4875_v30, %v9910_v27 }
0x1c6c   :  { %v9981_v62 = vadd.f32 %v4877_v56, %v4876_v29 }
0x1c6d   :  { %v4880_v58 = vpop.permute.xlu1 %4879 }
0x1c6e   :  { %7404 = vtanh.f32 %v9981_v62 }
0x1c7b   :  { %v7405_v63 = vpop.eup %7404 }
0x1c7c   :  { %v4882_v16 = vmul.f32 %v7405_v63, %v4880_v58 }
0x1c7e   :  { %v4883_v21 = vpack.c.bf16 %v4882_v16, %v4882_v16 }
0x1c80   :  { %7054 = vmatmul.mubr.bf16.vlgmr.msra.gmra.mxu1 %v4883_v21 }
0x1c81   :  { %4957 = vmatprep.mubr.bf16.mxu1 %v4883_v21  ;;  %4926 = vmatpush1.bf16.msra.mxu1 %v9618_v33 }
0x1c82   :  { %4927 = vmatprep.subr.bf16.mxu1 %v9624_v25 }
0x1c85   :  { %4928 = vmatpush1.bf16.msra.mxu1 %v9630_v1 }
0x1c86   :  { %4929 = vmatprep.subr.bf16.mxu1 %v9636_v11 }
0x1c89   :  { %4930 = vmatpush1.bf16.msra.mxu1 %v9642_v8 }
0x1c8a   :  { %4931 = vmatprep.subr.bf16.mxu1 %v9648_v39 }
0x1c8d   :  { %4932 = vmatpush1.bf16.msra.mxu1 %v9654_v42 }
0x1c8e   :  { %4933 = vmatprep.subr.bf16.mxu1 %v9660_v61 }
0x1c91   :  { %4934 = vmatpush1.bf16.msra.mxu1 %v9665_v17 }
0x1c92   :  { %4935 = vmatprep.subr.bf16.mxu1 %v9670_v40 }
0x1c95   :  { %4936 = vmatpush1.bf16.msra.mxu1 %v9678_v31 }
0x1c96   :  { %4937 = vmatprep.subr.bf16.mxu1 %v9684_v4 }
0x1c99   :  { %4938 = vmatpush1.bf16.msra.mxu1 %v9690_v9 }
0x1c9a   :  { %4939 = vmatprep.subr.bf16.mxu1 %v9696_v54 }
0x1c9d   :  { %4940 = vmatpush1.bf16.msra.mxu1 %v9702_v3 }
0x1c9e   :  { %4941 = vmatprep.subr.bf16.mxu1 %v9708_v28 }
0x1ca1   :  { %4942 = vmatpush2.bf16.msra.mxu1 %v9714_v15 }
0x1ca2   :  { %4943 = vmatprep.subr.bf16.mxu1 %v9720_v19 }
0x1ca5   :  { %4944 = vmatpush2.bf16.msra.mxu1 %v9726_v36 }
0x1ca6   :  { %4945 = vmatprep.subr.bf16.mxu1 %v9732_v59 }
0x1ca9   :  { %4946 = vmatpush2.bf16.msra.mxu1 %v9743_v49 }
0x1caa   :  { %4947 = vmatprep.subr.bf16.mxu1 %v9749_v6 }
0x1cad   :  { %4948 = vmatpush2.bf16.msra.mxu1 %v9754_v48 }
0x1cae   :  { %4949 = vmatprep.subr.bf16.mxu1 %v9761_v24 }
0x1cb1   :  { %4950 = vmatpush2.bf16.msra.mxu1 %v9766_v41 }
0x1cb2   :  { %4951 = vmatprep.subr.bf16.mxu1 %v9773_v51 }
0x1cb5   :  { %4952 = vmatpush2.bf16.msra.mxu1 %v9778_v53 }
0x1cb6   :  { %4953 = vmatprep.subr.bf16.mxu1 %v9786_v26 }
0x1cb9   :  { %4954 = vmatpush2.bf16.msra.mxu1 %v9791_v10 }
0x1cba   :  { %4955 = vmatprep.subr.bf16.mxu1 %v9801_v34 }
0x1cbd   :  { %4956 = vmatpush2.bf16.msra.mxu1 %v9806_v32 }
0x1cbe   :  { %7077 = vmatprep.subr.bf16.mxu1 %v10559_v52 }
0x1d40   :  { %v4918_v27 = vpop.f32.mrf.mxu1 }
0x1d41   :  { %v4919_v50 = vadd.f32 %v9948_v7, %v4918_v27 }
0x1d42   :  { %v7055_v45 = vpop.f32.mrf.mxu1 }
0x1d43   :  { %v4924_v12 = vpack.c.bf16 %v4919_v50, %v4919_v50  ;;  %5537 = vst [vmem:[%s10550_s12 + $0x8] sm:$0xff] %v4919_v50 }
0x1d44   :  { %v4921_v55 = vpop.f32.mrf.mxu1 }
0x1d45   :  { %4958 = vmatmul.mubr.bf16.vlgmr.msra.gmra.mxu1 %v4924_v12 }
0x1d46   :  { %v7056_v43 = vpop.f32.mrf.mxu1  ;;  %7078 = vmatpush3.bf16.msra.mxu1 %v9821_v0  ;;  %7093 = vmatprep.mubr.msk.bf16.mxu1 %vm7500_vm0, %v10559_v52 }
0x1d47   :  { %7079 = vmatprep.subr.bf16.mxu1 %v10559_v52 }
0x1d4a   :  { %7080 = vmatpush3.bf16.msra.mxu1 %v9827_v46 }
0x1d4b   :  { %7081 = vmatprep.subr.bf16.mxu1 %v10559_v52 }
0x1d4e   :  { %7082 = vmatpush3.bf16.msra.mxu1 %v9836_v47 }
0x1d4f   :  { %7083 = vmatprep.subr.bf16.mxu1 %v10559_v52 }
0x1d52   :  { %7084 = vmatpush3.bf16.msra.mxu1 %v9863_v37 }
0x1d53   :  { %7085 = vmatprep.subr.bf16.mxu1 %v10559_v52 }
0x1d56   :  { %7086 = vmatpush3.bf16.msra.mxu1 %v9872_v22 }
0x1d57   :  { %7087 = vmatprep.subr.bf16.mxu1 %v10559_v52 }
0x1d5a   :  { %7088 = vmatpush3.bf16.msra.mxu1 %v9881_v18 }
0x1d5b   :  { %7089 = vmatprep.subr.bf16.mxu1 %v10559_v52 }
0x1d5e   :  { %7090 = vmatpush3.bf16.msra.mxu1 %v9890_v20 }
0x1d5f   :  { %7091 = vmatprep.subr.bf16.mxu1 %v10559_v52 }
0x1d62   :  { %7092 = vmatpush3.bf16.msra.mxu1 %v9902_v38 }
0x1d63   :  { %5129 = vmatprep.subr.bf16.mxu1 %v9613_v35 }
0x1e05   :  { %v4959_v2 = vpop.f32.mrf.mxu1 }
0x1e06   :  { %v4960_v14 = vadd.f32 %v4959_v2, %v9850_v60 }
0x1e07   :  { %v4961_v57 = vpop.f32.mrf.mxu1 }
0x1e08   :  { %v4966_v23 = vmul.f32 0.5, %v4960_v14  ;;  %v4962_v5 = vadd.f32 %v4961_v57, %v9854_v13 }
0x1e09   :  { %v4963_v56 = vpop.f32.mrf.mxu1 }
0x1e0a   :  { %7406 = vtanh.f32 %v4966_v23  ;;  %v4970_v30 = vmul.f32 0.5, %v4962_v5 }
0x1e0b   :  { %v4964_v29 = vpop.f32.mrf.mxu1 }
0x1e0c   :  { %v4971_v63 = vsel %vm3373_vm3, %v4962_v5, %v4970_v30 }
0x1e0d   :  { %7408 = vtanh.f32 %v4971_v63 }
0x1e17   :  { %v7407_v58 = vpop.eup %7406 }
0x1e18   :  { %v4968_v16 = vadd.f32 1.0, %v7407_v58 }
0x1e1a   :  { %v7409_v21 = vpop.eup %7408  ;;  %v4969_v27 = vmul.f32 0.5, %v4968_v16 }
0x1e1b   :  { %v4973_v50 = vadd.f32 1.0, %v7409_v21 }
0x1e1c   :  { %4976 = vrot.lane.b32.xlu0 %v4969_v27, %s7503_s7 }
0x1e1d   :  { %v4974_v45 = vmul.f32 0.5, %v4973_v50 }
0x1e1f   :  { %v4975_v12 = vsel %vm3373_vm3, %v7409_v21, %v4974_v45 }
0x1e20   :  { %4981 = vrot.lane.b32.xlu1 %v4975_v12, %s7503_s7  ;;  %v4979_v55 = vmul.f32 %v4975_v12, %v4969_v27 }
0x1e8e   :  { %v4977_v43 = vpop.permute.xlu0 %4976 }
0x1e8f   :  { %v4978_v2 = vmul.f32 %v4977_v43, %v9981_v62 }
0x1e91   :  { %v10047_v14 = vadd.f32 %v4979_v55, %v4978_v2 }
0x1e92   :  { %v4982_v23 = vpop.permute.xlu1 %4981 }
0x1e93   :  { %7410 = vtanh.f32 %v10047_v14 }
0x1ea0   :  { %v7411_v57 = vpop.eup %7410 }
0x1ea1   :  { %v4984_v5 = vmul.f32 %v7411_v57, %v4982_v23 }
0x1ea3   :  { %v4985_v56 = vpack.c.bf16 %v4984_v5, %v4984_v5 }
0x1ea5   :  { %7074 = vmatmul.mubr.bf16.vlgmr.msra.gmra.mxu0 %v4985_v56 }
0x1ea6   :  { %5059 = vmatprep.mubr.bf16.mxu0 %v4985_v56  ;;  %5028 = vmatpush1.bf16.msra.mxu0 %v9618_v33 }
0x1ea7   :  { %5029 = vmatprep.subr.bf16.mxu0 %v9624_v25 }
0x1eaa   :  { %5030 = vmatpush1.bf16.msra.mxu0 %v9630_v1 }
0x1eab   :  { %5031 = vmatprep.subr.bf16.mxu0 %v9636_v11 }
0x1eae   :  { %5032 = vmatpush1.bf16.msra.mxu0 %v9642_v8 }
0x1eaf   :  { %5033 = vmatprep.subr.bf16.mxu0 %v9648_v39 }
0x1eb2   :  { %5034 = vmatpush1.bf16.msra.mxu0 %v9654_v42 }
0x1eb3   :  { %5035 = vmatprep.subr.bf16.mxu0 %v9660_v61 }
0x1eb6   :  { %5036 = vmatpush1.bf16.msra.mxu0 %v9665_v17 }
0x1eb7   :  { %5037 = vmatprep.subr.bf16.mxu0 %v9670_v40 }
0x1eba   :  { %5038 = vmatpush1.bf16.msra.mxu0 %v9678_v31 }
0x1ebb   :  { %5039 = vmatprep.subr.bf16.mxu0 %v9684_v4 }
0x1ebe   :  { %5040 = vmatpush1.bf16.msra.mxu0 %v9690_v9 }
0x1ebf   :  { %5041 = vmatprep.subr.bf16.mxu0 %v9696_v54 }
0x1ec2   :  { %5042 = vmatpush1.bf16.msra.mxu0 %v9702_v3 }
0x1ec3   :  { %5043 = vmatprep.subr.bf16.mxu0 %v9708_v28 }
0x1ec6   :  { %5044 = vmatpush2.bf16.msra.mxu0 %v9714_v15 }
0x1ec7   :  { %5045 = vmatprep.subr.bf16.mxu0 %v9720_v19 }
0x1eca   :  { %5046 = vmatpush2.bf16.msra.mxu0 %v9726_v36 }
0x1ecb   :  { %5047 = vmatprep.subr.bf16.mxu0 %v9732_v59 }
0x1ece   :  { %5048 = vmatpush2.bf16.msra.mxu0 %v9743_v49 }
0x1ecf   :  { %5049 = vmatprep.subr.bf16.mxu0 %v9749_v6 }
0x1ed2   :  { %5050 = vmatpush2.bf16.msra.mxu0 %v9754_v48 }
0x1ed3   :  { %5051 = vmatprep.subr.bf16.mxu0 %v9761_v24 }
0x1ed6   :  { %5052 = vmatpush2.bf16.msra.mxu0 %v9766_v41 }
0x1ed7   :  { %5053 = vmatprep.subr.bf16.mxu0 %v9773_v51 }
0x1eda   :  { %5054 = vmatpush2.bf16.msra.mxu0 %v9778_v53 }
0x1edb   :  { %5055 = vmatprep.subr.bf16.mxu0 %v9786_v26 }
0x1ede   :  { %5056 = vmatpush2.bf16.msra.mxu0 %v9791_v10 }
0x1edf   :  { %5057 = vmatprep.subr.bf16.mxu0 %v9801_v34 }
0x1ee2   :  { %5058 = vmatpush2.bf16.msra.mxu0 %v9806_v32 }
0x1ee3   :  { %7097 = vmatprep.subr.bf16.mxu0 %v10559_v52 }
0x1f65   :  { %v5020_v62 = vpop.f32.mrf.mxu0 }
0x1f66   :  { %v5021_v30 = vadd.f32 %v9948_v7, %v5020_v62 }
0x1f67   :  { %v7075_v29 = vpop.f32.mrf.mxu0 }
0x1f68   :  { %v5026_v63 = vpack.c.bf16 %v5021_v30, %v5021_v30  ;;  %5538 = vst [vmem:[%s10550_s12 + $0x10] sm:$0xff] %v5021_v30 }
0x1f69   :  { %v5023_v58 = vpop.f32.mrf.mxu0 }
0x1f6a   :  { %5060 = vmatmul.mubr.bf16.vlgmr.msra.gmra.mxu0 %v5026_v63 }
0x1f6b   :  { %v7076_v16 = vpop.f32.mrf.mxu0  ;;  %7098 = vmatpush3.bf16.msra.mxu0 %v9821_v0  ;;  %7113 = vmatprep.mubr.msk.bf16.mxu0 %vm7500_vm0, %v10559_v52 }
0x1f6c   :  { %7099 = vmatprep.subr.bf16.mxu0 %v10559_v52 }
0x1f6f   :  { %7100 = vmatpush3.bf16.msra.mxu0 %v9827_v46 }
0x1f70   :  { %7101 = vmatprep.subr.bf16.mxu0 %v10559_v52 }
0x1f73   :  { %7102 = vmatpush3.bf16.msra.mxu0 %v9836_v47 }
0x1f74   :  { %7103 = vmatprep.subr.bf16.mxu0 %v10559_v52 }
0x1f77   :  { %7104 = vmatpush3.bf16.msra.mxu0 %v9863_v37 }
0x1f78   :  { %7105 = vmatprep.subr.bf16.mxu0 %v10559_v52 }
0x1f7b   :  { %7106 = vmatpush3.bf16.msra.mxu0 %v9872_v22 }
0x1f7c   :  { %7107 = vmatprep.subr.bf16.mxu0 %v10559_v52 }
0x1f7f   :  { %7108 = vmatpush3.bf16.msra.mxu0 %v9881_v18 }
0x1f80   :  { %7109 = vmatprep.subr.bf16.mxu0 %v10559_v52 }
0x1f83   :  { %7110 = vmatpush3.bf16.msra.mxu0 %v9890_v20 }
0x1f84   :  { %7111 = vmatprep.subr.bf16.mxu0 %v10559_v52 }
0x1f87   :  { %7112 = vmatpush3.bf16.msra.mxu0 %v9902_v38 }
0x1f88   :  { %5231 = vmatprep.subr.bf16.mxu0 %v9613_v35 }
0x202a   :  { %v5061_v21 = vpop.f32.mrf.mxu0 }
0x202b   :  { %v5062_v27 = vadd.f32 %v5061_v21, %v9850_v60 }
0x202c   :  { %v5063_v50 = vpop.f32.mrf.mxu0 }
0x202d   :  { %v5068_v45 = vmul.f32 0.5, %v5062_v27  ;;  %v5064_v12 = vadd.f32 %v5063_v50, %v9854_v13 }
0x202e   :  { %v5065_v55 = vpop.f32.mrf.mxu0 }
0x202f   :  { %7412 = vtanh.f32 %v5068_v45  ;;  %v5072_v43 = vmul.f32 0.5, %v5064_v12 }
0x2030   :  { %v5066_v2 = vpop.f32.mrf.mxu0 }
0x2031   :  { %v5073_v57 = vsel %vm3373_vm3, %v5064_v12, %v5072_v43 }
0x2032   :  { %7414 = vtanh.f32 %v5073_v57 }
0x203c   :  { %v7413_v23 = vpop.eup %7412 }
0x203d   :  { %v5070_v5 = vadd.f32 1.0, %v7413_v23 }
0x203f   :  { %v7415_v56 = vpop.eup %7414  ;;  %v5071_v62 = vmul.f32 0.5, %v5070_v5 }
0x2040   :  { %v5075_v35 = vadd.f32 1.0, %v7415_v56 }
0x2041   :  { %5078 = vrot.lane.b32.xlu0 %v5071_v62, %s7503_s7 }
0x2042   :  { %v5076_v30 = vmul.f32 0.5, %v5075_v35 }
0x2044   :  { %v5077_v29 = vsel %vm3373_vm3, %v7415_v56, %v5076_v30 }
0x2045   :  { %5083 = vrot.lane.b32.xlu1 %v5077_v29, %s7503_s7  ;;  %v5081_v63 = vmul.f32 %v5077_v29, %v5071_v62  ;;  %v10190_v29 = vld [vmem:[%s10546_s8 + $0x70] ss:$8 sps:$4 sm:$0xff]  }
0x20b3   :  { %v5079_v58 = vpop.permute.xlu0 %5078 }
0x20b4   :  { %v5080_v16 = vmul.f32 %v5079_v58, %v10047_v14  ;;  %v10202_v58 = vld [vmem:[%s10546_s8 + $0x60] ss:$8 sps:$4 sm:$0xff]  }
0x20b6   :  { %v10113_v21 = vadd.f32 %v5081_v63, %v5080_v16  ;;  %v10196_v63 = vld [vmem:[%s10546_s8 + $0x64] ss:$8 sps:$4 sm:$0xff]   ;;  %v10208_v16 = vld [vmem:[%s10546_s8 + $0x54] ss:$8 sps:$4 sm:$0xff]  }
0x20b7   :  { %v5084_v50 = vpop.permute.xlu1 %5083 }
0x20b8   :  { %7416 = vtanh.f32 %v10113_v21 }
0x20c5   :  { %v7417_v27 = vpop.eup %7416 }
0x20c6   :  { %v5086_v45 = vmul.f32 %v7417_v27, %v5084_v50  ;;  %v10220_v27 = vld [vmem:[%s10546_s8 + $0x44] ss:$8 sps:$4 sm:$0xff]   ;;  %v10226_v50 = vld [vmem:[%s10546_s8 + $0x40] ss:$8 sps:$4 sm:$0xff]  }
0x20c8   :  { %v5087_v12 = vpack.c.bf16 %v5086_v45, %v5086_v45  ;;  %v10232_v45 = vld [vmem:[%s10546_s8 + $0x34] ss:$8 sps:$4 sm:$0xff]  }
0x20ca   :  { %7094 = vmatmul.mubr.bf16.vlgmr.msra.gmra.mxu1 %v5087_v12 }
0x20cb   :  { %5161 = vmatprep.mubr.bf16.mxu1 %v5087_v12  ;;  %5130 = vmatpush1.bf16.msra.mxu1 %v9618_v33  ;;  %v10238_v12 = vld [vmem:[%s10546_s8 + $0x30] ss:$8 sps:$4 sm:$0xff]  }
0x20cc   :  { %5131 = vmatprep.subr.bf16.mxu1 %v9624_v25 }
0x20cf   :  { %5132 = vmatpush1.bf16.msra.mxu1 %v9630_v1 }
0x20d0   :  { %5133 = vmatprep.subr.bf16.mxu1 %v9636_v11 }
0x20d3   :  { %5134 = vmatpush1.bf16.msra.mxu1 %v9642_v8 }
0x20d4   :  { %5135 = vmatprep.subr.bf16.mxu1 %v9648_v39 }
0x20d7   :  { %5136 = vmatpush1.bf16.msra.mxu1 %v9654_v42  ;;  %v10172_v42 = vld [vmem:[%s10546_s8 + $0x74] ss:$8 sps:$4 sm:$0xff]  }
0x20d8   :  { %5137 = vmatprep.subr.bf16.mxu1 %v9660_v61 }
0x20db   :  { %5138 = vmatpush1.bf16.msra.mxu1 %v9665_v17 }
0x20dc   :  { %5139 = vmatprep.subr.bf16.mxu1 %v9670_v40 }
0x20df   :  { %5140 = vmatpush1.bf16.msra.mxu1 %v9678_v31 }
0x20e0   :  { %5141 = vmatprep.subr.bf16.mxu1 %v9684_v4 }
0x20e3   :  { %5142 = vmatpush1.bf16.msra.mxu1 %v9690_v9 }
0x20e4   :  { %5143 = vmatprep.subr.bf16.mxu1 %v9696_v54 }
0x20e7   :  { %5144 = vmatpush1.bf16.msra.mxu1 %v9702_v3 }
0x20e8   :  { %5145 = vmatprep.subr.bf16.mxu1 %v9708_v28 }
0x20eb   :  { %5146 = vmatpush2.bf16.msra.mxu1 %v9714_v15 }
0x20ec   :  { %5147 = vmatprep.subr.bf16.mxu1 %v9720_v19 }
0x20ef   :  { %5148 = vmatpush2.bf16.msra.mxu1 %v9726_v36 }
0x20f0   :  { %5149 = vmatprep.subr.bf16.mxu1 %v9732_v59 }
0x20f3   :  { %5150 = vmatpush2.bf16.msra.mxu1 %v9743_v49 }
0x20f4   :  { %5151 = vmatprep.subr.bf16.mxu1 %v9749_v6 }
0x20f7   :  { %5152 = vmatpush2.bf16.msra.mxu1 %v9754_v48 }
0x20f8   :  { %5153 = vmatprep.subr.bf16.mxu1 %v9761_v24 }
0x20fb   :  { %5154 = vmatpush2.bf16.msra.mxu1 %v9766_v41 }
0x20fc   :  { %5155 = vmatprep.subr.bf16.mxu1 %v9773_v51 }
0x20ff   :  { %5156 = vmatpush2.bf16.msra.mxu1 %v9778_v53 }
0x2100   :  { %5157 = vmatprep.subr.bf16.mxu1 %v9786_v26 }
0x2103   :  { %5158 = vmatpush2.bf16.msra.mxu1 %v9791_v10 }
0x2104   :  { %5159 = vmatprep.subr.bf16.mxu1 %v9801_v34 }
0x2107   :  { %5160 = vmatpush2.bf16.msra.mxu1 %v9806_v32 }
0x2108   :  { %7117 = vmatprep.subr.bf16.mxu1 %v10559_v52 }
0x218a   :  { %v5122_v33 = vpop.f32.mrf.mxu1 }
0x218b   :  { %v5123_v25 = vadd.f32 %v9948_v7, %v5122_v33  ;;  %v10244_v33 = vld [vmem:[%s10546_s8 + $0x24] ss:$8 sps:$4 sm:$0xff]  }
0x218c   :  { %v7095_v1 = vpop.f32.mrf.mxu1 }
0x218d   :  { %v5128_v11 = vpack.c.bf16 %v5123_v25, %v5123_v25  ;;  %5539 = vst [vmem:[%s10550_s12 + $0x18] sm:$0xff] %v5123_v25  ;;  %v10250_v25 = vld [vmem:[%s10546_s8 + $0x20] ss:$8 sps:$4 sm:$0xff]   ;;  %v10256_v1 = vld [vmem:[%s10546_s8 + $0x14] ss:$8 sps:$4 sm:$0xff]  }
0x218e   :  { %v5125_v8 = vpop.f32.mrf.mxu1 }
0x218f   :  { %5162 = vmatmul.mubr.bf16.vlgmr.msra.gmra.mxu1 %v5128_v11  ;;  %v10262_v11 = vld [vmem:[%s10546_s8 + $0x10] ss:$8 sps:$4 sm:$0xff]   ;;  %v10268_v8 = vld [vmem:[%s10546_s8 + $0x4] ss:$8 sps:$4 sm:$0xff]  }
0x2190   :  { %v7096_v39 = vpop.f32.mrf.mxu1  ;;  %7118 = vmatpush3.bf16.msra.mxu1 %v9821_v0  ;;  %7133 = vmatprep.mubr.msk.bf16.mxu1 %vm7500_vm0, %v10559_v52 }
0x2191   :  { %7119 = vmatprep.subr.bf16.mxu1 %v10559_v52  ;;  %v10274_v39 = vld [vmem:[%s10546_s8] ss:$8 sps:$4 sm:$0xff]  }
0x2194   :  { %7120 = vmatpush3.bf16.msra.mxu1 %v9827_v46 }
0x2195   :  { %7121 = vmatprep.subr.bf16.mxu1 %v10559_v52 }
0x2198   :  { %7122 = vmatpush3.bf16.msra.mxu1 %v9836_v47 }
0x2199   :  { %7123 = vmatprep.subr.bf16.mxu1 %v10559_v52 }
0x219c   :  { %7124 = vmatpush3.bf16.msra.mxu1 %v9863_v37 }
0x219d   :  { %7125 = vmatprep.subr.bf16.mxu1 %v10559_v52 }
0x21a0   :  { %7126 = vmatpush3.bf16.msra.mxu1 %v9872_v22 }
0x21a1   :  { %7127 = vmatprep.subr.bf16.mxu1 %v10559_v52 }
0x21a4   :  { %7128 = vmatpush3.bf16.msra.mxu1 %v9881_v18 }
0x21a5   :  { %7129 = vmatprep.subr.bf16.mxu1 %v10559_v52 }
0x21a8   :  { %7130 = vmatpush3.bf16.msra.mxu1 %v9890_v20 }
0x21a9   :  { %7131 = vmatprep.subr.bf16.mxu1 %v10559_v52 }
0x21ac   :  { %7132 = vmatpush3.bf16.msra.mxu1 %v9902_v38 }
0x21ad   :  { %5333 = vmatprep.subr.bf16.mxu1 %v10172_v42 }
0x224f   :  { %v5163_v61 = vpop.f32.mrf.mxu1 }
0x2250   :  { %v5164_v17 = vadd.f32 %v5163_v61, %v9850_v60  ;;  %v10280_v61 = vld [vmem:[%s10546_s8 + $0xf4] ss:$8 sps:$4 sm:$0xff]  }
0x2251   :  { %v5165_v40 = vpop.f32.mrf.mxu1 }
0x2252   :  { %v5170_v31 = vmul.f32 0.5, %v5164_v17  ;;  %v5166_v4 = vadd.f32 %v5165_v40, %v9854_v13  ;;  %v10286_v17 = vld [vmem:[%s10546_s8 + $0xf0] ss:$8 sps:$4 sm:$0xff]   ;;  %v10292_v40 = vld [vmem:[%s10546_s8 + $0xe4] ss:$8 sps:$4 sm:$0xff]  }
0x2253   :  { %v5167_v9 = vpop.f32.mrf.mxu1 }
0x2254   :  { %7418 = vtanh.f32 %v5170_v31  ;;  %v5174_v54 = vmul.f32 0.5, %v5166_v4  ;;  %v10298_v31 = vld [vmem:[%s10546_s8 + $0xe0] ss:$8 sps:$4 sm:$0xff]  }
0x2255   :  { %v5168_v3 = vpop.f32.mrf.mxu1 }
0x2256   :  { %v5175_v28 = vsel %vm3373_vm3, %v5166_v4, %v5174_v54  ;;  %v10304_v4 = vld [vmem:[%s10546_s8 + $0xd4] ss:$8 sps:$4 sm:$0xff]  }
0x2257   :  { %7420 = vtanh.f32 %v5175_v28 }
0x2261   :  { %v7419_v15 = vpop.eup %7418 }
0x2262   :  { %v5172_v19 = vadd.f32 1.0, %v7419_v15 }
0x2264   :  { %v7421_v36 = vpop.eup %7420  ;;  %v5173_v59 = vmul.f32 0.5, %v5172_v19 }
0x2265   :  { %v5177_v14 = vadd.f32 1.0, %v7421_v36 }
0x2266   :  { %5180 = vrot.lane.b32.xlu0 %v5173_v59, %s7503_s7 }
0x2267   :  { %v5178_v55 = vmul.f32 0.5, %v5177_v14 }
0x2269   :  { %v5179_v43 = vsel %vm3373_vm3, %v7421_v36, %v5178_v55 }
0x226a   :  { %5185 = vrot.lane.b32.xlu1 %v5179_v43, %s7503_s7  ;;  %v5183_v2 = vmul.f32 %v5179_v43, %v5173_v59  ;;  %v10376_v43 = vld [vmem:[%s10546_s8 + $0xd0] ss:$8 sps:$4 sm:$0xff]  }
0x22d8   :  { %v5181_v57 = vpop.permute.xlu0 %5180 }
0x22d9   :  { %v5182_v23 = vmul.f32 %v5181_v57, %v10113_v21  ;;  %v10214_v21 = vld [vmem:[%s10546_s8 + $0x50] ss:$8 sps:$4 sm:$0xff]   ;;  %v10388_v57 = vld [vmem:[%s10546_s8 + $0xc0] ss:$8 sps:$4 sm:$0xff]  }
0x22db   :  { %v10184_v5 = vadd.f32 %v5183_v2, %v5182_v23  ;;  %v10382_v2 = vld [vmem:[%s10546_s8 + $0xc4] ss:$8 sps:$4 sm:$0xff]   ;;  %v10394_v23 = vld [vmem:[%s10546_s8 + $0xb4] ss:$8 sps:$4 sm:$0xff]  }
0x22dc   :  { %v5186_v62 = vpop.permute.xlu1 %5185 }
0x22dd   :  { %7422 = vtanh.f32 %v10184_v5 }
0x22ea   :  { %v7423_v56 = vpop.eup %7422 }
0x22eb   :  { %v5188_v35 = vmul.f32 %v7423_v56, %v5186_v62  ;;  %v10406_v56 = vld [vmem:[%s10546_s8 + $0xa4] ss:$8 sps:$4 sm:$0xff]   ;;  %v10412_v62 = vld [vmem:[%s10546_s8 + $0xa0] ss:$8 sps:$4 sm:$0xff]  }
0x22ed   :  { %v5189_v30 = vpack.c.bf16 %v5188_v35, %v5188_v35  ;;  %v10418_v35 = vld [vmem:[%s10546_s8 + $0x94] ss:$8 sps:$4 sm:$0xff]  }
0x22ef   :  { %7114 = vmatmul.mubr.bf16.vlgmr.msra.gmra.mxu0 %v5189_v30 }
0x22f0   :  { %5263 = vmatprep.mubr.bf16.mxu0 %v5189_v30  ;;  %5232 = vmatpush1.bf16.msra.mxu0 %v10190_v29  ;;  %v10424_v30 = vld [vmem:[%s10546_s8 + $0x90] ss:$8 sps:$4 sm:$0xff]  }
0x22f1   :  { %5233 = vmatprep.subr.bf16.mxu0 %v10196_v63 }
0x22f4   :  { %5234 = vmatpush1.bf16.msra.mxu0 %v10202_v58 }
0x22f5   :  { %5235 = vmatprep.subr.bf16.mxu0 %v10208_v16 }
0x22f8   :  { %5236 = vmatpush1.bf16.msra.mxu0 %v10214_v21 }
0x22f9   :  { %5237 = vmatprep.subr.bf16.mxu0 %v10220_v27 }
0x22fc   :  { %5238 = vmatpush1.bf16.msra.mxu0 %v10226_v50 }
0x22fd   :  { %5239 = vmatprep.subr.bf16.mxu0 %v10232_v45 }
0x2300   :  { %5240 = vmatpush1.bf16.msra.mxu0 %v10238_v12 }
0x2301   :  { %5241 = vmatprep.subr.bf16.mxu0 %v10244_v33 }
0x2304   :  { %5242 = vmatpush1.bf16.msra.mxu0 %v10250_v25 }
0x2305   :  { %5243 = vmatprep.subr.bf16.mxu0 %v10256_v1 }
0x2308   :  { %5244 = vmatpush1.bf16.msra.mxu0 %v10262_v11 }
0x2309   :  { %5245 = vmatprep.subr.bf16.mxu0 %v10268_v8 }
0x230c   :  { %5246 = vmatpush1.bf16.msra.mxu0 %v10274_v39 }
0x230d   :  { %5247 = vmatprep.subr.bf16.mxu0 %v10280_v61 }
0x2310   :  { %5248 = vmatpush2.bf16.msra.mxu0 %v10286_v17 }
0x2311   :  { %5249 = vmatprep.subr.bf16.mxu0 %v10292_v40 }
0x2314   :  { %5250 = vmatpush2.bf16.msra.mxu0 %v10298_v31 }
0x2315   :  { %5251 = vmatprep.subr.bf16.mxu0 %v10304_v4 }
0x2318   :  { %5252 = vmatpush2.bf16.msra.mxu0 %v9743_v49 }
0x2319   :  { %5253 = vmatprep.subr.bf16.mxu0 %v9749_v6 }
0x231c   :  { %5254 = vmatpush2.bf16.msra.mxu0 %v9754_v48 }
0x231d   :  { %5255 = vmatprep.subr.bf16.mxu0 %v9761_v24 }
0x2320   :  { %5256 = vmatpush2.bf16.msra.mxu0 %v9766_v41 }
0x2321   :  { %5257 = vmatprep.subr.bf16.mxu0 %v9773_v51 }
0x2324   :  { %5258 = vmatpush2.bf16.msra.mxu0 %v9778_v53 }
0x2325   :  { %5259 = vmatprep.subr.bf16.mxu0 %v9786_v26 }
0x2328   :  { %5260 = vmatpush2.bf16.msra.mxu0 %v9791_v10 }
0x2329   :  { %5261 = vmatprep.subr.bf16.mxu0 %v9801_v34 }
0x232c   :  { %5262 = vmatpush2.bf16.msra.mxu0 %v9806_v32 }
0x232d   :  { %7137 = vmatprep.subr.bf16.mxu0 %v10559_v52 }
0x23af   :  { %v5224_v49 = vpop.f32.mrf.mxu0 }
0x23b0   :  { %v5225_v6 = vadd.f32 %v9948_v7, %v5224_v49  ;;  %v10430_v49 = vld [vmem:[%s10546_s8 + $0x84] ss:$8 sps:$4 sm:$0xff]  }
0x23b1   :  { %v7115_v48 = vpop.f32.mrf.mxu0 }
0x23b2   :  { %v5230_v24 = vpack.c.bf16 %v5225_v6, %v5225_v6  ;;  %5540 = vst [vmem:[%s10550_s12 + $0x20] sm:$0xff] %v5225_v6  ;;  %v10436_v6 = vld [vmem:[%s10546_s8 + $0x80] ss:$8 sps:$4 sm:$0xff]  }
0x23b3   :  { %v5227_v41 = vpop.f32.mrf.mxu0 }
0x23b4   :  { %5264 = vmatmul.mubr.bf16.vlgmr.msra.gmra.mxu0 %v5230_v24 }
0x23b5   :  { %v7116_v51 = vpop.f32.mrf.mxu0  ;;  %7138 = vmatpush3.bf16.msra.mxu0 %v9821_v0  ;;  %7153 = vmatprep.mubr.msk.bf16.mxu0 %vm7500_vm0, %v10559_v52 }
0x23b6   :  { %7139 = vmatprep.subr.bf16.mxu0 %v10559_v52 }
0x23b9   :  { %7140 = vmatpush3.bf16.msra.mxu0 %v9827_v46 }
0x23ba   :  { %7141 = vmatprep.subr.bf16.mxu0 %v10559_v52 }
0x23bd   :  { %7142 = vmatpush3.bf16.msra.mxu0 %v9836_v47 }
0x23be   :  { %7143 = vmatprep.subr.bf16.mxu0 %v10559_v52 }
0x23c1   :  { %7144 = vmatpush3.bf16.msra.mxu0 %v9863_v37 }
0x23c2   :  { %7145 = vmatprep.subr.bf16.mxu0 %v10559_v52 }
0x23c5   :  { %7146 = vmatpush3.bf16.msra.mxu0 %v9872_v22 }
0x23c6   :  { %7147 = vmatprep.subr.bf16.mxu0 %v10559_v52 }
0x23c9   :  { %7148 = vmatpush3.bf16.msra.mxu0 %v9881_v18 }
0x23ca   :  { %7149 = vmatprep.subr.bf16.mxu0 %v10559_v52 }
0x23cd   :  { %7150 = vmatpush3.bf16.msra.mxu0 %v9890_v20 }
0x23ce   :  { %7151 = vmatprep.subr.bf16.mxu0 %v10559_v52 }
0x23d1   :  { %7152 = vmatpush3.bf16.msra.mxu0 %v9902_v38 }
0x23d2   :  { %5435 = vmatprep.subr.bf16.mxu0 %v10172_v42 }
0x2474   :  { %v5265_v53 = vpop.f32.mrf.mxu0 }
0x2475   :  { %v5266_v26 = vadd.f32 %v5265_v53, %v9850_v60 }
0x2476   :  { %v5267_v10 = vpop.f32.mrf.mxu0 }
0x2477   :  { %v5272_v34 = vmul.f32 0.5, %v5266_v26  ;;  %v5268_v32 = vadd.f32 %v5267_v10, %v9854_v13  ;;  %v7490_v10 = vld [vmem:[%s10547_s10 + $0x38] sm:$0xff]  }
0x2478   :  { %v5269_v0 = vpop.f32.mrf.mxu0 }
0x2479   :  { %7424 = vtanh.f32 %v5272_v34  ;;  %v5276_v46 = vmul.f32 0.5, %v5268_v32  ;;  %v7492_v34 = vld [vmem:[%s10547_s10 + $0x28] sm:$0xff]   ;;  %v7494_v0 = vld [vmem:[%s10547_s10 + $0x18] sm:$0xff]  }
0x247a   :  { %v5270_v47 = vpop.f32.mrf.mxu0 }
0x247b   :  { %v5277_v37 = vsel %vm3373_vm3, %v5268_v32, %v5276_v46  ;;  %v7493_v32 = vld [vmem:[%s10547_s10 + $0x20] sm:$0xff]   ;;  %v7495_v46 = vld [vmem:[%s10547_s10 + $0x10] sm:$0xff]   ;;  %v7496_v47 = vld [vmem:[%s10547_s10 + $0x8] sm:$0xff]  }
0x247c   :  { %7426 = vtanh.f32 %v5277_v37  ;;  %v7497_v37 = vld [vmem:[%s10547_s10] sm:$0xff]  }
0x2486   :  { %v7425_v22 = vpop.eup %7424 }
0x2487   :  { %v5274_v18 = vadd.f32 1.0, %v7425_v22 }
0x2489   :  { %v7427_v20 = vpop.eup %7426  ;;  %v5275_v38 = vmul.f32 0.5, %v5274_v18 }
0x248a   :  { %v5279_v42 = vadd.f32 1.0, %v7427_v20 }
0x248b   :  { %5282 = vrot.lane.b32.xlu0 %v5275_v38, %s7503_s7 }
0x248c   :  { %v5280_v9 = vmul.f32 0.5, %v5279_v42 }
0x248e   :  { %v5281_v54 = vsel %vm3373_vm3, %v7427_v20, %v5280_v9 }
0x248f   :  { %5287 = vrot.lane.b32.xlu1 %v5281_v54, %s7503_s7  ;;  %v5285_v3 = vmul.f32 %v5281_v54, %v5275_v38 }
0x24fd   :  { %v5283_v28 = vpop.permute.xlu0 %5282 }
0x24fe   :  { %v5284_v15 = vmul.f32 %v5283_v28, %v10184_v5  ;;  %v10400_v5 = vld [vmem:[%s10546_s8 + $0xb0] ss:$8 sps:$4 sm:$0xff]  }
0x2500   :  { %v10350_v19 = vadd.f32 %v5285_v3, %v5284_v15 }
0x2501   :  { %v5288_v59 = vpop.permute.xlu1 %5287 }
0x2502   :  { %7428 = vtanh.f32 %v10350_v19 }
0x250f   :  { %v7429_v36 = vpop.eup %7428 }
0x2510   :  { %v5290_v14 = vmul.f32 %v7429_v36, %v5288_v59 }
0x2512   :  { %v5291_v55 = vpack.c.bf16 %v5290_v14, %v5290_v14 }
0x2514   :  { %7134 = vmatmul.mubr.bf16.vlgmr.msra.gmra.mxu1 %v5291_v55 }
0x2515   :  { %5365 = vmatprep.mubr.bf16.mxu1 %v5291_v55  ;;  %5334 = vmatpush1.bf16.msra.mxu1 %v10190_v29 }
0x2516   :  { %5335 = vmatprep.subr.bf16.mxu1 %v10196_v63 }
0x2519   :  { %5336 = vmatpush1.bf16.msra.mxu1 %v10202_v58 }
0x251a   :  { %5337 = vmatprep.subr.bf16.mxu1 %v10208_v16 }
0x251d   :  { %5338 = vmatpush1.bf16.msra.mxu1 %v10214_v21 }
0x251e   :  { %5339 = vmatprep.subr.bf16.mxu1 %v10220_v27 }
0x2521   :  { %5340 = vmatpush1.bf16.msra.mxu1 %v10226_v50 }
0x2522   :  { %5341 = vmatprep.subr.bf16.mxu1 %v10232_v45 }
0x2525   :  { %5342 = vmatpush1.bf16.msra.mxu1 %v10238_v12 }
0x2526   :  { %5343 = vmatprep.subr.bf16.mxu1 %v10244_v33 }
0x2529   :  { %5344 = vmatpush1.bf16.msra.mxu1 %v10250_v25 }
0x252a   :  { %5345 = vmatprep.subr.bf16.mxu1 %v10256_v1 }
0x252d   :  { %5346 = vmatpush1.bf16.msra.mxu1 %v10262_v11 }
0x252e   :  { %5347 = vmatprep.subr.bf16.mxu1 %v10268_v8 }
0x2531   :  { %5348 = vmatpush1.bf16.msra.mxu1 %v10274_v39 }
0x2532   :  { %5349 = vmatprep.subr.bf16.mxu1 %v10280_v61 }
0x2535   :  { %5350 = vmatpush2.bf16.msra.mxu1 %v10286_v17 }
0x2536   :  { %5351 = vmatprep.subr.bf16.mxu1 %v10292_v40 }
0x2539   :  { %5352 = vmatpush2.bf16.msra.mxu1 %v10298_v31 }
0x253a   :  { %5353 = vmatprep.subr.bf16.mxu1 %v10304_v4 }
0x253d   :  { %5354 = vmatpush2.bf16.msra.mxu1 %v10376_v43 }
0x253e   :  { %5355 = vmatprep.subr.bf16.mxu1 %v10382_v2 }
0x2541   :  { %5356 = vmatpush2.bf16.msra.mxu1 %v10388_v57 }
0x2542   :  { %5357 = vmatprep.subr.bf16.mxu1 %v10394_v23 }
0x2545   :  { %5358 = vmatpush2.bf16.msra.mxu1 %v10400_v5 }
0x2546   :  { %5359 = vmatprep.subr.bf16.mxu1 %v10406_v56 }
0x2549   :  { %5360 = vmatpush2.bf16.msra.mxu1 %v10412_v62 }
0x254a   :  { %5361 = vmatprep.subr.bf16.mxu1 %v10418_v35 }
0x254d   :  { %5362 = vmatpush2.bf16.msra.mxu1 %v10424_v30 }
0x254e   :  { %5363 = vmatprep.subr.bf16.mxu1 %v10430_v49 }
0x2551   :  { %5364 = vmatpush2.bf16.msra.mxu1 %v10436_v6 }
0x2552   :  { %7157 = vmatprep.subr.bf16.mxu1 %v10559_v52 }
0x25d4   :  { %v5326_v48 = vpop.f32.mrf.mxu1 }
0x25d5   :  { %v5327_v24 = vadd.f32 %v9948_v7, %v5326_v48  ;;  %v7491_v7 = vld [vmem:[%s10547_s10 + $0x30] sm:$0xff]  }
0x25d6   :  { %v7135_v41 = vpop.f32.mrf.mxu1 }
0x25d7   :  { %v5332_v51 = vpack.c.bf16 %v5327_v24, %v5327_v24  ;;  %5541 = vst [vmem:[%s10550_s12 + $0x28] sm:$0xff] %v5327_v24 }
0x25d8   :  { %v5329_v53 = vpop.f32.mrf.mxu1 }
0x25d9   :  { %5366 = vmatmul.mubr.bf16.vlgmr.msra.gmra.mxu1 %v5332_v51 }
0x25da   :  { %v7136_v26 = vpop.f32.mrf.mxu1  ;;  %7158 = vmatpush3.bf16.msra.mxu1 %v7490_v10  ;;  %7173 = vmatprep.mubr.msk.bf16.mxu1 %vm7500_vm0, %v10559_v52 }
0x25db   :  { %7159 = vmatprep.subr.bf16.mxu1 %v10559_v52 }
0x25de   :  { %7160 = vmatpush3.bf16.msra.mxu1 %v7491_v7 }
0x25df   :  { %7161 = vmatprep.subr.bf16.mxu1 %v10559_v52 }
0x25e2   :  { %7162 = vmatpush3.bf16.msra.mxu1 %v7492_v34 }
0x25e3   :  { %7163 = vmatprep.subr.bf16.mxu1 %v10559_v52 }
0x25e6   :  { %7164 = vmatpush3.bf16.msra.mxu1 %v7493_v32 }
0x25e7   :  { %7165 = vmatprep.subr.bf16.mxu1 %v10559_v52 }
0x25ea   :  { %7166 = vmatpush3.bf16.msra.mxu1 %v7494_v0 }
0x25eb   :  { %7167 = vmatprep.subr.bf16.mxu1 %v10559_v52 }
0x25ee   :  { %7168 = vmatpush3.bf16.msra.mxu1 %v7495_v46 }
0x25ef   :  { %7169 = vmatprep.subr.bf16.mxu1 %v10559_v52 }
0x25f2   :  { %7170 = vmatpush3.bf16.msra.mxu1 %v7496_v47 }
0x25f3   :  { %7171 = vmatprep.subr.bf16.mxu1 %v10559_v52 }
0x25f6   :  { %7172 = vmatpush3.bf16.msra.mxu1 %v7497_v37 }
0x2699   :  { %v5367_v22 = vpop.f32.mrf.mxu1 }
0x269a   :  { %v5368_v18 = vadd.f32 %v5367_v22, %v9850_v60 }
0x269b   :  { %v5369_v20 = vpop.f32.mrf.mxu1 }
0x269c   :  { %v5374_v38 = vmul.f32 0.5, %v5368_v18  ;;  %v5370_v42 = vadd.f32 %v5369_v20, %v9854_v13 }
0x269d   :  { %v5371_v9 = vpop.f32.mrf.mxu1 }
0x269e   :  { %7430 = vtanh.f32 %v5374_v38  ;;  %v5378_v54 = vmul.f32 0.5, %v5370_v42 }
0x269f   :  { %v5372_v3 = vpop.f32.mrf.mxu1 }
0x26a0   :  { %v5379_v28 = vsel %vm3373_vm3, %v5370_v42, %v5378_v54 }
0x26a1   :  { %7432 = vtanh.f32 %v5379_v28 }
0x26ab   :  { %v7431_v52 = vpop.eup %7430 }
0x26ac   :  { %v5376_v15 = vadd.f32 1.0, %v7431_v52 }
0x26ae   :  { %v7433_v36 = vpop.eup %7432  ;;  %v5377_v59 = vmul.f32 0.5, %v5376_v15 }
0x26af   :  { %v5381_v14 = vadd.f32 1.0, %v7433_v36 }
0x26b0   :  { %5384 = vrot.lane.b32.xlu0 %v5377_v59, %s7503_s7 }
0x26b1   :  { %v5382_v55 = vmul.f32 0.5, %v5381_v14 }
0x26b3   :  { %v5383_v48 = vsel %vm3373_vm3, %v7433_v36, %v5382_v55 }
0x26b4   :  { %5389 = vrot.lane.b32.xlu1 %v5383_v48, %s7503_s7  ;;  %v5387_v24 = vmul.f32 %v5383_v48, %v5377_v59 }
0x2722   :  { %v5385_v41 = vpop.permute.xlu0 %5384 }
0x2723   :  { %v5386_v51 = vmul.f32 %v5385_v41, %v10350_v19 }
0x2725   :  { %v10486_v53 = vadd.f32 %v5387_v24, %v5386_v51 }
0x2726   :  { %v5390_v10 = vpop.permute.xlu1 %5389 }
0x2727   :  { %7434 = vtanh.f32 %v10486_v53 }
0x2734   :  { %v7435_v26 = vpop.eup %7434 }
0x2735   :  { %v5392_v7 = vmul.f32 %v7435_v26, %v5390_v10 }
0x2737   :  { %v5393_v34 = vpack.c.bf16 %v5392_v7, %v5392_v7 }
0x2739   :  { %7154 = vmatmul.mubr.bf16.vlgmr.msra.gmra.mxu0 %v5393_v34 }
0x273a   :  { %5467 = vmatprep.mubr.bf16.mxu0 %v5393_v34  ;;  %5436 = vmatpush1.bf16.msra.mxu0 %v10190_v29 }
0x273b   :  { %5437 = vmatprep.subr.bf16.mxu0 %v10196_v63  ;;  %v7498_v63 = vld [vmem:[%s10549_s11] ss:$0 sm:$0xff] }
0x273e   :  { %5438 = vmatpush1.bf16.msra.mxu0 %v10202_v58 }
0x273f   :  { %5439 = vmatprep.subr.bf16.mxu0 %v10208_v16 }
0x2742   :  { %5440 = vmatpush1.bf16.msra.mxu0 %v10214_v21 }
0x2743   :  { %5441 = vmatprep.subr.bf16.mxu0 %v10220_v27 }
0x2746   :  { %5442 = vmatpush1.bf16.msra.mxu0 %v10226_v50 }
0x2747   :  { %5443 = vmatprep.subr.bf16.mxu0 %v10232_v45 }
0x274a   :  { %5444 = vmatpush1.bf16.msra.mxu0 %v10238_v12 }
0x274b   :  { %5445 = vmatprep.subr.bf16.mxu0 %v10244_v33 }
0x274e   :  { %5446 = vmatpush1.bf16.msra.mxu0 %v10250_v25 }
0x274f   :  { %5447 = vmatprep.subr.bf16.mxu0 %v10256_v1 }
0x2752   :  { %5448 = vmatpush1.bf16.msra.mxu0 %v10262_v11 }
0x2753   :  { %5449 = vmatprep.subr.bf16.mxu0 %v10268_v8 }
0x2756   :  { %5450 = vmatpush1.bf16.msra.mxu0 %v10274_v39 }
0x2757   :  { %5451 = vmatprep.subr.bf16.mxu0 %v10280_v61 }
0x275a   :  { %5452 = vmatpush2.bf16.msra.mxu0 %v10286_v17 }
0x275b   :  { %5453 = vmatprep.subr.bf16.mxu0 %v10292_v40 }
0x275e   :  { %5454 = vmatpush2.bf16.msra.mxu0 %v10298_v31 }
0x275f   :  { %5455 = vmatprep.subr.bf16.mxu0 %v10304_v4 }
0x2762   :  { %5456 = vmatpush2.bf16.msra.mxu0 %v10376_v43 }
0x2763   :  { %5457 = vmatprep.subr.bf16.mxu0 %v10382_v2 }
0x2766   :  { %5458 = vmatpush2.bf16.msra.mxu0 %v10388_v57 }
0x2767   :  { %5459 = vmatprep.subr.bf16.mxu0 %v10394_v23 }
0x276a   :  { %5460 = vmatpush2.bf16.msra.mxu0 %v10400_v5 }
0x276b   :  { %5461 = vmatprep.subr.bf16.mxu0 %v10406_v56 }
0x276e   :  { %5462 = vmatpush2.bf16.msra.mxu0 %v10412_v62 }
0x276f   :  { %5463 = vmatprep.subr.bf16.mxu0 %v10418_v35 }
0x2772   :  { %5464 = vmatpush2.bf16.msra.mxu0 %v10424_v30 }
0x2773   :  { %5465 = vmatprep.subr.bf16.mxu0 %v10430_v49 }
0x2776   :  { %5466 = vmatpush2.bf16.msra.mxu0 %v10436_v6 }
0x27f9   :  { %v5428_v29 = vpop.f32.mrf.mxu0 }
0x27fa   :  { %v5429_v58 = vadd.f32 %v7498_v63, %v5428_v29 }
0x27fb   :  { %v7155_v16 = vpop.f32.mrf.mxu0 }
0x27fc   :  { %v5434_v21 = vpack.c.bf16 %v5429_v58, %v5429_v58  ;;  %5542 = vst [vmem:[%s10550_s12 + $0x30] sm:$0xff] %v5429_v58 }
0x27fd   :  { %v5431_v27 = vpop.f32.mrf.mxu0 }
0x27fe   :  { %5468 = vmatmul.mubr.bf16.vlgmr.msra.gmra.mxu0 %v5434_v21 }
0x27ff   :  { %v7156_v50 = vpop.f32.mrf.mxu0 }
0x28be   :  { %v5469_v45 = vpop.f32.mrf.mxu0 }
0x28bf   :  { %v5470_v12 = vadd.f32 %v5469_v45, %v9850_v60 }
0x28c0   :  { %v5471_v33 = vpop.f32.mrf.mxu0 }
0x28c1   :  { %v5476_v25 = vmul.f32 0.5, %v5470_v12  ;;  %v5472_v1 = vadd.f32 %v5471_v33, %v9854_v13 }
0x28c2   :  { %v5473_v11 = vpop.f32.mrf.mxu0 }
0x28c3   :  { %7436 = vtanh.f32 %v5476_v25  ;;  %v5480_v8 = vmul.f32 0.5, %v5472_v1 }
0x28c4   :  { %v5474_v39 = vpop.f32.mrf.mxu0 }
0x28c5   :  { %v5481_v61 = vsel %vm3373_vm3, %v5472_v1, %v5480_v8 }
0x28c6   :  { %7438 = vtanh.f32 %v5481_v61 }
0x28d0   :  { %v7437_v17 = vpop.eup %7436 }
0x28d1   :  { %v5478_v40 = vadd.f32 1.0, %v7437_v17 }
0x28d3   :  { %v7439_v31 = vpop.eup %7438  ;;  %v5479_v4 = vmul.f32 0.5, %v5478_v40 }
0x28d4   :  { %v5483_v19 = vadd.f32 1.0, %v7439_v31 }
0x28d5   :  { %5486 = vrot.lane.b32.xlu0 %v5479_v4, %s7503_s7 }
0x28d6   :  { %v5484_v60 = vmul.f32 0.5, %v5483_v19 }
0x28d8   :  { %v5485_v43 = vsel %vm3373_vm3, %v7439_v31, %v5484_v60 }
0x28d9   :  { %5491 = vrot.lane.b32.xlu1 %v5485_v43, %s7503_s7  ;;  %v5489_v13 = vmul.f32 %v5485_v43, %v5479_v4 }
0x2947   :  { %v5487_v2 = vpop.permute.xlu0 %5486 }
0x2948   :  { %v5488_v57 = vmul.f32 %v5487_v2, %v10486_v53 }
0x294a   :  { %v5490_v23 = vadd.f32 %v5489_v13, %v5488_v57 }
0x294b   :  { %v5492_v56 = vpop.permute.xlu1 %5491 }
0x294c   :  { %7440 = vtanh.f32 %v5490_v23 }
0x2959   :  { %v7441_v5 = vpop.eup %7440 }
0x295a   :  { %v5494_v62 = vmul.f32 %v7441_v5, %v5492_v56 }
0x295c   :  { %v5495_v35 = vpack.c.bf16 %v5494_v62, %v5494_v62 }
0x295e   :  { %7174 = vmatmul.mubr.bf16.vlgmr.msra.gmra.mxu1 %v5495_v35 }
0x2a1e   :  { %v5530_v30 = vpop.f32.mrf.mxu1 }
0x2a1f   :  { %v5531_v49 = vadd.f32 %v7498_v63, %v5530_v30 }
0x2a20   :  { %v7175_v6 = vpop.f32.mrf.mxu1 }
0x2a21   :  { %5543 = vst [vmem:[%s10550_s12 + $0x38] sm:$0xff] %v5531_v49 }
0x2a22   :  { %v5533_v44 = vpop.f32.mrf.mxu1 }
0x2a24   :  { %v7176_v32 = vpop.f32.mrf.mxu1 }

</bundles_post_ra>
